<compile_context>
chip_gen: v7x
topology: tpu7x:2x2x1
jax: 0.10.0
libtpu: 0.0.40
codegen_flags: <defaults>
</compile_context>

<pallas_src>
import functools
import math

import numpy as np

import jax
import jax.numpy as jnp
from jax.experimental import pallas as pl
from jax.experimental.pallas import tpu as pltpu


CONFIG = dict(
    trg_vocab=2,
    margin=0.5,
    file_word_vocab=50,
    patch_ab_vocab=50,
    patch_content_vocab=50,
    desc_vocab=50,
    title_vocab=50,
    d_word_dim=32,
    n_layers=1,
    n_heads=2,
    d_k=16,
    d_v=16,
    d_model=32,
    d_ffn=64,
    src_pad_idx=0,
    pad_size=8,
    file_word_pad_size=8,
    patch_ab_pad_size=8,
    patch_content_pad_size=8,
    desc_pad_size=8,
    title_pad_size=8,
)

MODALITIES = ("file_word", "patch_ab", "patch_content", "desc", "title")

_LN_EPS = 1e-5  # PyTorch nn.LayerNorm default

_VMEM = pl.BlockSpec(memory_space=pltpu.MemorySpace.VMEM)


# ----------------------------------------------------------------------------- kernel

def _ln(x, g, b, eps):
    mu = jnp.mean(x, axis=-1, keepdims=True)
    d = x - mu
    var = jnp.mean(d * d, axis=-1, keepdims=True)
    return d * jax.lax.rsqrt(var + eps) * g + b


def _joint_kernel(tok_col_ref, tok_bl_ref, emb_ref, pos_ref, ln0_ref,
                  wq_ref, wk_ref, wv_ref, bq_ref, bk_ref, bv_ref,
                  wo_ref, bo_ref, w1_ref, b1_ref, w2_ref, b2_ref, ln12_ref,
                  mask_ref, wwide_ref, ifold_ref, bfold_ref,
                  wj2_ref, bj2_ref, wj3_ref, bj3_ref,
                  o_ref, *, n_mod, n_layers, B, L, H, d_k, pad_idx, eps):
    """Whole JointEmbedder forward: 5 encoders + fused joint head, one invocation."""
    scale = 1.0 / math.sqrt(d_k)
    BL = B * L
    V = emb_ref.shape[1]
    d_joint = bfold_ref.shape[1]

    pos = pos_ref[...]                                     # (L, D)
    pos_bl = jnp.concatenate([pos] * B, axis=0)            # (B*L, D), hoisted

    h1 = jnp.zeros((B, d_joint), jnp.float32)              # joint fc1 pre-activation acc

    for m in range(n_mod):
        # ---- embedding gather (one-hot matmul), PE add, key-padding bias (all in-kernel)
        onehot = (jax.lax.broadcasted_iota(jnp.int32, (BL, V), 1)
                  == tok_col_ref[m]).astype(jnp.float32)                       # (B*L, V)
        x2 = jnp.dot(onehot, emb_ref[m], preferred_element_type=jnp.float32) + pos_bl
        bias = jnp.where(tok_bl_ref[m] != pad_idx, 0.0, -1e9).astype(jnp.float32)  # (B, L)
        ln0 = ln0_ref[m]
        x2 = _ln(x2, ln0[0:1, :], ln0[1:2, :], eps)                            # (B*L, D)

        for li in range(n_layers):
            # per-head Q/K/V: separate small matmuls -> no sub-vreg lane slicing
            q = [jnp.dot(x2, wq_ref[m, li, h], preferred_element_type=jnp.float32)
                 + bq_ref[m, li, h] for h in range(H)]
            k = [jnp.dot(x2, wk_ref[m, li, h], preferred_element_type=jnp.float32)
                 + bk_ref[m, li, h] for h in range(H)]
            v = [jnp.dot(x2, wv_ref[m, li, h], preferred_element_type=jnp.float32)
                 + bv_ref[m, li, h] for h in range(H)]

            rows = []
            for b in range(B):                             # batch row blocks are vreg-aligned
                bb = bias[b:b + 1, :]                      # (1, L) additive key mask
                acc = None
                for h in range(H):
                    qh = q[h][b * L:(b + 1) * L, :]
                    kh = k[h][b * L:(b + 1) * L, :]
                    vh = v[h][b * L:(b + 1) * L, :]
                    s = jax.lax.dot_general(qh, kh, (((1,), (1,)), ((), ())),
                                            preferred_element_type=jnp.float32) * scale + bb
                    s = s - jnp.max(s, axis=-1, keepdims=True)
                    p = jnp.exp(s)
                    p = p * pl.reciprocal(jnp.sum(p, axis=-1, keepdims=True))  # exact
                    ctx = jnp.dot(p, vh, preferred_element_type=jnp.float32)   # (L, dv)
                    # head-concat folded into the output projection (per-head Wo block)
                    proj = jnp.dot(ctx, wo_ref[m, li, h],
                                   preferred_element_type=jnp.float32)         # (L, D)
                    acc = proj if acc is None else acc + proj
                rows.append(acc)
            attn_out = jnp.concatenate(rows, axis=0) + bo_ref[m, li]           # (B*L, D)

            ln = ln12_ref[m, li]                           # (4, D): ln1_g, ln1_b, ln2_g, ln2_b
            x2 = _ln(x2 + attn_out, ln[0:1, :], ln[1:2, :], eps)

            hid = jnp.maximum(
                jnp.dot(x2, w1_ref[m, li], preferred_element_type=jnp.float32)
                + b1_ref[m, li], 0.0)
            ffn = jnp.dot(hid, w2_ref[m, li], preferred_element_type=jnp.float32) + b2_ref[m, li]
            x2 = _ln(x2 + ffn, ln[2:3, :], ln[3:4, :], eps)

        # ---- head contribution: flatten(B, L*D) @ (fc_w[m] @ W1_block[m]) without any
        #      in-kernel reshape:  wide matmul, position mask, identity-fold matmul.
        wide = jnp.dot(x2, wwide_ref[m],
                       preferred_element_type=jnp.float32) * mask_ref[...]     # (B*L, L*2D)
        per_b = [jnp.sum(wide[b * L:(b + 1) * L, :], axis=0, keepdims=True)
                 for b in range(B)]                                             # (1, L*2D)
        h1 = h1 + jnp.dot(jnp.concatenate(per_b, axis=0), ifold_ref[...],
                          preferred_element_type=jnp.float32)                   # (B, 2D)

    # ---- joint MLP head (dropout p=0.3 is identity in eval mode)
    hj = jnp.maximum(h1 + bfold_ref[...], 0.0)
    hj = jnp.maximum(jnp.dot(hj, wj2_ref[...], preferred_element_type=jnp.float32)
                     + bj2_ref[...], 0.0)
    o_ref[...] = jnp.dot(hj, wj3_ref[...], preferred_element_type=jnp.float32) + bj3_ref[...]


# ----------------------------------------------------------------------------- wrapper

def joint_embedder_forward(params, patch_ab, file_word, patch_content, desc, title, cfg):
    tokens = dict(file_word=file_word, patch_ab=patch_ab, patch_content=patch_content,
                  desc=desc, title=title)
    B, L = tokens[MODALITIES[0]].shape
    n_mod = len(MODALITIES)
    d_joint = 2 * cfg["d_model"]

    # only remaining glue: stack the token-id tensors (2 tiny int32 HLOs)
    tok_bl = jnp.stack([tokens[n].astype(jnp.int32) for n in MODALITIES], axis=0)  # (n_mod, B, L)
    tok_col = tok_bl.reshape(n_mod, B * L, 1)

    # constant position-selection mask for the in-kernel flatten (numpy -> baked constant)
    fold_mask = jnp.asarray(
        ((np.arange(B * L) % L)[:, None]
         == (np.arange(L * d_joint) // d_joint)[None, :]).astype(np.float32))      # (B*L, L*2D)

    kern = functools.partial(
        _joint_kernel, n_mod=n_mod, n_layers=cfg["n_layers"], B=B, L=L,
        H=cfg["n_heads"], d_k=cfg["d_k"], pad_idx=cfg["src_pad_idx"], eps=_LN_EPS)

    args = (tok_col, tok_bl, params["emb"], params["pos"], params["ln0"],
            params["wq"], params["wk"], params["wv"],
            params["bq"], params["bk"], params["bv"],
            params["wo"], params["bo"],
            params["w1"], params["b1"], params["w2"], params["b2"], params["ln12"],
            fold_mask, params["wwide"], params["ifold"], params["bfold"],
            params["wj2"], params["bj2"], params["wj3"], params["bj3"])

    return pl.pallas_call(
        kern,
        out_shape=jax.ShapeDtypeStruct((B, cfg["trg_vocab"]), jnp.float32),
        in_specs=[_VMEM] * len(args),
        out_specs=_VMEM,
    )(*args)


# ----------------------------------------------------------------------------- init

def sinusoid_pos(L, D):
    pos = jnp.arange(L, dtype=jnp.float32)[:, None]
    i = jnp.arange(D, dtype=jnp.float32)[None, :]
    angle = pos / jnp.power(10000.0, (2.0 * jnp.floor(i / 2.0)) / float(D))
    even = (jnp.arange(D)[None, :] % 2) == 0
    return jnp.where(even, jnp.sin(angle), jnp.cos(angle)).astype(jnp.float32)


def xavier(key, shape):
    fan_in, fan_out = shape[0], shape[1]
    limit = math.sqrt(6.0 / (fan_in + fan_out))
    return jax.random.uniform(key, shape, jnp.float32, -limit, limit)


def init_params(key, cfg):
    assert cfg["d_word_dim"] == cfg["d_model"]
    D, H, dk, dv, F = cfg["d_model"], cfg["n_heads"], cfg["d_k"], cfg["d_v"], cfg["d_ffn"]
    nL = cfg["n_layers"]
    n_mod = len(MODALITIES)
    d_joint = 2 * D

    pad_sizes = [cfg[n + "_pad_size"] for n in MODALITIES]
    assert len(set(pad_sizes)) == 1, "fused kernel assumes equal pad sizes"
    L = pad_sizes[0]
    vocabs = [cfg[n + "_vocab"] for n in MODALITIES]
    assert len(set(vocabs)) == 1, "fused kernel stacks the embedding tables"
    V = vocabs[0]

    keys = iter(list(jax.random.split(key, n_mod * (2 + 6 * nL) + 3)))
    ones_d = jnp.ones((D,), jnp.float32)
    zeros_d = jnp.zeros((D,), jnp.float32)

    emb, ln0, ln12 = [], [], []
    wq, wk, wv, wo, w1, w2 = ([] for _ in range(6))
    fc_w, fc_b = [], []
    for _ in MODALITIES:
        emb.append(xavier(next(keys), (V, D)).at[cfg["src_pad_idx"]].set(0.0))
        ln0.append(jnp.stack([ones_d, zeros_d]))
        lwq, lwk, lwv, lwo, lw1, lw2, lln = ([] for _ in range(7))
        for _ in range(nL):
            lwq.append(xavier(next(keys), (D, H * dk)).reshape(D, H, dk).transpose(1, 0, 2))
            lwk.append(xavier(next(keys), (D, H * dk)).reshape(D, H, dk).transpose(1, 0, 2))
            lwv.append(xavier(next(keys), (D, H * dv)).reshape(D, H, dv).transpose(1, 0, 2))
            lwo.append(xavier(next(keys), (H * dv, D)).reshape(H, dv, D))
            lw1.append(xavier(next(keys), (D, F)))
            lw2.append(xavier(next(keys), (F, D)))
            lln.append(jnp.stack([ones_d, zeros_d, ones_d, zeros_d]))
        wq.append(jnp.stack(lwq)); wk.append(jnp.stack(lwk)); wv.append(jnp.stack(lwv))
        wo.append(jnp.stack(lwo)); w1.append(jnp.stack(lw1)); w2.append(jnp.stack(lw2))
        ln12.append(jnp.stack(lln))
        fc_w.append(xavier(next(keys), (L * D, D)))
        fc_b.append(jnp.zeros((1, D), jnp.float32))

    jw1 = xavier(next(keys), (D * n_mod, d_joint))
    jb1 = jnp.zeros((1, d_joint), jnp.float32)
    jw2 = xavier(next(keys), (d_joint, d_joint))
    jb2 = jnp.zeros((1, d_joint), jnp.float32)
    jw3 = xavier(next(keys), (d_joint, cfg["trg_vocab"]))
    jb3 = jnp.zeros((1, cfg["trg_vocab"]), jnp.float32)

    # Eval-mode fold: per-modality FC + lane concat + joint_fc1 -> one wide weight per
    # modality, laid out (D, L*2D) so the kernel never flattens/reshapes activations.
    wwide, bfold = [], jb1
    for m in range(n_mod):
        w1_blk = jw1[m * D:(m + 1) * D, :]                              # (D, 2D)
        wf = fc_w[m] @ w1_blk                                           # (L*D, 2D)
        wwide.append(wf.reshape(L, D, d_joint).transpose(1, 0, 2).reshape(D, L * d_joint))
        bfold = bfold + fc_b[m] @ w1_blk

    # constant identity-fold matrix that sums the L per-position output blocks
    ifold = jnp.asarray(
        (np.arange(L * d_joint)[:, None] % d_joint
         == np.arange(d_joint)[None, :]).astype(np.float32))            # (L*2D, 2D)

    return {
        "emb": jnp.stack(emb),                                  # (n_mod, V, D)
        "pos": sinusoid_pos(L, D),                              # (L, D)
        "ln0": jnp.stack(ln0),                                  # (n_mod, 2, D)
        "wq": jnp.stack(wq), "wk": jnp.stack(wk), "wv": jnp.stack(wv),   # (n_mod, nL, H, D, dk)
        "bq": jnp.zeros((n_mod, nL, H, 1, dk), jnp.float32),
        "bk": jnp.zeros((n_mod, nL, H, 1, dk), jnp.float32),
        "bv": jnp.zeros((n_mod, nL, H, 1, dv), jnp.float32),
        "wo": jnp.stack(wo),                                    # (n_mod, nL, H, dv, D)
        "bo": jnp.zeros((n_mod, nL, 1, D), jnp.float32),
        "w1": jnp.stack(w1), "b1": jnp.zeros((n_mod, nL, 1, F), jnp.float32),
        "w2": jnp.stack(w2), "b2": jnp.zeros((n_mod, nL, 1, D), jnp.float32),
        "ln12": jnp.stack(ln12),                                # (n_mod, nL, 4, D)
        "wwide": jnp.stack(wwide),                              # (n_mod, D, L*2D)
        "ifold": ifold,                                         # (L*2D, 2D)
        "bfold": bfold,                                         # (1, 2D)
        "wj2": jw2, "bj2": jb2, "wj3": jw3, "bj3": jb3,
    }


# ----------------------------------------------------------------------------- main

if __name__ == "__main__":
    cfg = CONFIG
    B = 2
    key = jax.random.PRNGKey(0)
    pkey, dkey = jax.random.split(key)
    params = init_params(pkey, cfg)

    dkeys = jax.random.split(dkey, 5)
    patch_ab = jax.random.randint(dkeys[0], (B, cfg["patch_ab_pad_size"]), 0, cfg["patch_ab_vocab"], jnp.int32)
    file_word = jax.random.randint(dkeys[1], (B, cfg["file_word_pad_size"]), 0, cfg["file_word_vocab"], jnp.int32)
    patch_content = jax.random.randint(dkeys[2], (B, cfg["patch_content_pad_size"]), 0, cfg["patch_content_vocab"], jnp.int32)
    desc = jax.random.randint(dkeys[3], (B, cfg["desc_pad_size"]), 0, cfg["desc_vocab"], jnp.int32)
    title = jax.random.randint(dkeys[4], (B, cfg["title_pad_size"]), 0, cfg["title_vocab"], jnp.int32)

    fwd = jax.jit(lambda p, a, b_, c, d, e: joint_embedder_forward(p, a, b_, c, d, e, cfg))
    out = fwd(params, patch_ab, file_word, patch_content, desc, title)
    out = jax.block_until_ready(out)
    assert out.shape == (B, cfg["trg_vocab"]) and out.dtype == jnp.float32
    assert bool(jnp.all(jnp.isfinite(out)))
    print("KERNEL_OK")
</pallas_src>

<mosaic_0001>
module attributes {stable_mosaic.version = 11 : i64} {
  func.func @_joint_kernel(%arg0: memref<5x16x1xi32, #tpu.memory_space<vmem>>, %arg1: memref<5x2x8xi32, #tpu.memory_space<vmem>>, %arg2: memref<5x50x32xf32, #tpu.memory_space<vmem>>, %arg3: memref<8x32xf32, #tpu.memory_space<vmem>>, %arg4: memref<5x2x32xf32, #tpu.memory_space<vmem>>, %arg5: memref<5x1x2x32x16xf32, #tpu.memory_space<vmem>>, %arg6: memref<5x1x2x32x16xf32, #tpu.memory_space<vmem>>, %arg7: memref<5x1x2x32x16xf32, #tpu.memory_space<vmem>>, %arg8: memref<5x1x2x1x16xf32, #tpu.memory_space<vmem>>, %arg9: memref<5x1x2x1x16xf32, #tpu.memory_space<vmem>>, %arg10: memref<5x1x2x1x16xf32, #tpu.memory_space<vmem>>, %arg11: memref<5x1x2x16x32xf32, #tpu.memory_space<vmem>>, %arg12: memref<5x1x1x32xf32, #tpu.memory_space<vmem>>, %arg13: memref<5x1x32x64xf32, #tpu.memory_space<vmem>>, %arg14: memref<5x1x1x64xf32, #tpu.memory_space<vmem>>, %arg15: memref<5x1x64x32xf32, #tpu.memory_space<vmem>>, %arg16: memref<5x1x1x32xf32, #tpu.memory_space<vmem>>, %arg17: memref<5x1x4x32xf32, #tpu.memory_space<vmem>>, %arg18: memref<16x512xf32, #tpu.memory_space<vmem>>, %arg19: memref<5x32x512xf32, #tpu.memory_space<vmem>>, %arg20: memref<512x64xf32, #tpu.memory_space<vmem>>, %arg21: memref<1x64xf32, #tpu.memory_space<vmem>>, %arg22: memref<64x64xf32, #tpu.memory_space<vmem>>, %arg23: memref<1x64xf32, #tpu.memory_space<vmem>>, %arg24: memref<64x2xf32, #tpu.memory_space<vmem>>, %arg25: memref<1x2xf32, #tpu.memory_space<vmem>>, %arg26: memref<2x2xf32, #tpu.memory_space<vmem>>) attributes {dimension_semantics = [], scalar_prefetch = 0 : i64, scratch_operands = 0 : i64, tpu.core_type = #tpu.core_type<tc>} {
    %c0 = arith.constant 0 : index
    %c0_0 = arith.constant 0 : index
    %0 = vector.load %arg3[%c0, %c0_0] : memref<8x32xf32, #tpu.memory_space<vmem>>, vector<8x32xf32>
    %1 = tpu.concatenate %0, %0 in 0 : vector<8x32xf32>, vector<8x32xf32> -> vector<16x32xf32>
    %cst = arith.constant 0.000000e+00 : f32
    %2 = vector.broadcast %cst : f32 to vector<2x64xf32>
    %3 = tpu.iota {dimensions = array<i32: 1>} : vector<16x50xi32>
    %c0_1 = arith.constant 0 : index
    %c0_2 = arith.constant 0 : index
    %c0_3 = arith.constant 0 : index
    %4 = vector.load %arg0[%c0_1, %c0_2, %c0_3] : memref<5x16x1xi32, #tpu.memory_space<vmem>>, vector<1x16x1xi32>
    %5 = vector.shape_cast %4 : vector<1x16x1xi32> to vector<16x1xi32>
    %6 = vector.broadcast %5 : vector<16x1xi32> to vector<16x50xi32>
    %7 = arith.cmpi eq, %3, %6 : vector<16x50xi32>
    %8 = arith.extui %7 : vector<16x50xi1> to vector<16x50xi32>
    %9 = arith.sitofp %8 : vector<16x50xi32> to vector<16x50xf32>
    %c0_4 = arith.constant 0 : index
    %c0_5 = arith.constant 0 : index
    %c0_6 = arith.constant 0 : index
    %10 = vector.load %arg2[%c0_4, %c0_5, %c0_6] : memref<5x50x32xf32, #tpu.memory_space<vmem>>, vector<1x50x32xf32>
    %11 = vector.shape_cast %10 : vector<1x50x32xf32> to vector<50x32xf32>
    %cst_7 = arith.constant dense<0.000000e+00> : vector<16x32xf32>
    %12 = tpu.matmul %9, %11, %cst_7 {dimension_numbers = #tpu.dot_dimension_numbers<[1], [0], [0], [1], [0, 0, 1, 1], [], []>} : vector<16x50xf32>, vector<50x32xf32>, vector<16x32xf32> -> vector<16x32xf32>
    %13 = arith.addf %12, %1 : vector<16x32xf32>
    %c0_8 = arith.constant 0 : index
    %c0_9 = arith.constant 0 : index
    %c0_10 = arith.constant 0 : index
    %14 = vector.load %arg1[%c0_8, %c0_9, %c0_10] : memref<5x2x8xi32, #tpu.memory_space<vmem>>, vector<1x2x8xi32>
    %15 = vector.shape_cast %14 : vector<1x2x8xi32> to vector<2x8xi32>
    %c0_i32 = arith.constant 0 : i32
    %16 = vector.broadcast %c0_i32 : i32 to vector<2x8xi32>
    %17 = arith.cmpi ne, %15, %16 : vector<2x8xi32>
    %cst_11 = arith.constant 0.000000e+00 : f32
    %cst_12 = arith.constant -1.000000e+09 : f32
    %18 = vector.broadcast %cst_11 : f32 to vector<2x8xf32>
    %19 = vector.broadcast %cst_12 : f32 to vector<2x8xf32>
    %20 = arith.select %17, %18, %19 : vector<2x8xi1>, vector<2x8xf32>
    %c0_13 = arith.constant 0 : index
    %c0_14 = arith.constant 0 : index
    %c0_15 = arith.constant 0 : index
    %21 = vector.load %arg4[%c0_13, %c0_14, %c0_15] : memref<5x2x32xf32, #tpu.memory_space<vmem>>, vector<1x2x32xf32>
    %22 = vector.shape_cast %21 : vector<1x2x32xf32> to vector<2x32xf32>
    %23 = vector.extract_strided_slice %22 {offsets = [0, 0], sizes = [1, 32], strides = [1, 1]} : vector<2x32xf32> to vector<1x32xf32>
    %24 = vector.extract_strided_slice %22 {offsets = [1, 0], sizes = [1, 32], strides = [1, 1]} : vector<2x32xf32> to vector<1x32xf32>
    %cst_16 = arith.constant dense<0.000000e+00> : vector<16xf32>
    %25 = vector.multi_reduction <add>, %13, %cst_16 [1] : vector<16x32xf32> to vector<16xf32>
    %26 = vector.shape_cast %25 : vector<16xf32> to vector<16x1xf32>
    %cst_17 = arith.constant 3.200000e+01 : f32
    %27 = vector.broadcast %cst_17 : f32 to vector<16x1xf32>
    %28 = arith.divf %26, %27 : vector<16x1xf32>
    %29 = vector.broadcast %28 : vector<16x1xf32> to vector<16x32xf32>
    %30 = arith.subf %13, %29 : vector<16x32xf32>
    %31 = arith.mulf %30, %30 : vector<16x32xf32>
    %cst_18 = arith.constant dense<0.000000e+00> : vector<16xf32>
    %32 = vector.multi_reduction <add>, %31, %cst_18 [1] : vector<16x32xf32> to vector<16xf32>
    %33 = vector.shape_cast %32 : vector<16xf32> to vector<16x1xf32>
    %cst_19 = arith.constant 3.200000e+01 : f32
    %34 = vector.broadcast %cst_19 : f32 to vector<16x1xf32>
    %35 = arith.divf %33, %34 : vector<16x1xf32>
    %cst_20 = arith.constant 9.99999974E-6 : f32
    %36 = vector.broadcast %cst_20 : f32 to vector<16x1xf32>
    %37 = arith.addf %35, %36 : vector<16x1xf32>
    %38 = math.rsqrt %37 : vector<16x1xf32>
    %39 = vector.broadcast %38 : vector<16x1xf32> to vector<16x32xf32>
    %40 = arith.mulf %30, %39 : vector<16x32xf32>
    %41 = vector.broadcast %23 : vector<1x32xf32> to vector<16x32xf32>
    %42 = arith.mulf %40, %41 : vector<16x32xf32>
    %43 = vector.broadcast %24 : vector<1x32xf32> to vector<16x32xf32>
    %44 = arith.addf %42, %43 : vector<16x32xf32>
    %c0_21 = arith.constant 0 : index
    %c0_22 = arith.constant 0 : index
    %c0_23 = arith.constant 0 : index
    %c0_24 = arith.constant 0 : index
    %c0_25 = arith.constant 0 : index
    %45 = vector.load %arg5[%c0_21, %c0_22, %c0_23, %c0_24, %c0_25] : memref<5x1x2x32x16xf32, #tpu.memory_space<vmem>>, vector<1x1x1x32x16xf32>
    %46 = vector.shape_cast %45 : vector<1x1x1x32x16xf32> to vector<32x16xf32>
    %cst_26 = arith.constant dense<0.000000e+00> : vector<16x16xf32>
    %47 = tpu.matmul %44, %46, %cst_26 {dimension_numbers = #tpu.dot_dimension_numbers<[1], [0], [0], [1], [0, 0, 1, 1], [], []>} : vector<16x32xf32>, vector<32x16xf32>, vector<16x16xf32> -> vector<16x16xf32>
    %c0_27 = arith.constant 0 : index
    %c0_28 = arith.constant 0 : index
    %c0_29 = arith.constant 0 : index
    %c0_30 = arith.constant 0 : index
    %c0_31 = arith.constant 0 : index
    %48 = vector.load %arg8[%c0_27, %c0_28, %c0_29, %c0_30, %c0_31] : memref<5x1x2x1x16xf32, #tpu.memory_space<vmem>>, vector<1x1x1x1x16xf32>
    %49 = vector.shape_cast %48 : vector<1x1x1x1x16xf32> to vector<1x16xf32>
    %50 = vector.broadcast %49 : vector<1x16xf32> to vector<16x16xf32>
    %51 = arith.addf %47, %50 : vector<16x16xf32>
    %c0_32 = arith.constant 0 : index
    %c0_33 = arith.constant 0 : index
    %c1 = arith.constant 1 : index
    %c0_34 = arith.constant 0 : index
    %c0_35 = arith.constant 0 : index
    %52 = vector.load %arg5[%c0_32, %c0_33, %c1, %c0_34, %c0_35] : memref<5x1x2x32x16xf32, #tpu.memory_space<vmem>>, vector<1x1x1x32x16xf32>
    %53 = vector.shape_cast %52 : vector<1x1x1x32x16xf32> to vector<32x16xf32>
    %cst_36 = arith.constant dense<0.000000e+00> : vector<16x16xf32>
    %54 = tpu.matmul %44, %53, %cst_36 {dimension_numbers = #tpu.dot_dimension_numbers<[1], [0], [0], [1], [0, 0, 1, 1], [], []>} : vector<16x32xf32>, vector<32x16xf32>, vector<16x16xf32> -> vector<16x16xf32>
    %c0_37 = arith.constant 0 : index
    %c0_38 = arith.constant 0 : index
    %c1_39 = arith.constant 1 : index
    %c0_40 = arith.constant 0 : index
    %c0_41 = arith.constant 0 : index
    %55 = vector.load %arg8[%c0_37, %c0_38, %c1_39, %c0_40, %c0_41] : memref<5x1x2x1x16xf32, #tpu.memory_space<vmem>>, vector<1x1x1x1x16xf32>
    %56 = vector.shape_cast %55 : vector<1x1x1x1x16xf32> to vector<1x16xf32>
    %57 = vector.broadcast %56 : vector<1x16xf32> to vector<16x16xf32>
    %58 = arith.addf %54, %57 : vector<16x16xf32>
    %c0_42 = arith.constant 0 : index
    %c0_43 = arith.constant 0 : index
    %c0_44 = arith.constant 0 : index
    %c0_45 = arith.constant 0 : index
    %c0_46 = arith.constant 0 : index
    %59 = vector.load %arg6[%c0_42, %c0_43, %c0_44, %c0_45, %c0_46] : memref<5x1x2x32x16xf32, #tpu.memory_space<vmem>>, vector<1x1x1x32x16xf32>
    %60 = vector.shape_cast %59 : vector<1x1x1x32x16xf32> to vector<32x16xf32>
    %cst_47 = arith.constant dense<0.000000e+00> : vector<16x16xf32>
    %61 = tpu.matmul %44, %60, %cst_47 {dimension_numbers = #tpu.dot_dimension_numbers<[1], [0], [0], [1], [0, 0, 1, 1], [], []>} : vector<16x32xf32>, vector<32x16xf32>, vector<16x16xf32> -> vector<16x16xf32>
    %c0_48 = arith.constant 0 : index
    %c0_49 = arith.constant 0 : index
    %c0_50 = arith.constant 0 : index
    %c0_51 = arith.constant 0 : index
    %c0_52 = arith.constant 0 : index
    %62 = vector.load %arg9[%c0_48, %c0_49, %c0_50, %c0_51, %c0_52] : memref<5x1x2x1x16xf32, #tpu.memory_space<vmem>>, vector<1x1x1x1x16xf32>
    %63 = vector.shape_cast %62 : vector<1x1x1x1x16xf32> to vector<1x16xf32>
    %64 = vector.broadcast %63 : vector<1x16xf32> to vector<16x16xf32>
    %65 = arith.addf %61, %64 : vector<16x16xf32>
    %c0_53 = arith.constant 0 : index
    %c0_54 = arith.constant 0 : index
    %c1_55 = arith.constant 1 : index
    %c0_56 = arith.constant 0 : index
    %c0_57 = arith.constant 0 : index
    %66 = vector.load %arg6[%c0_53, %c0_54, %c1_55, %c0_56, %c0_57] : memref<5x1x2x32x16xf32, #tpu.memory_space<vmem>>, vector<1x1x1x32x16xf32>
    %67 = vector.shape_cast %66 : vector<1x1x1x32x16xf32> to vector<32x16xf32>
    %cst_58 = arith.constant dense<0.000000e+00> : vector<16x16xf32>
    %68 = tpu.matmul %44, %67, %cst_58 {dimension_numbers = #tpu.dot_dimension_numbers<[1], [0], [0], [1], [0, 0, 1, 1], [], []>} : vector<16x32xf32>, vector<32x16xf32>, vector<16x16xf32> -> vector<16x16xf32>
    %c0_59 = arith.constant 0 : index
    %c0_60 = arith.constant 0 : index
    %c1_61 = arith.constant 1 : index
    %c0_62 = arith.constant 0 : index
    %c0_63 = arith.constant 0 : index
    %69 = vector.load %arg9[%c0_59, %c0_60, %c1_61, %c0_62, %c0_63] : memref<5x1x2x1x16xf32, #tpu.memory_space<vmem>>, vector<1x1x1x1x16xf32>
    %70 = vector.shape_cast %69 : vector<1x1x1x1x16xf32> to vector<1x16xf32>
    %71 = vector.broadcast %70 : vector<1x16xf32> to vector<16x16xf32>
    %72 = arith.addf %68, %71 : vector<16x16xf32>
    %c0_64 = arith.constant 0 : index
    %c0_65 = arith.constant 0 : index
    %c0_66 = arith.constant 0 : index
    %c0_67 = arith.constant 0 : index
    %c0_68 = arith.constant 0 : index
    %73 = vector.load %arg7[%c0_64, %c0_65, %c0_66, %c0_67, %c0_68] : memref<5x1x2x32x16xf32, #tpu.memory_space<vmem>>, vector<1x1x1x32x16xf32>
    %74 = vector.shape_cast %73 : vector<1x1x1x32x16xf32> to vector<32x16xf32>
    %cst_69 = arith.constant dense<0.000000e+00> : vector<16x16xf32>
    %75 = tpu.matmul %44, %74, %cst_69 {dimension_numbers = #tpu.dot_dimension_numbers<[1], [0], [0], [1], [0, 0, 1, 1], [], []>} : vector<16x32xf32>, vector<32x16xf32>, vector<16x16xf32> -> vector<16x16xf32>
    %c0_70 = arith.constant 0 : index
    %c0_71 = arith.constant 0 : index
    %c0_72 = arith.constant 0 : index
    %c0_73 = arith.constant 0 : index
    %c0_74 = arith.constant 0 : index
    %76 = vector.load %arg10[%c0_70, %c0_71, %c0_72, %c0_73, %c0_74] : memref<5x1x2x1x16xf32, #tpu.memory_space<vmem>>, vector<1x1x1x1x16xf32>
    %77 = vector.shape_cast %76 : vector<1x1x1x1x16xf32> to vector<1x16xf32>
    %78 = vector.broadcast %77 : vector<1x16xf32> to vector<16x16xf32>
    %79 = arith.addf %75, %78 : vector<16x16xf32>
    %c0_75 = arith.constant 0 : index
    %c0_76 = arith.constant 0 : index
    %c1_77 = arith.constant 1 : index
    %c0_78 = arith.constant 0 : index
    %c0_79 = arith.constant 0 : index
    %80 = vector.load %arg7[%c0_75, %c0_76, %c1_77, %c0_78, %c0_79] : memref<5x1x2x32x16xf32, #tpu.memory_space<vmem>>, vector<1x1x1x32x16xf32>
    %81 = vector.shape_cast %80 : vector<1x1x1x32x16xf32> to vector<32x16xf32>
    %cst_80 = arith.constant dense<0.000000e+00> : vector<16x16xf32>
    %82 = tpu.matmul %44, %81, %cst_80 {dimension_numbers = #tpu.dot_dimension_numbers<[1], [0], [0], [1], [0, 0, 1, 1], [], []>} : vector<16x32xf32>, vector<32x16xf32>, vector<16x16xf32> -> vector<16x16xf32>
    %c0_81 = arith.constant 0 : index
    %c0_82 = arith.constant 0 : index
    %c1_83 = arith.constant 1 : index
    %c0_84 = arith.constant 0 : index
    %c0_85 = arith.constant 0 : index
    %83 = vector.load %arg10[%c0_81, %c0_82, %c1_83, %c0_84, %c0_85] : memref<5x1x2x1x16xf32, #tpu.memory_space<vmem>>, vector<1x1x1x1x16xf32>
    %84 = vector.shape_cast %83 : vector<1x1x1x1x16xf32> to vector<1x16xf32>
    %85 = vector.broadcast %84 : vector<1x16xf32> to vector<16x16xf32>
    %86 = arith.addf %82, %85 : vector<16x16xf32>
    %87 = vector.extract_strided_slice %20 {offsets = [0, 0], sizes = [1, 8], strides = [1, 1]} : vector<2x8xf32> to vector<1x8xf32>
    %88 = vector.extract_strided_slice %51 {offsets = [0, 0], sizes = [8, 16], strides = [1, 1]} : vector<16x16xf32> to vector<8x16xf32>
    %89 = vector.extract_strided_slice %65 {offsets = [0, 0], sizes = [8, 16], strides = [1, 1]} : vector<16x16xf32> to vector<8x16xf32>
    %90 = vector.extract_strided_slice %79 {offsets = [0, 0], sizes = [8, 16], strides = [1, 1]} : vector<16x16xf32> to vector<8x16xf32>
    %cst_86 = arith.constant dense<0.000000e+00> : vector<8x8xf32>
    %91 = tpu.matmul %88, %89, %cst_86 {dimension_numbers = #tpu.dot_dimension_numbers<[1], [1], [0], [0], [0, 0, 1, 0], [], []>} : vector<8x16xf32>, vector<8x16xf32>, vector<8x8xf32> -> vector<8x8xf32>
    %cst_87 = arith.constant 2.500000e-01 : f32
    %92 = vector.broadcast %cst_87 : f32 to vector<8x8xf32>
    %93 = arith.mulf %91, %92 : vector<8x8xf32>
    %94 = vector.broadcast %87 : vector<1x8xf32> to vector<8x8xf32>
    %95 = arith.addf %93, %94 : vector<8x8xf32>
    %cst_88 = arith.constant dense<0xFF800000> : vector<8xf32>
    %96 = vector.multi_reduction <maximumf>, %95, %cst_88 [1] : vector<8x8xf32> to vector<8xf32>
    %97 = vector.shape_cast %96 : vector<8xf32> to vector<8x1xf32>
    %98 = vector.broadcast %97 : vector<8x1xf32> to vector<8x8xf32>
    %99 = arith.subf %95, %98 : vector<8x8xf32>
    %100 = math.exp %99 : vector<8x8xf32>
    %cst_89 = arith.constant dense<0.000000e+00> : vector<8xf32>
    %101 = vector.multi_reduction <add>, %100, %cst_89 [1] : vector<8x8xf32> to vector<8xf32>
    %102 = vector.shape_cast %101 : vector<8xf32> to vector<8x1xf32>
    %103 = tpu.reciprocal %102 : vector<8x1xf32> -> vector<8x1xf32>
    %104 = vector.broadcast %103 : vector<8x1xf32> to vector<8x8xf32>
    %105 = arith.mulf %100, %104 : vector<8x8xf32>
    %cst_90 = arith.constant dense<0.000000e+00> : vector<8x16xf32>
    %106 = tpu.matmul %105, %90, %cst_90 {dimension_numbers = #tpu.dot_dimension_numbers<[1], [0], [0], [1], [0, 0, 1, 1], [], []>} : vector<8x8xf32>, vector<8x16xf32>, vector<8x16xf32> -> vector<8x16xf32>
    %c0_91 = arith.constant 0 : index
    %c0_92 = arith.constant 0 : index
    %c0_93 = arith.constant 0 : index
    %c0_94 = arith.constant 0 : index
    %c0_95 = arith.constant 0 : index
    %107 = vector.load %arg11[%c0_91, %c0_92, %c0_93, %c0_94, %c0_95] : memref<5x1x2x16x32xf32, #tpu.memory_space<vmem>>, vector<1x1x1x16x32xf32>
    %108 = vector.shape_cast %107 : vector<1x1x1x16x32xf32> to vector<16x32xf32>
    %cst_96 = arith.constant dense<0.000000e+00> : vector<8x32xf32>
    %109 = tpu.matmul %106, %108, %cst_96 {dimension_numbers = #tpu.dot_dimension_numbers<[1], [0], [0], [1], [0, 0, 1, 1], [], []>} : vector<8x16xf32>, vector<16x32xf32>, vector<8x32xf32> -> vector<8x32xf32>
    %110 = vector.extract_strided_slice %58 {offsets = [0, 0], sizes = [8, 16], strides = [1, 1]} : vector<16x16xf32> to vector<8x16xf32>
    %111 = vector.extract_strided_slice %72 {offsets = [0, 0], sizes = [8, 16], strides = [1, 1]} : vector<16x16xf32> to vector<8x16xf32>
    %112 = vector.extract_strided_slice %86 {offsets = [0, 0], sizes = [8, 16], strides = [1, 1]} : vector<16x16xf32> to vector<8x16xf32>
    %cst_97 = arith.constant dense<0.000000e+00> : vector<8x8xf32>
    %113 = tpu.matmul %110, %111, %cst_97 {dimension_numbers = #tpu.dot_dimension_numbers<[1], [1], [0], [0], [0, 0, 1, 0], [], []>} : vector<8x16xf32>, vector<8x16xf32>, vector<8x8xf32> -> vector<8x8xf32>
    %cst_98 = arith.constant 2.500000e-01 : f32
    %114 = vector.broadcast %cst_98 : f32 to vector<8x8xf32>
    %115 = arith.mulf %113, %114 : vector<8x8xf32>
    %116 = vector.broadcast %87 : vector<1x8xf32> to vector<8x8xf32>
    %117 = arith.addf %115, %116 : vector<8x8xf32>
    %cst_99 = arith.constant dense<0xFF800000> : vector<8xf32>
    %118 = vector.multi_reduction <maximumf>, %117, %cst_99 [1] : vector<8x8xf32> to vector<8xf32>
    %119 = vector.shape_cast %118 : vector<8xf32> to vector<8x1xf32>
    %120 = vector.broadcast %119 : vector<8x1xf32> to vector<8x8xf32>
    %121 = arith.subf %117, %120 : vector<8x8xf32>
    %122 = math.exp %121 : vector<8x8xf32>
    %cst_100 = arith.constant dense<0.000000e+00> : vector<8xf32>
    %123 = vector.multi_reduction <add>, %122, %cst_100 [1] : vector<8x8xf32> to vector<8xf32>
    %124 = vector.shape_cast %123 : vector<8xf32> to vector<8x1xf32>
    %125 = tpu.reciprocal %124 : vector<8x1xf32> -> vector<8x1xf32>
    %126 = vector.broadcast %125 : vector<8x1xf32> to vector<8x8xf32>
    %127 = arith.mulf %122, %126 : vector<8x8xf32>
    %cst_101 = arith.constant dense<0.000000e+00> : vector<8x16xf32>
    %128 = tpu.matmul %127, %112, %cst_101 {dimension_numbers = #tpu.dot_dimension_numbers<[1], [0], [0], [1], [0, 0, 1, 1], [], []>} : vector<8x8xf32>, vector<8x16xf32>, vector<8x16xf32> -> vector<8x16xf32>
    %c0_102 = arith.constant 0 : index
    %c0_103 = arith.constant 0 : index
    %c1_104 = arith.constant 1 : index
    %c0_105 = arith.constant 0 : index
    %c0_106 = arith.constant 0 : index
    %129 = vector.load %arg11[%c0_102, %c0_103, %c1_104, %c0_105, %c0_106] : memref<5x1x2x16x32xf32, #tpu.memory_space<vmem>>, vector<1x1x1x16x32xf32>
    %130 = vector.shape_cast %129 : vector<1x1x1x16x32xf32> to vector<16x32xf32>
    %cst_107 = arith.constant dense<0.000000e+00> : vector<8x32xf32>
    %131 = tpu.matmul %128, %130, %cst_107 {dimension_numbers = #tpu.dot_dimension_numbers<[1], [0], [0], [1], [0, 0, 1, 1], [], []>} : vector<8x16xf32>, vector<16x32xf32>, vector<8x32xf32> -> vector<8x32xf32>
    %132 = arith.addf %109, %131 : vector<8x32xf32>
    %133 = vector.extract_strided_slice %20 {offsets = [1, 0], sizes = [1, 8], strides = [1, 1]} : vector<2x8xf32> to vector<1x8xf32>
    %134 = vector.extract_strided_slice %51 {offsets = [8, 0], sizes = [8, 16], strides = [1, 1]} : vector<16x16xf32> to vector<8x16xf32>
    %135 = vector.extract_strided_slice %65 {offsets = [8, 0], sizes = [8, 16], strides = [1, 1]} : vector<16x16xf32> to vector<8x16xf32>
    %136 = vector.extract_strided_slice %79 {offsets = [8, 0], sizes = [8, 16], strides = [1, 1]} : vector<16x16xf32> to vector<8x16xf32>
    %cst_108 = arith.constant dense<0.000000e+00> : vector<8x8xf32>
    %137 = tpu.matmul %134, %135, %cst_108 {dimension_numbers = #tpu.dot_dimension_numbers<[1], [1], [0], [0], [0, 0, 1, 0], [], []>} : vector<8x16xf32>, vector<8x16xf32>, vector<8x8xf32> -> vector<8x8xf32>
    %cst_109 = arith.constant 2.500000e-01 : f32
    %138 = vector.broadcast %cst_109 : f32 to vector<8x8xf32>
    %139 = arith.mulf %137, %138 : vector<8x8xf32>
    %140 = vector.broadcast %133 : vector<1x8xf32> to vector<8x8xf32>
    %141 = arith.addf %139, %140 : vector<8x8xf32>
    %cst_110 = arith.constant dense<0xFF800000> : vector<8xf32>
    %142 = vector.multi_reduction <maximumf>, %141, %cst_110 [1] : vector<8x8xf32> to vector<8xf32>
    %143 = vector.shape_cast %142 : vector<8xf32> to vector<8x1xf32>
    %144 = vector.broadcast %143 : vector<8x1xf32> to vector<8x8xf32>
    %145 = arith.subf %141, %144 : vector<8x8xf32>
    %146 = math.exp %145 : vector<8x8xf32>
    %cst_111 = arith.constant dense<0.000000e+00> : vector<8xf32>
    %147 = vector.multi_reduction <add>, %146, %cst_111 [1] : vector<8x8xf32> to vector<8xf32>
    %148 = vector.shape_cast %147 : vector<8xf32> to vector<8x1xf32>
    %149 = tpu.reciprocal %148 : vector<8x1xf32> -> vector<8x1xf32>
    %150 = vector.broadcast %149 : vector<8x1xf32> to vector<8x8xf32>
    %151 = arith.mulf %146, %150 : vector<8x8xf32>
    %cst_112 = arith.constant dense<0.000000e+00> : vector<8x16xf32>
    %152 = tpu.matmul %151, %136, %cst_112 {dimension_numbers = #tpu.dot_dimension_numbers<[1], [0], [0], [1], [0, 0, 1, 1], [], []>} : vector<8x8xf32>, vector<8x16xf32>, vector<8x16xf32> -> vector<8x16xf32>
    %c0_113 = arith.constant 0 : index
    %c0_114 = arith.constant 0 : index
    %c0_115 = arith.constant 0 : index
    %c0_116 = arith.constant 0 : index
    %c0_117 = arith.constant 0 : index
    %153 = vector.load %arg11[%c0_113, %c0_114, %c0_115, %c0_116, %c0_117] : memref<5x1x2x16x32xf32, #tpu.memory_space<vmem>>, vector<1x1x1x16x32xf32>
    %154 = vector.shape_cast %153 : vector<1x1x1x16x32xf32> to vector<16x32xf32>
    %cst_118 = arith.constant dense<0.000000e+00> : vector<8x32xf32>
    %155 = tpu.matmul %152, %154, %cst_118 {dimension_numbers = #tpu.dot_dimension_numbers<[1], [0], [0], [1], [0, 0, 1, 1], [], []>} : vector<8x16xf32>, vector<16x32xf32>, vector<8x32xf32> -> vector<8x32xf32>
    %156 = vector.extract_strided_slice %58 {offsets = [8, 0], sizes = [8, 16], strides = [1, 1]} : vector<16x16xf32> to vector<8x16xf32>
    %157 = vector.extract_strided_slice %72 {offsets = [8, 0], sizes = [8, 16], strides = [1, 1]} : vector<16x16xf32> to vector<8x16xf32>
    %158 = vector.extract_strided_slice %86 {offsets = [8, 0], sizes = [8, 16], strides = [1, 1]} : vector<16x16xf32> to vector<8x16xf32>
    %cst_119 = arith.constant dense<0.000000e+00> : vector<8x8xf32>
    %159 = tpu.matmul %156, %157, %cst_119 {dimension_numbers = #tpu.dot_dimension_numbers<[1], [1], [0], [0], [0, 0, 1, 0], [], []>} : vector<8x16xf32>, vector<8x16xf32>, vector<8x8xf32> -> vector<8x8xf32>
    %cst_120 = arith.constant 2.500000e-01 : f32
    %160 = vector.broadcast %cst_120 : f32 to vector<8x8xf32>
    %161 = arith.mulf %159, %160 : vector<8x8xf32>
    %162 = vector.broadcast %133 : vector<1x8xf32> to vector<8x8xf32>
    %163 = arith.addf %161, %162 : vector<8x8xf32>
    %cst_121 = arith.constant dense<0xFF800000> : vector<8xf32>
    %164 = vector.multi_reduction <maximumf>, %163, %cst_121 [1] : vector<8x8xf32> to vector<8xf32>
    %165 = vector.shape_cast %164 : vector<8xf32> to vector<8x1xf32>
    %166 = vector.broadcast %165 : vector<8x1xf32> to vector<8x8xf32>
    %167 = arith.subf %163, %166 : vector<8x8xf32>
    %168 = math.exp %167 : vector<8x8xf32>
    %cst_122 = arith.constant dense<0.000000e+00> : vector<8xf32>
    %169 = vector.multi_reduction <add>, %168, %cst_122 [1] : vector<8x8xf32> to vector<8xf32>
    %170 = vector.shape_cast %169 : vector<8xf32> to vector<8x1xf32>
    %171 = tpu.reciprocal %170 : vector<8x1xf32> -> vector<8x1xf32>
    %172 = vector.broadcast %171 : vector<8x1xf32> to vector<8x8xf32>
    %173 = arith.mulf %168, %172 : vector<8x8xf32>
    %cst_123 = arith.constant dense<0.000000e+00> : vector<8x16xf32>
    %174 = tpu.matmul %173, %158, %cst_123 {dimension_numbers = #tpu.dot_dimension_numbers<[1], [0], [0], [1], [0, 0, 1, 1], [], []>} : vector<8x8xf32>, vector<8x16xf32>, vector<8x16xf32> -> vector<8x16xf32>
    %c0_124 = arith.constant 0 : index
    %c0_125 = arith.constant 0 : index
    %c1_126 = arith.constant 1 : index
    %c0_127 = arith.constant 0 : index
    %c0_128 = arith.constant 0 : index
    %175 = vector.load %arg11[%c0_124, %c0_125, %c1_126, %c0_127, %c0_128] : memref<5x1x2x16x32xf32, #tpu.memory_space<vmem>>, vector<1x1x1x16x32xf32>
    %176 = vector.shape_cast %175 : vector<1x1x1x16x32xf32> to vector<16x32xf32>
    %cst_129 = arith.constant dense<0.000000e+00> : vector<8x32xf32>
    %177 = tpu.matmul %174, %176, %cst_129 {dimension_numbers = #tpu.dot_dimension_numbers<[1], [0], [0], [1], [0, 0, 1, 1], [], []>} : vector<8x16xf32>, vector<16x32xf32>, vector<8x32xf32> -> vector<8x32xf32>
    %178 = arith.addf %155, %177 : vector<8x32xf32>
    %179 = tpu.concatenate %132, %178 in 0 : vector<8x32xf32>, vector<8x32xf32> -> vector<16x32xf32>
    %c0_130 = arith.constant 0 : index
    %c0_131 = arith.constant 0 : index
    %c0_132 = arith.constant 0 : index
    %c0_133 = arith.constant 0 : index
    %180 = vector.load %arg12[%c0_130, %c0_131, %c0_132, %c0_133] : memref<5x1x1x32xf32, #tpu.memory_space<vmem>>, vector<1x1x1x32xf32>
    %181 = vector.shape_cast %180 : vector<1x1x1x32xf32> to vector<1x32xf32>
    %182 = vector.broadcast %181 : vector<1x32xf32> to vector<16x32xf32>
    %183 = arith.addf %179, %182 : vector<16x32xf32>
    %c0_134 = arith.constant 0 : index
    %c0_135 = arith.constant 0 : index
    %c0_136 = arith.constant 0 : index
    %c0_137 = arith.constant 0 : index
    %184 = vector.load %arg17[%c0_134, %c0_135, %c0_136, %c0_137] : memref<5x1x4x32xf32, #tpu.memory_space<vmem>>, vector<1x1x4x32xf32>
    %185 = vector.shape_cast %184 : vector<1x1x4x32xf32> to vector<4x32xf32>
    %186 = arith.addf %44, %183 : vector<16x32xf32>
    %187 = vector.extract_strided_slice %185 {offsets = [0, 0], sizes = [1, 32], strides = [1, 1]} : vector<4x32xf32> to vector<1x32xf32>
    %188 = vector.extract_strided_slice %185 {offsets = [1, 0], sizes = [1, 32], strides = [1, 1]} : vector<4x32xf32> to vector<1x32xf32>
    %cst_138 = arith.constant dense<0.000000e+00> : vector<16xf32>
    %189 = vector.multi_reduction <add>, %186, %cst_138 [1] : vector<16x32xf32> to vector<16xf32>
    %190 = vector.shape_cast %189 : vector<16xf32> to vector<16x1xf32>
    %cst_139 = arith.constant 3.200000e+01 : f32
    %191 = vector.broadcast %cst_139 : f32 to vector<16x1xf32>
    %192 = arith.divf %190, %191 : vector<16x1xf32>
    %193 = vector.broadcast %192 : vector<16x1xf32> to vector<16x32xf32>
    %194 = arith.subf %186, %193 : vector<16x32xf32>
    %195 = arith.mulf %194, %194 : vector<16x32xf32>
    %cst_140 = arith.constant dense<0.000000e+00> : vector<16xf32>
    %196 = vector.multi_reduction <add>, %195, %cst_140 [1] : vector<16x32xf32> to vector<16xf32>
    %197 = vector.shape_cast %196 : vector<16xf32> to vector<16x1xf32>
    %cst_141 = arith.constant 3.200000e+01 : f32
    %198 = vector.broadcast %cst_141 : f32 to vector<16x1xf32>
    %199 = arith.divf %197, %198 : vector<16x1xf32>
    %cst_142 = arith.constant 9.99999974E-6 : f32
    %200 = vector.broadcast %cst_142 : f32 to vector<16x1xf32>
    %201 = arith.addf %199, %200 : vector<16x1xf32>
    %202 = math.rsqrt %201 : vector<16x1xf32>
    %203 = vector.broadcast %202 : vector<16x1xf32> to vector<16x32xf32>
    %204 = arith.mulf %194, %203 : vector<16x32xf32>
    %205 = vector.broadcast %187 : vector<1x32xf32> to vector<16x32xf32>
    %206 = arith.mulf %204, %205 : vector<16x32xf32>
    %207 = vector.broadcast %188 : vector<1x32xf32> to vector<16x32xf32>
    %208 = arith.addf %206, %207 : vector<16x32xf32>
    %c0_143 = arith.constant 0 : index
    %c0_144 = arith.constant 0 : index
    %c0_145 = arith.constant 0 : index
    %c0_146 = arith.constant 0 : index
    %209 = vector.load %arg13[%c0_143, %c0_144, %c0_145, %c0_146] : memref<5x1x32x64xf32, #tpu.memory_space<vmem>>, vector<1x1x32x64xf32>
    %210 = vector.shape_cast %209 : vector<1x1x32x64xf32> to vector<32x64xf32>
    %cst_147 = arith.constant dense<0.000000e+00> : vector<16x64xf32>
    %211 = tpu.matmul %208, %210, %cst_147 {dimension_numbers = #tpu.dot_dimension_numbers<[1], [0], [0], [1], [0, 0, 1, 1], [], []>} : vector<16x32xf32>, vector<32x64xf32>, vector<16x64xf32> -> vector<16x64xf32>
    %c0_148 = arith.constant 0 : index
    %c0_149 = arith.constant 0 : index
    %c0_150 = arith.constant 0 : index
    %c0_151 = arith.constant 0 : index
    %212 = vector.load %arg14[%c0_148, %c0_149, %c0_150, %c0_151] : memref<5x1x1x64xf32, #tpu.memory_space<vmem>>, vector<1x1x1x64xf32>
    %213 = vector.shape_cast %212 : vector<1x1x1x64xf32> to vector<1x64xf32>
    %214 = vector.broadcast %213 : vector<1x64xf32> to vector<16x64xf32>
    %215 = arith.addf %211, %214 : vector<16x64xf32>
    %cst_152 = arith.constant 0.000000e+00 : f32
    %216 = vector.broadcast %cst_152 : f32 to vector<16x64xf32>
    %217 = arith.maximumf %215, %216 : vector<16x64xf32>
    %c0_153 = arith.constant 0 : index
    %c0_154 = arith.constant 0 : index
    %c0_155 = arith.constant 0 : index
    %c0_156 = arith.constant 0 : index
    %218 = vector.load %arg15[%c0_153, %c0_154, %c0_155, %c0_156] : memref<5x1x64x32xf32, #tpu.memory_space<vmem>>, vector<1x1x64x32xf32>
    %219 = vector.shape_cast %218 : vector<1x1x64x32xf32> to vector<64x32xf32>
    %cst_157 = arith.constant dense<0.000000e+00> : vector<16x32xf32>
    %220 = tpu.matmul %217, %219, %cst_157 {dimension_numbers = #tpu.dot_dimension_numbers<[1], [0], [0], [1], [0, 0, 1, 1], [], []>} : vector<16x64xf32>, vector<64x32xf32>, vector<16x32xf32> -> vector<16x32xf32>
    %c0_158 = arith.constant 0 : index
    %c0_159 = arith.constant 0 : index
    %c0_160 = arith.constant 0 : index
    %c0_161 = arith.constant 0 : index
    %221 = vector.load %arg16[%c0_158, %c0_159, %c0_160, %c0_161] : memref<5x1x1x32xf32, #tpu.memory_space<vmem>>, vector<1x1x1x32xf32>
    %222 = vector.shape_cast %221 : vector<1x1x1x32xf32> to vector<1x32xf32>
    %223 = vector.broadcast %222 : vector<1x32xf32> to vector<16x32xf32>
    %224 = arith.addf %220, %223 : vector<16x32xf32>
    %225 = arith.addf %208, %224 : vector<16x32xf32>
    %226 = vector.extract_strided_slice %185 {offsets = [2, 0], sizes = [1, 32], strides = [1, 1]} : vector<4x32xf32> to vector<1x32xf32>
    %227 = vector.extract_strided_slice %185 {offsets = [3, 0], sizes = [1, 32], strides = [1, 1]} : vector<4x32xf32> to vector<1x32xf32>
    %cst_162 = arith.constant dense<0.000000e+00> : vector<16xf32>
    %228 = vector.multi_reduction <add>, %225, %cst_162 [1] : vector<16x32xf32> to vector<16xf32>
    %229 = vector.shape_cast %228 : vector<16xf32> to vector<16x1xf32>
    %cst_163 = arith.constant 3.200000e+01 : f32
    %230 = vector.broadcast %cst_163 : f32 to vector<16x1xf32>
    %231 = arith.divf %229, %230 : vector<16x1xf32>
    %232 = vector.broadcast %231 : vector<16x1xf32> to vector<16x32xf32>
    %233 = arith.subf %225, %232 : vector<16x32xf32>
    %234 = arith.mulf %233, %233 : vector<16x32xf32>
    %cst_164 = arith.constant dense<0.000000e+00> : vector<16xf32>
    %235 = vector.multi_reduction <add>, %234, %cst_164 [1] : vector<16x32xf32> to vector<16xf32>
    %236 = vector.shape_cast %235 : vector<16xf32> to vector<16x1xf32>
    %cst_165 = arith.constant 3.200000e+01 : f32
    %237 = vector.broadcast %cst_165 : f32 to vector<16x1xf32>
    %238 = arith.divf %236, %237 : vector<16x1xf32>
    %cst_166 = arith.constant 9.99999974E-6 : f32
    %239 = vector.broadcast %cst_166 : f32 to vector<16x1xf32>
    %240 = arith.addf %238, %239 : vector<16x1xf32>
    %241 = math.rsqrt %240 : vector<16x1xf32>
    %242 = vector.broadcast %241 : vector<16x1xf32> to vector<16x32xf32>
    %243 = arith.mulf %233, %242 : vector<16x32xf32>
    %244 = vector.broadcast %226 : vector<1x32xf32> to vector<16x32xf32>
    %245 = arith.mulf %243, %244 : vector<16x32xf32>
    %246 = vector.broadcast %227 : vector<1x32xf32> to vector<16x32xf32>
    %247 = arith.addf %245, %246 : vector<16x32xf32>
    %c0_167 = arith.constant 0 : index
    %c0_168 = arith.constant 0 : index
    %c0_169 = arith.constant 0 : index
    %248 = vector.load %arg19[%c0_167, %c0_168, %c0_169] : memref<5x32x512xf32, #tpu.memory_space<vmem>>, vector<1x32x512xf32>
    %249 = vector.shape_cast %248 : vector<1x32x512xf32> to vector<32x512xf32>
    %cst_170 = arith.constant dense<0.000000e+00> : vector<16x512xf32>
    %250 = tpu.matmul %247, %249, %cst_170 {dimension_numbers = #tpu.dot_dimension_numbers<[1], [0], [0], [1], [0, 0, 1, 1], [], []>} : vector<16x32xf32>, vector<32x512xf32>, vector<16x512xf32> -> vector<16x512xf32>
    %c0_171 = arith.constant 0 : index
    %c0_172 = arith.constant 0 : index
    %251 = vector.load %arg18[%c0_171, %c0_172] : memref<16x512xf32, #tpu.memory_space<vmem>>, vector<16x512xf32>
    %252 = arith.mulf %250, %251 : vector<16x512xf32>
    %253 = vector.extract_strided_slice %252 {offsets = [0, 0], sizes = [8, 512], strides = [1, 1]} : vector<16x512xf32> to vector<8x512xf32>
    %cst_173 = arith.constant dense<0.000000e+00> : vector<512xf32>
    %254 = vector.multi_reduction <add>, %253, %cst_173 [0] : vector<8x512xf32> to vector<512xf32>
    %255 = vector.shape_cast %254 : vector<512xf32> to vector<1x512xf32>
    %256 = vector.extract_strided_slice %252 {offsets = [8, 0], sizes = [8, 512], strides = [1, 1]} : vector<16x512xf32> to vector<8x512xf32>
    %cst_174 = arith.constant dense<0.000000e+00> : vector<512xf32>
    %257 = vector.multi_reduction <add>, %256, %cst_174 [0] : vector<8x512xf32> to vector<512xf32>
    %258 = vector.shape_cast %257 : vector<512xf32> to vector<1x512xf32>
    %259 = tpu.concatenate %255, %258 in 0 : vector<1x512xf32>, vector<1x512xf32> -> vector<2x512xf32>
    %c0_175 = arith.constant 0 : index
    %c0_176 = arith.constant 0 : index
    %260 = vector.load %arg20[%c0_175, %c0_176] : memref<512x64xf32, #tpu.memory_space<vmem>>, vector<512x64xf32>
    %cst_177 = arith.constant dense<0.000000e+00> : vector<2x64xf32>
    %261 = tpu.matmul %259, %260, %cst_177 {dimension_numbers = #tpu.dot_dimension_numbers<[1], [0], [0], [1], [0, 0, 1, 1], [], []>} : vector<2x512xf32>, vector<512x64xf32>, vector<2x64xf32> -> vector<2x64xf32>
    %262 = arith.addf %2, %261 : vector<2x64xf32>
    %263 = tpu.iota {dimensions = array<i32: 1>} : vector<16x50xi32>
    %c1_178 = arith.constant 1 : index
    %c0_179 = arith.constant 0 : index
    %c0_180 = arith.constant 0 : index
    %264 = vector.load %arg0[%c1_178, %c0_179, %c0_180] : memref<5x16x1xi32, #tpu.memory_space<vmem>>, vector<1x16x1xi32>
    %265 = vector.shape_cast %264 : vector<1x16x1xi32> to vector<16x1xi32>
    %266 = vector.broadcast %265 : vector<16x1xi32> to vector<16x50xi32>
    %267 = arith.cmpi eq, %263, %266 : vector<16x50xi32>
    %268 = arith.extui %267 : vector<16x50xi1> to vector<16x50xi32>
    %269 = arith.sitofp %268 : vector<16x50xi32> to vector<16x50xf32>
    %c1_181 = arith.constant 1 : index
    %c0_182 = arith.constant 0 : index
    %c0_183 = arith.constant 0 : index
    %270 = vector.load %arg2[%c1_181, %c0_182, %c0_183] : memref<5x50x32xf32, #tpu.memory_space<vmem>>, vector<1x50x32xf32>
    %271 = vector.shape_cast %270 : vector<1x50x32xf32> to vector<50x32xf32>
    %cst_184 = arith.constant dense<0.000000e+00> : vector<16x32xf32>
    %272 = tpu.matmul %269, %271, %cst_184 {dimension_numbers = #tpu.dot_dimension_numbers<[1], [0], [0], [1], [0, 0, 1, 1], [], []>} : vector<16x50xf32>, vector<50x32xf32>, vector<16x32xf32> -> vector<16x32xf32>
    %273 = arith.addf %272, %1 : vector<16x32xf32>
    %c1_185 = arith.constant 1 : index
    %c0_186 = arith.constant 0 : index
    %c0_187 = arith.constant 0 : index
    %274 = vector.load %arg1[%c1_185, %c0_186, %c0_187] : memref<5x2x8xi32, #tpu.memory_space<vmem>>, vector<1x2x8xi32>
    %275 = vector.shape_cast %274 : vector<1x2x8xi32> to vector<2x8xi32>
    %c0_i32_188 = arith.constant 0 : i32
    %276 = vector.broadcast %c0_i32_188 : i32 to vector<2x8xi32>
    %277 = arith.cmpi ne, %275, %276 : vector<2x8xi32>
    %cst_189 = arith.constant 0.000000e+00 : f32
    %cst_190 = arith.constant -1.000000e+09 : f32
    %278 = vector.broadcast %cst_189 : f32 to vector<2x8xf32>
    %279 = vector.broadcast %cst_190 : f32 to vector<2x8xf32>
    %280 = arith.select %277, %278, %279 : vector<2x8xi1>, vector<2x8xf32>
    %c1_191 = arith.constant 1 : index
    %c0_192 = arith.constant 0 : index
    %c0_193 = arith.constant 0 : index
    %281 = vector.load %arg4[%c1_191, %c0_192, %c0_193] : memref<5x2x32xf32, #tpu.memory_space<vmem>>, vector<1x2x32xf32>
    %282 = vector.shape_cast %281 : vector<1x2x32xf32> to vector<2x32xf32>
    %283 = vector.extract_strided_slice %282 {offsets = [0, 0], sizes = [1, 32], strides = [1, 1]} : vector<2x32xf32> to vector<1x32xf32>
    %284 = vector.extract_strided_slice %282 {offsets = [1, 0], sizes = [1, 32], strides = [1, 1]} : vector<2x32xf32> to vector<1x32xf32>
    %cst_194 = arith.constant dense<0.000000e+00> : vector<16xf32>
    %285 = vector.multi_reduction <add>, %273, %cst_194 [1] : vector<16x32xf32> to vector<16xf32>
    %286 = vector.shape_cast %285 : vector<16xf32> to vector<16x1xf32>
    %cst_195 = arith.constant 3.200000e+01 : f32
    %287 = vector.broadcast %cst_195 : f32 to vector<16x1xf32>
    %288 = arith.divf %286, %287 : vector<16x1xf32>
    %289 = vector.broadcast %288 : vector<16x1xf32> to vector<16x32xf32>
    %290 = arith.subf %273, %289 : vector<16x32xf32>
    %291 = arith.mulf %290, %290 : vector<16x32xf32>
    %cst_196 = arith.constant dense<0.000000e+00> : vector<16xf32>
    %292 = vector.multi_reduction <add>, %291, %cst_196 [1] : vector<16x32xf32> to vector<16xf32>
    %293 = vector.shape_cast %292 : vector<16xf32> to vector<16x1xf32>
    %cst_197 = arith.constant 3.200000e+01 : f32
    %294 = vector.broadcast %cst_197 : f32 to vector<16x1xf32>
    %295 = arith.divf %293, %294 : vector<16x1xf32>
    %cst_198 = arith.constant 9.99999974E-6 : f32
    %296 = vector.broadcast %cst_198 : f32 to vector<16x1xf32>
    %297 = arith.addf %295, %296 : vector<16x1xf32>
    %298 = math.rsqrt %297 : vector<16x1xf32>
    %299 = vector.broadcast %298 : vector<16x1xf32> to vector<16x32xf32>
    %300 = arith.mulf %290, %299 : vector<16x32xf32>
    %301 = vector.broadcast %283 : vector<1x32xf32> to vector<16x32xf32>
    %302 = arith.mulf %300, %301 : vector<16x32xf32>
    %303 = vector.broadcast %284 : vector<1x32xf32> to vector<16x32xf32>
    %304 = arith.addf %302, %303 : vector<16x32xf32>
    %c1_199 = arith.constant 1 : index
    %c0_200 = arith.constant 0 : index
    %c0_201 = arith.constant 0 : index
    %c0_202 = arith.constant 0 : index
    %c0_203 = arith.constant 0 : index
    %305 = vector.load %arg5[%c1_199, %c0_200, %c0_201, %c0_202, %c0_203] : memref<5x1x2x32x16xf32, #tpu.memory_space<vmem>>, vector<1x1x1x32x16xf32>
    %306 = vector.shape_cast %305 : vector<1x1x1x32x16xf32> to vector<32x16xf32>
    %cst_204 = arith.constant dense<0.000000e+00> : vector<16x16xf32>
    %307 = tpu.matmul %304, %306, %cst_204 {dimension_numbers = #tpu.dot_dimension_numbers<[1], [0], [0], [1], [0, 0, 1, 1], [], []>} : vector<16x32xf32>, vector<32x16xf32>, vector<16x16xf32> -> vector<16x16xf32>
    %c1_205 = arith.constant 1 : index
    %c0_206 = arith.constant 0 : index
    %c0_207 = arith.constant 0 : index
    %c0_208 = arith.constant 0 : index
    %c0_209 = arith.constant 0 : index
    %308 = vector.load %arg8[%c1_205, %c0_206, %c0_207, %c0_208, %c0_209] : memref<5x1x2x1x16xf32, #tpu.memory_space<vmem>>, vector<1x1x1x1x16xf32>
    %309 = vector.shape_cast %308 : vector<1x1x1x1x16xf32> to vector<1x16xf32>
    %310 = vector.broadcast %309 : vector<1x16xf32> to vector<16x16xf32>
    %311 = arith.addf %307, %310 : vector<16x16xf32>
    %c1_210 = arith.constant 1 : index
    %c0_211 = arith.constant 0 : index
    %c1_212 = arith.constant 1 : index
    %c0_213 = arith.constant 0 : index
    %c0_214 = arith.constant 0 : index
    %312 = vector.load %arg5[%c1_210, %c0_211, %c1_212, %c0_213, %c0_214] : memref<5x1x2x32x16xf32, #tpu.memory_space<vmem>>, vector<1x1x1x32x16xf32>
    %313 = vector.shape_cast %312 : vector<1x1x1x32x16xf32> to vector<32x16xf32>
    %cst_215 = arith.constant dense<0.000000e+00> : vector<16x16xf32>
    %314 = tpu.matmul %304, %313, %cst_215 {dimension_numbers = #tpu.dot_dimension_numbers<[1], [0], [0], [1], [0, 0, 1, 1], [], []>} : vector<16x32xf32>, vector<32x16xf32>, vector<16x16xf32> -> vector<16x16xf32>
    %c1_216 = arith.constant 1 : index
    %c0_217 = arith.constant 0 : index
    %c1_218 = arith.constant 1 : index
    %c0_219 = arith.constant 0 : index
    %c0_220 = arith.constant 0 : index
    %315 = vector.load %arg8[%c1_216, %c0_217, %c1_218, %c0_219, %c0_220] : memref<5x1x2x1x16xf32, #tpu.memory_space<vmem>>, vector<1x1x1x1x16xf32>
    %316 = vector.shape_cast %315 : vector<1x1x1x1x16xf32> to vector<1x16xf32>
    %317 = vector.broadcast %316 : vector<1x16xf32> to vector<16x16xf32>
    %318 = arith.addf %314, %317 : vector<16x16xf32>
    %c1_221 = arith.constant 1 : index
    %c0_222 = arith.constant 0 : index
    %c0_223 = arith.constant 0 : index
    %c0_224 = arith.constant 0 : index
    %c0_225 = arith.constant 0 : index
    %319 = vector.load %arg6[%c1_221, %c0_222, %c0_223, %c0_224, %c0_225] : memref<5x1x2x32x16xf32, #tpu.memory_space<vmem>>, vector<1x1x1x32x16xf32>
    %320 = vector.shape_cast %319 : vector<1x1x1x32x16xf32> to vector<32x16xf32>
    %cst_226 = arith.constant dense<0.000000e+00> : vector<16x16xf32>
    %321 = tpu.matmul %304, %320, %cst_226 {dimension_numbers = #tpu.dot_dimension_numbers<[1], [0], [0], [1], [0, 0, 1, 1], [], []>} : vector<16x32xf32>, vector<32x16xf32>, vector<16x16xf32> -> vector<16x16xf32>
    %c1_227 = arith.constant 1 : index
    %c0_228 = arith.constant 0 : index
    %c0_229 = arith.constant 0 : index
    %c0_230 = arith.constant 0 : index
    %c0_231 = arith.constant 0 : index
    %322 = vector.load %arg9[%c1_227, %c0_228, %c0_229, %c0_230, %c0_231] : memref<5x1x2x1x16xf32, #tpu.memory_space<vmem>>, vector<1x1x1x1x16xf32>
    %323 = vector.shape_cast %322 : vector<1x1x1x1x16xf32> to vector<1x16xf32>
    %324 = vector.broadcast %323 : vector<1x16xf32> to vector<16x16xf32>
    %325 = arith.addf %321, %324 : vector<16x16xf32>
    %c1_232 = arith.constant 1 : index
    %c0_233 = arith.constant 0 : index
    %c1_234 = arith.constant 1 : index
    %c0_235 = arith.constant 0 : index
    %c0_236 = arith.constant 0 : index
    %326 = vector.load %arg6[%c1_232, %c0_233, %c1_234, %c0_235, %c0_236] : memref<5x1x2x32x16xf32, #tpu.memory_space<vmem>>, vector<1x1x1x32x16xf32>
    %327 = vector.shape_cast %326 : vector<1x1x1x32x16xf32> to vector<32x16xf32>
    %cst_237 = arith.constant dense<0.000000e+00> : vector<16x16xf32>
    %328 = tpu.matmul %304, %327, %cst_237 {dimension_numbers = #tpu.dot_dimension_numbers<[1], [0], [0], [1], [0, 0, 1, 1], [], []>} : vector<16x32xf32>, vector<32x16xf32>, vector<16x16xf32> -> vector<16x16xf32>
    %c1_238 = arith.constant 1 : index
    %c0_239 = arith.constant 0 : index
    %c1_240 = arith.constant 1 : index
    %c0_241 = arith.constant 0 : index
    %c0_242 = arith.constant 0 : index
    %329 = vector.load %arg9[%c1_238, %c0_239, %c1_240, %c0_241, %c0_242] : memref<5x1x2x1x16xf32, #tpu.memory_space<vmem>>, vector<1x1x1x1x16xf32>
    %330 = vector.shape_cast %329 : vector<1x1x1x1x16xf32> to vector<1x16xf32>
    %331 = vector.broadcast %330 : vector<1x16xf32> to vector<16x16xf32>
    %332 = arith.addf %328, %331 : vector<16x16xf32>
    %c1_243 = arith.constant 1 : index
    %c0_244 = arith.constant 0 : index
    %c0_245 = arith.constant 0 : index
    %c0_246 = arith.constant 0 : index
    %c0_247 = arith.constant 0 : index
    %333 = vector.load %arg7[%c1_243, %c0_244, %c0_245, %c0_246, %c0_247] : memref<5x1x2x32x16xf32, #tpu.memory_space<vmem>>, vector<1x1x1x32x16xf32>
    %334 = vector.shape_cast %333 : vector<1x1x1x32x16xf32> to vector<32x16xf32>
    %cst_248 = arith.constant dense<0.000000e+00> : vector<16x16xf32>
    %335 = tpu.matmul %304, %334, %cst_248 {dimension_numbers = #tpu.dot_dimension_numbers<[1], [0], [0], [1], [0, 0, 1, 1], [], []>} : vector<16x32xf32>, vector<32x16xf32>, vector<16x16xf32> -> vector<16x16xf32>
    %c1_249 = arith.constant 1 : index
    %c0_250 = arith.constant 0 : index
    %c0_251 = arith.constant 0 : index
    %c0_252 = arith.constant 0 : index
    %c0_253 = arith.constant 0 : index
    %336 = vector.load %arg10[%c1_249, %c0_250, %c0_251, %c0_252, %c0_253] : memref<5x1x2x1x16xf32, #tpu.memory_space<vmem>>, vector<1x1x1x1x16xf32>
    %337 = vector.shape_cast %336 : vector<1x1x1x1x16xf32> to vector<1x16xf32>
    %338 = vector.broadcast %337 : vector<1x16xf32> to vector<16x16xf32>
    %339 = arith.addf %335, %338 : vector<16x16xf32>
    %c1_254 = arith.constant 1 : index
    %c0_255 = arith.constant 0 : index
    %c1_256 = arith.constant 1 : index
    %c0_257 = arith.constant 0 : index
    %c0_258 = arith.constant 0 : index
    %340 = vector.load %arg7[%c1_254, %c0_255, %c1_256, %c0_257, %c0_258] : memref<5x1x2x32x16xf32, #tpu.memory_space<vmem>>, vector<1x1x1x32x16xf32>
    %341 = vector.shape_cast %340 : vector<1x1x1x32x16xf32> to vector<32x16xf32>
    %cst_259 = arith.constant dense<0.000000e+00> : vector<16x16xf32>
    %342 = tpu.matmul %304, %341, %cst_259 {dimension_numbers = #tpu.dot_dimension_numbers<[1], [0], [0], [1], [0, 0, 1, 1], [], []>} : vector<16x32xf32>, vector<32x16xf32>, vector<16x16xf32> -> vector<16x16xf32>
    %c1_260 = arith.constant 1 : index
    %c0_261 = arith.constant 0 : index
    %c1_262 = arith.constant 1 : index
    %c0_263 = arith.constant 0 : index
    %c0_264 = arith.constant 0 : index
    %343 = vector.load %arg10[%c1_260, %c0_261, %c1_262, %c0_263, %c0_264] : memref<5x1x2x1x16xf32, #tpu.memory_space<vmem>>, vector<1x1x1x1x16xf32>
    %344 = vector.shape_cast %343 : vector<1x1x1x1x16xf32> to vector<1x16xf32>
    %345 = vector.broadcast %344 : vector<1x16xf32> to vector<16x16xf32>
    %346 = arith.addf %342, %345 : vector<16x16xf32>
    %347 = vector.extract_strided_slice %280 {offsets = [0, 0], sizes = [1, 8], strides = [1, 1]} : vector<2x8xf32> to vector<1x8xf32>
    %348 = vector.extract_strided_slice %311 {offsets = [0, 0], sizes = [8, 16], strides = [1, 1]} : vector<16x16xf32> to vector<8x16xf32>
    %349 = vector.extract_strided_slice %325 {offsets = [0, 0], sizes = [8, 16], strides = [1, 1]} : vector<16x16xf32> to vector<8x16xf32>
    %350 = vector.extract_strided_slice %339 {offsets = [0, 0], sizes = [8, 16], strides = [1, 1]} : vector<16x16xf32> to vector<8x16xf32>
    %cst_265 = arith.constant dense<0.000000e+00> : vector<8x8xf32>
    %351 = tpu.matmul %348, %349, %cst_265 {dimension_numbers = #tpu.dot_dimension_numbers<[1], [1], [0], [0], [0, 0, 1, 0], [], []>} : vector<8x16xf32>, vector<8x16xf32>, vector<8x8xf32> -> vector<8x8xf32>
    %cst_266 = arith.constant 2.500000e-01 : f32
    %352 = vector.broadcast %cst_266 : f32 to vector<8x8xf32>
    %353 = arith.mulf %351, %352 : vector<8x8xf32>
    %354 = vector.broadcast %347 : vector<1x8xf32> to vector<8x8xf32>
    %355 = arith.addf %353, %354 : vector<8x8xf32>
    %cst_267 = arith.constant dense<0xFF800000> : vector<8xf32>
    %356 = vector.multi_reduction <maximumf>, %355, %cst_267 [1] : vector<8x8xf32> to vector<8xf32>
    %357 = vector.shape_cast %356 : vector<8xf32> to vector<8x1xf32>
    %358 = vector.broadcast %357 : vector<8x1xf32> to vector<8x8xf32>
    %359 = arith.subf %355, %358 : vector<8x8xf32>
    %360 = math.exp %359 : vector<8x8xf32>
    %cst_268 = arith.constant dense<0.000000e+00> : vector<8xf32>
    %361 = vector.multi_reduction <add>, %360, %cst_268 [1] : vector<8x8xf32> to vector<8xf32>
    %362 = vector.shape_cast %361 : vector<8xf32> to vector<8x1xf32>
    %363 = tpu.reciprocal %362 : vector<8x1xf32> -> vector<8x1xf32>
    %364 = vector.broadcast %363 : vector<8x1xf32> to vector<8x8xf32>
    %365 = arith.mulf %360, %364 : vector<8x8xf32>
    %cst_269 = arith.constant dense<0.000000e+00> : vector<8x16xf32>
    %366 = tpu.matmul %365, %350, %cst_269 {dimension_numbers = #tpu.dot_dimension_numbers<[1], [0], [0], [1], [0, 0, 1, 1], [], []>} : vector<8x8xf32>, vector<8x16xf32>, vector<8x16xf32> -> vector<8x16xf32>
    %c1_270 = arith.constant 1 : index
    %c0_271 = arith.constant 0 : index
    %c0_272 = arith.constant 0 : index
    %c0_273 = arith.constant 0 : index
    %c0_274 = arith.constant 0 : index
    %367 = vector.load %arg11[%c1_270, %c0_271, %c0_272, %c0_273, %c0_274] : memref<5x1x2x16x32xf32, #tpu.memory_space<vmem>>, vector<1x1x1x16x32xf32>
    %368 = vector.shape_cast %367 : vector<1x1x1x16x32xf32> to vector<16x32xf32>
    %cst_275 = arith.constant dense<0.000000e+00> : vector<8x32xf32>
    %369 = tpu.matmul %366, %368, %cst_275 {dimension_numbers = #tpu.dot_dimension_numbers<[1], [0], [0], [1], [0, 0, 1, 1], [], []>} : vector<8x16xf32>, vector<16x32xf32>, vector<8x32xf32> -> vector<8x32xf32>
    %370 = vector.extract_strided_slice %318 {offsets = [0, 0], sizes = [8, 16], strides = [1, 1]} : vector<16x16xf32> to vector<8x16xf32>
    %371 = vector.extract_strided_slice %332 {offsets = [0, 0], sizes = [8, 16], strides = [1, 1]} : vector<16x16xf32> to vector<8x16xf32>
    %372 = vector.extract_strided_slice %346 {offsets = [0, 0], sizes = [8, 16], strides = [1, 1]} : vector<16x16xf32> to vector<8x16xf32>
    %cst_276 = arith.constant dense<0.000000e+00> : vector<8x8xf32>
    %373 = tpu.matmul %370, %371, %cst_276 {dimension_numbers = #tpu.dot_dimension_numbers<[1], [1], [0], [0], [0, 0, 1, 0], [], []>} : vector<8x16xf32>, vector<8x16xf32>, vector<8x8xf32> -> vector<8x8xf32>
    %cst_277 = arith.constant 2.500000e-01 : f32
    %374 = vector.broadcast %cst_277 : f32 to vector<8x8xf32>
    %375 = arith.mulf %373, %374 : vector<8x8xf32>
    %376 = vector.broadcast %347 : vector<1x8xf32> to vector<8x8xf32>
    %377 = arith.addf %375, %376 : vector<8x8xf32>
    %cst_278 = arith.constant dense<0xFF800000> : vector<8xf32>
    %378 = vector.multi_reduction <maximumf>, %377, %cst_278 [1] : vector<8x8xf32> to vector<8xf32>
    %379 = vector.shape_cast %378 : vector<8xf32> to vector<8x1xf32>
    %380 = vector.broadcast %379 : vector<8x1xf32> to vector<8x8xf32>
    %381 = arith.subf %377, %380 : vector<8x8xf32>
    %382 = math.exp %381 : vector<8x8xf32>
    %cst_279 = arith.constant dense<0.000000e+00> : vector<8xf32>
    %383 = vector.multi_reduction <add>, %382, %cst_279 [1] : vector<8x8xf32> to vector<8xf32>
    %384 = vector.shape_cast %383 : vector<8xf32> to vector<8x1xf32>
    %385 = tpu.reciprocal %384 : vector<8x1xf32> -> vector<8x1xf32>
    %386 = vector.broadcast %385 : vector<8x1xf32> to vector<8x8xf32>
    %387 = arith.mulf %382, %386 : vector<8x8xf32>
    %cst_280 = arith.constant dense<0.000000e+00> : vector<8x16xf32>
    %388 = tpu.matmul %387, %372, %cst_280 {dimension_numbers = #tpu.dot_dimension_numbers<[1], [0], [0], [1], [0, 0, 1, 1], [], []>} : vector<8x8xf32>, vector<8x16xf32>, vector<8x16xf32> -> vector<8x16xf32>
    %c1_281 = arith.constant 1 : index
    %c0_282 = arith.constant 0 : index
    %c1_283 = arith.constant 1 : index
    %c0_284 = arith.constant 0 : index
    %c0_285 = arith.constant 0 : index
    %389 = vector.load %arg11[%c1_281, %c0_282, %c1_283, %c0_284, %c0_285] : memref<5x1x2x16x32xf32, #tpu.memory_space<vmem>>, vector<1x1x1x16x32xf32>
    %390 = vector.shape_cast %389 : vector<1x1x1x16x32xf32> to vector<16x32xf32>
    %cst_286 = arith.constant dense<0.000000e+00> : vector<8x32xf32>
    %391 = tpu.matmul %388, %390, %cst_286 {dimension_numbers = #tpu.dot_dimension_numbers<[1], [0], [0], [1], [0, 0, 1, 1], [], []>} : vector<8x16xf32>, vector<16x32xf32>, vector<8x32xf32> -> vector<8x32xf32>
    %392 = arith.addf %369, %391 : vector<8x32xf32>
    %393 = vector.extract_strided_slice %280 {offsets = [1, 0], sizes = [1, 8], strides = [1, 1]} : vector<2x8xf32> to vector<1x8xf32>
    %394 = vector.extract_strided_slice %311 {offsets = [8, 0], sizes = [8, 16], strides = [1, 1]} : vector<16x16xf32> to vector<8x16xf32>
    %395 = vector.extract_strided_slice %325 {offsets = [8, 0], sizes = [8, 16], strides = [1, 1]} : vector<16x16xf32> to vector<8x16xf32>
    %396 = vector.extract_strided_slice %339 {offsets = [8, 0], sizes = [8, 16], strides = [1, 1]} : vector<16x16xf32> to vector<8x16xf32>
    %cst_287 = arith.constant dense<0.000000e+00> : vector<8x8xf32>
    %397 = tpu.matmul %394, %395, %cst_287 {dimension_numbers = #tpu.dot_dimension_numbers<[1], [1], [0], [0], [0, 0, 1, 0], [], []>} : vector<8x16xf32>, vector<8x16xf32>, vector<8x8xf32> -> vector<8x8xf32>
    %cst_288 = arith.constant 2.500000e-01 : f32
    %398 = vector.broadcast %cst_288 : f32 to vector<8x8xf32>
    %399 = arith.mulf %397, %398 : vector<8x8xf32>
    %400 = vector.broadcast %393 : vector<1x8xf32> to vector<8x8xf32>
    %401 = arith.addf %399, %400 : vector<8x8xf32>
    %cst_289 = arith.constant dense<0xFF800000> : vector<8xf32>
    %402 = vector.multi_reduction <maximumf>, %401, %cst_289 [1] : vector<8x8xf32> to vector<8xf32>
    %403 = vector.shape_cast %402 : vector<8xf32> to vector<8x1xf32>
    %404 = vector.broadcast %403 : vector<8x1xf32> to vector<8x8xf32>
    %405 = arith.subf %401, %404 : vector<8x8xf32>
    %406 = math.exp %405 : vector<8x8xf32>
    %cst_290 = arith.constant dense<0.000000e+00> : vector<8xf32>
    %407 = vector.multi_reduction <add>, %406, %cst_290 [1] : vector<8x8xf32> to vector<8xf32>
    %408 = vector.shape_cast %407 : vector<8xf32> to vector<8x1xf32>
    %409 = tpu.reciprocal %408 : vector<8x1xf32> -> vector<8x1xf32>
    %410 = vector.broadcast %409 : vector<8x1xf32> to vector<8x8xf32>
    %411 = arith.mulf %406, %410 : vector<8x8xf32>
    %cst_291 = arith.constant dense<0.000000e+00> : vector<8x16xf32>
    %412 = tpu.matmul %411, %396, %cst_291 {dimension_numbers = #tpu.dot_dimension_numbers<[1], [0], [0], [1], [0, 0, 1, 1], [], []>} : vector<8x8xf32>, vector<8x16xf32>, vector<8x16xf32> -> vector<8x16xf32>
    %c1_292 = arith.constant 1 : index
    %c0_293 = arith.constant 0 : index
    %c0_294 = arith.constant 0 : index
    %c0_295 = arith.constant 0 : index
    %c0_296 = arith.constant 0 : index
    %413 = vector.load %arg11[%c1_292, %c0_293, %c0_294, %c0_295, %c0_296] : memref<5x1x2x16x32xf32, #tpu.memory_space<vmem>>, vector<1x1x1x16x32xf32>
    %414 = vector.shape_cast %413 : vector<1x1x1x16x32xf32> to vector<16x32xf32>
    %cst_297 = arith.constant dense<0.000000e+00> : vector<8x32xf32>
    %415 = tpu.matmul %412, %414, %cst_297 {dimension_numbers = #tpu.dot_dimension_numbers<[1], [0], [0], [1], [0, 0, 1, 1], [], []>} : vector<8x16xf32>, vector<16x32xf32>, vector<8x32xf32> -> vector<8x32xf32>
    %416 = vector.extract_strided_slice %318 {offsets = [8, 0], sizes = [8, 16], strides = [1, 1]} : vector<16x16xf32> to vector<8x16xf32>
    %417 = vector.extract_strided_slice %332 {offsets = [8, 0], sizes = [8, 16], strides = [1, 1]} : vector<16x16xf32> to vector<8x16xf32>
    %418 = vector.extract_strided_slice %346 {offsets = [8, 0], sizes = [8, 16], strides = [1, 1]} : vector<16x16xf32> to vector<8x16xf32>
    %cst_298 = arith.constant dense<0.000000e+00> : vector<8x8xf32>
    %419 = tpu.matmul %416, %417, %cst_298 {dimension_numbers = #tpu.dot_dimension_numbers<[1], [1], [0], [0], [0, 0, 1, 0], [], []>} : vector<8x16xf32>, vector<8x16xf32>, vector<8x8xf32> -> vector<8x8xf32>
    %cst_299 = arith.constant 2.500000e-01 : f32
    %420 = vector.broadcast %cst_299 : f32 to vector<8x8xf32>
    %421 = arith.mulf %419, %420 : vector<8x8xf32>
    %422 = vector.broadcast %393 : vector<1x8xf32> to vector<8x8xf32>
    %423 = arith.addf %421, %422 : vector<8x8xf32>
    %cst_300 = arith.constant dense<0xFF800000> : vector<8xf32>
    %424 = vector.multi_reduction <maximumf>, %423, %cst_300 [1] : vector<8x8xf32> to vector<8xf32>
    %425 = vector.shape_cast %424 : vector<8xf32> to vector<8x1xf32>
    %426 = vector.broadcast %425 : vector<8x1xf32> to vector<8x8xf32>
    %427 = arith.subf %423, %426 : vector<8x8xf32>
    %428 = math.exp %427 : vector<8x8xf32>
    %cst_301 = arith.constant dense<0.000000e+00> : vector<8xf32>
    %429 = vector.multi_reduction <add>, %428, %cst_301 [1] : vector<8x8xf32> to vector<8xf32>
    %430 = vector.shape_cast %429 : vector<8xf32> to vector<8x1xf32>
    %431 = tpu.reciprocal %430 : vector<8x1xf32> -> vector<8x1xf32>
    %432 = vector.broadcast %431 : vector<8x1xf32> to vector<8x8xf32>
    %433 = arith.mulf %428, %432 : vector<8x8xf32>
    %cst_302 = arith.constant dense<0.000000e+00> : vector<8x16xf32>
    %434 = tpu.matmul %433, %418, %cst_302 {dimension_numbers = #tpu.dot_dimension_numbers<[1], [0], [0], [1], [0, 0, 1, 1], [], []>} : vector<8x8xf32>, vector<8x16xf32>, vector<8x16xf32> -> vector<8x16xf32>
    %c1_303 = arith.constant 1 : index
    %c0_304 = arith.constant 0 : index
    %c1_305 = arith.constant 1 : index
    %c0_306 = arith.constant 0 : index
    %c0_307 = arith.constant 0 : index
    %435 = vector.load %arg11[%c1_303, %c0_304, %c1_305, %c0_306, %c0_307] : memref<5x1x2x16x32xf32, #tpu.memory_space<vmem>>, vector<1x1x1x16x32xf32>
    %436 = vector.shape_cast %435 : vector<1x1x1x16x32xf32> to vector<16x32xf32>
    %cst_308 = arith.constant dense<0.000000e+00> : vector<8x32xf32>
    %437 = tpu.matmul %434, %436, %cst_308 {dimension_numbers = #tpu.dot_dimension_numbers<[1], [0], [0], [1], [0, 0, 1, 1], [], []>} : vector<8x16xf32>, vector<16x32xf32>, vector<8x32xf32> -> vector<8x32xf32>
    %438 = arith.addf %415, %437 : vector<8x32xf32>
    %439 = tpu.concatenate %392, %438 in 0 : vector<8x32xf32>, vector<8x32xf32> -> vector<16x32xf32>
    %c1_309 = arith.constant 1 : index
    %c0_310 = arith.constant 0 : index
    %c0_311 = arith.constant 0 : index
    %c0_312 = arith.constant 0 : index
    %440 = vector.load %arg12[%c1_309, %c0_310, %c0_311, %c0_312] : memref<5x1x1x32xf32, #tpu.memory_space<vmem>>, vector<1x1x1x32xf32>
    %441 = vector.shape_cast %440 : vector<1x1x1x32xf32> to vector<1x32xf32>
    %442 = vector.broadcast %441 : vector<1x32xf32> to vector<16x32xf32>
    %443 = arith.addf %439, %442 : vector<16x32xf32>
    %c1_313 = arith.constant 1 : index
    %c0_314 = arith.constant 0 : index
    %c0_315 = arith.constant 0 : index
    %c0_316 = arith.constant 0 : index
    %444 = vector.load %arg17[%c1_313, %c0_314, %c0_315, %c0_316] : memref<5x1x4x32xf32, #tpu.memory_space<vmem>>, vector<1x1x4x32xf32>
    %445 = vector.shape_cast %444 : vector<1x1x4x32xf32> to vector<4x32xf32>
    %446 = arith.addf %304, %443 : vector<16x32xf32>
    %447 = vector.extract_strided_slice %445 {offsets = [0, 0], sizes = [1, 32], strides = [1, 1]} : vector<4x32xf32> to vector<1x32xf32>
    %448 = vector.extract_strided_slice %445 {offsets = [1, 0], sizes = [1, 32], strides = [1, 1]} : vector<4x32xf32> to vector<1x32xf32>
    %cst_317 = arith.constant dense<0.000000e+00> : vector<16xf32>
    %449 = vector.multi_reduction <add>, %446, %cst_317 [1] : vector<16x32xf32> to vector<16xf32>
    %450 = vector.shape_cast %449 : vector<16xf32> to vector<16x1xf32>
    %cst_318 = arith.constant 3.200000e+01 : f32
    %451 = vector.broadcast %cst_318 : f32 to vector<16x1xf32>
    %452 = arith.divf %450, %451 : vector<16x1xf32>
    %453 = vector.broadcast %452 : vector<16x1xf32> to vector<16x32xf32>
    %454 = arith.subf %446, %453 : vector<16x32xf32>
    %455 = arith.mulf %454, %454 : vector<16x32xf32>
    %cst_319 = arith.constant dense<0.000000e+00> : vector<16xf32>
    %456 = vector.multi_reduction <add>, %455, %cst_319 [1] : vector<16x32xf32> to vector<16xf32>
    %457 = vector.shape_cast %456 : vector<16xf32> to vector<16x1xf32>
    %cst_320 = arith.constant 3.200000e+01 : f32
    %458 = vector.broadcast %cst_320 : f32 to vector<16x1xf32>
    %459 = arith.divf %457, %458 : vector<16x1xf32>
    %cst_321 = arith.constant 9.99999974E-6 : f32
    %460 = vector.broadcast %cst_321 : f32 to vector<16x1xf32>
    %461 = arith.addf %459, %460 : vector<16x1xf32>
    %462 = math.rsqrt %461 : vector<16x1xf32>
    %463 = vector.broadcast %462 : vector<16x1xf32> to vector<16x32xf32>
    %464 = arith.mulf %454, %463 : vector<16x32xf32>
    %465 = vector.broadcast %447 : vector<1x32xf32> to vector<16x32xf32>
    %466 = arith.mulf %464, %465 : vector<16x32xf32>
    %467 = vector.broadcast %448 : vector<1x32xf32> to vector<16x32xf32>
    %468 = arith.addf %466, %467 : vector<16x32xf32>
    %c1_322 = arith.constant 1 : index
    %c0_323 = arith.constant 0 : index
    %c0_324 = arith.constant 0 : index
    %c0_325 = arith.constant 0 : index
    %469 = vector.load %arg13[%c1_322, %c0_323, %c0_324, %c0_325] : memref<5x1x32x64xf32, #tpu.memory_space<vmem>>, vector<1x1x32x64xf32>
    %470 = vector.shape_cast %469 : vector<1x1x32x64xf32> to vector<32x64xf32>
    %cst_326 = arith.constant dense<0.000000e+00> : vector<16x64xf32>
    %471 = tpu.matmul %468, %470, %cst_326 {dimension_numbers = #tpu.dot_dimension_numbers<[1], [0], [0], [1], [0, 0, 1, 1], [], []>} : vector<16x32xf32>, vector<32x64xf32>, vector<16x64xf32> -> vector<16x64xf32>
    %c1_327 = arith.constant 1 : index
    %c0_328 = arith.constant 0 : index
    %c0_329 = arith.constant 0 : index
    %c0_330 = arith.constant 0 : index
    %472 = vector.load %arg14[%c1_327, %c0_328, %c0_329, %c0_330] : memref<5x1x1x64xf32, #tpu.memory_space<vmem>>, vector<1x1x1x64xf32>
    %473 = vector.shape_cast %472 : vector<1x1x1x64xf32> to vector<1x64xf32>
    %474 = vector.broadcast %473 : vector<1x64xf32> to vector<16x64xf32>
    %475 = arith.addf %471, %474 : vector<16x64xf32>
    %cst_331 = arith.constant 0.000000e+00 : f32
    %476 = vector.broadcast %cst_331 : f32 to vector<16x64xf32>
    %477 = arith.maximumf %475, %476 : vector<16x64xf32>
    %c1_332 = arith.constant 1 : index
    %c0_333 = arith.constant 0 : index
    %c0_334 = arith.constant 0 : index
    %c0_335 = arith.constant 0 : index
    %478 = vector.load %arg15[%c1_332, %c0_333, %c0_334, %c0_335] : memref<5x1x64x32xf32, #tpu.memory_space<vmem>>, vector<1x1x64x32xf32>
    %479 = vector.shape_cast %478 : vector<1x1x64x32xf32> to vector<64x32xf32>
    %cst_336 = arith.constant dense<0.000000e+00> : vector<16x32xf32>
    %480 = tpu.matmul %477, %479, %cst_336 {dimension_numbers = #tpu.dot_dimension_numbers<[1], [0], [0], [1], [0, 0, 1, 1], [], []>} : vector<16x64xf32>, vector<64x32xf32>, vector<16x32xf32> -> vector<16x32xf32>
    %c1_337 = arith.constant 1 : index
    %c0_338 = arith.constant 0 : index
    %c0_339 = arith.constant 0 : index
    %c0_340 = arith.constant 0 : index
    %481 = vector.load %arg16[%c1_337, %c0_338, %c0_339, %c0_340] : memref<5x1x1x32xf32, #tpu.memory_space<vmem>>, vector<1x1x1x32xf32>
    %482 = vector.shape_cast %481 : vector<1x1x1x32xf32> to vector<1x32xf32>
    %483 = vector.broadcast %482 : vector<1x32xf32> to vector<16x32xf32>
    %484 = arith.addf %480, %483 : vector<16x32xf32>
    %485 = arith.addf %468, %484 : vector<16x32xf32>
    %486 = vector.extract_strided_slice %445 {offsets = [2, 0], sizes = [1, 32], strides = [1, 1]} : vector<4x32xf32> to vector<1x32xf32>
    %487 = vector.extract_strided_slice %445 {offsets = [3, 0], sizes = [1, 32], strides = [1, 1]} : vector<4x32xf32> to vector<1x32xf32>
    %cst_341 = arith.constant dense<0.000000e+00> : vector<16xf32>
    %488 = vector.multi_reduction <add>, %485, %cst_341 [1] : vector<16x32xf32> to vector<16xf32>
    %489 = vector.shape_cast %488 : vector<16xf32> to vector<16x1xf32>
    %cst_342 = arith.constant 3.200000e+01 : f32
    %490 = vector.broadcast %cst_342 : f32 to vector<16x1xf32>
    %491 = arith.divf %489, %490 : vector<16x1xf32>
    %492 = vector.broadcast %491 : vector<16x1xf32> to vector<16x32xf32>
    %493 = arith.subf %485, %492 : vector<16x32xf32>
    %494 = arith.mulf %493, %493 : vector<16x32xf32>
    %cst_343 = arith.constant dense<0.000000e+00> : vector<16xf32>
    %495 = vector.multi_reduction <add>, %494, %cst_343 [1] : vector<16x32xf32> to vector<16xf32>
    %496 = vector.shape_cast %495 : vector<16xf32> to vector<16x1xf32>
    %cst_344 = arith.constant 3.200000e+01 : f32
    %497 = vector.broadcast %cst_344 : f32 to vector<16x1xf32>
    %498 = arith.divf %496, %497 : vector<16x1xf32>
    %cst_345 = arith.constant 9.99999974E-6 : f32
    %499 = vector.broadcast %cst_345 : f32 to vector<16x1xf32>
    %500 = arith.addf %498, %499 : vector<16x1xf32>
    %501 = math.rsqrt %500 : vector<16x1xf32>
    %502 = vector.broadcast %501 : vector<16x1xf32> to vector<16x32xf32>
    %503 = arith.mulf %493, %502 : vector<16x32xf32>
    %504 = vector.broadcast %486 : vector<1x32xf32> to vector<16x32xf32>
    %505 = arith.mulf %503, %504 : vector<16x32xf32>
    %506 = vector.broadcast %487 : vector<1x32xf32> to vector<16x32xf32>
    %507 = arith.addf %505, %506 : vector<16x32xf32>
    %c1_346 = arith.constant 1 : index
    %c0_347 = arith.constant 0 : index
    %c0_348 = arith.constant 0 : index
    %508 = vector.load %arg19[%c1_346, %c0_347, %c0_348] : memref<5x32x512xf32, #tpu.memory_space<vmem>>, vector<1x32x512xf32>
    %509 = vector.shape_cast %508 : vector<1x32x512xf32> to vector<32x512xf32>
    %cst_349 = arith.constant dense<0.000000e+00> : vector<16x512xf32>
    %510 = tpu.matmul %507, %509, %cst_349 {dimension_numbers = #tpu.dot_dimension_numbers<[1], [0], [0], [1], [0, 0, 1, 1], [], []>} : vector<16x32xf32>, vector<32x512xf32>, vector<16x512xf32> -> vector<16x512xf32>
    %c0_350 = arith.constant 0 : index
    %c0_351 = arith.constant 0 : index
    %511 = vector.load %arg18[%c0_350, %c0_351] : memref<16x512xf32, #tpu.memory_space<vmem>>, vector<16x512xf32>
    %512 = arith.mulf %510, %511 : vector<16x512xf32>
    %513 = vector.extract_strided_slice %512 {offsets = [0, 0], sizes = [8, 512], strides = [1, 1]} : vector<16x512xf32> to vector<8x512xf32>
    %cst_352 = arith.constant dense<0.000000e+00> : vector<512xf32>
    %514 = vector.multi_reduction <add>, %513, %cst_352 [0] : vector<8x512xf32> to vector<512xf32>
    %515 = vector.shape_cast %514 : vector<512xf32> to vector<1x512xf32>
    %516 = vector.extract_strided_slice %512 {offsets = [8, 0], sizes = [8, 512], strides = [1, 1]} : vector<16x512xf32> to vector<8x512xf32>
    %cst_353 = arith.constant dense<0.000000e+00> : vector<512xf32>
    %517 = vector.multi_reduction <add>, %516, %cst_353 [0] : vector<8x512xf32> to vector<512xf32>
    %518 = vector.shape_cast %517 : vector<512xf32> to vector<1x512xf32>
    %519 = tpu.concatenate %515, %518 in 0 : vector<1x512xf32>, vector<1x512xf32> -> vector<2x512xf32>
    %c0_354 = arith.constant 0 : index
    %c0_355 = arith.constant 0 : index
    %520 = vector.load %arg20[%c0_354, %c0_355] : memref<512x64xf32, #tpu.memory_space<vmem>>, vector<512x64xf32>
    %cst_356 = arith.constant dense<0.000000e+00> : vector<2x64xf32>
    %521 = tpu.matmul %519, %520, %cst_356 {dimension_numbers = #tpu.dot_dimension_numbers<[1], [0], [0], [1], [0, 0, 1, 1], [], []>} : vector<2x512xf32>, vector<512x64xf32>, vector<2x64xf32> -> vector<2x64xf32>
    %522 = arith.addf %262, %521 : vector<2x64xf32>
    %523 = tpu.iota {dimensions = array<i32: 1>} : vector<16x50xi32>
    %c2 = arith.constant 2 : index
    %c0_357 = arith.constant 0 : index
    %c0_358 = arith.constant 0 : index
    %524 = vector.load %arg0[%c2, %c0_357, %c0_358] : memref<5x16x1xi32, #tpu.memory_space<vmem>>, vector<1x16x1xi32>
    %525 = vector.shape_cast %524 : vector<1x16x1xi32> to vector<16x1xi32>
    %526 = vector.broadcast %525 : vector<16x1xi32> to vector<16x50xi32>
    %527 = arith.cmpi eq, %523, %526 : vector<16x50xi32>
    %528 = arith.extui %527 : vector<16x50xi1> to vector<16x50xi32>
    %529 = arith.sitofp %528 : vector<16x50xi32> to vector<16x50xf32>
    %c2_359 = arith.constant 2 : index
    %c0_360 = arith.constant 0 : index
    %c0_361 = arith.constant 0 : index
    %530 = vector.load %arg2[%c2_359, %c0_360, %c0_361] : memref<5x50x32xf32, #tpu.memory_space<vmem>>, vector<1x50x32xf32>
    %531 = vector.shape_cast %530 : vector<1x50x32xf32> to vector<50x32xf32>
    %cst_362 = arith.constant dense<0.000000e+00> : vector<16x32xf32>
    %532 = tpu.matmul %529, %531, %cst_362 {dimension_numbers = #tpu.dot_dimension_numbers<[1], [0], [0], [1], [0, 0, 1, 1], [], []>} : vector<16x50xf32>, vector<50x32xf32>, vector<16x32xf32> -> vector<16x32xf32>
    %533 = arith.addf %532, %1 : vector<16x32xf32>
    %c2_363 = arith.constant 2 : index
    %c0_364 = arith.constant 0 : index
    %c0_365 = arith.constant 0 : index
    %534 = vector.load %arg1[%c2_363, %c0_364, %c0_365] : memref<5x2x8xi32, #tpu.memory_space<vmem>>, vector<1x2x8xi32>
    %535 = vector.shape_cast %534 : vector<1x2x8xi32> to vector<2x8xi32>
    %c0_i32_366 = arith.constant 0 : i32
    %536 = vector.broadcast %c0_i32_366 : i32 to vector<2x8xi32>
    %537 = arith.cmpi ne, %535, %536 : vector<2x8xi32>
    %cst_367 = arith.constant 0.000000e+00 : f32
    %cst_368 = arith.constant -1.000000e+09 : f32
    %538 = vector.broadcast %cst_367 : f32 to vector<2x8xf32>
    %539 = vector.broadcast %cst_368 : f32 to vector<2x8xf32>
    %540 = arith.select %537, %538, %539 : vector<2x8xi1>, vector<2x8xf32>
    %c2_369 = arith.constant 2 : index
    %c0_370 = arith.constant 0 : index
    %c0_371 = arith.constant 0 : index
    %541 = vector.load %arg4[%c2_369, %c0_370, %c0_371] : memref<5x2x32xf32, #tpu.memory_space<vmem>>, vector<1x2x32xf32>
    %542 = vector.shape_cast %541 : vector<1x2x32xf32> to vector<2x32xf32>
    %543 = vector.extract_strided_slice %542 {offsets = [0, 0], sizes = [1, 32], strides = [1, 1]} : vector<2x32xf32> to vector<1x32xf32>
    %544 = vector.extract_strided_slice %542 {offsets = [1, 0], sizes = [1, 32], strides = [1, 1]} : vector<2x32xf32> to vector<1x32xf32>
    %cst_372 = arith.constant dense<0.000000e+00> : vector<16xf32>
    %545 = vector.multi_reduction <add>, %533, %cst_372 [1] : vector<16x32xf32> to vector<16xf32>
    %546 = vector.shape_cast %545 : vector<16xf32> to vector<16x1xf32>
    %cst_373 = arith.constant 3.200000e+01 : f32
    %547 = vector.broadcast %cst_373 : f32 to vector<16x1xf32>
    %548 = arith.divf %546, %547 : vector<16x1xf32>
    %549 = vector.broadcast %548 : vector<16x1xf32> to vector<16x32xf32>
    %550 = arith.subf %533, %549 : vector<16x32xf32>
    %551 = arith.mulf %550, %550 : vector<16x32xf32>
    %cst_374 = arith.constant dense<0.000000e+00> : vector<16xf32>
    %552 = vector.multi_reduction <add>, %551, %cst_374 [1] : vector<16x32xf32> to vector<16xf32>
    %553 = vector.shape_cast %552 : vector<16xf32> to vector<16x1xf32>
    %cst_375 = arith.constant 3.200000e+01 : f32
    %554 = vector.broadcast %cst_375 : f32 to vector<16x1xf32>
    %555 = arith.divf %553, %554 : vector<16x1xf32>
    %cst_376 = arith.constant 9.99999974E-6 : f32
    %556 = vector.broadcast %cst_376 : f32 to vector<16x1xf32>
    %557 = arith.addf %555, %556 : vector<16x1xf32>
    %558 = math.rsqrt %557 : vector<16x1xf32>
    %559 = vector.broadcast %558 : vector<16x1xf32> to vector<16x32xf32>
    %560 = arith.mulf %550, %559 : vector<16x32xf32>
    %561 = vector.broadcast %543 : vector<1x32xf32> to vector<16x32xf32>
    %562 = arith.mulf %560, %561 : vector<16x32xf32>
    %563 = vector.broadcast %544 : vector<1x32xf32> to vector<16x32xf32>
    %564 = arith.addf %562, %563 : vector<16x32xf32>
    %c2_377 = arith.constant 2 : index
    %c0_378 = arith.constant 0 : index
    %c0_379 = arith.constant 0 : index
    %c0_380 = arith.constant 0 : index
    %c0_381 = arith.constant 0 : index
    %565 = vector.load %arg5[%c2_377, %c0_378, %c0_379, %c0_380, %c0_381] : memref<5x1x2x32x16xf32, #tpu.memory_space<vmem>>, vector<1x1x1x32x16xf32>
    %566 = vector.shape_cast %565 : vector<1x1x1x32x16xf32> to vector<32x16xf32>
    %cst_382 = arith.constant dense<0.000000e+00> : vector<16x16xf32>
    %567 = tpu.matmul %564, %566, %cst_382 {dimension_numbers = #tpu.dot_dimension_numbers<[1], [0], [0], [1], [0, 0, 1, 1], [], []>} : vector<16x32xf32>, vector<32x16xf32>, vector<16x16xf32> -> vector<16x16xf32>
    %c2_383 = arith.constant 2 : index
    %c0_384 = arith.constant 0 : index
    %c0_385 = arith.constant 0 : index
    %c0_386 = arith.constant 0 : index
    %c0_387 = arith.constant 0 : index
    %568 = vector.load %arg8[%c2_383, %c0_384, %c0_385, %c0_386, %c0_387] : memref<5x1x2x1x16xf32, #tpu.memory_space<vmem>>, vector<1x1x1x1x16xf32>
    %569 = vector.shape_cast %568 : vector<1x1x1x1x16xf32> to vector<1x16xf32>
    %570 = vector.broadcast %569 : vector<1x16xf32> to vector<16x16xf32>
    %571 = arith.addf %567, %570 : vector<16x16xf32>
    %c2_388 = arith.constant 2 : index
    %c0_389 = arith.constant 0 : index
    %c1_390 = arith.constant 1 : index
    %c0_391 = arith.constant 0 : index
    %c0_392 = arith.constant 0 : index
    %572 = vector.load %arg5[%c2_388, %c0_389, %c1_390, %c0_391, %c0_392] : memref<5x1x2x32x16xf32, #tpu.memory_space<vmem>>, vector<1x1x1x32x16xf32>
    %573 = vector.shape_cast %572 : vector<1x1x1x32x16xf32> to vector<32x16xf32>
    %cst_393 = arith.constant dense<0.000000e+00> : vector<16x16xf32>
    %574 = tpu.matmul %564, %573, %cst_393 {dimension_numbers = #tpu.dot_dimension_numbers<[1], [0], [0], [1], [0, 0, 1, 1], [], []>} : vector<16x32xf32>, vector<32x16xf32>, vector<16x16xf32> -> vector<16x16xf32>
    %c2_394 = arith.constant 2 : index
    %c0_395 = arith.constant 0 : index
    %c1_396 = arith.constant 1 : index
    %c0_397 = arith.constant 0 : index
    %c0_398 = arith.constant 0 : index
    %575 = vector.load %arg8[%c2_394, %c0_395, %c1_396, %c0_397, %c0_398] : memref<5x1x2x1x16xf32, #tpu.memory_space<vmem>>, vector<1x1x1x1x16xf32>
    %576 = vector.shape_cast %575 : vector<1x1x1x1x16xf32> to vector<1x16xf32>
    %577 = vector.broadcast %576 : vector<1x16xf32> to vector<16x16xf32>
    %578 = arith.addf %574, %577 : vector<16x16xf32>
    %c2_399 = arith.constant 2 : index
    %c0_400 = arith.constant 0 : index
    %c0_401 = arith.constant 0 : index
    %c0_402 = arith.constant 0 : index
    %c0_403 = arith.constant 0 : index
    %579 = vector.load %arg6[%c2_399, %c0_400, %c0_401, %c0_402, %c0_403] : memref<5x1x2x32x16xf32, #tpu.memory_space<vmem>>, vector<1x1x1x32x16xf32>
    %580 = vector.shape_cast %579 : vector<1x1x1x32x16xf32> to vector<32x16xf32>
    %cst_404 = arith.constant dense<0.000000e+00> : vector<16x16xf32>
    %581 = tpu.matmul %564, %580, %cst_404 {dimension_numbers = #tpu.dot_dimension_numbers<[1], [0], [0], [1], [0, 0, 1, 1], [], []>} : vector<16x32xf32>, vector<32x16xf32>, vector<16x16xf32> -> vector<16x16xf32>
    %c2_405 = arith.constant 2 : index
    %c0_406 = arith.constant 0 : index
    %c0_407 = arith.constant 0 : index
    %c0_408 = arith.constant 0 : index
    %c0_409 = arith.constant 0 : index
    %582 = vector.load %arg9[%c2_405, %c0_406, %c0_407, %c0_408, %c0_409] : memref<5x1x2x1x16xf32, #tpu.memory_space<vmem>>, vector<1x1x1x1x16xf32>
    %583 = vector.shape_cast %582 : vector<1x1x1x1x16xf32> to vector<1x16xf32>
    %584 = vector.broadcast %583 : vector<1x16xf32> to vector<16x16xf32>
    %585 = arith.addf %581, %584 : vector<16x16xf32>
    %c2_410 = arith.constant 2 : index
    %c0_411 = arith.constant 0 : index
    %c1_412 = arith.constant 1 : index
    %c0_413 = arith.constant 0 : index
    %c0_414 = arith.constant 0 : index
    %586 = vector.load %arg6[%c2_410, %c0_411, %c1_412, %c0_413, %c0_414] : memref<5x1x2x32x16xf32, #tpu.memory_space<vmem>>, vector<1x1x1x32x16xf32>
    %587 = vector.shape_cast %586 : vector<1x1x1x32x16xf32> to vector<32x16xf32>
    %cst_415 = arith.constant dense<0.000000e+00> : vector<16x16xf32>
    %588 = tpu.matmul %564, %587, %cst_415 {dimension_numbers = #tpu.dot_dimension_numbers<[1], [0], [0], [1], [0, 0, 1, 1], [], []>} : vector<16x32xf32>, vector<32x16xf32>, vector<16x16xf32> -> vector<16x16xf32>
    %c2_416 = arith.constant 2 : index
    %c0_417 = arith.constant 0 : index
    %c1_418 = arith.constant 1 : index
    %c0_419 = arith.constant 0 : index
    %c0_420 = arith.constant 0 : index
    %589 = vector.load %arg9[%c2_416, %c0_417, %c1_418, %c0_419, %c0_420] : memref<5x1x2x1x16xf32, #tpu.memory_space<vmem>>, vector<1x1x1x1x16xf32>
    %590 = vector.shape_cast %589 : vector<1x1x1x1x16xf32> to vector<1x16xf32>
    %591 = vector.broadcast %590 : vector<1x16xf32> to vector<16x16xf32>
    %592 = arith.addf %588, %591 : vector<16x16xf32>
    %c2_421 = arith.constant 2 : index
    %c0_422 = arith.constant 0 : index
    %c0_423 = arith.constant 0 : index
    %c0_424 = arith.constant 0 : index
    %c0_425 = arith.constant 0 : index
    %593 = vector.load %arg7[%c2_421, %c0_422, %c0_423, %c0_424, %c0_425] : memref<5x1x2x32x16xf32, #tpu.memory_space<vmem>>, vector<1x1x1x32x16xf32>
    %594 = vector.shape_cast %593 : vector<1x1x1x32x16xf32> to vector<32x16xf32>
    %cst_426 = arith.constant dense<0.000000e+00> : vector<16x16xf32>
    %595 = tpu.matmul %564, %594, %cst_426 {dimension_numbers = #tpu.dot_dimension_numbers<[1], [0], [0], [1], [0, 0, 1, 1], [], []>} : vector<16x32xf32>, vector<32x16xf32>, vector<16x16xf32> -> vector<16x16xf32>
    %c2_427 = arith.constant 2 : index
    %c0_428 = arith.constant 0 : index
    %c0_429 = arith.constant 0 : index
    %c0_430 = arith.constant 0 : index
    %c0_431 = arith.constant 0 : index
    %596 = vector.load %arg10[%c2_427, %c0_428, %c0_429, %c0_430, %c0_431] : memref<5x1x2x1x16xf32, #tpu.memory_space<vmem>>, vector<1x1x1x1x16xf32>
    %597 = vector.shape_cast %596 : vector<1x1x1x1x16xf32> to vector<1x16xf32>
    %598 = vector.broadcast %597 : vector<1x16xf32> to vector<16x16xf32>
    %599 = arith.addf %595, %598 : vector<16x16xf32>
    %c2_432 = arith.constant 2 : index
    %c0_433 = arith.constant 0 : index
    %c1_434 = arith.constant 1 : index
    %c0_435 = arith.constant 0 : index
    %c0_436 = arith.constant 0 : index
    %600 = vector.load %arg7[%c2_432, %c0_433, %c1_434, %c0_435, %c0_436] : memref<5x1x2x32x16xf32, #tpu.memory_space<vmem>>, vector<1x1x1x32x16xf32>
    %601 = vector.shape_cast %600 : vector<1x1x1x32x16xf32> to vector<32x16xf32>
    %cst_437 = arith.constant dense<0.000000e+00> : vector<16x16xf32>
    %602 = tpu.matmul %564, %601, %cst_437 {dimension_numbers = #tpu.dot_dimension_numbers<[1], [0], [0], [1], [0, 0, 1, 1], [], []>} : vector<16x32xf32>, vector<32x16xf32>, vector<16x16xf32> -> vector<16x16xf32>
    %c2_438 = arith.constant 2 : index
    %c0_439 = arith.constant 0 : index
    %c1_440 = arith.constant 1 : index
    %c0_441 = arith.constant 0 : index
    %c0_442 = arith.constant 0 : index
    %603 = vector.load %arg10[%c2_438, %c0_439, %c1_440, %c0_441, %c0_442] : memref<5x1x2x1x16xf32, #tpu.memory_space<vmem>>, vector<1x1x1x1x16xf32>
    %604 = vector.shape_cast %603 : vector<1x1x1x1x16xf32> to vector<1x16xf32>
    %605 = vector.broadcast %604 : vector<1x16xf32> to vector<16x16xf32>
    %606 = arith.addf %602, %605 : vector<16x16xf32>
    %607 = vector.extract_strided_slice %540 {offsets = [0, 0], sizes = [1, 8], strides = [1, 1]} : vector<2x8xf32> to vector<1x8xf32>
    %608 = vector.extract_strided_slice %571 {offsets = [0, 0], sizes = [8, 16], strides = [1, 1]} : vector<16x16xf32> to vector<8x16xf32>
    %609 = vector.extract_strided_slice %585 {offsets = [0, 0], sizes = [8, 16], strides = [1, 1]} : vector<16x16xf32> to vector<8x16xf32>
    %610 = vector.extract_strided_slice %599 {offsets = [0, 0], sizes = [8, 16], strides = [1, 1]} : vector<16x16xf32> to vector<8x16xf32>
    %cst_443 = arith.constant dense<0.000000e+00> : vector<8x8xf32>
    %611 = tpu.matmul %608, %609, %cst_443 {dimension_numbers = #tpu.dot_dimension_numbers<[1], [1], [0], [0], [0, 0, 1, 0], [], []>} : vector<8x16xf32>, vector<8x16xf32>, vector<8x8xf32> -> vector<8x8xf32>
    %cst_444 = arith.constant 2.500000e-01 : f32
    %612 = vector.broadcast %cst_444 : f32 to vector<8x8xf32>
    %613 = arith.mulf %611, %612 : vector<8x8xf32>
    %614 = vector.broadcast %607 : vector<1x8xf32> to vector<8x8xf32>
    %615 = arith.addf %613, %614 : vector<8x8xf32>
    %cst_445 = arith.constant dense<0xFF800000> : vector<8xf32>
    %616 = vector.multi_reduction <maximumf>, %615, %cst_445 [1] : vector<8x8xf32> to vector<8xf32>
    %617 = vector.shape_cast %616 : vector<8xf32> to vector<8x1xf32>
    %618 = vector.broadcast %617 : vector<8x1xf32> to vector<8x8xf32>
    %619 = arith.subf %615, %618 : vector<8x8xf32>
    %620 = math.exp %619 : vector<8x8xf32>
    %cst_446 = arith.constant dense<0.000000e+00> : vector<8xf32>
    %621 = vector.multi_reduction <add>, %620, %cst_446 [1] : vector<8x8xf32> to vector<8xf32>
    %622 = vector.shape_cast %621 : vector<8xf32> to vector<8x1xf32>
    %623 = tpu.reciprocal %622 : vector<8x1xf32> -> vector<8x1xf32>
    %624 = vector.broadcast %623 : vector<8x1xf32> to vector<8x8xf32>
    %625 = arith.mulf %620, %624 : vector<8x8xf32>
    %cst_447 = arith.constant dense<0.000000e+00> : vector<8x16xf32>
    %626 = tpu.matmul %625, %610, %cst_447 {dimension_numbers = #tpu.dot_dimension_numbers<[1], [0], [0], [1], [0, 0, 1, 1], [], []>} : vector<8x8xf32>, vector<8x16xf32>, vector<8x16xf32> -> vector<8x16xf32>
    %c2_448 = arith.constant 2 : index
    %c0_449 = arith.constant 0 : index
    %c0_450 = arith.constant 0 : index
    %c0_451 = arith.constant 0 : index
    %c0_452 = arith.constant 0 : index
    %627 = vector.load %arg11[%c2_448, %c0_449, %c0_450, %c0_451, %c0_452] : memref<5x1x2x16x32xf32, #tpu.memory_space<vmem>>, vector<1x1x1x16x32xf32>
    %628 = vector.shape_cast %627 : vector<1x1x1x16x32xf32> to vector<16x32xf32>
    %cst_453 = arith.constant dense<0.000000e+00> : vector<8x32xf32>
    %629 = tpu.matmul %626, %628, %cst_453 {dimension_numbers = #tpu.dot_dimension_numbers<[1], [0], [0], [1], [0, 0, 1, 1], [], []>} : vector<8x16xf32>, vector<16x32xf32>, vector<8x32xf32> -> vector<8x32xf32>
    %630 = vector.extract_strided_slice %578 {offsets = [0, 0], sizes = [8, 16], strides = [1, 1]} : vector<16x16xf32> to vector<8x16xf32>
    %631 = vector.extract_strided_slice %592 {offsets = [0, 0], sizes = [8, 16], strides = [1, 1]} : vector<16x16xf32> to vector<8x16xf32>
    %632 = vector.extract_strided_slice %606 {offsets = [0, 0], sizes = [8, 16], strides = [1, 1]} : vector<16x16xf32> to vector<8x16xf32>
    %cst_454 = arith.constant dense<0.000000e+00> : vector<8x8xf32>
    %633 = tpu.matmul %630, %631, %cst_454 {dimension_numbers = #tpu.dot_dimension_numbers<[1], [1], [0], [0], [0, 0, 1, 0], [], []>} : vector<8x16xf32>, vector<8x16xf32>, vector<8x8xf32> -> vector<8x8xf32>
    %cst_455 = arith.constant 2.500000e-01 : f32
    %634 = vector.broadcast %cst_455 : f32 to vector<8x8xf32>
    %635 = arith.mulf %633, %634 : vector<8x8xf32>
    %636 = vector.broadcast %607 : vector<1x8xf32> to vector<8x8xf32>
    %637 = arith.addf %635, %636 : vector<8x8xf32>
    %cst_456 = arith.constant dense<0xFF800000> : vector<8xf32>
    %638 = vector.multi_reduction <maximumf>, %637, %cst_456 [1] : vector<8x8xf32> to vector<8xf32>
    %639 = vector.shape_cast %638 : vector<8xf32> to vector<8x1xf32>
    %640 = vector.broadcast %639 : vector<8x1xf32> to vector<8x8xf32>
    %641 = arith.subf %637, %640 : vector<8x8xf32>
    %642 = math.exp %641 : vector<8x8xf32>
    %cst_457 = arith.constant dense<0.000000e+00> : vector<8xf32>
    %643 = vector.multi_reduction <add>, %642, %cst_457 [1] : vector<8x8xf32> to vector<8xf32>
    %644 = vector.shape_cast %643 : vector<8xf32> to vector<8x1xf32>
    %645 = tpu.reciprocal %644 : vector<8x1xf32> -> vector<8x1xf32>
    %646 = vector.broadcast %645 : vector<8x1xf32> to vector<8x8xf32>
    %647 = arith.mulf %642, %646 : vector<8x8xf32>
    %cst_458 = arith.constant dense<0.000000e+00> : vector<8x16xf32>
    %648 = tpu.matmul %647, %632, %cst_458 {dimension_numbers = #tpu.dot_dimension_numbers<[1], [0], [0], [1], [0, 0, 1, 1], [], []>} : vector<8x8xf32>, vector<8x16xf32>, vector<8x16xf32> -> vector<8x16xf32>
    %c2_459 = arith.constant 2 : index
    %c0_460 = arith.constant 0 : index
    %c1_461 = arith.constant 1 : index
    %c0_462 = arith.constant 0 : index
    %c0_463 = arith.constant 0 : index
    %649 = vector.load %arg11[%c2_459, %c0_460, %c1_461, %c0_462, %c0_463] : memref<5x1x2x16x32xf32, #tpu.memory_space<vmem>>, vector<1x1x1x16x32xf32>
    %650 = vector.shape_cast %649 : vector<1x1x1x16x32xf32> to vector<16x32xf32>
    %cst_464 = arith.constant dense<0.000000e+00> : vector<8x32xf32>
    %651 = tpu.matmul %648, %650, %cst_464 {dimension_numbers = #tpu.dot_dimension_numbers<[1], [0], [0], [1], [0, 0, 1, 1], [], []>} : vector<8x16xf32>, vector<16x32xf32>, vector<8x32xf32> -> vector<8x32xf32>
    %652 = arith.addf %629, %651 : vector<8x32xf32>
    %653 = vector.extract_strided_slice %540 {offsets = [1, 0], sizes = [1, 8], strides = [1, 1]} : vector<2x8xf32> to vector<1x8xf32>
    %654 = vector.extract_strided_slice %571 {offsets = [8, 0], sizes = [8, 16], strides = [1, 1]} : vector<16x16xf32> to vector<8x16xf32>
    %655 = vector.extract_strided_slice %585 {offsets = [8, 0], sizes = [8, 16], strides = [1, 1]} : vector<16x16xf32> to vector<8x16xf32>
    %656 = vector.extract_strided_slice %599 {offsets = [8, 0], sizes = [8, 16], strides = [1, 1]} : vector<16x16xf32> to vector<8x16xf32>
    %cst_465 = arith.constant dense<0.000000e+00> : vector<8x8xf32>
    %657 = tpu.matmul %654, %655, %cst_465 {dimension_numbers = #tpu.dot_dimension_numbers<[1], [1], [0], [0], [0, 0, 1, 0], [], []>} : vector<8x16xf32>, vector<8x16xf32>, vector<8x8xf32> -> vector<8x8xf32>
    %cst_466 = arith.constant 2.500000e-01 : f32
    %658 = vector.broadcast %cst_466 : f32 to vector<8x8xf32>
    %659 = arith.mulf %657, %658 : vector<8x8xf32>
    %660 = vector.broadcast %653 : vector<1x8xf32> to vector<8x8xf32>
    %661 = arith.addf %659, %660 : vector<8x8xf32>
    %cst_467 = arith.constant dense<0xFF800000> : vector<8xf32>
    %662 = vector.multi_reduction <maximumf>, %661, %cst_467 [1] : vector<8x8xf32> to vector<8xf32>
    %663 = vector.shape_cast %662 : vector<8xf32> to vector<8x1xf32>
    %664 = vector.broadcast %663 : vector<8x1xf32> to vector<8x8xf32>
    %665 = arith.subf %661, %664 : vector<8x8xf32>
    %666 = math.exp %665 : vector<8x8xf32>
    %cst_468 = arith.constant dense<0.000000e+00> : vector<8xf32>
    %667 = vector.multi_reduction <add>, %666, %cst_468 [1] : vector<8x8xf32> to vector<8xf32>
    %668 = vector.shape_cast %667 : vector<8xf32> to vector<8x1xf32>
    %669 = tpu.reciprocal %668 : vector<8x1xf32> -> vector<8x1xf32>
    %670 = vector.broadcast %669 : vector<8x1xf32> to vector<8x8xf32>
    %671 = arith.mulf %666, %670 : vector<8x8xf32>
    %cst_469 = arith.constant dense<0.000000e+00> : vector<8x16xf32>
    %672 = tpu.matmul %671, %656, %cst_469 {dimension_numbers = #tpu.dot_dimension_numbers<[1], [0], [0], [1], [0, 0, 1, 1], [], []>} : vector<8x8xf32>, vector<8x16xf32>, vector<8x16xf32> -> vector<8x16xf32>
    %c2_470 = arith.constant 2 : index
    %c0_471 = arith.constant 0 : index
    %c0_472 = arith.constant 0 : index
    %c0_473 = arith.constant 0 : index
    %c0_474 = arith.constant 0 : index
    %673 = vector.load %arg11[%c2_470, %c0_471, %c0_472, %c0_473, %c0_474] : memref<5x1x2x16x32xf32, #tpu.memory_space<vmem>>, vector<1x1x1x16x32xf32>
    %674 = vector.shape_cast %673 : vector<1x1x1x16x32xf32> to vector<16x32xf32>
    %cst_475 = arith.constant dense<0.000000e+00> : vector<8x32xf32>
    %675 = tpu.matmul %672, %674, %cst_475 {dimension_numbers = #tpu.dot_dimension_numbers<[1], [0], [0], [1], [0, 0, 1, 1], [], []>} : vector<8x16xf32>, vector<16x32xf32>, vector<8x32xf32> -> vector<8x32xf32>
    %676 = vector.extract_strided_slice %578 {offsets = [8, 0], sizes = [8, 16], strides = [1, 1]} : vector<16x16xf32> to vector<8x16xf32>
    %677 = vector.extract_strided_slice %592 {offsets = [8, 0], sizes = [8, 16], strides = [1, 1]} : vector<16x16xf32> to vector<8x16xf32>
    %678 = vector.extract_strided_slice %606 {offsets = [8, 0], sizes = [8, 16], strides = [1, 1]} : vector<16x16xf32> to vector<8x16xf32>
    %cst_476 = arith.constant dense<0.000000e+00> : vector<8x8xf32>
    %679 = tpu.matmul %676, %677, %cst_476 {dimension_numbers = #tpu.dot_dimension_numbers<[1], [1], [0], [0], [0, 0, 1, 0], [], []>} : vector<8x16xf32>, vector<8x16xf32>, vector<8x8xf32> -> vector<8x8xf32>
    %cst_477 = arith.constant 2.500000e-01 : f32
    %680 = vector.broadcast %cst_477 : f32 to vector<8x8xf32>
    %681 = arith.mulf %679, %680 : vector<8x8xf32>
    %682 = vector.broadcast %653 : vector<1x8xf32> to vector<8x8xf32>
    %683 = arith.addf %681, %682 : vector<8x8xf32>
    %cst_478 = arith.constant dense<0xFF800000> : vector<8xf32>
    %684 = vector.multi_reduction <maximumf>, %683, %cst_478 [1] : vector<8x8xf32> to vector<8xf32>
    %685 = vector.shape_cast %684 : vector<8xf32> to vector<8x1xf32>
    %686 = vector.broadcast %685 : vector<8x1xf32> to vector<8x8xf32>
    %687 = arith.subf %683, %686 : vector<8x8xf32>
    %688 = math.exp %687 : vector<8x8xf32>
    %cst_479 = arith.constant dense<0.000000e+00> : vector<8xf32>
    %689 = vector.multi_reduction <add>, %688, %cst_479 [1] : vector<8x8xf32> to vector<8xf32>
    %690 = vector.shape_cast %689 : vector<8xf32> to vector<8x1xf32>
    %691 = tpu.reciprocal %690 : vector<8x1xf32> -> vector<8x1xf32>
    %692 = vector.broadcast %691 : vector<8x1xf32> to vector<8x8xf32>
    %693 = arith.mulf %688, %692 : vector<8x8xf32>
    %cst_480 = arith.constant dense<0.000000e+00> : vector<8x16xf32>
    %694 = tpu.matmul %693, %678, %cst_480 {dimension_numbers = #tpu.dot_dimension_numbers<[1], [0], [0], [1], [0, 0, 1, 1], [], []>} : vector<8x8xf32>, vector<8x16xf32>, vector<8x16xf32> -> vector<8x16xf32>
    %c2_481 = arith.constant 2 : index
    %c0_482 = arith.constant 0 : index
    %c1_483 = arith.constant 1 : index
    %c0_484 = arith.constant 0 : index
    %c0_485 = arith.constant 0 : index
    %695 = vector.load %arg11[%c2_481, %c0_482, %c1_483, %c0_484, %c0_485] : memref<5x1x2x16x32xf32, #tpu.memory_space<vmem>>, vector<1x1x1x16x32xf32>
    %696 = vector.shape_cast %695 : vector<1x1x1x16x32xf32> to vector<16x32xf32>
    %cst_486 = arith.constant dense<0.000000e+00> : vector<8x32xf32>
    %697 = tpu.matmul %694, %696, %cst_486 {dimension_numbers = #tpu.dot_dimension_numbers<[1], [0], [0], [1], [0, 0, 1, 1], [], []>} : vector<8x16xf32>, vector<16x32xf32>, vector<8x32xf32> -> vector<8x32xf32>
    %698 = arith.addf %675, %697 : vector<8x32xf32>
    %699 = tpu.concatenate %652, %698 in 0 : vector<8x32xf32>, vector<8x32xf32> -> vector<16x32xf32>
    %c2_487 = arith.constant 2 : index
    %c0_488 = arith.constant 0 : index
    %c0_489 = arith.constant 0 : index
    %c0_490 = arith.constant 0 : index
    %700 = vector.load %arg12[%c2_487, %c0_488, %c0_489, %c0_490] : memref<5x1x1x32xf32, #tpu.memory_space<vmem>>, vector<1x1x1x32xf32>
    %701 = vector.shape_cast %700 : vector<1x1x1x32xf32> to vector<1x32xf32>
    %702 = vector.broadcast %701 : vector<1x32xf32> to vector<16x32xf32>
    %703 = arith.addf %699, %702 : vector<16x32xf32>
    %c2_491 = arith.constant 2 : index
    %c0_492 = arith.constant 0 : index
    %c0_493 = arith.constant 0 : index
    %c0_494 = arith.constant 0 : index
    %704 = vector.load %arg17[%c2_491, %c0_492, %c0_493, %c0_494] : memref<5x1x4x32xf32, #tpu.memory_space<vmem>>, vector<1x1x4x32xf32>
    %705 = vector.shape_cast %704 : vector<1x1x4x32xf32> to vector<4x32xf32>
    %706 = arith.addf %564, %703 : vector<16x32xf32>
    %707 = vector.extract_strided_slice %705 {offsets = [0, 0], sizes = [1, 32], strides = [1, 1]} : vector<4x32xf32> to vector<1x32xf32>
    %708 = vector.extract_strided_slice %705 {offsets = [1, 0], sizes = [1, 32], strides = [1, 1]} : vector<4x32xf32> to vector<1x32xf32>
    %cst_495 = arith.constant dense<0.000000e+00> : vector<16xf32>
    %709 = vector.multi_reduction <add>, %706, %cst_495 [1] : vector<16x32xf32> to vector<16xf32>
    %710 = vector.shape_cast %709 : vector<16xf32> to vector<16x1xf32>
    %cst_496 = arith.constant 3.200000e+01 : f32
    %711 = vector.broadcast %cst_496 : f32 to vector<16x1xf32>
    %712 = arith.divf %710, %711 : vector<16x1xf32>
    %713 = vector.broadcast %712 : vector<16x1xf32> to vector<16x32xf32>
    %714 = arith.subf %706, %713 : vector<16x32xf32>
    %715 = arith.mulf %714, %714 : vector<16x32xf32>
    %cst_497 = arith.constant dense<0.000000e+00> : vector<16xf32>
    %716 = vector.multi_reduction <add>, %715, %cst_497 [1] : vector<16x32xf32> to vector<16xf32>
    %717 = vector.shape_cast %716 : vector<16xf32> to vector<16x1xf32>
    %cst_498 = arith.constant 3.200000e+01 : f32
    %718 = vector.broadcast %cst_498 : f32 to vector<16x1xf32>
    %719 = arith.divf %717, %718 : vector<16x1xf32>
    %cst_499 = arith.constant 9.99999974E-6 : f32
    %720 = vector.broadcast %cst_499 : f32 to vector<16x1xf32>
    %721 = arith.addf %719, %720 : vector<16x1xf32>
    %722 = math.rsqrt %721 : vector<16x1xf32>
    %723 = vector.broadcast %722 : vector<16x1xf32> to vector<16x32xf32>
    %724 = arith.mulf %714, %723 : vector<16x32xf32>
    %725 = vector.broadcast %707 : vector<1x32xf32> to vector<16x32xf32>
    %726 = arith.mulf %724, %725 : vector<16x32xf32>
    %727 = vector.broadcast %708 : vector<1x32xf32> to vector<16x32xf32>
    %728 = arith.addf %726, %727 : vector<16x32xf32>
    %c2_500 = arith.constant 2 : index
    %c0_501 = arith.constant 0 : index
    %c0_502 = arith.constant 0 : index
    %c0_503 = arith.constant 0 : index
    %729 = vector.load %arg13[%c2_500, %c0_501, %c0_502, %c0_503] : memref<5x1x32x64xf32, #tpu.memory_space<vmem>>, vector<1x1x32x64xf32>
    %730 = vector.shape_cast %729 : vector<1x1x32x64xf32> to vector<32x64xf32>
    %cst_504 = arith.constant dense<0.000000e+00> : vector<16x64xf32>
    %731 = tpu.matmul %728, %730, %cst_504 {dimension_numbers = #tpu.dot_dimension_numbers<[1], [0], [0], [1], [0, 0, 1, 1], [], []>} : vector<16x32xf32>, vector<32x64xf32>, vector<16x64xf32> -> vector<16x64xf32>
    %c2_505 = arith.constant 2 : index
    %c0_506 = arith.constant 0 : index
    %c0_507 = arith.constant 0 : index
    %c0_508 = arith.constant 0 : index
    %732 = vector.load %arg14[%c2_505, %c0_506, %c0_507, %c0_508] : memref<5x1x1x64xf32, #tpu.memory_space<vmem>>, vector<1x1x1x64xf32>
    %733 = vector.shape_cast %732 : vector<1x1x1x64xf32> to vector<1x64xf32>
    %734 = vector.broadcast %733 : vector<1x64xf32> to vector<16x64xf32>
    %735 = arith.addf %731, %734 : vector<16x64xf32>
    %cst_509 = arith.constant 0.000000e+00 : f32
    %736 = vector.broadcast %cst_509 : f32 to vector<16x64xf32>
    %737 = arith.maximumf %735, %736 : vector<16x64xf32>
    %c2_510 = arith.constant 2 : index
    %c0_511 = arith.constant 0 : index
    %c0_512 = arith.constant 0 : index
    %c0_513 = arith.constant 0 : index
    %738 = vector.load %arg15[%c2_510, %c0_511, %c0_512, %c0_513] : memref<5x1x64x32xf32, #tpu.memory_space<vmem>>, vector<1x1x64x32xf32>
    %739 = vector.shape_cast %738 : vector<1x1x64x32xf32> to vector<64x32xf32>
    %cst_514 = arith.constant dense<0.000000e+00> : vector<16x32xf32>
    %740 = tpu.matmul %737, %739, %cst_514 {dimension_numbers = #tpu.dot_dimension_numbers<[1], [0], [0], [1], [0, 0, 1, 1], [], []>} : vector<16x64xf32>, vector<64x32xf32>, vector<16x32xf32> -> vector<16x32xf32>
    %c2_515 = arith.constant 2 : index
    %c0_516 = arith.constant 0 : index
    %c0_517 = arith.constant 0 : index
    %c0_518 = arith.constant 0 : index
    %741 = vector.load %arg16[%c2_515, %c0_516, %c0_517, %c0_518] : memref<5x1x1x32xf32, #tpu.memory_space<vmem>>, vector<1x1x1x32xf32>
    %742 = vector.shape_cast %741 : vector<1x1x1x32xf32> to vector<1x32xf32>
    %743 = vector.broadcast %742 : vector<1x32xf32> to vector<16x32xf32>
    %744 = arith.addf %740, %743 : vector<16x32xf32>
    %745 = arith.addf %728, %744 : vector<16x32xf32>
    %746 = vector.extract_strided_slice %705 {offsets = [2, 0], sizes = [1, 32], strides = [1, 1]} : vector<4x32xf32> to vector<1x32xf32>
    %747 = vector.extract_strided_slice %705 {offsets = [3, 0], sizes = [1, 32], strides = [1, 1]} : vector<4x32xf32> to vector<1x32xf32>
    %cst_519 = arith.constant dense<0.000000e+00> : vector<16xf32>
    %748 = vector.multi_reduction <add>, %745, %cst_519 [1] : vector<16x32xf32> to vector<16xf32>
    %749 = vector.shape_cast %748 : vector<16xf32> to vector<16x1xf32>
    %cst_520 = arith.constant 3.200000e+01 : f32
    %750 = vector.broadcast %cst_520 : f32 to vector<16x1xf32>
    %751 = arith.divf %749, %750 : vector<16x1xf32>
    %752 = vector.broadcast %751 : vector<16x1xf32> to vector<16x32xf32>
    %753 = arith.subf %745, %752 : vector<16x32xf32>
    %754 = arith.mulf %753, %753 : vector<16x32xf32>
    %cst_521 = arith.constant dense<0.000000e+00> : vector<16xf32>
    %755 = vector.multi_reduction <add>, %754, %cst_521 [1] : vector<16x32xf32> to vector<16xf32>
    %756 = vector.shape_cast %755 : vector<16xf32> to vector<16x1xf32>
    %cst_522 = arith.constant 3.200000e+01 : f32
    %757 = vector.broadcast %cst_522 : f32 to vector<16x1xf32>
    %758 = arith.divf %756, %757 : vector<16x1xf32>
    %cst_523 = arith.constant 9.99999974E-6 : f32
    %759 = vector.broadcast %cst_523 : f32 to vector<16x1xf32>
    %760 = arith.addf %758, %759 : vector<16x1xf32>
    %761 = math.rsqrt %760 : vector<16x1xf32>
    %762 = vector.broadcast %761 : vector<16x1xf32> to vector<16x32xf32>
    %763 = arith.mulf %753, %762 : vector<16x32xf32>
    %764 = vector.broadcast %746 : vector<1x32xf32> to vector<16x32xf32>
    %765 = arith.mulf %763, %764 : vector<16x32xf32>
    %766 = vector.broadcast %747 : vector<1x32xf32> to vector<16x32xf32>
    %767 = arith.addf %765, %766 : vector<16x32xf32>
    %c2_524 = arith.constant 2 : index
    %c0_525 = arith.constant 0 : index
    %c0_526 = arith.constant 0 : index
    %768 = vector.load %arg19[%c2_524, %c0_525, %c0_526] : memref<5x32x512xf32, #tpu.memory_space<vmem>>, vector<1x32x512xf32>
    %769 = vector.shape_cast %768 : vector<1x32x512xf32> to vector<32x512xf32>
    %cst_527 = arith.constant dense<0.000000e+00> : vector<16x512xf32>
    %770 = tpu.matmul %767, %769, %cst_527 {dimension_numbers = #tpu.dot_dimension_numbers<[1], [0], [0], [1], [0, 0, 1, 1], [], []>} : vector<16x32xf32>, vector<32x512xf32>, vector<16x512xf32> -> vector<16x512xf32>
    %c0_528 = arith.constant 0 : index
    %c0_529 = arith.constant 0 : index
    %771 = vector.load %arg18[%c0_528, %c0_529] : memref<16x512xf32, #tpu.memory_space<vmem>>, vector<16x512xf32>
    %772 = arith.mulf %770, %771 : vector<16x512xf32>
    %773 = vector.extract_strided_slice %772 {offsets = [0, 0], sizes = [8, 512], strides = [1, 1]} : vector<16x512xf32> to vector<8x512xf32>
    %cst_530 = arith.constant dense<0.000000e+00> : vector<512xf32>
    %774 = vector.multi_reduction <add>, %773, %cst_530 [0] : vector<8x512xf32> to vector<512xf32>
    %775 = vector.shape_cast %774 : vector<512xf32> to vector<1x512xf32>
    %776 = vector.extract_strided_slice %772 {offsets = [8, 0], sizes = [8, 512], strides = [1, 1]} : vector<16x512xf32> to vector<8x512xf32>
    %cst_531 = arith.constant dense<0.000000e+00> : vector<512xf32>
    %777 = vector.multi_reduction <add>, %776, %cst_531 [0] : vector<8x512xf32> to vector<512xf32>
    %778 = vector.shape_cast %777 : vector<512xf32> to vector<1x512xf32>
    %779 = tpu.concatenate %775, %778 in 0 : vector<1x512xf32>, vector<1x512xf32> -> vector<2x512xf32>
    %c0_532 = arith.constant 0 : index
    %c0_533 = arith.constant 0 : index
    %780 = vector.load %arg20[%c0_532, %c0_533] : memref<512x64xf32, #tpu.memory_space<vmem>>, vector<512x64xf32>
    %cst_534 = arith.constant dense<0.000000e+00> : vector<2x64xf32>
    %781 = tpu.matmul %779, %780, %cst_534 {dimension_numbers = #tpu.dot_dimension_numbers<[1], [0], [0], [1], [0, 0, 1, 1], [], []>} : vector<2x512xf32>, vector<512x64xf32>, vector<2x64xf32> -> vector<2x64xf32>
    %782 = arith.addf %522, %781 : vector<2x64xf32>
    %783 = tpu.iota {dimensions = array<i32: 1>} : vector<16x50xi32>
    %c3 = arith.constant 3 : index
    %c0_535 = arith.constant 0 : index
    %c0_536 = arith.constant 0 : index
    %784 = vector.load %arg0[%c3, %c0_535, %c0_536] : memref<5x16x1xi32, #tpu.memory_space<vmem>>, vector<1x16x1xi32>
    %785 = vector.shape_cast %784 : vector<1x16x1xi32> to vector<16x1xi32>
    %786 = vector.broadcast %785 : vector<16x1xi32> to vector<16x50xi32>
    %787 = arith.cmpi eq, %783, %786 : vector<16x50xi32>
    %788 = arith.extui %787 : vector<16x50xi1> to vector<16x50xi32>
    %789 = arith.sitofp %788 : vector<16x50xi32> to vector<16x50xf32>
    %c3_537 = arith.constant 3 : index
    %c0_538 = arith.constant 0 : index
    %c0_539 = arith.constant 0 : index
    %790 = vector.load %arg2[%c3_537, %c0_538, %c0_539] : memref<5x50x32xf32, #tpu.memory_space<vmem>>, vector<1x50x32xf32>
    %791 = vector.shape_cast %790 : vector<1x50x32xf32> to vector<50x32xf32>
    %cst_540 = arith.constant dense<0.000000e+00> : vector<16x32xf32>
    %792 = tpu.matmul %789, %791, %cst_540 {dimension_numbers = #tpu.dot_dimension_numbers<[1], [0], [0], [1], [0, 0, 1, 1], [], []>} : vector<16x50xf32>, vector<50x32xf32>, vector<16x32xf32> -> vector<16x32xf32>
    %793 = arith.addf %792, %1 : vector<16x32xf32>
    %c3_541 = arith.constant 3 : index
    %c0_542 = arith.constant 0 : index
    %c0_543 = arith.constant 0 : index
    %794 = vector.load %arg1[%c3_541, %c0_542, %c0_543] : memref<5x2x8xi32, #tpu.memory_space<vmem>>, vector<1x2x8xi32>
    %795 = vector.shape_cast %794 : vector<1x2x8xi32> to vector<2x8xi32>
    %c0_i32_544 = arith.constant 0 : i32
    %796 = vector.broadcast %c0_i32_544 : i32 to vector<2x8xi32>
    %797 = arith.cmpi ne, %795, %796 : vector<2x8xi32>
    %cst_545 = arith.constant 0.000000e+00 : f32
    %cst_546 = arith.constant -1.000000e+09 : f32
    %798 = vector.broadcast %cst_545 : f32 to vector<2x8xf32>
    %799 = vector.broadcast %cst_546 : f32 to vector<2x8xf32>
    %800 = arith.select %797, %798, %799 : vector<2x8xi1>, vector<2x8xf32>
    %c3_547 = arith.constant 3 : index
    %c0_548 = arith.constant 0 : index
    %c0_549 = arith.constant 0 : index
    %801 = vector.load %arg4[%c3_547, %c0_548, %c0_549] : memref<5x2x32xf32, #tpu.memory_space<vmem>>, vector<1x2x32xf32>
    %802 = vector.shape_cast %801 : vector<1x2x32xf32> to vector<2x32xf32>
    %803 = vector.extract_strided_slice %802 {offsets = [0, 0], sizes = [1, 32], strides = [1, 1]} : vector<2x32xf32> to vector<1x32xf32>
    %804 = vector.extract_strided_slice %802 {offsets = [1, 0], sizes = [1, 32], strides = [1, 1]} : vector<2x32xf32> to vector<1x32xf32>
    %cst_550 = arith.constant dense<0.000000e+00> : vector<16xf32>
    %805 = vector.multi_reduction <add>, %793, %cst_550 [1] : vector<16x32xf32> to vector<16xf32>
    %806 = vector.shape_cast %805 : vector<16xf32> to vector<16x1xf32>
    %cst_551 = arith.constant 3.200000e+01 : f32
    %807 = vector.broadcast %cst_551 : f32 to vector<16x1xf32>
    %808 = arith.divf %806, %807 : vector<16x1xf32>
    %809 = vector.broadcast %808 : vector<16x1xf32> to vector<16x32xf32>
    %810 = arith.subf %793, %809 : vector<16x32xf32>
    %811 = arith.mulf %810, %810 : vector<16x32xf32>
    %cst_552 = arith.constant dense<0.000000e+00> : vector<16xf32>
    %812 = vector.multi_reduction <add>, %811, %cst_552 [1] : vector<16x32xf32> to vector<16xf32>
    %813 = vector.shape_cast %812 : vector<16xf32> to vector<16x1xf32>
    %cst_553 = arith.constant 3.200000e+01 : f32
    %814 = vector.broadcast %cst_553 : f32 to vector<16x1xf32>
    %815 = arith.divf %813, %814 : vector<16x1xf32>
    %cst_554 = arith.constant 9.99999974E-6 : f32
    %816 = vector.broadcast %cst_554 : f32 to vector<16x1xf32>
    %817 = arith.addf %815, %816 : vector<16x1xf32>
    %818 = math.rsqrt %817 : vector<16x1xf32>
    %819 = vector.broadcast %818 : vector<16x1xf32> to vector<16x32xf32>
    %820 = arith.mulf %810, %819 : vector<16x32xf32>
    %821 = vector.broadcast %803 : vector<1x32xf32> to vector<16x32xf32>
    %822 = arith.mulf %820, %821 : vector<16x32xf32>
    %823 = vector.broadcast %804 : vector<1x32xf32> to vector<16x32xf32>
    %824 = arith.addf %822, %823 : vector<16x32xf32>
    %c3_555 = arith.constant 3 : index
    %c0_556 = arith.constant 0 : index
    %c0_557 = arith.constant 0 : index
    %c0_558 = arith.constant 0 : index
    %c0_559 = arith.constant 0 : index
    %825 = vector.load %arg5[%c3_555, %c0_556, %c0_557, %c0_558, %c0_559] : memref<5x1x2x32x16xf32, #tpu.memory_space<vmem>>, vector<1x1x1x32x16xf32>
    %826 = vector.shape_cast %825 : vector<1x1x1x32x16xf32> to vector<32x16xf32>
    %cst_560 = arith.constant dense<0.000000e+00> : vector<16x16xf32>
    %827 = tpu.matmul %824, %826, %cst_560 {dimension_numbers = #tpu.dot_dimension_numbers<[1], [0], [0], [1], [0, 0, 1, 1], [], []>} : vector<16x32xf32>, vector<32x16xf32>, vector<16x16xf32> -> vector<16x16xf32>
    %c3_561 = arith.constant 3 : index
    %c0_562 = arith.constant 0 : index
    %c0_563 = arith.constant 0 : index
    %c0_564 = arith.constant 0 : index
    %c0_565 = arith.constant 0 : index
    %828 = vector.load %arg8[%c3_561, %c0_562, %c0_563, %c0_564, %c0_565] : memref<5x1x2x1x16xf32, #tpu.memory_space<vmem>>, vector<1x1x1x1x16xf32>
    %829 = vector.shape_cast %828 : vector<1x1x1x1x16xf32> to vector<1x16xf32>
    %830 = vector.broadcast %829 : vector<1x16xf32> to vector<16x16xf32>
    %831 = arith.addf %827, %830 : vector<16x16xf32>
    %c3_566 = arith.constant 3 : index
    %c0_567 = arith.constant 0 : index
    %c1_568 = arith.constant 1 : index
    %c0_569 = arith.constant 0 : index
    %c0_570 = arith.constant 0 : index
    %832 = vector.load %arg5[%c3_566, %c0_567, %c1_568, %c0_569, %c0_570] : memref<5x1x2x32x16xf32, #tpu.memory_space<vmem>>, vector<1x1x1x32x16xf32>
    %833 = vector.shape_cast %832 : vector<1x1x1x32x16xf32> to vector<32x16xf32>
    %cst_571 = arith.constant dense<0.000000e+00> : vector<16x16xf32>
    %834 = tpu.matmul %824, %833, %cst_571 {dimension_numbers = #tpu.dot_dimension_numbers<[1], [0], [0], [1], [0, 0, 1, 1], [], []>} : vector<16x32xf32>, vector<32x16xf32>, vector<16x16xf32> -> vector<16x16xf32>
    %c3_572 = arith.constant 3 : index
    %c0_573 = arith.constant 0 : index
    %c1_574 = arith.constant 1 : index
    %c0_575 = arith.constant 0 : index
    %c0_576 = arith.constant 0 : index
    %835 = vector.load %arg8[%c3_572, %c0_573, %c1_574, %c0_575, %c0_576] : memref<5x1x2x1x16xf32, #tpu.memory_space<vmem>>, vector<1x1x1x1x16xf32>
    %836 = vector.shape_cast %835 : vector<1x1x1x1x16xf32> to vector<1x16xf32>
    %837 = vector.broadcast %836 : vector<1x16xf32> to vector<16x16xf32>
    %838 = arith.addf %834, %837 : vector<16x16xf32>
    %c3_577 = arith.constant 3 : index
    %c0_578 = arith.constant 0 : index
    %c0_579 = arith.constant 0 : index
    %c0_580 = arith.constant 0 : index
    %c0_581 = arith.constant 0 : index
    %839 = vector.load %arg6[%c3_577, %c0_578, %c0_579, %c0_580, %c0_581] : memref<5x1x2x32x16xf32, #tpu.memory_space<vmem>>, vector<1x1x1x32x16xf32>
    %840 = vector.shape_cast %839 : vector<1x1x1x32x16xf32> to vector<32x16xf32>
    %cst_582 = arith.constant dense<0.000000e+00> : vector<16x16xf32>
    %841 = tpu.matmul %824, %840, %cst_582 {dimension_numbers = #tpu.dot_dimension_numbers<[1], [0], [0], [1], [0, 0, 1, 1], [], []>} : vector<16x32xf32>, vector<32x16xf32>, vector<16x16xf32> -> vector<16x16xf32>
    %c3_583 = arith.constant 3 : index
    %c0_584 = arith.constant 0 : index
    %c0_585 = arith.constant 0 : index
    %c0_586 = arith.constant 0 : index
    %c0_587 = arith.constant 0 : index
    %842 = vector.load %arg9[%c3_583, %c0_584, %c0_585, %c0_586, %c0_587] : memref<5x1x2x1x16xf32, #tpu.memory_space<vmem>>, vector<1x1x1x1x16xf32>
    %843 = vector.shape_cast %842 : vector<1x1x1x1x16xf32> to vector<1x16xf32>
    %844 = vector.broadcast %843 : vector<1x16xf32> to vector<16x16xf32>
    %845 = arith.addf %841, %844 : vector<16x16xf32>
    %c3_588 = arith.constant 3 : index
    %c0_589 = arith.constant 0 : index
    %c1_590 = arith.constant 1 : index
    %c0_591 = arith.constant 0 : index
    %c0_592 = arith.constant 0 : index
    %846 = vector.load %arg6[%c3_588, %c0_589, %c1_590, %c0_591, %c0_592] : memref<5x1x2x32x16xf32, #tpu.memory_space<vmem>>, vector<1x1x1x32x16xf32>
    %847 = vector.shape_cast %846 : vector<1x1x1x32x16xf32> to vector<32x16xf32>
    %cst_593 = arith.constant dense<0.000000e+00> : vector<16x16xf32>
    %848 = tpu.matmul %824, %847, %cst_593 {dimension_numbers = #tpu.dot_dimension_numbers<[1], [0], [0], [1], [0, 0, 1, 1], [], []>} : vector<16x32xf32>, vector<32x16xf32>, vector<16x16xf32> -> vector<16x16xf32>
    %c3_594 = arith.constant 3 : index
    %c0_595 = arith.constant 0 : index
    %c1_596 = arith.constant 1 : index
    %c0_597 = arith.constant 0 : index
    %c0_598 = arith.constant 0 : index
    %849 = vector.load %arg9[%c3_594, %c0_595, %c1_596, %c0_597, %c0_598] : memref<5x1x2x1x16xf32, #tpu.memory_space<vmem>>, vector<1x1x1x1x16xf32>
    %850 = vector.shape_cast %849 : vector<1x1x1x1x16xf32> to vector<1x16xf32>
    %851 = vector.broadcast %850 : vector<1x16xf32> to vector<16x16xf32>
    %852 = arith.addf %848, %851 : vector<16x16xf32>
    %c3_599 = arith.constant 3 : index
    %c0_600 = arith.constant 0 : index
    %c0_601 = arith.constant 0 : index
    %c0_602 = arith.constant 0 : index
    %c0_603 = arith.constant 0 : index
    %853 = vector.load %arg7[%c3_599, %c0_600, %c0_601, %c0_602, %c0_603] : memref<5x1x2x32x16xf32, #tpu.memory_space<vmem>>, vector<1x1x1x32x16xf32>
    %854 = vector.shape_cast %853 : vector<1x1x1x32x16xf32> to vector<32x16xf32>
    %cst_604 = arith.constant dense<0.000000e+00> : vector<16x16xf32>
    %855 = tpu.matmul %824, %854, %cst_604 {dimension_numbers = #tpu.dot_dimension_numbers<[1], [0], [0], [1], [0, 0, 1, 1], [], []>} : vector<16x32xf32>, vector<32x16xf32>, vector<16x16xf32> -> vector<16x16xf32>
    %c3_605 = arith.constant 3 : index
    %c0_606 = arith.constant 0 : index
    %c0_607 = arith.constant 0 : index
    %c0_608 = arith.constant 0 : index
    %c0_609 = arith.constant 0 : index
    %856 = vector.load %arg10[%c3_605, %c0_606, %c0_607, %c0_608, %c0_609] : memref<5x1x2x1x16xf32, #tpu.memory_space<vmem>>, vector<1x1x1x1x16xf32>
    %857 = vector.shape_cast %856 : vector<1x1x1x1x16xf32> to vector<1x16xf32>
    %858 = vector.broadcast %857 : vector<1x16xf32> to vector<16x16xf32>
    %859 = arith.addf %855, %858 : vector<16x16xf32>
    %c3_610 = arith.constant 3 : index
    %c0_611 = arith.constant 0 : index
    %c1_612 = arith.constant 1 : index
    %c0_613 = arith.constant 0 : index
    %c0_614 = arith.constant 0 : index
    %860 = vector.load %arg7[%c3_610, %c0_611, %c1_612, %c0_613, %c0_614] : memref<5x1x2x32x16xf32, #tpu.memory_space<vmem>>, vector<1x1x1x32x16xf32>
    %861 = vector.shape_cast %860 : vector<1x1x1x32x16xf32> to vector<32x16xf32>
    %cst_615 = arith.constant dense<0.000000e+00> : vector<16x16xf32>
    %862 = tpu.matmul %824, %861, %cst_615 {dimension_numbers = #tpu.dot_dimension_numbers<[1], [0], [0], [1], [0, 0, 1, 1], [], []>} : vector<16x32xf32>, vector<32x16xf32>, vector<16x16xf32> -> vector<16x16xf32>
    %c3_616 = arith.constant 3 : index
    %c0_617 = arith.constant 0 : index
    %c1_618 = arith.constant 1 : index
    %c0_619 = arith.constant 0 : index
    %c0_620 = arith.constant 0 : index
    %863 = vector.load %arg10[%c3_616, %c0_617, %c1_618, %c0_619, %c0_620] : memref<5x1x2x1x16xf32, #tpu.memory_space<vmem>>, vector<1x1x1x1x16xf32>
    %864 = vector.shape_cast %863 : vector<1x1x1x1x16xf32> to vector<1x16xf32>
    %865 = vector.broadcast %864 : vector<1x16xf32> to vector<16x16xf32>
    %866 = arith.addf %862, %865 : vector<16x16xf32>
    %867 = vector.extract_strided_slice %800 {offsets = [0, 0], sizes = [1, 8], strides = [1, 1]} : vector<2x8xf32> to vector<1x8xf32>
    %868 = vector.extract_strided_slice %831 {offsets = [0, 0], sizes = [8, 16], strides = [1, 1]} : vector<16x16xf32> to vector<8x16xf32>
    %869 = vector.extract_strided_slice %845 {offsets = [0, 0], sizes = [8, 16], strides = [1, 1]} : vector<16x16xf32> to vector<8x16xf32>
    %870 = vector.extract_strided_slice %859 {offsets = [0, 0], sizes = [8, 16], strides = [1, 1]} : vector<16x16xf32> to vector<8x16xf32>
    %cst_621 = arith.constant dense<0.000000e+00> : vector<8x8xf32>
    %871 = tpu.matmul %868, %869, %cst_621 {dimension_numbers = #tpu.dot_dimension_numbers<[1], [1], [0], [0], [0, 0, 1, 0], [], []>} : vector<8x16xf32>, vector<8x16xf32>, vector<8x8xf32> -> vector<8x8xf32>
    %cst_622 = arith.constant 2.500000e-01 : f32
    %872 = vector.broadcast %cst_622 : f32 to vector<8x8xf32>
    %873 = arith.mulf %871, %872 : vector<8x8xf32>
    %874 = vector.broadcast %867 : vector<1x8xf32> to vector<8x8xf32>
    %875 = arith.addf %873, %874 : vector<8x8xf32>
    %cst_623 = arith.constant dense<0xFF800000> : vector<8xf32>
    %876 = vector.multi_reduction <maximumf>, %875, %cst_623 [1] : vector<8x8xf32> to vector<8xf32>
    %877 = vector.shape_cast %876 : vector<8xf32> to vector<8x1xf32>
    %878 = vector.broadcast %877 : vector<8x1xf32> to vector<8x8xf32>
    %879 = arith.subf %875, %878 : vector<8x8xf32>
    %880 = math.exp %879 : vector<8x8xf32>
    %cst_624 = arith.constant dense<0.000000e+00> : vector<8xf32>
    %881 = vector.multi_reduction <add>, %880, %cst_624 [1] : vector<8x8xf32> to vector<8xf32>
    %882 = vector.shape_cast %881 : vector<8xf32> to vector<8x1xf32>
    %883 = tpu.reciprocal %882 : vector<8x1xf32> -> vector<8x1xf32>
    %884 = vector.broadcast %883 : vector<8x1xf32> to vector<8x8xf32>
    %885 = arith.mulf %880, %884 : vector<8x8xf32>
    %cst_625 = arith.constant dense<0.000000e+00> : vector<8x16xf32>
    %886 = tpu.matmul %885, %870, %cst_625 {dimension_numbers = #tpu.dot_dimension_numbers<[1], [0], [0], [1], [0, 0, 1, 1], [], []>} : vector<8x8xf32>, vector<8x16xf32>, vector<8x16xf32> -> vector<8x16xf32>
    %c3_626 = arith.constant 3 : index
    %c0_627 = arith.constant 0 : index
    %c0_628 = arith.constant 0 : index
    %c0_629 = arith.constant 0 : index
    %c0_630 = arith.constant 0 : index
    %887 = vector.load %arg11[%c3_626, %c0_627, %c0_628, %c0_629, %c0_630] : memref<5x1x2x16x32xf32, #tpu.memory_space<vmem>>, vector<1x1x1x16x32xf32>
    %888 = vector.shape_cast %887 : vector<1x1x1x16x32xf32> to vector<16x32xf32>
    %cst_631 = arith.constant dense<0.000000e+00> : vector<8x32xf32>
    %889 = tpu.matmul %886, %888, %cst_631 {dimension_numbers = #tpu.dot_dimension_numbers<[1], [0], [0], [1], [0, 0, 1, 1], [], []>} : vector<8x16xf32>, vector<16x32xf32>, vector<8x32xf32> -> vector<8x32xf32>
    %890 = vector.extract_strided_slice %838 {offsets = [0, 0], sizes = [8, 16], strides = [1, 1]} : vector<16x16xf32> to vector<8x16xf32>
    %891 = vector.extract_strided_slice %852 {offsets = [0, 0], sizes = [8, 16], strides = [1, 1]} : vector<16x16xf32> to vector<8x16xf32>
    %892 = vector.extract_strided_slice %866 {offsets = [0, 0], sizes = [8, 16], strides = [1, 1]} : vector<16x16xf32> to vector<8x16xf32>
    %cst_632 = arith.constant dense<0.000000e+00> : vector<8x8xf32>
    %893 = tpu.matmul %890, %891, %cst_632 {dimension_numbers = #tpu.dot_dimension_numbers<[1], [1], [0], [0], [0, 0, 1, 0], [], []>} : vector<8x16xf32>, vector<8x16xf32>, vector<8x8xf32> -> vector<8x8xf32>
    %cst_633 = arith.constant 2.500000e-01 : f32
    %894 = vector.broadcast %cst_633 : f32 to vector<8x8xf32>
    %895 = arith.mulf %893, %894 : vector<8x8xf32>
    %896 = vector.broadcast %867 : vector<1x8xf32> to vector<8x8xf32>
    %897 = arith.addf %895, %896 : vector<8x8xf32>
    %cst_634 = arith.constant dense<0xFF800000> : vector<8xf32>
    %898 = vector.multi_reduction <maximumf>, %897, %cst_634 [1] : vector<8x8xf32> to vector<8xf32>
    %899 = vector.shape_cast %898 : vector<8xf32> to vector<8x1xf32>
    %900 = vector.broadcast %899 : vector<8x1xf32> to vector<8x8xf32>
    %901 = arith.subf %897, %900 : vector<8x8xf32>
    %902 = math.exp %901 : vector<8x8xf32>
    %cst_635 = arith.constant dense<0.000000e+00> : vector<8xf32>
    %903 = vector.multi_reduction <add>, %902, %cst_635 [1] : vector<8x8xf32> to vector<8xf32>
    %904 = vector.shape_cast %903 : vector<8xf32> to vector<8x1xf32>
    %905 = tpu.reciprocal %904 : vector<8x1xf32> -> vector<8x1xf32>
    %906 = vector.broadcast %905 : vector<8x1xf32> to vector<8x8xf32>
    %907 = arith.mulf %902, %906 : vector<8x8xf32>
    %cst_636 = arith.constant dense<0.000000e+00> : vector<8x16xf32>
    %908 = tpu.matmul %907, %892, %cst_636 {dimension_numbers = #tpu.dot_dimension_numbers<[1], [0], [0], [1], [0, 0, 1, 1], [], []>} : vector<8x8xf32>, vector<8x16xf32>, vector<8x16xf32> -> vector<8x16xf32>
    %c3_637 = arith.constant 3 : index
    %c0_638 = arith.constant 0 : index
    %c1_639 = arith.constant 1 : index
    %c0_640 = arith.constant 0 : index
    %c0_641 = arith.constant 0 : index
    %909 = vector.load %arg11[%c3_637, %c0_638, %c1_639, %c0_640, %c0_641] : memref<5x1x2x16x32xf32, #tpu.memory_space<vmem>>, vector<1x1x1x16x32xf32>
    %910 = vector.shape_cast %909 : vector<1x1x1x16x32xf32> to vector<16x32xf32>
    %cst_642 = arith.constant dense<0.000000e+00> : vector<8x32xf32>
    %911 = tpu.matmul %908, %910, %cst_642 {dimension_numbers = #tpu.dot_dimension_numbers<[1], [0], [0], [1], [0, 0, 1, 1], [], []>} : vector<8x16xf32>, vector<16x32xf32>, vector<8x32xf32> -> vector<8x32xf32>
    %912 = arith.addf %889, %911 : vector<8x32xf32>
    %913 = vector.extract_strided_slice %800 {offsets = [1, 0], sizes = [1, 8], strides = [1, 1]} : vector<2x8xf32> to vector<1x8xf32>
    %914 = vector.extract_strided_slice %831 {offsets = [8, 0], sizes = [8, 16], strides = [1, 1]} : vector<16x16xf32> to vector<8x16xf32>
    %915 = vector.extract_strided_slice %845 {offsets = [8, 0], sizes = [8, 16], strides = [1, 1]} : vector<16x16xf32> to vector<8x16xf32>
    %916 = vector.extract_strided_slice %859 {offsets = [8, 0], sizes = [8, 16], strides = [1, 1]} : vector<16x16xf32> to vector<8x16xf32>
    %cst_643 = arith.constant dense<0.000000e+00> : vector<8x8xf32>
    %917 = tpu.matmul %914, %915, %cst_643 {dimension_numbers = #tpu.dot_dimension_numbers<[1], [1], [0], [0], [0, 0, 1, 0], [], []>} : vector<8x16xf32>, vector<8x16xf32>, vector<8x8xf32> -> vector<8x8xf32>
    %cst_644 = arith.constant 2.500000e-01 : f32
    %918 = vector.broadcast %cst_644 : f32 to vector<8x8xf32>
    %919 = arith.mulf %917, %918 : vector<8x8xf32>
    %920 = vector.broadcast %913 : vector<1x8xf32> to vector<8x8xf32>
    %921 = arith.addf %919, %920 : vector<8x8xf32>
    %cst_645 = arith.constant dense<0xFF800000> : vector<8xf32>
    %922 = vector.multi_reduction <maximumf>, %921, %cst_645 [1] : vector<8x8xf32> to vector<8xf32>
    %923 = vector.shape_cast %922 : vector<8xf32> to vector<8x1xf32>
    %924 = vector.broadcast %923 : vector<8x1xf32> to vector<8x8xf32>
    %925 = arith.subf %921, %924 : vector<8x8xf32>
    %926 = math.exp %925 : vector<8x8xf32>
    %cst_646 = arith.constant dense<0.000000e+00> : vector<8xf32>
    %927 = vector.multi_reduction <add>, %926, %cst_646 [1] : vector<8x8xf32> to vector<8xf32>
    %928 = vector.shape_cast %927 : vector<8xf32> to vector<8x1xf32>
    %929 = tpu.reciprocal %928 : vector<8x1xf32> -> vector<8x1xf32>
    %930 = vector.broadcast %929 : vector<8x1xf32> to vector<8x8xf32>
    %931 = arith.mulf %926, %930 : vector<8x8xf32>
    %cst_647 = arith.constant dense<0.000000e+00> : vector<8x16xf32>
    %932 = tpu.matmul %931, %916, %cst_647 {dimension_numbers = #tpu.dot_dimension_numbers<[1], [0], [0], [1], [0, 0, 1, 1], [], []>} : vector<8x8xf32>, vector<8x16xf32>, vector<8x16xf32> -> vector<8x16xf32>
    %c3_648 = arith.constant 3 : index
    %c0_649 = arith.constant 0 : index
    %c0_650 = arith.constant 0 : index
    %c0_651 = arith.constant 0 : index
    %c0_652 = arith.constant 0 : index
    %933 = vector.load %arg11[%c3_648, %c0_649, %c0_650, %c0_651, %c0_652] : memref<5x1x2x16x32xf32, #tpu.memory_space<vmem>>, vector<1x1x1x16x32xf32>
    %934 = vector.shape_cast %933 : vector<1x1x1x16x32xf32> to vector<16x32xf32>
    %cst_653 = arith.constant dense<0.000000e+00> : vector<8x32xf32>
    %935 = tpu.matmul %932, %934, %cst_653 {dimension_numbers = #tpu.dot_dimension_numbers<[1], [0], [0], [1], [0, 0, 1, 1], [], []>} : vector<8x16xf32>, vector<16x32xf32>, vector<8x32xf32> -> vector<8x32xf32>
    %936 = vector.extract_strided_slice %838 {offsets = [8, 0], sizes = [8, 16], strides = [1, 1]} : vector<16x16xf32> to vector<8x16xf32>
    %937 = vector.extract_strided_slice %852 {offsets = [8, 0], sizes = [8, 16], strides = [1, 1]} : vector<16x16xf32> to vector<8x16xf32>
    %938 = vector.extract_strided_slice %866 {offsets = [8, 0], sizes = [8, 16], strides = [1, 1]} : vector<16x16xf32> to vector<8x16xf32>
    %cst_654 = arith.constant dense<0.000000e+00> : vector<8x8xf32>
    %939 = tpu.matmul %936, %937, %cst_654 {dimension_numbers = #tpu.dot_dimension_numbers<[1], [1], [0], [0], [0, 0, 1, 0], [], []>} : vector<8x16xf32>, vector<8x16xf32>, vector<8x8xf32> -> vector<8x8xf32>
    %cst_655 = arith.constant 2.500000e-01 : f32
    %940 = vector.broadcast %cst_655 : f32 to vector<8x8xf32>
    %941 = arith.mulf %939, %940 : vector<8x8xf32>
    %942 = vector.broadcast %913 : vector<1x8xf32> to vector<8x8xf32>
    %943 = arith.addf %941, %942 : vector<8x8xf32>
    %cst_656 = arith.constant dense<0xFF800000> : vector<8xf32>
    %944 = vector.multi_reduction <maximumf>, %943, %cst_656 [1] : vector<8x8xf32> to vector<8xf32>
    %945 = vector.shape_cast %944 : vector<8xf32> to vector<8x1xf32>
    %946 = vector.broadcast %945 : vector<8x1xf32> to vector<8x8xf32>
    %947 = arith.subf %943, %946 : vector<8x8xf32>
    %948 = math.exp %947 : vector<8x8xf32>
    %cst_657 = arith.constant dense<0.000000e+00> : vector<8xf32>
    %949 = vector.multi_reduction <add>, %948, %cst_657 [1] : vector<8x8xf32> to vector<8xf32>
    %950 = vector.shape_cast %949 : vector<8xf32> to vector<8x1xf32>
    %951 = tpu.reciprocal %950 : vector<8x1xf32> -> vector<8x1xf32>
    %952 = vector.broadcast %951 : vector<8x1xf32> to vector<8x8xf32>
    %953 = arith.mulf %948, %952 : vector<8x8xf32>
    %cst_658 = arith.constant dense<0.000000e+00> : vector<8x16xf32>
    %954 = tpu.matmul %953, %938, %cst_658 {dimension_numbers = #tpu.dot_dimension_numbers<[1], [0], [0], [1], [0, 0, 1, 1], [], []>} : vector<8x8xf32>, vector<8x16xf32>, vector<8x16xf32> -> vector<8x16xf32>
    %c3_659 = arith.constant 3 : index
    %c0_660 = arith.constant 0 : index
    %c1_661 = arith.constant 1 : index
    %c0_662 = arith.constant 0 : index
    %c0_663 = arith.constant 0 : index
    %955 = vector.load %arg11[%c3_659, %c0_660, %c1_661, %c0_662, %c0_663] : memref<5x1x2x16x32xf32, #tpu.memory_space<vmem>>, vector<1x1x1x16x32xf32>
    %956 = vector.shape_cast %955 : vector<1x1x1x16x32xf32> to vector<16x32xf32>
    %cst_664 = arith.constant dense<0.000000e+00> : vector<8x32xf32>
    %957 = tpu.matmul %954, %956, %cst_664 {dimension_numbers = #tpu.dot_dimension_numbers<[1], [0], [0], [1], [0, 0, 1, 1], [], []>} : vector<8x16xf32>, vector<16x32xf32>, vector<8x32xf32> -> vector<8x32xf32>
    %958 = arith.addf %935, %957 : vector<8x32xf32>
    %959 = tpu.concatenate %912, %958 in 0 : vector<8x32xf32>, vector<8x32xf32> -> vector<16x32xf32>
    %c3_665 = arith.constant 3 : index
    %c0_666 = arith.constant 0 : index
    %c0_667 = arith.constant 0 : index
    %c0_668 = arith.constant 0 : index
    %960 = vector.load %arg12[%c3_665, %c0_666, %c0_667, %c0_668] : memref<5x1x1x32xf32, #tpu.memory_space<vmem>>, vector<1x1x1x32xf32>
    %961 = vector.shape_cast %960 : vector<1x1x1x32xf32> to vector<1x32xf32>
    %962 = vector.broadcast %961 : vector<1x32xf32> to vector<16x32xf32>
    %963 = arith.addf %959, %962 : vector<16x32xf32>
    %c3_669 = arith.constant 3 : index
    %c0_670 = arith.constant 0 : index
    %c0_671 = arith.constant 0 : index
    %c0_672 = arith.constant 0 : index
    %964 = vector.load %arg17[%c3_669, %c0_670, %c0_671, %c0_672] : memref<5x1x4x32xf32, #tpu.memory_space<vmem>>, vector<1x1x4x32xf32>
    %965 = vector.shape_cast %964 : vector<1x1x4x32xf32> to vector<4x32xf32>
    %966 = arith.addf %824, %963 : vector<16x32xf32>
    %967 = vector.extract_strided_slice %965 {offsets = [0, 0], sizes = [1, 32], strides = [1, 1]} : vector<4x32xf32> to vector<1x32xf32>
    %968 = vector.extract_strided_slice %965 {offsets = [1, 0], sizes = [1, 32], strides = [1, 1]} : vector<4x32xf32> to vector<1x32xf32>
    %cst_673 = arith.constant dense<0.000000e+00> : vector<16xf32>
    %969 = vector.multi_reduction <add>, %966, %cst_673 [1] : vector<16x32xf32> to vector<16xf32>
    %970 = vector.shape_cast %969 : vector<16xf32> to vector<16x1xf32>
    %cst_674 = arith.constant 3.200000e+01 : f32
    %971 = vector.broadcast %cst_674 : f32 to vector<16x1xf32>
    %972 = arith.divf %970, %971 : vector<16x1xf32>
    %973 = vector.broadcast %972 : vector<16x1xf32> to vector<16x32xf32>
    %974 = arith.subf %966, %973 : vector<16x32xf32>
    %975 = arith.mulf %974, %974 : vector<16x32xf32>
    %cst_675 = arith.constant dense<0.000000e+00> : vector<16xf32>
    %976 = vector.multi_reduction <add>, %975, %cst_675 [1] : vector<16x32xf32> to vector<16xf32>
    %977 = vector.shape_cast %976 : vector<16xf32> to vector<16x1xf32>
    %cst_676 = arith.constant 3.200000e+01 : f32
    %978 = vector.broadcast %cst_676 : f32 to vector<16x1xf32>
    %979 = arith.divf %977, %978 : vector<16x1xf32>
    %cst_677 = arith.constant 9.99999974E-6 : f32
    %980 = vector.broadcast %cst_677 : f32 to vector<16x1xf32>
    %981 = arith.addf %979, %980 : vector<16x1xf32>
    %982 = math.rsqrt %981 : vector<16x1xf32>
    %983 = vector.broadcast %982 : vector<16x1xf32> to vector<16x32xf32>
    %984 = arith.mulf %974, %983 : vector<16x32xf32>
    %985 = vector.broadcast %967 : vector<1x32xf32> to vector<16x32xf32>
    %986 = arith.mulf %984, %985 : vector<16x32xf32>
    %987 = vector.broadcast %968 : vector<1x32xf32> to vector<16x32xf32>
    %988 = arith.addf %986, %987 : vector<16x32xf32>
    %c3_678 = arith.constant 3 : index
    %c0_679 = arith.constant 0 : index
    %c0_680 = arith.constant 0 : index
    %c0_681 = arith.constant 0 : index
    %989 = vector.load %arg13[%c3_678, %c0_679, %c0_680, %c0_681] : memref<5x1x32x64xf32, #tpu.memory_space<vmem>>, vector<1x1x32x64xf32>
    %990 = vector.shape_cast %989 : vector<1x1x32x64xf32> to vector<32x64xf32>
    %cst_682 = arith.constant dense<0.000000e+00> : vector<16x64xf32>
    %991 = tpu.matmul %988, %990, %cst_682 {dimension_numbers = #tpu.dot_dimension_numbers<[1], [0], [0], [1], [0, 0, 1, 1], [], []>} : vector<16x32xf32>, vector<32x64xf32>, vector<16x64xf32> -> vector<16x64xf32>
    %c3_683 = arith.constant 3 : index
    %c0_684 = arith.constant 0 : index
    %c0_685 = arith.constant 0 : index
    %c0_686 = arith.constant 0 : index
    %992 = vector.load %arg14[%c3_683, %c0_684, %c0_685, %c0_686] : memref<5x1x1x64xf32, #tpu.memory_space<vmem>>, vector<1x1x1x64xf32>
    %993 = vector.shape_cast %992 : vector<1x1x1x64xf32> to vector<1x64xf32>
    %994 = vector.broadcast %993 : vector<1x64xf32> to vector<16x64xf32>
    %995 = arith.addf %991, %994 : vector<16x64xf32>
    %cst_687 = arith.constant 0.000000e+00 : f32
    %996 = vector.broadcast %cst_687 : f32 to vector<16x64xf32>
    %997 = arith.maximumf %995, %996 : vector<16x64xf32>
    %c3_688 = arith.constant 3 : index
    %c0_689 = arith.constant 0 : index
    %c0_690 = arith.constant 0 : index
    %c0_691 = arith.constant 0 : index
    %998 = vector.load %arg15[%c3_688, %c0_689, %c0_690, %c0_691] : memref<5x1x64x32xf32, #tpu.memory_space<vmem>>, vector<1x1x64x32xf32>
    %999 = vector.shape_cast %998 : vector<1x1x64x32xf32> to vector<64x32xf32>
    %cst_692 = arith.constant dense<0.000000e+00> : vector<16x32xf32>
    %1000 = tpu.matmul %997, %999, %cst_692 {dimension_numbers = #tpu.dot_dimension_numbers<[1], [0], [0], [1], [0, 0, 1, 1], [], []>} : vector<16x64xf32>, vector<64x32xf32>, vector<16x32xf32> -> vector<16x32xf32>
    %c3_693 = arith.constant 3 : index
    %c0_694 = arith.constant 0 : index
    %c0_695 = arith.constant 0 : index
    %c0_696 = arith.constant 0 : index
    %1001 = vector.load %arg16[%c3_693, %c0_694, %c0_695, %c0_696] : memref<5x1x1x32xf32, #tpu.memory_space<vmem>>, vector<1x1x1x32xf32>
    %1002 = vector.shape_cast %1001 : vector<1x1x1x32xf32> to vector<1x32xf32>
    %1003 = vector.broadcast %1002 : vector<1x32xf32> to vector<16x32xf32>
    %1004 = arith.addf %1000, %1003 : vector<16x32xf32>
    %1005 = arith.addf %988, %1004 : vector<16x32xf32>
    %1006 = vector.extract_strided_slice %965 {offsets = [2, 0], sizes = [1, 32], strides = [1, 1]} : vector<4x32xf32> to vector<1x32xf32>
    %1007 = vector.extract_strided_slice %965 {offsets = [3, 0], sizes = [1, 32], strides = [1, 1]} : vector<4x32xf32> to vector<1x32xf32>
    %cst_697 = arith.constant dense<0.000000e+00> : vector<16xf32>
    %1008 = vector.multi_reduction <add>, %1005, %cst_697 [1] : vector<16x32xf32> to vector<16xf32>
    %1009 = vector.shape_cast %1008 : vector<16xf32> to vector<16x1xf32>
    %cst_698 = arith.constant 3.200000e+01 : f32
    %1010 = vector.broadcast %cst_698 : f32 to vector<16x1xf32>
    %1011 = arith.divf %1009, %1010 : vector<16x1xf32>
    %1012 = vector.broadcast %1011 : vector<16x1xf32> to vector<16x32xf32>
    %1013 = arith.subf %1005, %1012 : vector<16x32xf32>
    %1014 = arith.mulf %1013, %1013 : vector<16x32xf32>
    %cst_699 = arith.constant dense<0.000000e+00> : vector<16xf32>
    %1015 = vector.multi_reduction <add>, %1014, %cst_699 [1] : vector<16x32xf32> to vector<16xf32>
    %1016 = vector.shape_cast %1015 : vector<16xf32> to vector<16x1xf32>
    %cst_700 = arith.constant 3.200000e+01 : f32
    %1017 = vector.broadcast %cst_700 : f32 to vector<16x1xf32>
    %1018 = arith.divf %1016, %1017 : vector<16x1xf32>
    %cst_701 = arith.constant 9.99999974E-6 : f32
    %1019 = vector.broadcast %cst_701 : f32 to vector<16x1xf32>
    %1020 = arith.addf %1018, %1019 : vector<16x1xf32>
    %1021 = math.rsqrt %1020 : vector<16x1xf32>
    %1022 = vector.broadcast %1021 : vector<16x1xf32> to vector<16x32xf32>
    %1023 = arith.mulf %1013, %1022 : vector<16x32xf32>
    %1024 = vector.broadcast %1006 : vector<1x32xf32> to vector<16x32xf32>
    %1025 = arith.mulf %1023, %1024 : vector<16x32xf32>
    %1026 = vector.broadcast %1007 : vector<1x32xf32> to vector<16x32xf32>
    %1027 = arith.addf %1025, %1026 : vector<16x32xf32>
    %c3_702 = arith.constant 3 : index
    %c0_703 = arith.constant 0 : index
    %c0_704 = arith.constant 0 : index
    %1028 = vector.load %arg19[%c3_702, %c0_703, %c0_704] : memref<5x32x512xf32, #tpu.memory_space<vmem>>, vector<1x32x512xf32>
    %1029 = vector.shape_cast %1028 : vector<1x32x512xf32> to vector<32x512xf32>
    %cst_705 = arith.constant dense<0.000000e+00> : vector<16x512xf32>
    %1030 = tpu.matmul %1027, %1029, %cst_705 {dimension_numbers = #tpu.dot_dimension_numbers<[1], [0], [0], [1], [0, 0, 1, 1], [], []>} : vector<16x32xf32>, vector<32x512xf32>, vector<16x512xf32> -> vector<16x512xf32>
    %c0_706 = arith.constant 0 : index
    %c0_707 = arith.constant 0 : index
    %1031 = vector.load %arg18[%c0_706, %c0_707] : memref<16x512xf32, #tpu.memory_space<vmem>>, vector<16x512xf32>
    %1032 = arith.mulf %1030, %1031 : vector<16x512xf32>
    %1033 = vector.extract_strided_slice %1032 {offsets = [0, 0], sizes = [8, 512], strides = [1, 1]} : vector<16x512xf32> to vector<8x512xf32>
    %cst_708 = arith.constant dense<0.000000e+00> : vector<512xf32>
    %1034 = vector.multi_reduction <add>, %1033, %cst_708 [0] : vector<8x512xf32> to vector<512xf32>
    %1035 = vector.shape_cast %1034 : vector<512xf32> to vector<1x512xf32>
    %1036 = vector.extract_strided_slice %1032 {offsets = [8, 0], sizes = [8, 512], strides = [1, 1]} : vector<16x512xf32> to vector<8x512xf32>
    %cst_709 = arith.constant dense<0.000000e+00> : vector<512xf32>
    %1037 = vector.multi_reduction <add>, %1036, %cst_709 [0] : vector<8x512xf32> to vector<512xf32>
    %1038 = vector.shape_cast %1037 : vector<512xf32> to vector<1x512xf32>
    %1039 = tpu.concatenate %1035, %1038 in 0 : vector<1x512xf32>, vector<1x512xf32> -> vector<2x512xf32>
    %c0_710 = arith.constant 0 : index
    %c0_711 = arith.constant 0 : index
    %1040 = vector.load %arg20[%c0_710, %c0_711] : memref<512x64xf32, #tpu.memory_space<vmem>>, vector<512x64xf32>
    %cst_712 = arith.constant dense<0.000000e+00> : vector<2x64xf32>
    %1041 = tpu.matmul %1039, %1040, %cst_712 {dimension_numbers = #tpu.dot_dimension_numbers<[1], [0], [0], [1], [0, 0, 1, 1], [], []>} : vector<2x512xf32>, vector<512x64xf32>, vector<2x64xf32> -> vector<2x64xf32>
    %1042 = arith.addf %782, %1041 : vector<2x64xf32>
    %1043 = tpu.iota {dimensions = array<i32: 1>} : vector<16x50xi32>
    %c4 = arith.constant 4 : index
    %c0_713 = arith.constant 0 : index
    %c0_714 = arith.constant 0 : index
    %1044 = vector.load %arg0[%c4, %c0_713, %c0_714] : memref<5x16x1xi32, #tpu.memory_space<vmem>>, vector<1x16x1xi32>
    %1045 = vector.shape_cast %1044 : vector<1x16x1xi32> to vector<16x1xi32>
    %1046 = vector.broadcast %1045 : vector<16x1xi32> to vector<16x50xi32>
    %1047 = arith.cmpi eq, %1043, %1046 : vector<16x50xi32>
    %1048 = arith.extui %1047 : vector<16x50xi1> to vector<16x50xi32>
    %1049 = arith.sitofp %1048 : vector<16x50xi32> to vector<16x50xf32>
    %c4_715 = arith.constant 4 : index
    %c0_716 = arith.constant 0 : index
    %c0_717 = arith.constant 0 : index
    %1050 = vector.load %arg2[%c4_715, %c0_716, %c0_717] : memref<5x50x32xf32, #tpu.memory_space<vmem>>, vector<1x50x32xf32>
    %1051 = vector.shape_cast %1050 : vector<1x50x32xf32> to vector<50x32xf32>
    %cst_718 = arith.constant dense<0.000000e+00> : vector<16x32xf32>
    %1052 = tpu.matmul %1049, %1051, %cst_718 {dimension_numbers = #tpu.dot_dimension_numbers<[1], [0], [0], [1], [0, 0, 1, 1], [], []>} : vector<16x50xf32>, vector<50x32xf32>, vector<16x32xf32> -> vector<16x32xf32>
    %1053 = arith.addf %1052, %1 : vector<16x32xf32>
    %c4_719 = arith.constant 4 : index
    %c0_720 = arith.constant 0 : index
    %c0_721 = arith.constant 0 : index
    %1054 = vector.load %arg1[%c4_719, %c0_720, %c0_721] : memref<5x2x8xi32, #tpu.memory_space<vmem>>, vector<1x2x8xi32>
    %1055 = vector.shape_cast %1054 : vector<1x2x8xi32> to vector<2x8xi32>
    %c0_i32_722 = arith.constant 0 : i32
    %1056 = vector.broadcast %c0_i32_722 : i32 to vector<2x8xi32>
    %1057 = arith.cmpi ne, %1055, %1056 : vector<2x8xi32>
    %cst_723 = arith.constant 0.000000e+00 : f32
    %cst_724 = arith.constant -1.000000e+09 : f32
    %1058 = vector.broadcast %cst_723 : f32 to vector<2x8xf32>
    %1059 = vector.broadcast %cst_724 : f32 to vector<2x8xf32>
    %1060 = arith.select %1057, %1058, %1059 : vector<2x8xi1>, vector<2x8xf32>
    %c4_725 = arith.constant 4 : index
    %c0_726 = arith.constant 0 : index
    %c0_727 = arith.constant 0 : index
    %1061 = vector.load %arg4[%c4_725, %c0_726, %c0_727] : memref<5x2x32xf32, #tpu.memory_space<vmem>>, vector<1x2x32xf32>
    %1062 = vector.shape_cast %1061 : vector<1x2x32xf32> to vector<2x32xf32>
    %1063 = vector.extract_strided_slice %1062 {offsets = [0, 0], sizes = [1, 32], strides = [1, 1]} : vector<2x32xf32> to vector<1x32xf32>
    %1064 = vector.extract_strided_slice %1062 {offsets = [1, 0], sizes = [1, 32], strides = [1, 1]} : vector<2x32xf32> to vector<1x32xf32>
    %cst_728 = arith.constant dense<0.000000e+00> : vector<16xf32>
    %1065 = vector.multi_reduction <add>, %1053, %cst_728 [1] : vector<16x32xf32> to vector<16xf32>
    %1066 = vector.shape_cast %1065 : vector<16xf32> to vector<16x1xf32>
    %cst_729 = arith.constant 3.200000e+01 : f32
    %1067 = vector.broadcast %cst_729 : f32 to vector<16x1xf32>
    %1068 = arith.divf %1066, %1067 : vector<16x1xf32>
    %1069 = vector.broadcast %1068 : vector<16x1xf32> to vector<16x32xf32>
    %1070 = arith.subf %1053, %1069 : vector<16x32xf32>
    %1071 = arith.mulf %1070, %1070 : vector<16x32xf32>
    %cst_730 = arith.constant dense<0.000000e+00> : vector<16xf32>
    %1072 = vector.multi_reduction <add>, %1071, %cst_730 [1] : vector<16x32xf32> to vector<16xf32>
    %1073 = vector.shape_cast %1072 : vector<16xf32> to vector<16x1xf32>
    %cst_731 = arith.constant 3.200000e+01 : f32
    %1074 = vector.broadcast %cst_731 : f32 to vector<16x1xf32>
    %1075 = arith.divf %1073, %1074 : vector<16x1xf32>
    %cst_732 = arith.constant 9.99999974E-6 : f32
    %1076 = vector.broadcast %cst_732 : f32 to vector<16x1xf32>
    %1077 = arith.addf %1075, %1076 : vector<16x1xf32>
    %1078 = math.rsqrt %1077 : vector<16x1xf32>
    %1079 = vector.broadcast %1078 : vector<16x1xf32> to vector<16x32xf32>
    %1080 = arith.mulf %1070, %1079 : vector<16x32xf32>
    %1081 = vector.broadcast %1063 : vector<1x32xf32> to vector<16x32xf32>
    %1082 = arith.mulf %1080, %1081 : vector<16x32xf32>
    %1083 = vector.broadcast %1064 : vector<1x32xf32> to vector<16x32xf32>
    %1084 = arith.addf %1082, %1083 : vector<16x32xf32>
    %c4_733 = arith.constant 4 : index
    %c0_734 = arith.constant 0 : index
    %c0_735 = arith.constant 0 : index
    %c0_736 = arith.constant 0 : index
    %c0_737 = arith.constant 0 : index
    %1085 = vector.load %arg5[%c4_733, %c0_734, %c0_735, %c0_736, %c0_737] : memref<5x1x2x32x16xf32, #tpu.memory_space<vmem>>, vector<1x1x1x32x16xf32>
    %1086 = vector.shape_cast %1085 : vector<1x1x1x32x16xf32> to vector<32x16xf32>
    %cst_738 = arith.constant dense<0.000000e+00> : vector<16x16xf32>
    %1087 = tpu.matmul %1084, %1086, %cst_738 {dimension_numbers = #tpu.dot_dimension_numbers<[1], [0], [0], [1], [0, 0, 1, 1], [], []>} : vector<16x32xf32>, vector<32x16xf32>, vector<16x16xf32> -> vector<16x16xf32>
    %c4_739 = arith.constant 4 : index
    %c0_740 = arith.constant 0 : index
    %c0_741 = arith.constant 0 : index
    %c0_742 = arith.constant 0 : index
    %c0_743 = arith.constant 0 : index
    %1088 = vector.load %arg8[%c4_739, %c0_740, %c0_741, %c0_742, %c0_743] : memref<5x1x2x1x16xf32, #tpu.memory_space<vmem>>, vector<1x1x1x1x16xf32>
    %1089 = vector.shape_cast %1088 : vector<1x1x1x1x16xf32> to vector<1x16xf32>
    %1090 = vector.broadcast %1089 : vector<1x16xf32> to vector<16x16xf32>
    %1091 = arith.addf %1087, %1090 : vector<16x16xf32>
    %c4_744 = arith.constant 4 : index
    %c0_745 = arith.constant 0 : index
    %c1_746 = arith.constant 1 : index
    %c0_747 = arith.constant 0 : index
    %c0_748 = arith.constant 0 : index
    %1092 = vector.load %arg5[%c4_744, %c0_745, %c1_746, %c0_747, %c0_748] : memref<5x1x2x32x16xf32, #tpu.memory_space<vmem>>, vector<1x1x1x32x16xf32>
    %1093 = vector.shape_cast %1092 : vector<1x1x1x32x16xf32> to vector<32x16xf32>
    %cst_749 = arith.constant dense<0.000000e+00> : vector<16x16xf32>
    %1094 = tpu.matmul %1084, %1093, %cst_749 {dimension_numbers = #tpu.dot_dimension_numbers<[1], [0], [0], [1], [0, 0, 1, 1], [], []>} : vector<16x32xf32>, vector<32x16xf32>, vector<16x16xf32> -> vector<16x16xf32>
    %c4_750 = arith.constant 4 : index
    %c0_751 = arith.constant 0 : index
    %c1_752 = arith.constant 1 : index
    %c0_753 = arith.constant 0 : index
    %c0_754 = arith.constant 0 : index
    %1095 = vector.load %arg8[%c4_750, %c0_751, %c1_752, %c0_753, %c0_754] : memref<5x1x2x1x16xf32, #tpu.memory_space<vmem>>, vector<1x1x1x1x16xf32>
    %1096 = vector.shape_cast %1095 : vector<1x1x1x1x16xf32> to vector<1x16xf32>
    %1097 = vector.broadcast %1096 : vector<1x16xf32> to vector<16x16xf32>
    %1098 = arith.addf %1094, %1097 : vector<16x16xf32>
    %c4_755 = arith.constant 4 : index
    %c0_756 = arith.constant 0 : index
    %c0_757 = arith.constant 0 : index
    %c0_758 = arith.constant 0 : index
    %c0_759 = arith.constant 0 : index
    %1099 = vector.load %arg6[%c4_755, %c0_756, %c0_757, %c0_758, %c0_759] : memref<5x1x2x32x16xf32, #tpu.memory_space<vmem>>, vector<1x1x1x32x16xf32>
    %1100 = vector.shape_cast %1099 : vector<1x1x1x32x16xf32> to vector<32x16xf32>
    %cst_760 = arith.constant dense<0.000000e+00> : vector<16x16xf32>
    %1101 = tpu.matmul %1084, %1100, %cst_760 {dimension_numbers = #tpu.dot_dimension_numbers<[1], [0], [0], [1], [0, 0, 1, 1], [], []>} : vector<16x32xf32>, vector<32x16xf32>, vector<16x16xf32> -> vector<16x16xf32>
    %c4_761 = arith.constant 4 : index
    %c0_762 = arith.constant 0 : index
    %c0_763 = arith.constant 0 : index
    %c0_764 = arith.constant 0 : index
    %c0_765 = arith.constant 0 : index
    %1102 = vector.load %arg9[%c4_761, %c0_762, %c0_763, %c0_764, %c0_765] : memref<5x1x2x1x16xf32, #tpu.memory_space<vmem>>, vector<1x1x1x1x16xf32>
    %1103 = vector.shape_cast %1102 : vector<1x1x1x1x16xf32> to vector<1x16xf32>
    %1104 = vector.broadcast %1103 : vector<1x16xf32> to vector<16x16xf32>
    %1105 = arith.addf %1101, %1104 : vector<16x16xf32>
    %c4_766 = arith.constant 4 : index
    %c0_767 = arith.constant 0 : index
    %c1_768 = arith.constant 1 : index
    %c0_769 = arith.constant 0 : index
    %c0_770 = arith.constant 0 : index
    %1106 = vector.load %arg6[%c4_766, %c0_767, %c1_768, %c0_769, %c0_770] : memref<5x1x2x32x16xf32, #tpu.memory_space<vmem>>, vector<1x1x1x32x16xf32>
    %1107 = vector.shape_cast %1106 : vector<1x1x1x32x16xf32> to vector<32x16xf32>
    %cst_771 = arith.constant dense<0.000000e+00> : vector<16x16xf32>
    %1108 = tpu.matmul %1084, %1107, %cst_771 {dimension_numbers = #tpu.dot_dimension_numbers<[1], [0], [0], [1], [0, 0, 1, 1], [], []>} : vector<16x32xf32>, vector<32x16xf32>, vector<16x16xf32> -> vector<16x16xf32>
    %c4_772 = arith.constant 4 : index
    %c0_773 = arith.constant 0 : index
    %c1_774 = arith.constant 1 : index
    %c0_775 = arith.constant 0 : index
    %c0_776 = arith.constant 0 : index
    %1109 = vector.load %arg9[%c4_772, %c0_773, %c1_774, %c0_775, %c0_776] : memref<5x1x2x1x16xf32, #tpu.memory_space<vmem>>, vector<1x1x1x1x16xf32>
    %1110 = vector.shape_cast %1109 : vector<1x1x1x1x16xf32> to vector<1x16xf32>
    %1111 = vector.broadcast %1110 : vector<1x16xf32> to vector<16x16xf32>
    %1112 = arith.addf %1108, %1111 : vector<16x16xf32>
    %c4_777 = arith.constant 4 : index
    %c0_778 = arith.constant 0 : index
    %c0_779 = arith.constant 0 : index
    %c0_780 = arith.constant 0 : index
    %c0_781 = arith.constant 0 : index
    %1113 = vector.load %arg7[%c4_777, %c0_778, %c0_779, %c0_780, %c0_781] : memref<5x1x2x32x16xf32, #tpu.memory_space<vmem>>, vector<1x1x1x32x16xf32>
    %1114 = vector.shape_cast %1113 : vector<1x1x1x32x16xf32> to vector<32x16xf32>
    %cst_782 = arith.constant dense<0.000000e+00> : vector<16x16xf32>
    %1115 = tpu.matmul %1084, %1114, %cst_782 {dimension_numbers = #tpu.dot_dimension_numbers<[1], [0], [0], [1], [0, 0, 1, 1], [], []>} : vector<16x32xf32>, vector<32x16xf32>, vector<16x16xf32> -> vector<16x16xf32>
    %c4_783 = arith.constant 4 : index
    %c0_784 = arith.constant 0 : index
    %c0_785 = arith.constant 0 : index
    %c0_786 = arith.constant 0 : index
    %c0_787 = arith.constant 0 : index
    %1116 = vector.load %arg10[%c4_783, %c0_784, %c0_785, %c0_786, %c0_787] : memref<5x1x2x1x16xf32, #tpu.memory_space<vmem>>, vector<1x1x1x1x16xf32>
    %1117 = vector.shape_cast %1116 : vector<1x1x1x1x16xf32> to vector<1x16xf32>
    %1118 = vector.broadcast %1117 : vector<1x16xf32> to vector<16x16xf32>
    %1119 = arith.addf %1115, %1118 : vector<16x16xf32>
    %c4_788 = arith.constant 4 : index
    %c0_789 = arith.constant 0 : index
    %c1_790 = arith.constant 1 : index
    %c0_791 = arith.constant 0 : index
    %c0_792 = arith.constant 0 : index
    %1120 = vector.load %arg7[%c4_788, %c0_789, %c1_790, %c0_791, %c0_792] : memref<5x1x2x32x16xf32, #tpu.memory_space<vmem>>, vector<1x1x1x32x16xf32>
    %1121 = vector.shape_cast %1120 : vector<1x1x1x32x16xf32> to vector<32x16xf32>
    %cst_793 = arith.constant dense<0.000000e+00> : vector<16x16xf32>
    %1122 = tpu.matmul %1084, %1121, %cst_793 {dimension_numbers = #tpu.dot_dimension_numbers<[1], [0], [0], [1], [0, 0, 1, 1], [], []>} : vector<16x32xf32>, vector<32x16xf32>, vector<16x16xf32> -> vector<16x16xf32>
    %c4_794 = arith.constant 4 : index
    %c0_795 = arith.constant 0 : index
    %c1_796 = arith.constant 1 : index
    %c0_797 = arith.constant 0 : index
    %c0_798 = arith.constant 0 : index
    %1123 = vector.load %arg10[%c4_794, %c0_795, %c1_796, %c0_797, %c0_798] : memref<5x1x2x1x16xf32, #tpu.memory_space<vmem>>, vector<1x1x1x1x16xf32>
    %1124 = vector.shape_cast %1123 : vector<1x1x1x1x16xf32> to vector<1x16xf32>
    %1125 = vector.broadcast %1124 : vector<1x16xf32> to vector<16x16xf32>
    %1126 = arith.addf %1122, %1125 : vector<16x16xf32>
    %1127 = vector.extract_strided_slice %1060 {offsets = [0, 0], sizes = [1, 8], strides = [1, 1]} : vector<2x8xf32> to vector<1x8xf32>
    %1128 = vector.extract_strided_slice %1091 {offsets = [0, 0], sizes = [8, 16], strides = [1, 1]} : vector<16x16xf32> to vector<8x16xf32>
    %1129 = vector.extract_strided_slice %1105 {offsets = [0, 0], sizes = [8, 16], strides = [1, 1]} : vector<16x16xf32> to vector<8x16xf32>
    %1130 = vector.extract_strided_slice %1119 {offsets = [0, 0], sizes = [8, 16], strides = [1, 1]} : vector<16x16xf32> to vector<8x16xf32>
    %cst_799 = arith.constant dense<0.000000e+00> : vector<8x8xf32>
    %1131 = tpu.matmul %1128, %1129, %cst_799 {dimension_numbers = #tpu.dot_dimension_numbers<[1], [1], [0], [0], [0, 0, 1, 0], [], []>} : vector<8x16xf32>, vector<8x16xf32>, vector<8x8xf32> -> vector<8x8xf32>
    %cst_800 = arith.constant 2.500000e-01 : f32
    %1132 = vector.broadcast %cst_800 : f32 to vector<8x8xf32>
    %1133 = arith.mulf %1131, %1132 : vector<8x8xf32>
    %1134 = vector.broadcast %1127 : vector<1x8xf32> to vector<8x8xf32>
    %1135 = arith.addf %1133, %1134 : vector<8x8xf32>
    %cst_801 = arith.constant dense<0xFF800000> : vector<8xf32>
    %1136 = vector.multi_reduction <maximumf>, %1135, %cst_801 [1] : vector<8x8xf32> to vector<8xf32>
    %1137 = vector.shape_cast %1136 : vector<8xf32> to vector<8x1xf32>
    %1138 = vector.broadcast %1137 : vector<8x1xf32> to vector<8x8xf32>
    %1139 = arith.subf %1135, %1138 : vector<8x8xf32>
    %1140 = math.exp %1139 : vector<8x8xf32>
    %cst_802 = arith.constant dense<0.000000e+00> : vector<8xf32>
    %1141 = vector.multi_reduction <add>, %1140, %cst_802 [1] : vector<8x8xf32> to vector<8xf32>
    %1142 = vector.shape_cast %1141 : vector<8xf32> to vector<8x1xf32>
    %1143 = tpu.reciprocal %1142 : vector<8x1xf32> -> vector<8x1xf32>
    %1144 = vector.broadcast %1143 : vector<8x1xf32> to vector<8x8xf32>
    %1145 = arith.mulf %1140, %1144 : vector<8x8xf32>
    %cst_803 = arith.constant dense<0.000000e+00> : vector<8x16xf32>
    %1146 = tpu.matmul %1145, %1130, %cst_803 {dimension_numbers = #tpu.dot_dimension_numbers<[1], [0], [0], [1], [0, 0, 1, 1], [], []>} : vector<8x8xf32>, vector<8x16xf32>, vector<8x16xf32> -> vector<8x16xf32>
    %c4_804 = arith.constant 4 : index
    %c0_805 = arith.constant 0 : index
    %c0_806 = arith.constant 0 : index
    %c0_807 = arith.constant 0 : index
    %c0_808 = arith.constant 0 : index
    %1147 = vector.load %arg11[%c4_804, %c0_805, %c0_806, %c0_807, %c0_808] : memref<5x1x2x16x32xf32, #tpu.memory_space<vmem>>, vector<1x1x1x16x32xf32>
    %1148 = vector.shape_cast %1147 : vector<1x1x1x16x32xf32> to vector<16x32xf32>
    %cst_809 = arith.constant dense<0.000000e+00> : vector<8x32xf32>
    %1149 = tpu.matmul %1146, %1148, %cst_809 {dimension_numbers = #tpu.dot_dimension_numbers<[1], [0], [0], [1], [0, 0, 1, 1], [], []>} : vector<8x16xf32>, vector<16x32xf32>, vector<8x32xf32> -> vector<8x32xf32>
    %1150 = vector.extract_strided_slice %1098 {offsets = [0, 0], sizes = [8, 16], strides = [1, 1]} : vector<16x16xf32> to vector<8x16xf32>
    %1151 = vector.extract_strided_slice %1112 {offsets = [0, 0], sizes = [8, 16], strides = [1, 1]} : vector<16x16xf32> to vector<8x16xf32>
    %1152 = vector.extract_strided_slice %1126 {offsets = [0, 0], sizes = [8, 16], strides = [1, 1]} : vector<16x16xf32> to vector<8x16xf32>
    %cst_810 = arith.constant dense<0.000000e+00> : vector<8x8xf32>
    %1153 = tpu.matmul %1150, %1151, %cst_810 {dimension_numbers = #tpu.dot_dimension_numbers<[1], [1], [0], [0], [0, 0, 1, 0], [], []>} : vector<8x16xf32>, vector<8x16xf32>, vector<8x8xf32> -> vector<8x8xf32>
    %cst_811 = arith.constant 2.500000e-01 : f32
    %1154 = vector.broadcast %cst_811 : f32 to vector<8x8xf32>
    %1155 = arith.mulf %1153, %1154 : vector<8x8xf32>
    %1156 = vector.broadcast %1127 : vector<1x8xf32> to vector<8x8xf32>
    %1157 = arith.addf %1155, %1156 : vector<8x8xf32>
    %cst_812 = arith.constant dense<0xFF800000> : vector<8xf32>
    %1158 = vector.multi_reduction <maximumf>, %1157, %cst_812 [1] : vector<8x8xf32> to vector<8xf32>
    %1159 = vector.shape_cast %1158 : vector<8xf32> to vector<8x1xf32>
    %1160 = vector.broadcast %1159 : vector<8x1xf32> to vector<8x8xf32>
    %1161 = arith.subf %1157, %1160 : vector<8x8xf32>
    %1162 = math.exp %1161 : vector<8x8xf32>
    %cst_813 = arith.constant dense<0.000000e+00> : vector<8xf32>
    %1163 = vector.multi_reduction <add>, %1162, %cst_813 [1] : vector<8x8xf32> to vector<8xf32>
    %1164 = vector.shape_cast %1163 : vector<8xf32> to vector<8x1xf32>
    %1165 = tpu.reciprocal %1164 : vector<8x1xf32> -> vector<8x1xf32>
    %1166 = vector.broadcast %1165 : vector<8x1xf32> to vector<8x8xf32>
    %1167 = arith.mulf %1162, %1166 : vector<8x8xf32>
    %cst_814 = arith.constant dense<0.000000e+00> : vector<8x16xf32>
    %1168 = tpu.matmul %1167, %1152, %cst_814 {dimension_numbers = #tpu.dot_dimension_numbers<[1], [0], [0], [1], [0, 0, 1, 1], [], []>} : vector<8x8xf32>, vector<8x16xf32>, vector<8x16xf32> -> vector<8x16xf32>
    %c4_815 = arith.constant 4 : index
    %c0_816 = arith.constant 0 : index
    %c1_817 = arith.constant 1 : index
    %c0_818 = arith.constant 0 : index
    %c0_819 = arith.constant 0 : index
    %1169 = vector.load %arg11[%c4_815, %c0_816, %c1_817, %c0_818, %c0_819] : memref<5x1x2x16x32xf32, #tpu.memory_space<vmem>>, vector<1x1x1x16x32xf32>
    %1170 = vector.shape_cast %1169 : vector<1x1x1x16x32xf32> to vector<16x32xf32>
    %cst_820 = arith.constant dense<0.000000e+00> : vector<8x32xf32>
    %1171 = tpu.matmul %1168, %1170, %cst_820 {dimension_numbers = #tpu.dot_dimension_numbers<[1], [0], [0], [1], [0, 0, 1, 1], [], []>} : vector<8x16xf32>, vector<16x32xf32>, vector<8x32xf32> -> vector<8x32xf32>
    %1172 = arith.addf %1149, %1171 : vector<8x32xf32>
    %1173 = vector.extract_strided_slice %1060 {offsets = [1, 0], sizes = [1, 8], strides = [1, 1]} : vector<2x8xf32> to vector<1x8xf32>
    %1174 = vector.extract_strided_slice %1091 {offsets = [8, 0], sizes = [8, 16], strides = [1, 1]} : vector<16x16xf32> to vector<8x16xf32>
    %1175 = vector.extract_strided_slice %1105 {offsets = [8, 0], sizes = [8, 16], strides = [1, 1]} : vector<16x16xf32> to vector<8x16xf32>
    %1176 = vector.extract_strided_slice %1119 {offsets = [8, 0], sizes = [8, 16], strides = [1, 1]} : vector<16x16xf32> to vector<8x16xf32>
    %cst_821 = arith.constant dense<0.000000e+00> : vector<8x8xf32>
    %1177 = tpu.matmul %1174, %1175, %cst_821 {dimension_numbers = #tpu.dot_dimension_numbers<[1], [1], [0], [0], [0, 0, 1, 0], [], []>} : vector<8x16xf32>, vector<8x16xf32>, vector<8x8xf32> -> vector<8x8xf32>
    %cst_822 = arith.constant 2.500000e-01 : f32
    %1178 = vector.broadcast %cst_822 : f32 to vector<8x8xf32>
    %1179 = arith.mulf %1177, %1178 : vector<8x8xf32>
    %1180 = vector.broadcast %1173 : vector<1x8xf32> to vector<8x8xf32>
    %1181 = arith.addf %1179, %1180 : vector<8x8xf32>
    %cst_823 = arith.constant dense<0xFF800000> : vector<8xf32>
    %1182 = vector.multi_reduction <maximumf>, %1181, %cst_823 [1] : vector<8x8xf32> to vector<8xf32>
    %1183 = vector.shape_cast %1182 : vector<8xf32> to vector<8x1xf32>
    %1184 = vector.broadcast %1183 : vector<8x1xf32> to vector<8x8xf32>
    %1185 = arith.subf %1181, %1184 : vector<8x8xf32>
    %1186 = math.exp %1185 : vector<8x8xf32>
    %cst_824 = arith.constant dense<0.000000e+00> : vector<8xf32>
    %1187 = vector.multi_reduction <add>, %1186, %cst_824 [1] : vector<8x8xf32> to vector<8xf32>
    %1188 = vector.shape_cast %1187 : vector<8xf32> to vector<8x1xf32>
    %1189 = tpu.reciprocal %1188 : vector<8x1xf32> -> vector<8x1xf32>
    %1190 = vector.broadcast %1189 : vector<8x1xf32> to vector<8x8xf32>
    %1191 = arith.mulf %1186, %1190 : vector<8x8xf32>
    %cst_825 = arith.constant dense<0.000000e+00> : vector<8x16xf32>
    %1192 = tpu.matmul %1191, %1176, %cst_825 {dimension_numbers = #tpu.dot_dimension_numbers<[1], [0], [0], [1], [0, 0, 1, 1], [], []>} : vector<8x8xf32>, vector<8x16xf32>, vector<8x16xf32> -> vector<8x16xf32>
    %c4_826 = arith.constant 4 : index
    %c0_827 = arith.constant 0 : index
    %c0_828 = arith.constant 0 : index
    %c0_829 = arith.constant 0 : index
    %c0_830 = arith.constant 0 : index
    %1193 = vector.load %arg11[%c4_826, %c0_827, %c0_828, %c0_829, %c0_830] : memref<5x1x2x16x32xf32, #tpu.memory_space<vmem>>, vector<1x1x1x16x32xf32>
    %1194 = vector.shape_cast %1193 : vector<1x1x1x16x32xf32> to vector<16x32xf32>
    %cst_831 = arith.constant dense<0.000000e+00> : vector<8x32xf32>
    %1195 = tpu.matmul %1192, %1194, %cst_831 {dimension_numbers = #tpu.dot_dimension_numbers<[1], [0], [0], [1], [0, 0, 1, 1], [], []>} : vector<8x16xf32>, vector<16x32xf32>, vector<8x32xf32> -> vector<8x32xf32>
    %1196 = vector.extract_strided_slice %1098 {offsets = [8, 0], sizes = [8, 16], strides = [1, 1]} : vector<16x16xf32> to vector<8x16xf32>
    %1197 = vector.extract_strided_slice %1112 {offsets = [8, 0], sizes = [8, 16], strides = [1, 1]} : vector<16x16xf32> to vector<8x16xf32>
    %1198 = vector.extract_strided_slice %1126 {offsets = [8, 0], sizes = [8, 16], strides = [1, 1]} : vector<16x16xf32> to vector<8x16xf32>
    %cst_832 = arith.constant dense<0.000000e+00> : vector<8x8xf32>
    %1199 = tpu.matmul %1196, %1197, %cst_832 {dimension_numbers = #tpu.dot_dimension_numbers<[1], [1], [0], [0], [0, 0, 1, 0], [], []>} : vector<8x16xf32>, vector<8x16xf32>, vector<8x8xf32> -> vector<8x8xf32>
    %cst_833 = arith.constant 2.500000e-01 : f32
    %1200 = vector.broadcast %cst_833 : f32 to vector<8x8xf32>
    %1201 = arith.mulf %1199, %1200 : vector<8x8xf32>
    %1202 = vector.broadcast %1173 : vector<1x8xf32> to vector<8x8xf32>
    %1203 = arith.addf %1201, %1202 : vector<8x8xf32>
    %cst_834 = arith.constant dense<0xFF800000> : vector<8xf32>
    %1204 = vector.multi_reduction <maximumf>, %1203, %cst_834 [1] : vector<8x8xf32> to vector<8xf32>
    %1205 = vector.shape_cast %1204 : vector<8xf32> to vector<8x1xf32>
    %1206 = vector.broadcast %1205 : vector<8x1xf32> to vector<8x8xf32>
    %1207 = arith.subf %1203, %1206 : vector<8x8xf32>
    %1208 = math.exp %1207 : vector<8x8xf32>
    %cst_835 = arith.constant dense<0.000000e+00> : vector<8xf32>
    %1209 = vector.multi_reduction <add>, %1208, %cst_835 [1] : vector<8x8xf32> to vector<8xf32>
    %1210 = vector.shape_cast %1209 : vector<8xf32> to vector<8x1xf32>
    %1211 = tpu.reciprocal %1210 : vector<8x1xf32> -> vector<8x1xf32>
    %1212 = vector.broadcast %1211 : vector<8x1xf32> to vector<8x8xf32>
    %1213 = arith.mulf %1208, %1212 : vector<8x8xf32>
    %cst_836 = arith.constant dense<0.000000e+00> : vector<8x16xf32>
    %1214 = tpu.matmul %1213, %1198, %cst_836 {dimension_numbers = #tpu.dot_dimension_numbers<[1], [0], [0], [1], [0, 0, 1, 1], [], []>} : vector<8x8xf32>, vector<8x16xf32>, vector<8x16xf32> -> vector<8x16xf32>
    %c4_837 = arith.constant 4 : index
    %c0_838 = arith.constant 0 : index
    %c1_839 = arith.constant 1 : index
    %c0_840 = arith.constant 0 : index
    %c0_841 = arith.constant 0 : index
    %1215 = vector.load %arg11[%c4_837, %c0_838, %c1_839, %c0_840, %c0_841] : memref<5x1x2x16x32xf32, #tpu.memory_space<vmem>>, vector<1x1x1x16x32xf32>
    %1216 = vector.shape_cast %1215 : vector<1x1x1x16x32xf32> to vector<16x32xf32>
    %cst_842 = arith.constant dense<0.000000e+00> : vector<8x32xf32>
    %1217 = tpu.matmul %1214, %1216, %cst_842 {dimension_numbers = #tpu.dot_dimension_numbers<[1], [0], [0], [1], [0, 0, 1, 1], [], []>} : vector<8x16xf32>, vector<16x32xf32>, vector<8x32xf32> -> vector<8x32xf32>
    %1218 = arith.addf %1195, %1217 : vector<8x32xf32>
    %1219 = tpu.concatenate %1172, %1218 in 0 : vector<8x32xf32>, vector<8x32xf32> -> vector<16x32xf32>
    %c4_843 = arith.constant 4 : index
    %c0_844 = arith.constant 0 : index
    %c0_845 = arith.constant 0 : index
    %c0_846 = arith.constant 0 : index
    %1220 = vector.load %arg12[%c4_843, %c0_844, %c0_845, %c0_846] : memref<5x1x1x32xf32, #tpu.memory_space<vmem>>, vector<1x1x1x32xf32>
    %1221 = vector.shape_cast %1220 : vector<1x1x1x32xf32> to vector<1x32xf32>
    %1222 = vector.broadcast %1221 : vector<1x32xf32> to vector<16x32xf32>
    %1223 = arith.addf %1219, %1222 : vector<16x32xf32>
    %c4_847 = arith.constant 4 : index
    %c0_848 = arith.constant 0 : index
    %c0_849 = arith.constant 0 : index
    %c0_850 = arith.constant 0 : index
    %1224 = vector.load %arg17[%c4_847, %c0_848, %c0_849, %c0_850] : memref<5x1x4x32xf32, #tpu.memory_space<vmem>>, vector<1x1x4x32xf32>
    %1225 = vector.shape_cast %1224 : vector<1x1x4x32xf32> to vector<4x32xf32>
    %1226 = arith.addf %1084, %1223 : vector<16x32xf32>
    %1227 = vector.extract_strided_slice %1225 {offsets = [0, 0], sizes = [1, 32], strides = [1, 1]} : vector<4x32xf32> to vector<1x32xf32>
    %1228 = vector.extract_strided_slice %1225 {offsets = [1, 0], sizes = [1, 32], strides = [1, 1]} : vector<4x32xf32> to vector<1x32xf32>
    %cst_851 = arith.constant dense<0.000000e+00> : vector<16xf32>
    %1229 = vector.multi_reduction <add>, %1226, %cst_851 [1] : vector<16x32xf32> to vector<16xf32>
    %1230 = vector.shape_cast %1229 : vector<16xf32> to vector<16x1xf32>
    %cst_852 = arith.constant 3.200000e+01 : f32
    %1231 = vector.broadcast %cst_852 : f32 to vector<16x1xf32>
    %1232 = arith.divf %1230, %1231 : vector<16x1xf32>
    %1233 = vector.broadcast %1232 : vector<16x1xf32> to vector<16x32xf32>
    %1234 = arith.subf %1226, %1233 : vector<16x32xf32>
    %1235 = arith.mulf %1234, %1234 : vector<16x32xf32>
    %cst_853 = arith.constant dense<0.000000e+00> : vector<16xf32>
    %1236 = vector.multi_reduction <add>, %1235, %cst_853 [1] : vector<16x32xf32> to vector<16xf32>
    %1237 = vector.shape_cast %1236 : vector<16xf32> to vector<16x1xf32>
    %cst_854 = arith.constant 3.200000e+01 : f32
    %1238 = vector.broadcast %cst_854 : f32 to vector<16x1xf32>
    %1239 = arith.divf %1237, %1238 : vector<16x1xf32>
    %cst_855 = arith.constant 9.99999974E-6 : f32
    %1240 = vector.broadcast %cst_855 : f32 to vector<16x1xf32>
    %1241 = arith.addf %1239, %1240 : vector<16x1xf32>
    %1242 = math.rsqrt %1241 : vector<16x1xf32>
    %1243 = vector.broadcast %1242 : vector<16x1xf32> to vector<16x32xf32>
    %1244 = arith.mulf %1234, %1243 : vector<16x32xf32>
    %1245 = vector.broadcast %1227 : vector<1x32xf32> to vector<16x32xf32>
    %1246 = arith.mulf %1244, %1245 : vector<16x32xf32>
    %1247 = vector.broadcast %1228 : vector<1x32xf32> to vector<16x32xf32>
    %1248 = arith.addf %1246, %1247 : vector<16x32xf32>
    %c4_856 = arith.constant 4 : index
    %c0_857 = arith.constant 0 : index
    %c0_858 = arith.constant 0 : index
    %c0_859 = arith.constant 0 : index
    %1249 = vector.load %arg13[%c4_856, %c0_857, %c0_858, %c0_859] : memref<5x1x32x64xf32, #tpu.memory_space<vmem>>, vector<1x1x32x64xf32>
    %1250 = vector.shape_cast %1249 : vector<1x1x32x64xf32> to vector<32x64xf32>
    %cst_860 = arith.constant dense<0.000000e+00> : vector<16x64xf32>
    %1251 = tpu.matmul %1248, %1250, %cst_860 {dimension_numbers = #tpu.dot_dimension_numbers<[1], [0], [0], [1], [0, 0, 1, 1], [], []>} : vector<16x32xf32>, vector<32x64xf32>, vector<16x64xf32> -> vector<16x64xf32>
    %c4_861 = arith.constant 4 : index
    %c0_862 = arith.constant 0 : index
    %c0_863 = arith.constant 0 : index
    %c0_864 = arith.constant 0 : index
    %1252 = vector.load %arg14[%c4_861, %c0_862, %c0_863, %c0_864] : memref<5x1x1x64xf32, #tpu.memory_space<vmem>>, vector<1x1x1x64xf32>
    %1253 = vector.shape_cast %1252 : vector<1x1x1x64xf32> to vector<1x64xf32>
    %1254 = vector.broadcast %1253 : vector<1x64xf32> to vector<16x64xf32>
    %1255 = arith.addf %1251, %1254 : vector<16x64xf32>
    %cst_865 = arith.constant 0.000000e+00 : f32
    %1256 = vector.broadcast %cst_865 : f32 to vector<16x64xf32>
    %1257 = arith.maximumf %1255, %1256 : vector<16x64xf32>
    %c4_866 = arith.constant 4 : index
    %c0_867 = arith.constant 0 : index
    %c0_868 = arith.constant 0 : index
    %c0_869 = arith.constant 0 : index
    %1258 = vector.load %arg15[%c4_866, %c0_867, %c0_868, %c0_869] : memref<5x1x64x32xf32, #tpu.memory_space<vmem>>, vector<1x1x64x32xf32>
    %1259 = vector.shape_cast %1258 : vector<1x1x64x32xf32> to vector<64x32xf32>
    %cst_870 = arith.constant dense<0.000000e+00> : vector<16x32xf32>
    %1260 = tpu.matmul %1257, %1259, %cst_870 {dimension_numbers = #tpu.dot_dimension_numbers<[1], [0], [0], [1], [0, 0, 1, 1], [], []>} : vector<16x64xf32>, vector<64x32xf32>, vector<16x32xf32> -> vector<16x32xf32>
    %c4_871 = arith.constant 4 : index
    %c0_872 = arith.constant 0 : index
    %c0_873 = arith.constant 0 : index
    %c0_874 = arith.constant 0 : index
    %1261 = vector.load %arg16[%c4_871, %c0_872, %c0_873, %c0_874] : memref<5x1x1x32xf32, #tpu.memory_space<vmem>>, vector<1x1x1x32xf32>
    %1262 = vector.shape_cast %1261 : vector<1x1x1x32xf32> to vector<1x32xf32>
    %1263 = vector.broadcast %1262 : vector<1x32xf32> to vector<16x32xf32>
    %1264 = arith.addf %1260, %1263 : vector<16x32xf32>
    %1265 = arith.addf %1248, %1264 : vector<16x32xf32>
    %1266 = vector.extract_strided_slice %1225 {offsets = [2, 0], sizes = [1, 32], strides = [1, 1]} : vector<4x32xf32> to vector<1x32xf32>
    %1267 = vector.extract_strided_slice %1225 {offsets = [3, 0], sizes = [1, 32], strides = [1, 1]} : vector<4x32xf32> to vector<1x32xf32>
    %cst_875 = arith.constant dense<0.000000e+00> : vector<16xf32>
    %1268 = vector.multi_reduction <add>, %1265, %cst_875 [1] : vector<16x32xf32> to vector<16xf32>
    %1269 = vector.shape_cast %1268 : vector<16xf32> to vector<16x1xf32>
    %cst_876 = arith.constant 3.200000e+01 : f32
    %1270 = vector.broadcast %cst_876 : f32 to vector<16x1xf32>
    %1271 = arith.divf %1269, %1270 : vector<16x1xf32>
    %1272 = vector.broadcast %1271 : vector<16x1xf32> to vector<16x32xf32>
    %1273 = arith.subf %1265, %1272 : vector<16x32xf32>
    %1274 = arith.mulf %1273, %1273 : vector<16x32xf32>
    %cst_877 = arith.constant dense<0.000000e+00> : vector<16xf32>
    %1275 = vector.multi_reduction <add>, %1274, %cst_877 [1] : vector<16x32xf32> to vector<16xf32>
    %1276 = vector.shape_cast %1275 : vector<16xf32> to vector<16x1xf32>
    %cst_878 = arith.constant 3.200000e+01 : f32
    %1277 = vector.broadcast %cst_878 : f32 to vector<16x1xf32>
    %1278 = arith.divf %1276, %1277 : vector<16x1xf32>
    %cst_879 = arith.constant 9.99999974E-6 : f32
    %1279 = vector.broadcast %cst_879 : f32 to vector<16x1xf32>
    %1280 = arith.addf %1278, %1279 : vector<16x1xf32>
    %1281 = math.rsqrt %1280 : vector<16x1xf32>
    %1282 = vector.broadcast %1281 : vector<16x1xf32> to vector<16x32xf32>
    %1283 = arith.mulf %1273, %1282 : vector<16x32xf32>
    %1284 = vector.broadcast %1266 : vector<1x32xf32> to vector<16x32xf32>
    %1285 = arith.mulf %1283, %1284 : vector<16x32xf32>
    %1286 = vector.broadcast %1267 : vector<1x32xf32> to vector<16x32xf32>
    %1287 = arith.addf %1285, %1286 : vector<16x32xf32>
    %c4_880 = arith.constant 4 : index
    %c0_881 = arith.constant 0 : index
    %c0_882 = arith.constant 0 : index
    %1288 = vector.load %arg19[%c4_880, %c0_881, %c0_882] : memref<5x32x512xf32, #tpu.memory_space<vmem>>, vector<1x32x512xf32>
    %1289 = vector.shape_cast %1288 : vector<1x32x512xf32> to vector<32x512xf32>
    %cst_883 = arith.constant dense<0.000000e+00> : vector<16x512xf32>
    %1290 = tpu.matmul %1287, %1289, %cst_883 {dimension_numbers = #tpu.dot_dimension_numbers<[1], [0], [0], [1], [0, 0, 1, 1], [], []>} : vector<16x32xf32>, vector<32x512xf32>, vector<16x512xf32> -> vector<16x512xf32>
    %c0_884 = arith.constant 0 : index
    %c0_885 = arith.constant 0 : index
    %1291 = vector.load %arg18[%c0_884, %c0_885] : memref<16x512xf32, #tpu.memory_space<vmem>>, vector<16x512xf32>
    %1292 = arith.mulf %1290, %1291 : vector<16x512xf32>
    %1293 = vector.extract_strided_slice %1292 {offsets = [0, 0], sizes = [8, 512], strides = [1, 1]} : vector<16x512xf32> to vector<8x512xf32>
    %cst_886 = arith.constant dense<0.000000e+00> : vector<512xf32>
    %1294 = vector.multi_reduction <add>, %1293, %cst_886 [0] : vector<8x512xf32> to vector<512xf32>
    %1295 = vector.shape_cast %1294 : vector<512xf32> to vector<1x512xf32>
    %1296 = vector.extract_strided_slice %1292 {offsets = [8, 0], sizes = [8, 512], strides = [1, 1]} : vector<16x512xf32> to vector<8x512xf32>
    %cst_887 = arith.constant dense<0.000000e+00> : vector<512xf32>
    %1297 = vector.multi_reduction <add>, %1296, %cst_887 [0] : vector<8x512xf32> to vector<512xf32>
    %1298 = vector.shape_cast %1297 : vector<512xf32> to vector<1x512xf32>
    %1299 = tpu.concatenate %1295, %1298 in 0 : vector<1x512xf32>, vector<1x512xf32> -> vector<2x512xf32>
    %c0_888 = arith.constant 0 : index
    %c0_889 = arith.constant 0 : index
    %1300 = vector.load %arg20[%c0_888, %c0_889] : memref<512x64xf32, #tpu.memory_space<vmem>>, vector<512x64xf32>
    %cst_890 = arith.constant dense<0.000000e+00> : vector<2x64xf32>
    %1301 = tpu.matmul %1299, %1300, %cst_890 {dimension_numbers = #tpu.dot_dimension_numbers<[1], [0], [0], [1], [0, 0, 1, 1], [], []>} : vector<2x512xf32>, vector<512x64xf32>, vector<2x64xf32> -> vector<2x64xf32>
    %1302 = arith.addf %1042, %1301 : vector<2x64xf32>
    %c0_891 = arith.constant 0 : index
    %c0_892 = arith.constant 0 : index
    %1303 = vector.load %arg21[%c0_891, %c0_892] : memref<1x64xf32, #tpu.memory_space<vmem>>, vector<1x64xf32>
    %1304 = vector.broadcast %1303 : vector<1x64xf32> to vector<2x64xf32>
    %1305 = arith.addf %1302, %1304 : vector<2x64xf32>
    %cst_893 = arith.constant 0.000000e+00 : f32
    %1306 = vector.broadcast %cst_893 : f32 to vector<2x64xf32>
    %1307 = arith.maximumf %1305, %1306 : vector<2x64xf32>
    %c0_894 = arith.constant 0 : index
    %c0_895 = arith.constant 0 : index
    %1308 = vector.load %arg22[%c0_894, %c0_895] : memref<64x64xf32, #tpu.memory_space<vmem>>, vector<64x64xf32>
    %cst_896 = arith.constant dense<0.000000e+00> : vector<2x64xf32>
    %1309 = tpu.matmul %1307, %1308, %cst_896 {dimension_numbers = #tpu.dot_dimension_numbers<[1], [0], [0], [1], [0, 0, 1, 1], [], []>} : vector<2x64xf32>, vector<64x64xf32>, vector<2x64xf32> -> vector<2x64xf32>
    %c0_897 = arith.constant 0 : index
    %c0_898 = arith.constant 0 : index
    %1310 = vector.load %arg23[%c0_897, %c0_898] : memref<1x64xf32, #tpu.memory_space<vmem>>, vector<1x64xf32>
    %1311 = vector.broadcast %1310 : vector<1x64xf32> to vector<2x64xf32>
    %1312 = arith.addf %1309, %1311 : vector<2x64xf32>
    %cst_899 = arith.constant 0.000000e+00 : f32
    %1313 = vector.broadcast %cst_899 : f32 to vector<2x64xf32>
    %1314 = arith.maximumf %1312, %1313 : vector<2x64xf32>
    %c0_900 = arith.constant 0 : index
    %c0_901 = arith.constant 0 : index
    %1315 = vector.load %arg24[%c0_900, %c0_901] : memref<64x2xf32, #tpu.memory_space<vmem>>, vector<64x2xf32>
    %cst_902 = arith.constant dense<0.000000e+00> : vector<2x2xf32>
    %1316 = tpu.matmul %1314, %1315, %cst_902 {dimension_numbers = #tpu.dot_dimension_numbers<[1], [0], [0], [1], [0, 0, 1, 1], [], []>} : vector<2x64xf32>, vector<64x2xf32>, vector<2x2xf32> -> vector<2x2xf32>
    %c0_903 = arith.constant 0 : index
    %c0_904 = arith.constant 0 : index
    %1317 = vector.load %arg25[%c0_903, %c0_904] : memref<1x2xf32, #tpu.memory_space<vmem>>, vector<1x2xf32>
    %1318 = vector.broadcast %1317 : vector<1x2xf32> to vector<2x2xf32>
    %1319 = arith.addf %1316, %1318 : vector<2x2xf32>
    %c0_905 = arith.constant 0 : index
    %c0_906 = arith.constant 0 : index
    %1320 = vector.load %arg26[%c0_905, %c0_906] : memref<2x2xf32, #tpu.memory_space<vmem>>, vector<2x2xf32>
    tpu.vector_store %arg26[%c0_905, %c0_906], %1319 {strides = array<i32>} : memref<2x2xf32, #tpu.memory_space<vmem>>, vector<2x2xf32>,
    return
  }
}

</mosaic_0001>

<bundles_post_ra>
// kernel: _lambda_.1
= control target key start
LH: loop header
LB: loop body
LE: loop exit
PB: predicated region body
PF: predicated region fallthrough
CT: control target
= control target key end

     0   :  { %s18180_s0 = inlined_call_operand.vmem [shape: s32[5,16,1], index: 0, kind: input, shape index: {}]   ;;  %s18181_s1 = inlined_call_operand.vmem [shape: s32[5,2,8], index: 1, kind: input, shape index: {}]   ;;  %s18182_s2 = inlined_call_operand.vmem [shape: f32[5,50,32], index: 2, kind: input, shape index: {}]   ;;  %s18183_s3 = inlined_call_operand.vmem [shape: f32[8,32], index: 3, kind: input, shape index: {}]   ;;  %s18184_s4 = inlined_call_operand.vmem [shape: f32[5,2,32], index: 4, kind: input, shape index: {}]   ;;  %s18185_s5 = inlined_call_operand.vmem [shape: f32[5,1,2,32,16], index: 5, kind: input, shape index: {}]   ;;  %s18186_s6 = inlined_call_operand.vmem [shape: f32[5,1,2,32,16], index: 6, kind: input, shape index: {}]   ;;  %s18187_s7 = inlined_call_operand.vmem [shape: f32[5,1,2,32,16], index: 7, kind: input, shape index: {}]   ;;  %s18188_s8 = inlined_call_operand.vmem [shape: f32[5,1,2,1,16], index: 8, kind: input, shape index: {}]   ;;  %s18189_s9 = inlined_call_operand.vmem [shape: f32[5,1,2,1,16], index: 9, kind: input, shape index: {}]   ;;  %s18190_s10 = inlined_call_operand.vmem [shape: f32[5,1,2,1,16], index: 10, kind: input, shape index: {}]   ;;  %s18191_s11 = inlined_call_operand.vmem [shape: f32[5,1,2,16,32], index: 11, kind: input, shape index: {}]   ;;  %s18192_s12 = inlined_call_operand.vmem [shape: f32[5,1,1,32], index: 12, kind: input, shape index: {}]   ;;  %s18193_s13 = inlined_call_operand.vmem [shape: f32[5,1,32,64], index: 13, kind: input, shape index: {}]   ;;  %s18194_s14 = inlined_call_operand.vmem [shape: f32[5,1,1,64], index: 14, kind: input, shape index: {}]   ;;  %s18195_s15 = inlined_call_operand.vmem [shape: f32[5,1,64,32], index: 15, kind: input, shape index: {}]   ;;  %s18196_s16 = inlined_call_operand.vmem [shape: f32[5,1,1,32], index: 16, kind: input, shape index: {}]   ;;  %s18197_s17 = inlined_call_operand.vmem [shape: f32[5,1,4,32], index: 17, kind: input, shape index: {}]   ;;  %s18198_s18 = inlined_call_operand.vmem [shape: f32[16,512], index: 18, kind: input, shape index: {}]   ;;  %s18199_s19 = inlined_call_operand.vmem [shape: f32[5,32,512], index: 19, kind: input, shape index: {}]   ;;  %s18200_s20 = inlined_call_operand.vmem [shape: f32[512,64], index: 20, kind: input, shape index: {}]   ;;  %s18201_s21 = inlined_call_operand.vmem [shape: f32[1,64], index: 21, kind: input, shape index: {}]   ;;  %s18202_s22 = inlined_call_operand.vmem [shape: f32[64,64], index: 22, kind: input, shape index: {}]   ;;  %s18203_s23 = inlined_call_operand.vmem [shape: f32[1,64], index: 23, kind: input, shape index: {}]   ;;  %s18204_s24 = inlined_call_operand.vmem [shape: f32[64,2], index: 24, kind: input, shape index: {}]   ;;  %s18205_s25 = inlined_call_operand.vmem [shape: f32[1,2], index: 25, kind: input, shape index: {}]   ;;  %s18206_s26 = inlined_call_operand.hbm [shape: f32[2,2], index: 26, kind: output, shape index: {}]  }
   0x1   :  { %18252 = sst [smem:[#allocation18_spill]] %s18180_s0 }
   0x2   :  { %18253 = sst [smem:[#allocation19_spill]] %s18181_s1 }
   0x3   :  { %18254 = sst [smem:[#allocation20_spill]] %s18182_s2 }
   0x4   :  { %18255 = sst [smem:[#allocation21_spill]] %s18183_s3 }
   0x5   :  { %18256 = sst [smem:[#allocation22_spill]] %s18184_s4 }
   0x6   :  { %18257 = sst [smem:[#allocation23_spill]] %s18185_s5 }
   0x7   :  { %18258 = sst [smem:[#allocation24_spill]] %s18186_s6 }
   0x8   :  { %18259 = sst [smem:[#allocation25_spill]] %s18187_s7 }
   0x9   :  { %18260 = sst [smem:[#allocation26_spill]] %s18188_s8 }
   0xa   :  { %18261 = sst [smem:[#allocation27_spill]] %s18189_s9 }
   0xb   :  { %18262 = sst [smem:[#allocation28_spill]] %s18190_s10 }
   0xc   :  { %18263 = sst [smem:[#allocation29_spill]] %s18201_s21 }
   0xd   :  { %18264 = sst [smem:[#allocation30_spill]] %s18202_s22 }
   0xe   :  { %18265 = sst [smem:[#allocation31_spill]] %s18203_s23 }
   0xf   :  { %18266 = sst [smem:[#allocation32_spill]] %s18204_s24 }
  0x10   :  { %18267 = sst [smem:[#allocation33_spill]] %s18205_s25 }
  0x11   :  { %18268 = sst [smem:[#allocation34_spill]] %s18206_s26 }
  0x12   :  { %s18269_s7 = sld [smem:[#allocation18_spill]]  ;;  %s18270_s21 = sld [smem:[#allocation20_spill]]  ;;  %v15311_v2 = vmov 0  }
  0x13   :  { %15110 = vset.pattern.permute.xlu0 %v15311_v2  ;;  %15111 = vset.pattern.permute.xlu1 %v15311_v2 }
  0x18   :  { %v87_v0 = vld [vmem:[%s18269_s7] sm:$0xff]  ;;  %v102_v3 = vld [vmem:[%s18270_s21 + $0x8] sm:$0xff]  ;;  %v103_v4 = vld [vmem:[%s18270_s21 + $0x10] sm:$0xff] }
  0x19   :  { %v101_v1 = vld [vmem:[%s18270_s21] sm:$0xff]  ;;  %v104_v5 = vld [vmem:[%s18270_s21 + $0x18] sm:$0xff]  ;;  %90 = vperm.xlu0 %15110, %v87_v0  }
  0x1a   :  { %v14200_v6 = vpack.c.bf16 %v102_v3, %v101_v1  ;;  %v14204_v7 = vpack.c.bf16 %v104_v5, %v103_v4 }
  0x1b   :  { %31 = vsyncpa [#allocation3], 0  ;;  %v88_v8 = vld [vmem:[%s18269_s7 + $0x8] sm:$0xff]  ;;  %v105_v9 = vld [vmem:[%s18270_s21 + $0x20] sm:$0xff]  ;;  %vm115_vm0 = vcmask 1041408   ;;  %v85_v13 = vlaneseq  ;;  %vm108_vm1 = vcmask 408576  }
  0x1c   :  { %v106_v10 = vld [vmem:[%s18270_s21 + $0x28] sm:$0xff]  ;;  %14201 = vmatprep.subr.bf16.mxu0 %v14200_v6  ;;  %v107_v12 = vld [vmem:[%s18270_s21 + $0x30] sm:$0x3]  ;;  %v18225_v16 = vmov 0.0   ;;  %s18271_s0 = sld [smem:[#allocation21_spill]]  ;;  %vm198_vm4 = vcmask 261120  }
  0x1d   :  { %14203 = vmatpush3.bf16.msra.mxu0 %v14200_v6  ;;  %93 = vperm.xlu0 %15110, %v88_v8   ;;  %v14208_v11 = vpack.c.bf16 %v106_v10, %v105_v9  ;;  %v15482_v14 = vand.u32 127, %v85_v13  ;;  %s18272_s2 = sld [smem:[#allocation23_spill]]  ;;  %s18273_s27 = sld [smem:[#allocation24_spill]]  ;;  %v15538_v60 = vshrl.u32 %v85_v13, 7  ;;  %vm15313_vm5 = vmmov 0  }
  0x1e   :  { %14205 = vmatprep.subr.bf16.mxu0 %v14204_v7  ;;  %s18274_s9 = sld [smem:[#allocation25_spill]]  ;;  %s18276_s1 = sld [smem:[#allocation22_spill]]  ;;  %vm766_vm6 = vcmask 130048   ;;  %vm849_vm8 = vcmask 64512   ;;  %vm1880_vm10 = vcmask 523264   ;;  %vm2242_vm12 = vcmask 1040384  }
  0x1f   :  { %v15541_v62 = vsub.s32 0, %v15538_v60  ;;  %v15547_v0 = vsub.s32 1, %v15538_v60  ;;  %s18278_s30 = sld [smem:[#allocation26_spill]]  ;;  %s18279_s6 = sld [smem:[#allocation27_spill]] }
  0x20   :  { %s18280_s4 = sld [smem:[#allocation28_spill]]  ;;  %s18281_s26 = sld [smem:[#allocation19_spill]] }
  0x21   :  { %14207 = vmatpush3.bf16.msra.mxu0 %v14204_v7  ;;  %18275 = vst [vmem:[#allocation5_spill] sm:$0xff] %v15541_v62  ;;  %18277 = vst [vmem:[#allocation6_spill] sm:$0xff] %v15547_v0  ;;  %s18319_s22 = sld [smem:[#allocation29_spill]] }
  0x22   :  { %14209 = vmatprep.subr.bf16.mxu0 %v14208_v11  ;;  %v15493_v20 = vld [vmem:[%s18271_s0] sm:$0xff] }
  0x23   :  { %v238_v37 = vld [vmem:[%s18272_s2] sm:$0xff]  ;;  %v239_v38 = vld [vmem:[%s18272_s2 + $0x8] sm:$0xff]  ;;  %v240_v43 = vld [vmem:[%s18272_s2 + $0x10] sm:$0xff] }
  0x24   :  { %v418_v39 = vld [vmem:[%s18273_s27] sm:$0xff]  ;;  %v14212_v40 = vpack.c.bf16 %v239_v38, %v238_v37  ;;  %v419_v41 = vld [vmem:[%s18273_s27 + $0x8] sm:$0xff]  ;;  %v241_v44 = vld [vmem:[%s18272_s2 + $0x18] sm:$0xff] }
  0x25   :  { %14211 = vmatpush3.bf16.msra.mxu0 %v14208_v11  ;;  %v14228_v42 = vpack.c.bf16 %v419_v41, %v418_v39  ;;  %v420_v45 = vld [vmem:[%s18273_s27 + $0x10] sm:$0xff]  ;;  %v14216_v46 = vpack.c.bf16 %v241_v44, %v240_v43  ;;  %v421_v47 = vld [vmem:[%s18273_s27 + $0x18] sm:$0xff]  ;;  %v11872_v49 = vld [vmem:[%s18272_s2 + $0x20] sm:$0xff] }
  0x26   :  { %13269 = vmatprep.subr.msk.mxu0 %vm115_vm0, %v107_v12  ;;  %14213 = vmatprep.subr.bf16.mxu1 %v14212_v40  ;;  %v14232_v48 = vpack.c.bf16 %v421_v47, %v420_v45  ;;  %v11873_v50 = vld [vmem:[%s18272_s2 + $0x28] sm:$0xff]  ;;  %v592_v51 = vld [vmem:[%s18274_s9] sm:$0xff]  ;;  %v11874_v9 = vld [vmem:[%s18272_s2 + $0x30] sm:$0xff] }
  0x27   :  { %14215 = vmatpush3.bf16.msra.mxu1 %v14212_v40  ;;  %v14220_v52 = vpack.c.bf16 %v11873_v50, %v11872_v49  ;;  %v593_v53 = vld [vmem:[%s18274_s9 + $0x8] sm:$0xff]  ;;  %v197_v63 = vld [vmem:[%s18276_s1] sm:$0x3]  ;;  %v11875_v11 = vld [vmem:[%s18272_s2 + $0x38] sm:$0xff] }
  0x28   :  { %14217 = vmatprep.subr.bf16.mxu1 %v14216_v46  ;;  %v14244_v54 = vpack.c.bf16 %v593_v53, %v592_v51  ;;  %v229_v1 = vrot.slane %v197_v63, %v15541_v62  ;;  %v235_v3 = vrot.slane %v197_v63, %v15547_v0  ;;  %v595_v13 = vld [vmem:[%s18274_s9 + $0x18] sm:$0xff]  ;;  %v11891_v43 = vld [vmem:[%s18280_s4] ss:$0 sm:$0xff]  ;;  %v11888_v51 = vld [vmem:[%s18279_s6 + $0x1] ss:$0 sm:$0xff] }
  0x29   :  { %13270 = vmatpush3.msk.msra.mxu0 %vm115_vm0, %v107_v12  ;;  %v594_v12 = vld [vmem:[%s18274_s9 + $0x10] sm:$0xff]  ;;  %v18221_v63 = vmov -1e+09  }
  0x2a   :  { %14229 = vmatprep.subr.bf16.mxu0 %v14228_v42 }
  0x2b   :  { %14219 = vmatpush3.bf16.msra.mxu1 %v14216_v46 }
  0x2c   :  { %14221 = vmatprep.subr.bf16.mxu1 %v14220_v52 }
  0x98   :  { %v91_v15 = vpop.permute.xlu0 %90 }
  0x99   :  { %vm95_vm2 = vcmp.eq.s32.totalorder %v15482_v14, %v91_v15 }
  0x9a   :  { %v11864_v17 = vsel %vm95_vm2, 1.0, %v18225_v16 }
  0x9b   :  { %13271 = vmatprep.mubr.msk.f32.mxu0 %vm108_vm1, %v11864_v17  ;;  %v14224_v17 = vpack.c.bf16 %v11875_v11, %v11874_v9 }
  0x9c   :  { %v94_v18 = vpop.permute.xlu0 %93 }
  0x9d   :  { %vm96_vm3 = vcmp.eq.s32.totalorder %v15482_v14, %v94_v18  ;;  %v14248_v18 = vpack.c.bf16 %v595_v13, %v594_v12 }
  0x9e   :  { %v11865_v19 = vsel %vm96_vm3, 1.0, %v18225_v16 }
  0x9f   :  { %13272 = vmatmul.mubr.msk.f32.vlgmr.msra.gmra.mrb[0].mxu0 %vm108_vm1, %v11865_v19  ;;  %v11883_v19 = vld [vmem:[%s18273_s27 + $0x20] sm:$0xff] }
  0xa0   :  { %14231 = vmatpush3.bf16.msra.mxu0 %v14228_v42  ;;  %v11877_v42 = vld [vmem:[%s18278_s30 + $0x1] ss:$0 sm:$0xff] }
  0xa1   :  { %14233 = vmatprep.subr.bf16.mxu0 %v14232_v48 }
  0xa4   :  { %14235 = vmatpush3.bf16.msra.mxu0 %v14232_v48 }
  0xa5   :  { %14245 = vmatprep.subr.bf16.mxu0 %v14244_v54 }
 0x172   :  { %v13273_v21 = vpop.f32.mrb[0].mxu0 }
 0x173   :  { %v185_v22 = vpop.f32.mrb[1].mxu0  ;;  %v191_v24 = vadd.f32 %v13273_v21, %v15493_v20  ;;  %v11884_v21 = vld [vmem:[%s18273_s27 + $0x28] sm:$0xff] }
 0x174   :  { %v186_v23 = vadd.f32 %v185_v22, %v15493_v20  ;;  %v14236_v22 = vpack.c.bf16 %v11884_v21, %v11883_v19 }
 0x175   :  { %v202_v26 = vsel %vm198_vm4, %v191_v24, 0.0 }
 0x176   :  { %v199_v25 = vsel %vm198_vm4, %v186_v23, 0.0 }
 0x177   :  { %200 = vadd.xlane.f32.xlu1 %v199_v25 }
 0x17b   :  { %203 = vadd.xlane.f32.xlu1 %v202_v26  ;;  %v11894_v26 = vld [vmem:[%s18274_s9 + $0x20] sm:$0xff] }
 0x204   :  { %v201_v27 = vpop.xlane.xlu1 %200 }
 0x205   :  { %v206_v28 = vmul.f32 0.03125, %v201_v27  ;;  %v11895_v27 = vld [vmem:[%s18274_s9 + $0x28] sm:$0xff] }
 0x207   :  { %v208_v29 = vsub.f32 %v186_v23, %v206_v28  ;;  %v11885_v23 = vld [vmem:[%s18273_s27 + $0x30] sm:$0xff]  ;;  %v14252_v28 = vpack.c.bf16 %v11895_v27, %v11894_v26 }
 0x208   :  { %v204_v30 = vpop.xlane.xlu1 %203 }
 0x209   :  { %v207_v31 = vmul.f32 0.03125, %v204_v30  ;;  %v210_v32 = vmul.f32 %v208_v29, %v208_v29  ;;  %v11897_v30 = vld [vmem:[%s18274_s9 + $0x38] sm:$0xff] }
 0x20b   :  { %v209_v33 = vsub.f32 %v191_v24, %v207_v31  ;;  %v212_v34 = vsel %vm198_vm4, %v210_v32, 0.0  ;;  %v11886_v24 = vld [vmem:[%s18273_s27 + $0x38] sm:$0xff]  ;;  %v11869_v32 = vld [vmem:[%s18278_s30] ss:$0 sm:$0xff] }
 0x20c   :  { %213 = vadd.xlane.f32.xlu0 %v212_v34  ;;  %v14240_v25 = vpack.c.bf16 %v11886_v24, %v11885_v23 }
 0x20d   :  { %v211_v35 = vmul.f32 %v209_v33, %v209_v33 }
 0x20f   :  { %v215_v36 = vsel %vm198_vm4, %v211_v35, 0.0 }
 0x210   :  { %216 = vadd.xlane.f32.xlu1 %v215_v36 }
 0x299   :  { %v214_v55 = vpop.xlane.xlu0 %213 }
 0x29a   :  { %v218_v56 = vmul.f32 0.03125, %v214_v55  ;;  %v11899_v55 = vld [vmem:[%s18280_s4 + $0x1] ss:$0 sm:$0xff] }
 0x29c   :  { %v220_v57 = vadd.f32 1e-05, %v218_v56 }
 0x29d   :  { %v217_v58 = vpop.xlane.xlu1 %216 }
 0x29e   :  { %15112 = vrsqrt.f32 %v220_v57  ;;  %v219_v59 = vmul.f32 0.03125, %v217_v58 }
 0x2a0   :  { %v221_v61 = vadd.f32 1e-05, %v219_v59 }
 0x2a2   :  { %15114 = vrsqrt.f32 %v221_v61  ;;  %v194_v61 = vld [vmem:[%s18281_s26] sm:$0x3] }
 0x2a3   :  { %vm195_vm7 = vcmp.ne.s32.totalorder %v194_v61, 0 }
 0x2a8   :  { %v15113_v2 = vpop.eup %15112 }
 0x2a9   :  { %v224_v4 = vmul.f32 %v15113_v2, %v208_v29  ;;  %v11896_v29 = vld [vmem:[%s18274_s9 + $0x30] sm:$0xff] }
 0x2aa   :  { %v14256_v31 = vpack.c.bf16 %v11897_v30, %v11896_v29 }
 0x2ab   :  { %v230_v5 = vmul.f32 %v229_v1, %v224_v4 }
 0x2ac   :  { %v15115_v6 = vpop.eup %15114 }
 0x2ad   :  { %v15551_v7 = vadd.f32 %v235_v3, %v230_v5  ;;  %v225_v8 = vmul.f32 %v15115_v6, %v209_v33  ;;  %v11880_v33 = vld [vmem:[%s18279_s6] ss:$0 sm:$0xff] }
 0x2af   :  { %v231_v10 = vmul.f32 %v229_v1, %v225_v8  ;;  %13282 = vmatprep.mubr.msk.f32.mxu1 %vm198_vm4, %v15551_v7  ;;  %13304 = vmatprep.mubr.msk.f32.mxu0 %vm198_vm4, %v15551_v7  ;;  %v15661_v1 = vsel %vm195_vm7, 0.0, %v18221_v63 }
 0x2b0   :  { %v847_v2 = vrot.slane %v15661_v1, %v15541_v62 }
 0x2b1   :  { %v15569_v15 = vadd.f32 %v235_v3, %v231_v10 }
 0x2b3   :  { %13283 = vmatmul.mubr.msk.f32.vlgmr.msra.gmra.mrb[0].mxu1 %vm198_vm4, %v15569_v15  ;;  %13305 = vmatmul.mubr.msk.f32.vlgmr.msra.gmra.mrb[2].mxu0 %vm198_vm4, %v15569_v15 }
 0x2b4   :  { %14223 = vmatpush3.bf16.msra.mxu1 %v14220_v52  ;;  %14247 = vmatpush3.bf16.msra.mxu0 %v14244_v54 }
 0x2b5   :  { %13293 = vmatprep.mubr.msk.f32.mxu1 %vm198_vm4, %v15551_v7  ;;  %13326 = vmatprep.mubr.msk.f32.mxu0 %vm198_vm4, %v15551_v7 }
 0x2b6   :  { %14225 = vmatprep.subr.bf16.mxu1 %v14224_v17  ;;  %14249 = vmatprep.subr.bf16.mxu0 %v14248_v18 }
 0x2b8   :  { %14227 = vmatpush3.bf16.msra.mxu1 %v14224_v17  ;;  %14251 = vmatpush3.bf16.msra.mxu0 %v14248_v18 }
 0x2b9   :  { %14237 = vmatprep.subr.bf16.mxu1 %v14236_v22  ;;  %13340 = vmatprep.subr.mxu0 %v18225_v16 }
 0x2bb   :  { %13294 = vmatmul.mubr.msk.f32.vlgmr.msra.gmra.mrb[2].mxu1 %vm198_vm4, %v15569_v15  ;;  %13327 = vmatmul.mubr.msk.f32.vlgmr.msra.gmra.mrb[4].mxu0 %vm198_vm4, %v15569_v15 }
 0x2bc   :  { %14239 = vmatpush3.bf16.msra.mxu1 %v14236_v22  ;;  %13315 = vmatprep.mubr.msk.f32.mxu1 %vm198_vm4, %v15551_v7 }
 0x2bd   :  { %14241 = vmatprep.subr.bf16.mxu1 %v14240_v25  ;;  %13342 = vmatprep.mubr.msk.f32.mxu0 %vm15313_vm5, %v18225_v16 }
 0x2c0   :  { %14243 = vmatpush3.bf16.msra.mxu1 %v14240_v25 }
 0x2c1   :  { %14253 = vmatprep.subr.bf16.mxu1 %v14252_v28 }
 0x2c3   :  { %13316 = vmatmul.mubr.msk.f32.vlgmr.msra.gmra.mrb[4].mxu1 %vm198_vm4, %v15569_v15 }
 0x2c4   :  { %14255 = vmatpush3.bf16.msra.mxu1 %v14252_v28  ;;  %13337 = vmatprep.mubr.msk.f32.mxu1 %vm198_vm4, %v15551_v7 }
 0x2c5   :  { %14257 = vmatprep.subr.bf16.mxu1 %v14256_v31 }
 0x2c8   :  { %14259 = vmatpush3.bf16.msra.mxu1 %v14256_v31 }
 0x2c9   :  { %13355 = vmatprep.subr.mxu1 %v18225_v16 }
 0x2cb   :  { %13338 = vmatmul.mubr.msk.f32.vlgmr.msra.gmra.mrb[6].mxu1 %vm198_vm4, %v15569_v15 }
 0x2cc   :  { %13357 = vmatprep.mubr.msk.f32.mxu1 %vm15313_vm5, %v18225_v16 }
 0x386   :  { %v13284_v34 = vpop.f32.mrb[0].mxu1  ;;  %v13306_v35 = vpop.f32.mrb[2].mxu0 }
 0x387   :  { %v15627_v36 = vadd.f32 %v13284_v34, %v11869_v32  ;;  %v15629_v37 = vadd.f32 %v13306_v35, %v11880_v33  ;;  %v321_v38 = vpop.f32.mrb[1].mxu1  ;;  %v495_v39 = vpop.f32.mrb[3].mxu0  ;;  %v18223_v35 = vmov 0.0|0.0  }
 0x388   :  { %v496_v40 = vadd.f32 %v11880_v33, %v495_v39  ;;  %v322_v41 = vadd.f32 %v11869_v32, %v321_v38  ;;  %v11908_v38 = vld [vmem:[%s18191_s11 + $0x10] sm:$0xff]  ;;  %v11909_v39 = vld [vmem:[%s18191_s11 + $0x18] sm:$0xff] }
 0x38a   :  { %13341 = vmatpush3.xpose.msk.msra.mxu0 %vm766_vm6, %v496_v40  ;;  %v14261_v40 = vpack.c.bf16 %v11909_v39, %v11908_v38 }
 0x38b   :  { %13345 = vmatprep.subr.mxu0 %v18225_v16 }
 0x38d   :  { %13343 = vmatmul.mubr.msk.f32.vlgmr.msra.gmra.mrb[6].mxu0 %vm766_vm6, %v322_v41 }
 0x38e   :  { %v13295_v44 = vpop.f32.mrb[2].mxu1  ;;  %v13328_v45 = vpop.f32.mrb[4].mxu0  ;;  %13347 = vmatprep.mubr.msk.f32.mxu0 %vm15313_vm5, %v18225_v16 }
 0x38f   :  { %v15642_v46 = vadd.f32 %v13295_v44, %v11877_v42  ;;  %v15644_v47 = vadd.f32 %v13328_v45, %v11891_v43  ;;  %v409_v48 = vpop.f32.mrb[3].mxu1  ;;  %v669_v49 = vpop.f32.mrb[5].mxu0 }
 0x390   :  { %v670_v50 = vadd.f32 %v11891_v43, %v669_v49  ;;  %v410_v22 = vadd.f32 %v11877_v42, %v409_v48  ;;  %v934_v42 = vld [vmem:[%s18191_s11] sm:$0xff]  ;;  %v935_v43 = vld [vmem:[%s18191_s11 + $0x8] sm:$0xff] }
 0x391   :  { %v15691_v45 = vpack.c.bf16 %v935_v43, %v934_v42 }
 0x392   :  { %13346 = vmatpush3.msra.mxu0 %v670_v50 }
 0x393   :  { %13350 = vmatprep.subr.mxu0 %v18225_v16 }
 0x396   :  { %v13317_v52 = vpop.f32.mrb[4].mxu1 }
 0x397   :  { %v15650_v53 = vadd.f32 %v13317_v52, %v11888_v51  ;;  %v583_v54 = vpop.f32.mrb[5].mxu1 }
 0x398   :  { %v584_v21 = vadd.f32 %v11888_v51, %v583_v54 }
 0x39e   :  { %v13339_v56 = vpop.f32.mrb[6].mxu1 }
 0x39f   :  { %v15655_v57 = vadd.f32 %v13339_v56, %v11899_v55  ;;  %v757_v58 = vpop.f32.mrb[7].mxu1 }
 0x3a0   :  { %v758_v59 = vadd.f32 %v11899_v55, %v757_v58 }
 0x3a2   :  { %13356 = vmatpush3.msra.mxu1 %v758_v59 }
 0x3a3   :  { %14263 = vmatprep.subr.bf16.mxu1 %v18223_v35 }
 0x460   :  { %v839_v3 = vpop.f32.mrb[6].mxu0 }
 0x461   :  { %v843_v4 = vmul.f32 0.25, %v839_v3  ;;  %v13344_v5 = vpop.f32.mrb[7].mxu0 }
 0x463   :  { %v848_v6 = vadd.f32 %v847_v2, %v843_v4 }
 0x465   :  { %v850_v8 = vsel %vm849_vm8, %v848_v6, -inf }
 0x466   :  { %851 = vmax.xlane.f32.xlu1 %v850_v8 }
 0x4f3   :  { %v852_v9 = vpop.xlane.xlu1 %851 }
 0x4f4   :  { %v853_v10 = vsub.f32 %v848_v6, %v852_v9 }
 0x4f6   :  { %v854_v11 = vmul.f32 1.442695, %v853_v10 }
 0x4f8   :  { %15116 = vpow2.f32 %v854_v11  ;;  %v11920_v11 = vld [vmem:[%s18192_s12] ss:$0 sm:$0xff] }
 0x502   :  { %v15117_v12 = vpop.eup %15116 }
 0x503   :  { %v856_v13 = vsel %vm849_vm8, %v15117_v12, 0.0 }
 0x504   :  { %857 = vadd.xlane.f32.xlu1 %v856_v13 }
 0x591   :  { %v858_v17 = vpop.xlane.xlu1 %857 }
 0x592   :  { %15118 = vrcp.f32 %v858_v17 }
 0x59c   :  { %v15119_v18 = vpop.eup %15118 }
 0x59d   :  { %v860_v19 = vmul.f32 %v15119_v18, %v15117_v12 }
 0x59f   :  { %13348 = vmatmul.mubr.msk.f32.vlgmr.msra.gmra.mrb[8].mxu0 %vm849_vm8, %v860_v19 }
 0x5a0   :  { %13351 = vmatpush3.xpose.msk.msra.mxu0 %vm766_vm6, %v584_v21  ;;  %13352 = vmatprep.mubr.msk.f32.mxu0 %vm15313_vm5, %v18225_v16 }
 0x5a1   :  { %14260 = vmatprep.subr.bf16.mxu0 %v18223_v35 }
 0x5a3   :  { %13353 = vmatmul.mubr.msk.f32.vlgmr.msra.gmra.mrb[10].mxu0 %vm766_vm6, %v410_v22 }
 0x5a4   :  { %13364 = vmatprep.mubr.msk.f32.mxu0 %vm15313_vm5, %v18225_v16  ;;  %14262 = vmatpush3.bf16.msra.mxu0 %v14261_v40 }
 0x5a5   :  { %13374 = vmatprep.subr.mxu0 %v18225_v16 }
 0x672   :  { %v930_v23 = vpop.f32.mrb[8].mxu0 }
 0x673   :  { %v13349_v24 = vpop.f32.mrb[9].mxu0 }
 0x676   :  { %v1008_v25 = vpop.f32.mrb[10].mxu0 }
 0x677   :  { %v1012_v26 = vmul.f32 0.25, %v1008_v25  ;;  %v13354_v27 = vpop.f32.mrb[11].mxu0 }
 0x679   :  { %v1013_v28 = vadd.f32 %v1012_v26, %v847_v2 }
 0x67b   :  { %v1014_v29 = vsel %vm849_vm8, %v1013_v28, -inf }
 0x67c   :  { %1015 = vmax.xlane.f32.xlu1 %v1014_v29 }
 0x709   :  { %v1016_v30 = vpop.xlane.xlu1 %1015 }
 0x70a   :  { %v1017_v31 = vsub.f32 %v1013_v28, %v1016_v30 }
 0x70c   :  { %v1018_v32 = vmul.f32 1.442695, %v1017_v31 }
 0x70e   :  { %15120 = vpow2.f32 %v1018_v32 }
 0x718   :  { %v15121_v33 = vpop.eup %15120 }
 0x719   :  { %v1020_v34 = vsel %vm849_vm8, %v15121_v33, 0.0 }
 0x71a   :  { %1021 = vadd.xlane.f32.xlu1 %v1020_v34 }
 0x7a7   :  { %v1022_v41 = vpop.xlane.xlu1 %1021 }
 0x7a8   :  { %15122 = vrcp.f32 %v1022_v41 }
 0x7b2   :  { %v15123_v44 = vpop.eup %15122 }
 0x7b3   :  { %v1024_v48 = vmul.f32 %v15123_v44, %v15121_v33 }
 0x7b5   :  { %13358 = vmatmul.mubr.msk.f32.vlgmr.msra.gmra.mrb[8].mxu1 %vm849_vm8, %v1024_v48 }
 0x7b6   :  { %14265 = vmatpush3.bf16.msra.mxu1 %v15691_v45  ;;  %13371 = vmatprep.mubr.msk.f32.mxu1 %vm15313_vm5, %v18225_v16 }
 0x7b7   :  { %13379 = vmatprep.subr.mxu1 %v18225_v16 }
 0x7b9   :  { %13372 = vmatmul.mubr.msk.f32.vlgmr.msra.gmra.mrb[10].mxu1 %vm766_vm6, %v930_v23 }
 0x7ba   :  { %13380 = vmatpush3.msra.mxu1 %v15644_v47  ;;  %13381 = vmatprep.mubr.msk.f32.mxu1 %vm15313_vm5, %v18225_v16 }
 0x7bb   :  { %13389 = vmatprep.subr.mxu1 %v18225_v16 }
 0x888   :  { %v1094_v49 = vpop.f32.mrb[8].mxu1 }
 0x889   :  { %v13359_v50 = vpop.f32.mrb[9].mxu1  ;;  %13365 = vmatmul.mubr.msk.f32.vlgmr.msra.gmra.mrb[12].mxu0 %vm766_vm6, %v1094_v49 }
 0x88a   :  { %13375 = vmatpush3.xpose.msk.msra.mxu0 %vm766_vm6, %v15629_v37  ;;  %13376 = vmatprep.mubr.msk.f32.mxu0 %vm15313_vm5, %v18225_v16 }
 0x88b   :  { %13384 = vmatprep.subr.mxu0 %v18225_v16 }
 0x88c   :  { %v1243_v51 = vpop.f32.mrb[10].mxu1 }
 0x88d   :  { %v13373_v52 = vpop.f32.mrb[11].mxu1  ;;  %13377 = vmatmul.mubr.msk.f32.vlgmr.msra.gmra.mrb[14].mxu0 %vm766_vm6, %v15627_v36  ;;  %v1327_v36 = vrot.slane %v15661_v1, %v15547_v0 }
 0x88e   :  { %13385 = vmatpush3.xpose.msk.msra.mxu0 %vm766_vm6, %v15650_v53  ;;  %13386 = vmatprep.mubr.msk.f32.mxu0 %vm15313_vm5, %v18225_v16 }
 0x88f   :  { %14266 = vmatprep.subr.bf16.mxu0 %v18223_v35 }
 0x891   :  { %13387 = vmatmul.mubr.msk.f32.vlgmr.msra.gmra.mrb[16].mxu0 %vm766_vm6, %v15642_v46 }
 0x892   :  { %14268 = vmatpush3.bf16.msra.mxu0 %v14261_v40  ;;  %13398 = vmatprep.mubr.msk.f32.mxu0 %vm15313_vm5, %v18225_v16 }
 0x95c   :  { %v1170_v37 = vpop.f32.mrb[12].mxu0 }
 0x95d   :  { %v1244_v47 = vadd.f32 %v1243_v51, %v1170_v37  ;;  %v13366_v54 = vpop.f32.mrb[13].mxu0 }
 0x95f   :  { %v1728_v12 = vadd.f32 %v11920_v11, %v1244_v47 }
 0x960   :  { %v1319_v55 = vpop.f32.mrb[14].mxu0 }
 0x961   :  { %v1323_v53 = vmul.f32 0.25, %v1319_v55  ;;  %v13378_v56 = vpop.f32.mrb[15].mxu0  ;;  %v1731_v18 = vadd.f32 %v1728_v12, %v15551_v7  ;;  %v1867_v12 = vld [vmem:[%s18195_s15 + $0x10] sm:$0xff] }
 0x963   :  { %v1328_v58 = vadd.f32 %v1327_v36, %v1323_v53  ;;  %v1733_v21 = vsel %vm198_vm4, %v1731_v18, 0.0 }
 0x964   :  { %v1485_v59 = vpop.f32.mrb[16].mxu0 }
 0x965   :  { %v1489_v61 = vmul.f32 0.25, %v1485_v59  ;;  %v13388_v2 = vpop.f32.mrb[17].mxu0  ;;  %v1329_v3 = vsel %vm849_vm8, %v1328_v58, -inf }
 0x966   :  { %1330 = vmax.xlane.f32.xlu1 %v1329_v3  ;;  %v11932_v3 = vld [vmem:[%s18269_s7 + $0x18] sm:$0xff] }
 0x967   :  { %v1490_v46 = vadd.f32 %v1489_v61, %v1327_v36 }
 0x969   :  { %v1491_v4 = vsel %vm849_vm8, %v1490_v46, -inf }
 0x96a   :  { %1492 = vmax.xlane.f32.xlu1 %v1491_v4 }
 0x9f3   :  { %v1331_v5 = vpop.xlane.xlu1 %1330 }
 0x9f4   :  { %v1332_v6 = vsub.f32 %v1328_v58, %v1331_v5  ;;  %v1773_v5 = vld [vmem:[%s18193_s13 + $0x10] sm:$0xff] }
 0x9f6   :  { %v1333_v8 = vmul.f32 1.442695, %v1332_v6  ;;  %v1774_v6 = vld [vmem:[%s18193_s13 + $0x18] sm:$0xff] }
 0x9f7   :  { %v1493_v9 = vpop.xlane.xlu1 %1492 }
 0x9f8   :  { %15124 = vpow2.f32 %v1333_v8  ;;  %v1494_v1 = vsub.f32 %v1490_v46, %v1493_v9  ;;  %v1771_v46 = vld [vmem:[%s18193_s13] sm:$0xff]  ;;  %v14276_v8 = vpack.c.bf16 %v1774_v6, %v1773_v5  ;;  %v11931_v9 = vld [vmem:[%s18269_s7 + $0x10] sm:$0xff] }
 0x9fa   :  { %v1495_v10 = vmul.f32 1.442695, %v1494_v1  ;;  %v1865_v1 = vld [vmem:[%s18195_s15] sm:$0xff] }
 0x9fc   :  { %15126 = vpow2.f32 %v1495_v10  ;;  %v1866_v10 = vld [vmem:[%s18195_s15 + $0x8] sm:$0xff] }
 0xa02   :  { %v15125_v13 = vpop.eup %15124 }
 0xa03   :  { %v1335_v17 = vsel %vm849_vm8, %v15125_v13, 0.0 }
 0xa04   :  { %1336 = vadd.xlane.f32.xlu1 %v1335_v17 }
 0xa06   :  { %v15127_v19 = vpop.eup %15126 }
 0xa07   :  { %v1497_v22 = vsel %vm849_vm8, %v15127_v19, 0.0 }
 0xa08   :  { %1734 = vadd.xlane.f32.xlu1 %v1733_v21  ;;  %1498 = vadd.xlane.f32.xlu0 %v1497_v22 }
 0xa91   :  { %v1337_v23 = vpop.xlane.xlu1 %1336 }
 0xa92   :  { %15128 = vrcp.f32 %v1337_v23 }
 0xa95   :  { %v1499_v24 = vpop.xlane.xlu0 %1498  ;;  %v1735_v25 = vpop.xlane.xlu1 %1734 }
 0xa96   :  { %15130 = vrcp.f32 %v1499_v24  ;;  %v1739_v26 = vmul.f32 0.03125, %v1735_v25 }
 0xa98   :  { %v1741_v27 = vsub.f32 %v1731_v18, %v1739_v26  ;;  %v1869_v18 = vld [vmem:[%s18195_s15 + $0x20] sm:$0xff] }
 0xa9a   :  { %v1743_v28 = vmul.f32 %v1741_v27, %v1741_v27 }
 0xa9c   :  { %v15129_v29 = vpop.eup %15128  ;;  %v1745_v30 = vsel %vm198_vm4, %v1743_v28, 0.0 }
 0xa9d   :  { %v1339_v7 = vmul.f32 %v15129_v29, %v15125_v13  ;;  %1746 = vadd.xlane.f32.xlu1 %v1745_v30  ;;  %v1868_v13 = vld [vmem:[%s18195_s15 + $0x18] sm:$0xff]  ;;  %v1871_v29 = vld [vmem:[%s18195_s15 + $0x30] sm:$0xff] }
 0xa9e   :  { %v14284_v17 = vpack.c.bf16 %v1868_v13, %v1867_v12  ;;  %v1872_v30 = vld [vmem:[%s18195_s15 + $0x38] sm:$0xff] }
 0xa9f   :  { %13382 = vmatmul.mubr.msk.f32.vlgmr.msra.gmra.mrb[12].mxu1 %vm849_vm8, %v1339_v7  ;;  %v14292_v7 = vpack.c.bf16 %v1872_v30, %v1871_v29 }
 0xaa0   :  { %v15131_v31 = vpop.eup %15130  ;;  %13390 = vmatpush3.msra.mxu1 %v15655_v57  ;;  %13391 = vmatprep.mubr.msk.f32.mxu1 %vm15313_vm5, %v18225_v16  ;;  %v15744_v57 = vld [vmem:[%s18197_s17] sm:$0xf] }
 0xaa1   :  { %v1501_v32 = vmul.f32 %v15131_v31, %v15127_v19  ;;  %14269 = vmatprep.subr.bf16.mxu1 %v18223_v35  ;;  %v1762_v41 = vrot.slane %v15744_v57, %v15541_v62  ;;  %v1768_v44 = vrot.slane %v15744_v57, %v15547_v0  ;;  %v1870_v19 = vld [vmem:[%s18195_s15 + $0x28] sm:$0xff]  ;;  %v11935_v31 = vld [vmem:[%s18270_s21 + $0x38] sm:$0xff] }
 0xaa2   :  { %v14288_v21 = vpack.c.bf16 %v1870_v19, %v1869_v18 }
 0xaa3   :  { %13392 = vmatmul.mubr.msk.f32.vlgmr.msra.gmra.mrb[14].mxu1 %vm849_vm8, %v1501_v32  ;;  %v11936_v32 = vld [vmem:[%s18270_s21 + $0x40] sm:$0xff] }
 0xaa4   :  { %14271 = vmatpush3.bf16.msra.mxu1 %v15691_v45  ;;  %13405 = vmatprep.mubr.msk.f32.mxu1 %vm15313_vm5, %v18225_v16 }
 0xaae   :  { %2315 = vperm.xlu1 %15111, %v11931_v9  }
 0xb2a   :  { %v1747_v33 = vpop.xlane.xlu1 %1746 }
 0xb2b   :  { %v1751_v34 = vmul.f32 0.03125, %v1747_v33  ;;  %v14312_v33 = vpack.c.bf16 %v11936_v32, %v11935_v31  ;;  %v2003_v31 = vld [vmem:[%s18199_s19 + $0x8] sm:$0xff] }
 0xb2c   :  { %v2007_v32 = vld [vmem:[%s18199_s19 + $0x28] sm:$0xff] }
 0xb2d   :  { %v1753_v38 = vadd.f32 1e-05, %v1751_v34  ;;  %v11921_v34 = vld [vmem:[%s18194_s14] ss:$0 sm:$0xff] }
 0xb2f   :  { %15132 = vrsqrt.f32 %v1753_v38  ;;  %v2316_v38 = vpop.permute.xlu1 %2315 }
 0xb30   :  { %vm2320_vm9 = vcmp.eq.s32.totalorder %v15482_v14, %v2316_v38  ;;  %v2006_v38 = vld [vmem:[%s18199_s19 + $0x20] sm:$0xff] }
 0xb39   :  { %v15133_v39 = vpop.eup %15132 }
 0xb3a   :  { %v1757_v40 = vmul.f32 %v15133_v39, %v1741_v27 }
 0xb3c   :  { %v1763_v43 = vmul.f32 %v1762_v41, %v1757_v40 }
 0xb3e   :  { %v15751_v49 = vadd.f32 %v1768_v44, %v1763_v43  ;;  %v11937_v43 = vld [vmem:[%s18270_s21 + $0x48] sm:$0xff] }
 0xb72   :  { %v1409_v42 = vpop.f32.mrb[12].mxu1 }
 0xb73   :  { %v13383_v45 = vpop.f32.mrb[13].mxu1  ;;  %13406 = vmatmul.mubr.msk.f32.vlgmr.msra.gmra.mrb[16].mxu1 %vm766_vm6, %v1409_v42 }
 0xb76   :  { %v1571_v48 = vpop.f32.mrb[14].mxu1 }
 0xb77   :  { %v13393_v50 = vpop.f32.mrb[15].mxu1  ;;  %13399 = vmatmul.mubr.msk.f32.vlgmr.msra.gmra.mrb[18].mxu0 %vm766_vm6, %v1571_v48 }
 0xb78   :  { %13416 = vmatprep.mubr.msk.f32.mxu0 %vm198_vm4, %v15751_v49 }
 0xc46   :  { %v1717_v51 = vpop.f32.mrb[16].mxu1 }
 0xc47   :  { %v13407_v52 = vpop.f32.mrb[17].mxu1 }
 0xc48   :  { %v11939_v52 = vld [vmem:[%s18270_s21 + $0x58] sm:$0xff] }
 0xc4a   :  { %v1644_v37 = vpop.f32.mrb[18].mxu0 }
 0xc4b   :  { %v1718_v47 = vadd.f32 %v1717_v51, %v1644_v37  ;;  %v13400_v54 = vpop.f32.mrb[19].mxu0  ;;  %v11933_v51 = vsel %vm2320_vm9, 1.0, %v18225_v16  ;;  %v11940_v37 = vld [vmem:[%s18270_s21 + $0x60] sm:$0xff] }
 0xc4d   :  { %v1729_v36 = vadd.f32 %v11920_v11, %v1718_v47  ;;  %v14280_v11 = vpack.c.bf16 %v1866_v10, %v1865_v1  ;;  %v14320_v47 = vpack.c.bf16 %v11940_v37, %v11939_v52  ;;  %v11963_v52 = vld [vmem:[%s18273_s27 + $0x40] sm:$0xff]  ;;  %v11964_v37 = vld [vmem:[%s18273_s27 + $0x48] sm:$0xff] }
 0xc4f   :  { %v1732_v55 = vadd.f32 %v1729_v36, %v15569_v15  ;;  %v1772_v15 = vld [vmem:[%s18193_s13 + $0x8] sm:$0xff]  ;;  %14281 = vmatprep.subr.bf16.mxu1 %v14280_v11 }
 0xc50   :  { %v14272_v4 = vpack.c.bf16 %v1772_v15, %v1771_v46  ;;  %14283 = vmatpush3.bf16.msra.mxu1 %v14280_v11  ;;  %v11941_v36 = vld [vmem:[%s18270_s21 + $0x68] sm:$0x3] }
 0xc51   :  { %v1736_v53 = vsel %vm198_vm4, %v1732_v55, 0.0  ;;  %14285 = vmatprep.subr.bf16.mxu1 %v14284_v17 }
 0xc52   :  { %1737 = vadd.xlane.f32.xlu0 %v1736_v53  ;;  %14273 = vmatprep.subr.bf16.mxu0 %v14272_v4  ;;  %v11924_v53 = vld [vmem:[%s18196_s16] ss:$0 sm:$0xff] }
 0xc53   :  { %14275 = vmatpush3.bf16.msra.mxu0 %v14272_v4 }
 0xc54   :  { %14277 = vmatprep.subr.bf16.mxu0 %v14276_v8  ;;  %14287 = vmatpush3.bf16.msra.mxu1 %v14284_v17 }
 0xc55   :  { %14289 = vmatprep.subr.bf16.mxu1 %v14288_v21 }
 0xc57   :  { %14279 = vmatpush3.bf16.msra.mxu0 %v14276_v8 }
 0xc58   :  { %14291 = vmatpush3.bf16.msra.mxu1 %v14288_v21 }
 0xc59   :  { %14293 = vmatprep.subr.bf16.mxu1 %v14292_v7 }
 0xc5c   :  { %14295 = vmatpush3.bf16.msra.mxu1 %v14292_v7 }
 0xc5d   :  { %14313 = vmatprep.subr.bf16.mxu1 %v14312_v33 }
 0xcdf   :  { %v1738_v56 = vpop.xlane.xlu0 %1737 }
 0xce0   :  { %v1740_v58 = vmul.f32 0.03125, %v1738_v56 }
 0xce2   :  { %v1742_v59 = vsub.f32 %v1732_v55, %v1740_v58 }
 0xce4   :  { %v1744_v61 = vmul.f32 %v1742_v59, %v1742_v59 }
 0xce6   :  { %v1748_v2 = vsel %vm198_vm4, %v1744_v61, 0.0 }
 0xce7   :  { %1749 = vadd.xlane.f32.xlu0 %v1748_v2 }
 0xcfd   :  { %2318 = vperm.xlu0 %15110, %v11932_v3  }
 0xd74   :  { %v1750_v22 = vpop.xlane.xlu0 %1749 }
 0xd75   :  { %v1752_v23 = vmul.f32 0.03125, %v1750_v22 }
 0xd77   :  { %v1754_v24 = vadd.f32 1e-05, %v1752_v23 }
 0xd79   :  { %15134 = vrsqrt.f32 %v1754_v24 }
 0xd7c   :  { %v2319_v54 = vpop.permute.xlu0 %2318 }
 0xd7d   :  { %vm2321_vm11 = vcmp.eq.s32.totalorder %v15482_v14, %v2319_v54  ;;  %v11965_v54 = vld [vmem:[%s18273_s27 + $0x50] sm:$0xff] }
 0xd7e   :  { %v11934_v55 = vsel %vm2321_vm11, 1.0, %v18225_v16 }
 0xd83   :  { %v15135_v25 = vpop.eup %15134 }
 0xd84   :  { %v1758_v26 = vmul.f32 %v15135_v25, %v1742_v59 }
 0xd86   :  { %v1764_v27 = vmul.f32 %v1762_v41, %v1758_v26 }
 0xd88   :  { %v1770_v28 = vadd.f32 %v1768_v44, %v1764_v27  ;;  %v11938_v44 = vld [vmem:[%s18270_s21 + $0x50] sm:$0xff] }
 0xd89   :  { %v14316_v50 = vpack.c.bf16 %v11938_v44, %v11937_v43  ;;  %v2010_v43 = vld [vmem:[%s18199_s19 + $0x40] sm:$0xff] }
 0xd8a   :  { %13417 = vmatmul.mubr.msk.f32.vlgmr.msra.gmra.mrb[20].mxu0 %vm198_vm4, %v1770_v28  ;;  %v2014_v44 = vld [vmem:[%s18199_s19 + $0x60] sm:$0xff] }
 0xd8b   :  { %2088 = vmatprep.mubr.f32.mxu0 %v18225_v16 }
 0xe5d   :  { %v13418_v39 = vpop.f32.mrb[20].mxu0 }
 0xe5e   :  { %v1860_v40 = vadd.f32 %v13418_v39, %v11921_v34  ;;  %v1854_v41 = vpop.f32.mrb[21].mxu0 }
 0xe5f   :  { %v1855_v42 = vadd.f32 %v11921_v34, %v1854_v41  ;;  %v2002_v34 = vld [vmem:[%s18199_s19] sm:$0xff]  ;;  %v2015_v41 = vld [vmem:[%s18199_s19 + $0x68] sm:$0xff] }
 0xe60   :  { %v1864_v48 = vmax.f32 %v1860_v40, 0.0  ;;  %v14298_v39 = vpack.c.bf16 %v2006_v38, %v2002_v34  ;;  %v2011_v40 = vld [vmem:[%s18199_s19 + $0x48] sm:$0xff] }
 0xe61   :  { %v1863_v45 = vmax.f32 %v1855_v42, 0.0  ;;  %v14300_v42 = vpack.c.bf16 %v2015_v41, %v2011_v40  ;;  %v11949_v40 = vld [vmem:[%s18272_s2 + $0x50] sm:$0xff]  ;;  %v11950_v41 = vld [vmem:[%s18272_s2 + $0x58] sm:$0xff] }
 0xe63   :  { %13435 = vmatprep.mubr.msk.f32.mxu1 %vm1880_vm10, %v1863_v45  ;;  %v14302_v45 = vpack.c.bf16 %v2014_v44, %v2010_v43 }
 0xe64   :  { %13436 = vmatmul.mubr.msk.f32.vlgmr.msra.gmra.mrb[18].mxu1 %vm1880_vm10, %v1864_v48  ;;  %v2005_v48 = vld [vmem:[%s18199_s19 + $0x18] sm:$0xff] }
 0xe65   :  { %14315 = vmatpush3.bf16.msra.mxu1 %v14312_v33  ;;  %13452 = vmatprep.mubr.msk.f32.mxu1 %vm108_vm1, %v11933_v51  ;;  %v14296_v33 = vpack.c.bf16 %v2007_v32, %v2003_v31  ;;  %v11948_v31 = vld [vmem:[%s18272_s2 + $0x48] sm:$0xff]  ;;  %v11946_v32 = vld [vmem:[%s18276_s1 + $0x2] sm:$0x3] }
 0xe66   :  { %14317 = vmatprep.subr.bf16.mxu1 %v14316_v50 }
 0xe67   :  { %14297 = vmatprep.subr.bf16.mxu0 %v14296_v33 }
 0xe68   :  { %14299 = vmatpush1.bf16.msra.mxu0 %v14298_v39  ;;  %v2453_v39 = vrot.slane %v11946_v32, %v15541_v62 }
 0xe69   :  { %14319 = vmatpush3.bf16.msra.mxu1 %v14316_v50  ;;  %14301 = vmatprep.subr.bf16.mxu0 %v14300_v42  ;;  %v2009_v50 = vld [vmem:[%s18199_s19 + $0x38] sm:$0xff] }
 0xe6a   :  { %14321 = vmatprep.subr.bf16.mxu1 %v14320_v47  ;;  %v14304_v51 = vpack.c.bf16 %v2009_v50, %v2005_v48  ;;  %v14328_v50 = vpack.c.bf16 %v11950_v41, %v11949_v40 }
 0xe6c   :  { %14303 = vmatpush1.bf16.msra.mxu0 %v14302_v45  ;;  %v2459_v45 = vrot.slane %v11946_v32, %v15547_v0 }
 0xe6d   :  { %14323 = vmatpush3.bf16.msra.mxu1 %v14320_v47  ;;  %14305 = vmatprep.subr.bf16.mxu0 %v14304_v51  ;;  %v14340_v47 = vpack.c.bf16 %v11964_v37, %v11963_v52  ;;  %v11955_v37 = vld [vmem:[%s18272_s2 + $0x60] sm:$0xff] }
 0xe6e   :  { %13450 = vmatprep.subr.msk.mxu1 %vm115_vm0, %v11941_v36 }
 0xe71   :  { %13451 = vmatpush3.msk.msra.mxu1 %vm115_vm0, %v11941_v36  ;;  %v11966_v36 = vld [vmem:[%s18273_s27 + $0x58] sm:$0xff] }
 0xe72   :  { %13453 = vmatmul.mubr.msk.f32.vlgmr.msra.gmra.mrb[20].mxu1 %vm108_vm1, %v11934_v55  ;;  %14341 = vmatprep.subr.bf16.mxu1 %v14340_v47  ;;  %v14344_v55 = vpack.c.bf16 %v11966_v36, %v11965_v54 }
 0xe73   :  { %14343 = vmatpush3.bf16.msra.mxu1 %v14340_v47  ;;  %v11982_v47 = vld [vmem:[%s18274_s9 + $0x58] sm:$0xff] }
 0xe74   :  { %14345 = vmatprep.subr.bf16.mxu1 %v14344_v55 }
 0xe77   :  { %14347 = vmatpush3.bf16.msra.mxu1 %v14344_v55 }
 0xf37   :  { %v13437_v56 = vpop.f32.mrb[18].mxu1 }
 0xf38   :  { %v1959_v58 = vadd.f32 %v13437_v56, %v11924_v53  ;;  %v1953_v59 = vpop.f32.mrb[19].mxu1  ;;  %v11980_v56 = vld [vmem:[%s18274_s9 + $0x48] sm:$0xff] }
 0xf39   :  { %v1954_v61 = vadd.f32 %v11924_v53, %v1953_v59  ;;  %v11979_v53 = vld [vmem:[%s18274_s9 + $0x40] sm:$0xff] }
 0xf3a   :  { %v1963_v2 = vadd.f32 %v1959_v58, %v1770_v28  ;;  %v15915_v58 = vpack.c.bf16 %v11980_v56, %v11979_v53  ;;  %v11957_v53 = vld [vmem:[%s18272_s2 + $0x70] sm:$0xff]  ;;  %v11958_v56 = vld [vmem:[%s18272_s2 + $0x78] sm:$0xff] }
 0xf3b   :  { %v1962_v3 = vadd.f32 %v1954_v61, %v15751_v49 }
 0xf3c   :  { %v1967_v46 = vsel %vm198_vm4, %v1963_v2, 0.0  ;;  %14357 = vmatprep.subr.bf16.mxu1 %v15915_v58 }
 0xf3d   :  { %1968 = vadd.xlane.f32.xlu0 %v1967_v46  ;;  %v1964_v15 = vsel %vm198_vm4, %v1962_v3, 0.0 }
 0xf3e   :  { %1965 = vadd.xlane.f32.xlu1 %v1964_v15 }
 0xf45   :  { %v13454_v4 = vpop.f32.mrb[20].mxu1 }
 0xf46   :  { %v2415_v5 = vadd.f32 %v13454_v4, %v15493_v20  ;;  %v2409_v6 = vpop.f32.mrb[21].mxu1  ;;  %v15919_v4 = vsub.s32 2, %v15538_v60 }
 0xf47   :  { %v2410_v8 = vadd.f32 %v2409_v6, %v15493_v20 }
 0xf48   :  { %v2427_v9 = vsel %vm198_vm4, %v2415_v5, 0.0  ;;  %18282 = vst [vmem:[#allocation7_spill] sm:$0xff] %v15919_v4 }
 0xf49   :  { %2428 = vadd.xlane.f32.xlu0 %v2427_v9  ;;  %v2424_v1 = vsel %vm198_vm4, %v2410_v8, 0.0  ;;  %v15922_v9 = vsub.s32 3, %v15538_v60  ;;  %v2008_v60 = vld [vmem:[%s18199_s19 + $0x30] sm:$0xff] }
 0xf4a   :  { %2425 = vadd.xlane.f32.xlu1 %v2424_v1 }
 0xf4b   :  { %18283 = vst [vmem:[#allocation8_spill] sm:$0xff] %v15922_v9 }
 0xfca   :  { %v1969_v10 = vpop.xlane.xlu0 %1968 }
 0xfcb   :  { %v1971_v49 = vmul.f32 0.03125, %v1969_v10  ;;  %v1966_v11 = vpop.xlane.xlu1 %1965 }
 0xfcc   :  { %v1970_v12 = vmul.f32 0.03125, %v1966_v11  ;;  %v1993_v11 = vrot.slane %v15744_v57, %v15919_v4 }
 0xfcd   :  { %v15847_v13 = vsub.f32 %v1963_v2, %v1971_v49 }
 0xfce   :  { %v15849_v17 = vsub.f32 %v1962_v3, %v1970_v12 }
 0xfcf   :  { %v1975_v18 = vmul.f32 %v15847_v13, %v15847_v13 }
 0xfd0   :  { %v1974_v20 = vmul.f32 %v15849_v17, %v15849_v17 }
 0xfd1   :  { %v1979_v19 = vsel %vm198_vm4, %v1975_v18, 0.0 }
 0xfd2   :  { %1980 = vadd.xlane.f32.xlu0 %v1979_v19  ;;  %v1976_v21 = vsel %vm198_vm4, %v1974_v20, 0.0  ;;  %v1999_v19 = vrot.slane %v15744_v57, %v15922_v9 }
 0xfd3   :  { %1977 = vadd.xlane.f32.xlu1 %v1976_v21  ;;  %v2004_v21 = vld [vmem:[%s18199_s19 + $0x10] sm:$0xff] }
 0xfd6   :  { %v2429_v22 = vpop.xlane.xlu0 %2428 }
 0xfd7   :  { %v2431_v23 = vmul.f32 0.03125, %v2429_v22  ;;  %v2426_v24 = vpop.xlane.xlu1 %2425 }
 0xfd8   :  { %v2430_v25 = vmul.f32 0.03125, %v2426_v24  ;;  %v14306_v24 = vpack.c.bf16 %v2008_v60, %v2004_v21 }
 0xfd9   :  { %v15857_v26 = vsub.f32 %v2415_v5, %v2431_v23  ;;  %v2013_v23 = vld [vmem:[%s18199_s19 + $0x58] sm:$0xff] }
 0xfda   :  { %v15859_v27 = vsub.f32 %v2410_v8, %v2430_v25 }
 0xfdb   :  { %v2435_v28 = vmul.f32 %v15857_v26, %v15857_v26 }
 0xfdc   :  { %v2434_v29 = vmul.f32 %v15859_v27, %v15859_v27 }
 0xfdd   :  { %v2439_v30 = vsel %vm198_vm4, %v2435_v28, 0.0 }
 0xfde   :  { %2440 = vadd.xlane.f32.xlu0 %v2439_v30  ;;  %v2436_v7 = vsel %vm198_vm4, %v2434_v29, 0.0  ;;  %v2012_v30 = vld [vmem:[%s18199_s19 + $0x50] sm:$0xff] }
 0xfdf   :  { %2437 = vadd.xlane.f32.xlu1 %v2436_v7  ;;  %v11947_v7 = vld [vmem:[%s18272_s2 + $0x40] sm:$0xff] }
 0xfe0   :  { %v14324_v38 = vpack.c.bf16 %v11948_v31, %v11947_v7  ;;  %v2180_v7 = vld [vmem:[%s18198_s18 + $0x10] sm:$0xff] }
0x105f   :  { %v1981_v59 = vpop.xlane.xlu0 %1980 }
0x1060   :  { %v1983_v61 = vmul.f32 0.03125, %v1981_v59  ;;  %v1978_v2 = vpop.xlane.xlu1 %1977 }
0x1061   :  { %v1982_v3 = vmul.f32 0.03125, %v1978_v2  ;;  %v11971_v2 = vld [vmem:[%s18273_s27 + $0x60] sm:$0xff] }
0x1062   :  { %v1985_v46 = vadd.f32 1e-05, %v1983_v61  ;;  %v14336_v61 = vpack.c.bf16 %v11958_v56, %v11957_v53 }
0x1063   :  { %v1984_v15 = vadd.f32 1e-05, %v1982_v3  ;;  %v11972_v3 = vld [vmem:[%s18273_s27 + $0x68] sm:$0xff] }
0x1064   :  { %15136 = vrsqrt.f32 %v1985_v46  ;;  %v11973_v46 = vld [vmem:[%s18273_s27 + $0x70] sm:$0xff] }
0x1065   :  { %15138 = vrsqrt.f32 %v1984_v15  ;;  %v11974_v15 = vld [vmem:[%s18273_s27 + $0x78] sm:$0xff] }
0x106b   :  { %v2441_v5 = vpop.xlane.xlu0 %2440 }
0x106c   :  { %v2443_v6 = vmul.f32 0.03125, %v2441_v5  ;;  %v2438_v8 = vpop.xlane.xlu1 %2437  ;;  %v14352_v5 = vpack.c.bf16 %v11974_v15, %v11973_v46 }
0x106d   :  { %v2442_v1 = vmul.f32 0.03125, %v2438_v8  ;;  %v11988_v8 = vld [vmem:[%s18274_s9 + $0x68] sm:$0xff] }
0x106e   :  { %v15137_v10 = vpop.eup %15136  ;;  %v2445_v49 = vadd.f32 1e-05, %v2443_v6  ;;  %v11987_v6 = vld [vmem:[%s18274_s9 + $0x60] sm:$0xff] }
0x106f   :  { %v15139_v12 = vpop.eup %15138  ;;  %v2444_v18 = vadd.f32 1e-05, %v2442_v1  ;;  %v1989_v22 = vmul.f32 %v15137_v10, %v15847_v13  ;;  %v2016_v13 = vld [vmem:[%s18199_s19 + $0x70] sm:$0xff]  ;;  %v14364_v1 = vpack.c.bf16 %v11988_v8, %v11987_v6 }
0x1070   :  { %v1988_v20 = vmul.f32 %v15139_v12, %v15849_v17  ;;  %15140 = vrsqrt.f32 %v2445_v49  ;;  %v2017_v17 = vld [vmem:[%s18199_s19 + $0x78] sm:$0xff]  ;;  %v14310_v33 = vpack.c.bf16 %v2016_v13, %v2012_v30  ;;  %v11989_v10 = vld [vmem:[%s18274_s9 + $0x70] sm:$0xff]  ;;  %v2178_v12 = vld [vmem:[%s18198_s18] sm:$0xff] }
0x1071   :  { %15142 = vrsqrt.f32 %v2444_v18  ;;  %v14308_v28 = vpack.c.bf16 %v2017_v17, %v2013_v23  ;;  %v1995_v29 = vmul.f32 %v1993_v11, %v1989_v22  ;;  %v11990_v49 = vld [vmem:[%s18274_s9 + $0x78] sm:$0xff]  ;;  %v2179_v18 = vld [vmem:[%s18198_s18 + $0x8] sm:$0xff]  ;;  %v2182_v22 = vld [vmem:[%s18198_s18 + $0x20] sm:$0xff] }
0x1072   :  { %v1994_v57 = vmul.f32 %v1993_v11, %v1988_v20  ;;  %v14368_v11 = vpack.c.bf16 %v11990_v49, %v11989_v10  ;;  %v2183_v17 = vld [vmem:[%s18198_s18 + $0x28] sm:$0xff]  ;;  %v11952_v10 = vld [vmem:[%s18278_s30 + $0x2] ss:$0 sm:$0xff] }
0x1073   :  { %v2001_v34 = vadd.f32 %v1999_v19, %v1995_v29 }
0x1074   :  { %v2000_v25 = vadd.f32 %v1999_v19, %v1994_v57 }
0x1076   :  { %11927 = vmatmul.mubr.msk.f32.vlgmr.msra.gmra.mrb[22].mxu0 %vm198_vm4, %v2000_v25 }
0x1077   :  { %14307 = vmatpush1.bf16.msra.mxu0 %v14306_v24  ;;  %2094 = vmatprep.mubr.f32.mxu0 %v18225_v16 }
0x1078   :  { %14309 = vmatprep.subr.bf16.mxu0 %v14308_v28 }
0x107a   :  { %v15141_v42 = vpop.eup %15140  ;;  %11928 = vmatmul.mubr.msk.f32.gmra.mrb[24].mxu0 %vm198_vm4, %v2001_v34 }
0x107b   :  { %v15143_v43 = vpop.eup %15142  ;;  %v2449_v44 = vmul.f32 %v15141_v42, %v15857_v26  ;;  %14311 = vmatpush1.bf16.msra.mxu0 %v14310_v33  ;;  %2165 = vmatprep.mubr.f32.mxu0 %v18225_v16  ;;  %v11956_v26 = vld [vmem:[%s18272_s2 + $0x68] sm:$0xff]  ;;  %v2181_v33 = vld [vmem:[%s18198_s18 + $0x18] sm:$0xff] }
0x107c   :  { %v2448_v48 = vmul.f32 %v15143_v43, %v15859_v27  ;;  %14325 = vmatprep.subr.bf16.mxu0 %v14324_v38  ;;  %v11981_v27 = vld [vmem:[%s18274_s9 + $0x50] sm:$0xff]  ;;  %v14332_v55 = vpack.c.bf16 %v11956_v26, %v11955_v37  ;;  %v11968_v26 = vld [vmem:[%s18279_s6 + $0x2] ss:$0 sm:$0xff] }
0x107d   :  { %v2455_v51 = vmul.f32 %v2453_v39, %v2449_v44  ;;  %v14360_v59 = vpack.c.bf16 %v11982_v47, %v11981_v27  ;;  %v2185_v27 = vld [vmem:[%s18198_s18 + $0x38] sm:$0xff] }
0x107e   :  { %v2454_v52 = vmul.f32 %v2453_v39, %v2448_v48  ;;  %11929 = vmatmul.mubr.msk.f32.vlgmr.msra.gmra.mrb[26].mxu0 %vm198_vm4, %v2000_v25 }
0x107f   :  { %14327 = vmatpush3.bf16.msra.mxu0 %v14324_v38  ;;  %2171 = vmatprep.mubr.f32.mxu0 %v18225_v16  ;;  %v15987_v36 = vadd.f32 %v2459_v45, %v2455_v51 }
0x1080   :  { %v15985_v54 = vadd.f32 %v2459_v45, %v2454_v52  ;;  %14329 = vmatprep.subr.bf16.mxu0 %v14328_v50 }
0x1082   :  { %13485 = vmatprep.mubr.msk.f32.mxu1 %vm198_vm4, %v15985_v54  ;;  %11930 = vmatmul.mubr.msk.f32.gmra.mrb[28].mxu0 %vm198_vm4, %v2001_v34 }
0x1083   :  { %14331 = vmatpush3.bf16.msra.mxu0 %v14328_v50  ;;  %13486 = vmatmul.mubr.msk.f32.vlgmr.msra.gmra.mrb[22].mxu1 %vm198_vm4, %v15987_v36  ;;  %v2184_v50 = vld [vmem:[%s18198_s18 + $0x30] sm:$0xff] }
0x1084   :  { %14359 = vmatpush3.bf16.msra.mxu1 %v15915_v58  ;;  %13463 = vmatprep.mubr.msk.f32.mxu0 %vm198_vm4, %v15985_v54  ;;  %v14348_v58 = vpack.c.bf16 %v11972_v3, %v11971_v2 }
0x1085   :  { %13507 = vmatprep.mubr.msk.f32.mxu1 %vm198_vm4, %v15985_v54  ;;  %14333 = vmatprep.subr.bf16.mxu0 %v14332_v55 }
0x1086   :  { %14361 = vmatprep.subr.bf16.mxu1 %v14360_v59  ;;  %13464 = vmatmul.mubr.msk.f32.vlgmr.msra.gmra.mrb[30].mxu0 %vm198_vm4, %v15987_v36 }
0x1087   :  { %14335 = vmatpush3.bf16.msra.mxu0 %v14332_v55  ;;  %13474 = vmatprep.mubr.msk.f32.mxu0 %vm198_vm4, %v15985_v54 }
0x1088   :  { %14363 = vmatpush3.bf16.msra.mxu1 %v14360_v59  ;;  %14337 = vmatprep.subr.bf16.mxu0 %v14336_v61 }
0x1089   :  { %13521 = vmatprep.subr.mxu1 %v18225_v16 }
0x108b   :  { %13508 = vmatmul.mubr.msk.f32.vlgmr.msra.gmra.mrb[24].mxu1 %vm198_vm4, %v15987_v36  ;;  %14339 = vmatpush3.bf16.msra.mxu0 %v14336_v61 }
0x108c   :  { %14349 = vmatprep.subr.bf16.mxu0 %v14348_v58  ;;  %13523 = vmatprep.mubr.msk.f32.mxu1 %vm15313_vm5, %v18225_v16 }
0x108e   :  { %13475 = vmatmul.mubr.msk.f32.vlgmr.msra.gmra.mrb[32].mxu0 %vm198_vm4, %v15987_v36 }
0x108f   :  { %14351 = vmatpush3.bf16.msra.mxu0 %v14348_v58  ;;  %13496 = vmatprep.mubr.msk.f32.mxu0 %vm198_vm4, %v15985_v54 }
0x1090   :  { %14353 = vmatprep.subr.bf16.mxu0 %v14352_v5 }
0x1093   :  { %14355 = vmatpush3.bf16.msra.mxu0 %v14352_v5 }
0x1094   :  { %14365 = vmatprep.subr.bf16.mxu0 %v14364_v1 }
0x1096   :  { %13497 = vmatmul.mubr.msk.f32.vlgmr.msra.gmra.mrb[34].mxu0 %vm198_vm4, %v15987_v36 }
0x1097   :  { %14367 = vmatpush3.bf16.msra.mxu0 %v14364_v1  ;;  %13518 = vmatprep.mubr.msk.f32.mxu0 %vm198_vm4, %v15985_v54 }
0x1098   :  { %14369 = vmatprep.subr.bf16.mxu0 %v14368_v11 }
0x109b   :  { %14371 = vmatpush3.bf16.msra.mxu0 %v14368_v11 }
0x109c   :  { %13531 = vmatprep.subr.mxu0 %v18225_v16 }
0x109e   :  { %13519 = vmatmul.mubr.msk.f32.vlgmr.msra.gmra.mrb[36].mxu0 %vm198_vm4, %v15987_v36 }
0x109f   :  { %13533 = vmatprep.mubr.msk.f32.mxu0 %vm15313_vm5, %v18225_v16 }
0x1149   :  { %v2090_v20 = vpop.f32.mrb[22].mxu0 }
0x114a   :  { %v2186_v19 = vmul.f32 %v2178_v12, %v2090_v20  ;;  %v2092_v21 = vpop.f32.mrb[23].mxu0 }
0x114b   :  { %v2187_v60 = vmul.f32 %v2179_v18, %v2092_v21 }
0x114c   :  { %v2194_v23 = vrot.slane %v2186_v19, 4 }
0x114d   :  { %v2200_v57 = vrot.slane %v2187_v60, 4  ;;  %v2096_v24 = vpop.f32.mrb[24].mxu0 }
0x114e   :  { %v2195_v25 = vadd.f32 %v2194_v23, %v2186_v19  ;;  %v2190_v28 = vmul.f32 %v2182_v22, %v2096_v24  ;;  %v2098_v29 = vpop.f32.mrb[25].mxu0 }
0x114f   :  { %v2201_v30 = vadd.f32 %v2200_v57, %v2187_v60  ;;  %v2191_v13 = vmul.f32 %v2183_v17, %v2098_v29 }
0x1150   :  { %v2196_v31 = vrot.slane %v2195_v25, 2  ;;  %v2218_v32 = vrot.slane %v2190_v28, 4 }
0x1151   :  { %v2202_v34 = vrot.slane %v2201_v30, 2  ;;  %v2224_v38 = vrot.slane %v2191_v13, 4  ;;  %v2167_v39 = vpop.f32.mrb[26].mxu0 }
0x1152   :  { %v2197_v40 = vadd.f32 %v2196_v31, %v2195_v25  ;;  %v2219_v41 = vadd.f32 %v2218_v32, %v2190_v28  ;;  %v2188_v42 = vmul.f32 %v2180_v7, %v2167_v39  ;;  %v2169_v43 = vpop.f32.mrb[27].mxu0  ;;  %v11984_v31 = vld [vmem:[%s18280_s4 + $0x2] ss:$0 sm:$0xff] }
0x1153   :  { %v2203_v44 = vadd.f32 %v2202_v34, %v2201_v30  ;;  %v2225_v45 = vadd.f32 %v2224_v38, %v2191_v13  ;;  %v2189_v48 = vmul.f32 %v2181_v33, %v2169_v43 }
0x1154   :  { %v2198_v51 = vrot.slane %v2197_v40, 1  ;;  %v2220_v52 = vrot.slane %v2219_v41, 2  ;;  %v2206_v37 = vrot.slane %v2188_v42, 4 }
0x1155   :  { %v2204_v47 = vrot.slane %v2203_v44, 1  ;;  %v2226_v55 = vrot.slane %v2225_v45, 2  ;;  %v2212_v53 = vrot.slane %v2189_v48, 4  ;;  %v2173_v56 = vpop.f32.mrb[28].mxu0 }
0x1156   :  { %v2199_v59 = vadd.f32 %v2198_v51, %v2197_v40  ;;  %v2221_v61 = vadd.f32 %v2220_v52, %v2219_v41  ;;  %v2207_v2 = vadd.f32 %v2206_v37, %v2188_v42  ;;  %v2192_v3 = vmul.f32 %v2184_v50, %v2173_v56  ;;  %v13487_v58 = vpop.f32.mrb[22].mxu1  ;;  %v2175_v46 = vpop.f32.mrb[29].mxu0 }
0x1157   :  { %v2227_v15 = vadd.f32 %v2226_v55, %v2225_v45  ;;  %v2213_v5 = vadd.f32 %v2212_v53, %v2189_v48  ;;  %v16078_v6 = vadd.f32 %v13487_v58, %v11968_v26  ;;  %v2193_v8 = vmul.f32 %v2185_v27, %v2175_v46  ;;  %v2723_v1 = vpop.f32.mrb[23].mxu1  ;;  %v11960_v45 = vld [vmem:[%s18278_s30 + $0x3] ss:$0 sm:$0xff] }
0x1158   :  { %v2222_v49 = vrot.slane %v2221_v61, 1  ;;  %v2208_v11 = vrot.slane %v2207_v2, 2  ;;  %v2230_v12 = vrot.slane %v2192_v3, 4  ;;  %v2724_v18 = vadd.f32 %v11968_v26, %v2723_v1 }
0x1159   :  { %v2228_v20 = vrot.slane %v2227_v15, 1  ;;  %v2214_v19 = vrot.slane %v2213_v5, 2  ;;  %v2236_v21 = vrot.slane %v2193_v8, 4  ;;  %v13465_v60 = vpop.f32.mrb[30].mxu0  ;;  %v2205_v22 = vadd.f32 %v2204_v47, %v2203_v44 }
0x115a   :  { %v2223_v23 = vadd.f32 %v2222_v49, %v2221_v61  ;;  %v2209_v17 = vadd.f32 %v2208_v11, %v2207_v2  ;;  %v2231_v57 = vadd.f32 %v2230_v12, %v2192_v3  ;;  %v16083_v24 = vadd.f32 %v13465_v60, %v11952_v10  ;;  %13522 = vmatpush3.xpose.msk.msra.mxu1 %vm766_vm6, %v2724_v18  ;;  %v2547_v25 = vpop.f32.mrb[31].mxu0  ;;  %v11976_v61 = vld [vmem:[%s18279_s6 + $0x3] ss:$0 sm:$0xff] }
0x115b   :  { %v2215_v28 = vadd.f32 %v2214_v19, %v2213_v5  ;;  %v2237_v29 = vadd.f32 %v2236_v21, %v2193_v8  ;;  %v2548_v30 = vadd.f32 %v11952_v10, %v2547_v25  ;;  %13526 = vmatprep.subr.mxu1 %v18225_v16  ;;  %v2229_v13 = vadd.f32 %v2228_v20, %v2227_v15  ;;  %v11992_v5 = vld [vmem:[%s18280_s4 + $0x3] ss:$0 sm:$0xff] }
0x115c   :  { %v2232_v7 = vrot.slane %v2231_v57, 2  ;;  %v16091_v32 = vsel %vm2242_vm12, %v2199_v59, %v2223_v23  ;;  %v2210_v38 = vrot.slane %v2209_v17, 1  ;;  %v11945_v49 = vld [vmem:[%s18281_s26 + $0x2] sm:$0x3] }
0x115d   :  { %v2238_v33 = vrot.slane %v2237_v29, 2  ;;  %13524 = vmatmul.mubr.msk.f32.vlgmr.msra.gmra.mrb[26].mxu1 %vm766_vm6, %v2548_v30  ;;  %v16095_v34 = vsel %vm2242_vm12, %v2205_v22, %v2229_v13  ;;  %v2216_v41 = vrot.slane %v2215_v28, 1  ;;  %vm2420_vm13 = vcmp.ne.s32.totalorder %v11945_v49, 0 }
0x115e   :  { %v2233_v39 = vadd.f32 %v2232_v7, %v2231_v57  ;;  %v13509_v40 = vpop.f32.mrb[24].mxu1  ;;  %13528 = vmatprep.mubr.msk.f32.mxu1 %vm15313_vm5, %v18225_v16  ;;  %v2211_v37 = vadd.f32 %v2210_v38, %v2209_v17  ;;  %v16132_v11 = vsel %vm2420_vm13, 0.0, %v18221_v63 }
0x115f   :  { %v2239_v42 = vadd.f32 %v2238_v33, %v2237_v29  ;;  %v16099_v43 = vadd.f32 %v13509_v40, %v11984_v31  ;;  %v2899_v44 = vpop.f32.mrb[25].mxu1  ;;  %v2217_v55 = vadd.f32 %v2216_v41, %v2215_v28  ;;  %v3076_v12 = vrot.slane %v16132_v11, %v15541_v62 }
0x1160   :  { %v2234_v48 = vrot.slane %v2233_v39, 1  ;;  %v2900_v50 = vadd.f32 %v11984_v31, %v2899_v44 }
0x1161   :  { %v2240_v51 = vrot.slane %v2239_v42, 1  ;;  %v13476_v52 = vpop.f32.mrb[32].mxu0 }
0x1162   :  { %v2235_v26 = vadd.f32 %v2234_v48, %v2233_v39  ;;  %v16104_v27 = vadd.f32 %v13476_v52, %v11960_v45  ;;  %13527 = vmatpush3.msra.mxu1 %v2900_v50  ;;  %v2635_v47 = vpop.f32.mrb[33].mxu0  ;;  %v11998_v50 = vld [vmem:[%s18191_s11 + $0x20] sm:$0xff] }
0x1163   :  { %13536 = vmatprep.subr.mxu1 %v18225_v16  ;;  %v2241_v53 = vadd.f32 %v2240_v51, %v2239_v42  ;;  %v2636_v15 = vadd.f32 %v11960_v45, %v2635_v47  ;;  %v11999_v51 = vld [vmem:[%s18191_s11 + $0x28] sm:$0xff]  ;;  %v12003_v47 = vld [vmem:[%s18191_s11 + $0x30] sm:$0xff] }
0x1164   :  { %v16108_v56 = vsel %vm2242_vm12, %v2211_v37, %v2235_v26  ;;  %v16150_v37 = vpack.c.bf16 %v11999_v51, %v11998_v50 }
0x1165   :  { %18284 = vst [vmem:[#allocation9_spill] sm:$0xff] %v16108_v56  ;;  %v16111_v59 = vsel %vm2242_vm12, %v2217_v55, %v2241_v53  ;;  %v12004_v55 = vld [vmem:[%s18191_s11 + $0x38] sm:$0xff] }
0x1166   :  { %v14373_v53 = vpack.c.bf16 %v12004_v55, %v12003_v47 }
0x1169   :  { %v13498_v2 = vpop.f32.mrb[34].mxu0 }
0x116a   :  { %v16116_v3 = vadd.f32 %v13498_v2, %v11976_v61  ;;  %v2811_v58 = vpop.f32.mrb[35].mxu0 }
0x116b   :  { %v2812_v46 = vadd.f32 %v11976_v61, %v2811_v58 }
0x116d   :  { %13532 = vmatpush3.xpose.msk.msra.mxu0 %vm766_vm6, %v2812_v46 }
0x116e   :  { %14372 = vmatprep.subr.bf16.mxu0 %v18223_v35 }
0x1170   :  { %13534 = vmatmul.mubr.msk.f32.vlgmr.msra.gmra.mrb[38].mxu0 %vm766_vm6, %v2636_v15 }
0x1171   :  { %v13520_v8 = vpop.f32.mrb[36].mxu0  ;;  %13545 = vmatprep.mubr.msk.f32.mxu0 %vm15313_vm5, %v18225_v16  ;;  %14374 = vmatpush3.bf16.msra.mxu0 %v14373_v53 }
0x1172   :  { %v16126_v1 = vadd.f32 %v13520_v8, %v11992_v5  ;;  %v2987_v10 = vpop.f32.mrb[37].mxu0  ;;  %13555 = vmatprep.subr.mxu0 %v18225_v16 }
0x1173   :  { %v2988_v45 = vadd.f32 %v11992_v5, %v2987_v10 }
0x1230   :  { %v3068_v18 = vpop.f32.mrb[26].mxu1 }
0x1231   :  { %v3072_v20 = vmul.f32 0.25, %v3068_v18  ;;  %v13525_v19 = vpop.f32.mrb[27].mxu1 }
0x1233   :  { %v3077_v21 = vadd.f32 %v3076_v12, %v3072_v20 }
0x1235   :  { %v3078_v60 = vsel %vm849_vm8, %v3077_v21, -inf }
0x1236   :  { %3079 = vmax.xlane.f32.xlu1 %v3078_v60 }
0x1243   :  { %v3237_v22 = vpop.f32.mrb[38].mxu0 }
0x1244   :  { %v3241_v23 = vmul.f32 0.25, %v3237_v22  ;;  %v13535_v17 = vpop.f32.mrb[39].mxu0 }
0x1246   :  { %v3242_v57 = vadd.f32 %v3241_v23, %v3076_v12 }
0x1248   :  { %v3243_v25 = vsel %vm849_vm8, %v3242_v57, -inf }
0x1249   :  { %3244 = vmax.xlane.f32.xlu0 %v3243_v25 }
0x12c3   :  { %v3080_v28 = vpop.xlane.xlu1 %3079 }
0x12c4   :  { %v3081_v29 = vsub.f32 %v3077_v21, %v3080_v28  ;;  %v12016_v28 = vld [vmem:[%s18192_s12 + $0x1] ss:$0 sm:$0xff] }
0x12c6   :  { %v3082_v30 = vmul.f32 1.442695, %v3081_v29 }
0x12c8   :  { %15144 = vpow2.f32 %v3082_v30 }
0x12d2   :  { %v15145_v13 = vpop.eup %15144 }
0x12d3   :  { %v3084_v7 = vsel %vm849_vm8, %v15145_v13, 0.0 }
0x12d4   :  { %3085 = vadd.xlane.f32.xlu1 %v3084_v7 }
0x12d6   :  { %v3245_v31 = vpop.xlane.xlu0 %3244 }
0x12d7   :  { %v3246_v33 = vsub.f32 %v3242_v57, %v3245_v31 }
0x12d9   :  { %v3247_v38 = vmul.f32 1.442695, %v3246_v33 }
0x12db   :  { %15146 = vpow2.f32 %v3247_v38 }
0x12e5   :  { %v15147_v39 = vpop.eup %15146 }
0x12e6   :  { %v3249_v40 = vsel %vm849_vm8, %v15147_v39, 0.0 }
0x12e7   :  { %3250 = vadd.xlane.f32.xlu0 %v3249_v40 }
0x1361   :  { %v3086_v41 = vpop.xlane.xlu1 %3085 }
0x1362   :  { %15148 = vrcp.f32 %v3086_v41 }
0x136c   :  { %v15149_v42 = vpop.eup %15148 }
0x136d   :  { %v3088_v44 = vmul.f32 %v15149_v42, %v15145_v13 }
0x136f   :  { %13529 = vmatmul.mubr.msk.f32.vlgmr.msra.gmra.mrb[28].mxu1 %vm849_vm8, %v3088_v44 }
0x1370   :  { %13537 = vmatpush3.msra.mxu1 %v2988_v45  ;;  %13538 = vmatprep.mubr.msk.f32.mxu1 %vm15313_vm5, %v18225_v16 }
0x1371   :  { %14375 = vmatprep.subr.bf16.mxu1 %v18223_v35 }
0x1374   :  { %v3251_v48 = vpop.xlane.xlu0 %3250 }
0x1375   :  { %15150 = vrcp.f32 %v3251_v48 }
0x137f   :  { %v15151_v52 = vpop.eup %15150 }
0x1380   :  { %v3253_v26 = vmul.f32 %v15151_v52, %v15147_v39 }
0x1382   :  { %13539 = vmatmul.mubr.msk.f32.vlgmr.msra.gmra.mrb[30].mxu1 %vm849_vm8, %v3253_v26 }
0x1383   :  { %14377 = vmatpush3.bf16.msra.mxu1 %v16150_v37  ;;  %13552 = vmatprep.mubr.msk.f32.mxu1 %vm15313_vm5, %v18225_v16 }
0x1384   :  { %13560 = vmatprep.subr.mxu1 %v18225_v16 }
0x1442   :  { %v3158_v61 = vpop.f32.mrb[28].mxu1 }
0x1443   :  { %v13530_v2 = vpop.f32.mrb[29].mxu1  ;;  %13553 = vmatmul.mubr.msk.f32.vlgmr.msra.gmra.mrb[32].mxu1 %vm766_vm6, %v3158_v61 }
0x1444   :  { %13561 = vmatpush3.msra.mxu1 %v16099_v43  ;;  %13562 = vmatprep.mubr.msk.f32.mxu1 %vm15313_vm5, %v18225_v16 }
0x1445   :  { %13570 = vmatprep.subr.mxu1 %v18225_v16 }
0x1455   :  { %v3323_v58 = vpop.f32.mrb[30].mxu1 }
0x1456   :  { %v13540_v46 = vpop.f32.mrb[31].mxu1  ;;  %13546 = vmatmul.mubr.msk.f32.vlgmr.msra.gmra.mrb[40].mxu0 %vm766_vm6, %v3323_v58 }
0x1457   :  { %13556 = vmatpush3.xpose.msk.msra.mxu0 %vm766_vm6, %v16078_v6  ;;  %13557 = vmatprep.mubr.msk.f32.mxu0 %vm15313_vm5, %v18225_v16 }
0x1458   :  { %13565 = vmatprep.subr.mxu0 %v18225_v16 }
0x145a   :  { %13558 = vmatmul.mubr.msk.f32.vlgmr.msra.gmra.mrb[42].mxu0 %vm766_vm6, %v16083_v24 }
0x145b   :  { %13566 = vmatpush3.xpose.msk.msra.mxu0 %vm766_vm6, %v16116_v3  ;;  %13567 = vmatprep.mubr.msk.f32.mxu0 %vm15313_vm5, %v18225_v16  ;;  %v3556_v3 = vrot.slane %v16132_v11, %v15547_v0 }
0x145c   :  { %14378 = vmatprep.subr.bf16.mxu0 %v18223_v35 }
0x145e   :  { %13568 = vmatmul.mubr.msk.f32.vlgmr.msra.gmra.mrb[44].mxu0 %vm766_vm6, %v16104_v27 }
0x145f   :  { %14380 = vmatpush3.bf16.msra.mxu0 %v14373_v53  ;;  %13579 = vmatprep.mubr.msk.f32.mxu0 %vm15313_vm5, %v18225_v16 }
0x1516   :  { %v3472_v6 = vpop.f32.mrb[32].mxu1 }
0x1517   :  { %v13554_v43 = vpop.f32.mrb[33].mxu1 }
0x1529   :  { %v3399_v15 = vpop.f32.mrb[40].mxu0 }
0x152a   :  { %v3473_v5 = vadd.f32 %v3472_v6, %v3399_v15  ;;  %v13547_v24 = vpop.f32.mrb[41].mxu0 }
0x152c   :  { %v3958_v29 = vadd.f32 %v12016_v28, %v3473_v5 }
0x152d   :  { %v3548_v8 = vpop.f32.mrb[42].mxu0 }
0x152e   :  { %v3552_v10 = vmul.f32 0.25, %v3548_v8  ;;  %v13559_v49 = vpop.f32.mrb[43].mxu0  ;;  %v3962_v7 = vadd.f32 %v3958_v29, %v15985_v54  ;;  %v12027_v29 = vld [vmem:[%s18195_s15 + $0x48] sm:$0xff] }
0x1530   :  { %v3557_v12 = vadd.f32 %v3556_v3, %v3552_v10  ;;  %v3964_v38 = vsel %vm198_vm4, %v3962_v7, 0.0 }
0x1531   :  { %v3714_v18 = vpop.f32.mrb[44].mxu0 }
0x1532   :  { %v3718_v20 = vmul.f32 0.25, %v3714_v18  ;;  %v13569_v19 = vpop.f32.mrb[45].mxu0  ;;  %v3558_v27 = vsel %vm849_vm8, %v3557_v12, -inf }
0x1533   :  { %3559 = vmax.xlane.f32.xlu1 %v3558_v27 }
0x1534   :  { %v3719_v21 = vadd.f32 %v3718_v20, %v3556_v3 }
0x1536   :  { %v3720_v60 = vsel %vm849_vm8, %v3719_v21, -inf }
0x1537   :  { %3721 = vmax.xlane.f32.xlu0 %v3720_v60 }
0x15c0   :  { %v3560_v22 = vpop.xlane.xlu1 %3559 }
0x15c1   :  { %v3561_v23 = vsub.f32 %v3557_v12, %v3560_v22 }
0x15c3   :  { %v3562_v17 = vmul.f32 1.442695, %v3561_v23  ;;  %v12018_v23 = vld [vmem:[%s18193_s13 + $0x20] sm:$0xff] }
0x15c4   :  { %v3722_v57 = vpop.xlane.xlu0 %3721 }
0x15c5   :  { %15152 = vpow2.f32 %v3562_v17  ;;  %v3723_v11 = vsub.f32 %v3719_v21, %v3722_v57  ;;  %v12019_v17 = vld [vmem:[%s18193_s13 + $0x28] sm:$0xff] }
0x15c6   :  { %v14384_v57 = vpack.c.bf16 %v12019_v17, %v12018_v23  ;;  %v12058_v23 = vld [vmem:[%s18269_s7 + $0x20] sm:$0xff]  ;;  %v12059_v17 = vld [vmem:[%s18269_s7 + $0x28] sm:$0xff] }
0x15c7   :  { %v3724_v25 = vmul.f32 1.442695, %v3723_v11  ;;  %v12021_v11 = vld [vmem:[%s18193_s13 + $0x38] sm:$0xff] }
0x15c8   :  { %14385 = vmatprep.subr.bf16.mxu0 %v14384_v57 }
0x15c9   :  { %15154 = vpow2.f32 %v3724_v25 }
0x15cf   :  { %v15153_v30 = vpop.eup %15152 }
0x15d0   :  { %v3564_v13 = vsel %vm849_vm8, %v15153_v30, 0.0 }
0x15d1   :  { %3565 = vadd.xlane.f32.xlu1 %v3564_v13 }
0x15d3   :  { %v15155_v31 = vpop.eup %15154 }
0x15d4   :  { %v3726_v33 = vsel %vm849_vm8, %v15155_v31, 0.0 }
0x15d5   :  { %3727 = vadd.xlane.f32.xlu0 %v3726_v33  ;;  %3965 = vadd.xlane.f32.xlu1 %v3964_v38  ;;  %v12030_v33 = vld [vmem:[%s18195_s15 + $0x60] sm:$0xff]  ;;  %v12031_v38 = vld [vmem:[%s18195_s15 + $0x68] sm:$0xff] }
0x165e   :  { %v3566_v39 = vpop.xlane.xlu1 %3565 }
0x165f   :  { %15156 = vrcp.f32 %v3566_v39  ;;  %v14400_v39 = vpack.c.bf16 %v12031_v38, %v12030_v33  ;;  %v12050_v33 = vld [vmem:[%s18199_s19 + $0xe0] sm:$0xff] }
0x1662   :  { %v3728_v40 = vpop.xlane.xlu0 %3727  ;;  %v3966_v41 = vpop.xlane.xlu1 %3965 }
0x1663   :  { %15158 = vrcp.f32 %v3728_v40  ;;  %v3970_v42 = vmul.f32 0.03125, %v3966_v41 }
0x1665   :  { %v3972_v44 = vsub.f32 %v3962_v7, %v3970_v42  ;;  %v12029_v7 = vld [vmem:[%s18195_s15 + $0x58] sm:$0xff] }
0x1667   :  { %v3974_v45 = vmul.f32 %v3972_v44, %v3972_v44 }
0x1669   :  { %v15157_v48 = vpop.eup %15156  ;;  %v3976_v50 = vsel %vm198_vm4, %v3974_v45, 0.0 }
0x166a   :  { %v3568_v54 = vmul.f32 %v15157_v48, %v15153_v30  ;;  %3977 = vadd.xlane.f32.xlu1 %v3976_v50  ;;  %v12028_v30 = vld [vmem:[%s18195_s15 + $0x50] sm:$0xff] }
0x166c   :  { %13563 = vmatmul.mubr.msk.f32.vlgmr.msra.gmra.mrb[34].mxu1 %vm849_vm8, %v3568_v54  ;;  %v12032_v54 = vld [vmem:[%s18195_s15 + $0x70] sm:$0xff] }
0x166d   :  { %v15159_v51 = vpop.eup %15158  ;;  %13571 = vmatpush3.msra.mxu1 %v16126_v1  ;;  %13572 = vmatprep.mubr.msk.f32.mxu1 %vm15313_vm5, %v18225_v16  ;;  %v16210_v1 = vld [vmem:[%s18197_s17 + $0x4] sm:$0xf] }
0x166e   :  { %v3730_v52 = vmul.f32 %v15159_v51, %v15155_v31  ;;  %14381 = vmatprep.subr.bf16.mxu1 %v18223_v35  ;;  %v3993_v2 = vrot.slane %v16210_v1, %v15541_v62  ;;  %v14396_v31 = vpack.c.bf16 %v12029_v7, %v12028_v30  ;;  %v12033_v51 = vld [vmem:[%s18195_s15 + $0x78] sm:$0xff]  ;;  %v12047_v30 = vld [vmem:[%s18199_s19 + $0xc8] sm:$0xff]  ;;  %v12046_v7 = vld [vmem:[%s18199_s19 + $0xc0] sm:$0xff] }
0x166f   :  { %v14414_v38 = vpack.c.bf16 %v12050_v33, %v12046_v7  ;;  %v2280_v33 = vld [vmem:[%s18200_s20 + $0x108] sm:$0xff] }
0x1670   :  { %13573 = vmatmul.mubr.msk.f32.vlgmr.msra.gmra.mrb[36].mxu1 %vm849_vm8, %v3730_v52  ;;  %v14404_v52 = vpack.c.bf16 %v12033_v51, %v12032_v54  ;;  %v2265_v54 = vld [vmem:[%s18200_s20 + $0x90] sm:$0xff]  ;;  %v2266_v51 = vld [vmem:[%s18200_s20 + $0x98] sm:$0xff] }
0x1671   :  { %14383 = vmatpush3.bf16.msra.mxu1 %v16150_v37  ;;  %13586 = vmatprep.mubr.msk.f32.mxu1 %vm15313_vm5, %v18225_v16  ;;  %v3999_v37 = vrot.slane %v16210_v1, %v15547_v0 }
0x16f7   :  { %v3978_v26 = vpop.xlane.xlu1 %3977 }
0x16f8   :  { %v3982_v47 = vmul.f32 0.03125, %v3978_v26  ;;  %v12023_v26 = vld [vmem:[%s18194_s14 + $0x1] ss:$0 sm:$0xff] }
0x16fa   :  { %v3984_v55 = vadd.f32 1e-05, %v3982_v47 }
0x16fc   :  { %15160 = vrsqrt.f32 %v3984_v55 }
0x1706   :  { %v15161_v53 = vpop.eup %15160 }
0x1707   :  { %v3988_v61 = vmul.f32 %v15161_v53, %v3972_v44 }
0x1709   :  { %v3994_v46 = vmul.f32 %v3993_v2, %v3988_v61 }
0x170b   :  { %v16217_v15 = vadd.f32 %v3999_v37, %v3994_v46  ;;  %v12035_v46 = vld [vmem:[%s18196_s16 + $0x1] ss:$0 sm:$0xff] }
0x173f   :  { %v3638_v58 = vpop.f32.mrb[34].mxu1 }
0x1740   :  { %v13564_v6 = vpop.f32.mrb[35].mxu1  ;;  %13587 = vmatmul.mubr.msk.f32.vlgmr.msra.gmra.mrb[38].mxu1 %vm766_vm6, %v3638_v58 }
0x1743   :  { %v3800_v43 = vpop.f32.mrb[36].mxu1 }
0x1744   :  { %v13574_v5 = vpop.f32.mrb[37].mxu1  ;;  %13580 = vmatmul.mubr.msk.f32.vlgmr.msra.gmra.mrb[46].mxu0 %vm766_vm6, %v3800_v43 }
0x1745   :  { %13597 = vmatprep.mubr.msk.f32.mxu0 %vm198_vm4, %v16217_v15  ;;  %14387 = vmatpush3.bf16.msra.mxu0 %v14384_v57  ;;  %v12039_v57 = vld [vmem:[%s18199_s19 + $0x88] sm:$0xff] }
0x1813   :  { %v3946_v24 = vpop.f32.mrb[38].mxu1 }
0x1814   :  { %v13588_v3 = vpop.f32.mrb[39].mxu1 }
0x1817   :  { %v3873_v8 = vpop.f32.mrb[46].mxu0 }
0x1818   :  { %v3947_v10 = vadd.f32 %v3946_v24, %v3873_v8  ;;  %v13581_v49 = vpop.f32.mrb[47].mxu0 }
0x181a   :  { %v3959_v12 = vadd.f32 %v12016_v28, %v3947_v10  ;;  %v12026_v28 = vld [vmem:[%s18195_s15 + $0x40] sm:$0xff] }
0x181b   :  { %v14392_v13 = vpack.c.bf16 %v12027_v29, %v12026_v28  ;;  %v12042_v28 = vld [vmem:[%s18199_s19 + $0xa0] sm:$0xff] }
0x181c   :  { %v3963_v18 = vadd.f32 %v3959_v12, %v15987_v36  ;;  %v12020_v36 = vld [vmem:[%s18193_s13 + $0x30] sm:$0xff] }
0x181d   :  { %v14388_v25 = vpack.c.bf16 %v12021_v11, %v12020_v36  ;;  %14393 = vmatprep.subr.bf16.mxu1 %v14392_v13  ;;  %v12043_v36 = vld [vmem:[%s18199_s19 + $0xa8] sm:$0xff] }
0x181e   :  { %v3967_v20 = vsel %vm198_vm4, %v3963_v18, 0.0  ;;  %14395 = vmatpush3.bf16.msra.mxu1 %v14392_v13  ;;  %v14408_v11 = vpack.c.bf16 %v12043_v36, %v12039_v57  ;;  %v12051_v13 = vld [vmem:[%s18199_s19 + $0xe8] sm:$0xff] }
0x181f   :  { %3968 = vadd.xlane.f32.xlu0 %v3967_v20  ;;  %14389 = vmatprep.subr.bf16.mxu0 %v14388_v25 }
0x1820   :  { %14391 = vmatpush3.bf16.msra.mxu0 %v14388_v25  ;;  %14397 = vmatprep.subr.bf16.mxu1 %v14396_v31  ;;  %v12038_v25 = vld [vmem:[%s18199_s19 + $0x80] sm:$0xff] }
0x1821   :  { %v14410_v29 = vpack.c.bf16 %v12042_v28, %v12038_v25  ;;  %14409 = vmatprep.subr.bf16.mxu0 %v14408_v11  ;;  %v12048_v25 = vld [vmem:[%s18199_s19 + $0xd0] sm:$0xff]  ;;  %v2295_v28 = vld [vmem:[%s18200_s20 + $0x180] sm:$0xff] }
0x1822   :  { %14399 = vmatpush3.bf16.msra.mxu1 %v14396_v31  ;;  %v14412_v31 = vpack.c.bf16 %v12051_v13, %v12047_v30 }
0x1823   :  { %14401 = vmatprep.subr.bf16.mxu1 %v14400_v39 }
0x1826   :  { %14403 = vmatpush3.bf16.msra.mxu1 %v14400_v39  ;;  %v12041_v39 = vld [vmem:[%s18199_s19 + $0x98] sm:$0xff] }
0x1827   :  { %14405 = vmatprep.subr.bf16.mxu1 %v14404_v52 }
0x182a   :  { %14407 = vmatpush3.bf16.msra.mxu1 %v14404_v52 }
0x18ac   :  { %v3969_v19 = vpop.xlane.xlu0 %3968 }
0x18ad   :  { %v3971_v27 = vmul.f32 0.03125, %v3969_v19 }
0x18af   :  { %v3973_v21 = vsub.f32 %v3963_v18, %v3971_v27 }
0x18b1   :  { %v3975_v60 = vmul.f32 %v3973_v21, %v3973_v21 }
0x18b3   :  { %v3979_v22 = vsel %vm198_vm4, %v3975_v60, 0.0 }
0x18b4   :  { %3980 = vadd.xlane.f32.xlu0 %v3979_v22 }
0x1941   :  { %v3981_v40 = vpop.xlane.xlu0 %3980 }
0x1942   :  { %v3983_v41 = vmul.f32 0.03125, %v3981_v40  ;;  %v12045_v40 = vld [vmem:[%s18199_s19 + $0xb8] sm:$0xff] }
0x1944   :  { %v3985_v42 = vadd.f32 1e-05, %v3983_v41  ;;  %v14416_v41 = vpack.c.bf16 %v12045_v40, %v12041_v39  ;;  %v2269_v39 = vld [vmem:[%s18200_s20 + $0xb0] sm:$0xff]  ;;  %v2270_v40 = vld [vmem:[%s18200_s20 + $0xb8] sm:$0xff] }
0x1946   :  { %15162 = vrsqrt.f32 %v3985_v42  ;;  %v2263_v42 = vld [vmem:[%s18200_s20 + $0x80] sm:$0xff] }
0x1950   :  { %v15163_v44 = vpop.eup %15162 }
0x1951   :  { %v3989_v45 = vmul.f32 %v15163_v44, %v3973_v21  ;;  %v2264_v44 = vld [vmem:[%s18200_s20 + $0x88] sm:$0xff] }
0x1953   :  { %v3995_v48 = vmul.f32 %v3993_v2, %v3989_v45  ;;  %v2247_v45 = vld [vmem:[%s18200_s20] sm:$0xff] }
0x1955   :  { %v4001_v50 = vadd.f32 %v3999_v37, %v3995_v48  ;;  %v16329_v48 = vpack.c.bf16 %v2264_v44, %v2263_v42  ;;  %v16432_v42 = vpack.c.bf16 %v2270_v40, %v2269_v39  ;;  %v2298_v44 = vld [vmem:[%s18200_s20 + $0x198] sm:$0xff]  ;;  %v2287_v40 = vld [vmem:[%s18200_s20 + $0x140] sm:$0xff] }
0x1957   :  { %13598 = vmatmul.mubr.msk.f32.vlgmr.msra.gmra.mrb[48].mxu0 %vm198_vm4, %v4001_v50  ;;  %18285 = vst [vmem:[#allocation10_spill] sm:$0xff] %v16329_v48  ;;  %14425 = vmatprep.subr.bf16.mxu1 %v16329_v48 }
0x1958   :  { %4323 = vmatprep.mubr.f32.mxu0 %v18225_v16  ;;  %14411 = vmatpush1.bf16.msra.mxu0 %v14410_v29  ;;  %v2296_v29 = vld [vmem:[%s18200_s20 + $0x188] sm:$0xff] }
0x1959   :  { %14413 = vmatprep.subr.bf16.mxu0 %v14412_v31  ;;  %v16406_v7 = vpack.c.bf16 %v2296_v29, %v2295_v28  ;;  %v2279_v31 = vld [vmem:[%s18200_s20 + $0x100] sm:$0xff] }
0x195a   :  { %v2303_v28 = vld [vmem:[%s18200_s20 + $0x1c0] sm:$0xff] }
0x195b   :  { %18286 = vst [vmem:[#allocation11_spill] sm:$0xff] %v16406_v7 }
0x195c   :  { %14415 = vmatpush1.bf16.msra.mxu0 %v14414_v38  ;;  %v16416_v38 = vpack.c.bf16 %v2280_v33, %v2279_v31  ;;  %v2260_v31 = vld [vmem:[%s18200_s20 + $0x68] sm:$0xff] }
0x195d   :  { %14417 = vmatprep.subr.bf16.mxu0 %v14416_v41  ;;  %v2297_v41 = vld [vmem:[%s18200_s20 + $0x190] sm:$0xff] }
0x1a2a   :  { %v13599_v47 = vpop.f32.mrb[48].mxu0 }
0x1a2b   :  { %v4093_v55 = vadd.f32 %v13599_v47, %v12023_v26  ;;  %v4087_v53 = vpop.f32.mrb[49].mxu0  ;;  %v2249_v47 = vld [vmem:[%s18200_s20 + $0x10] sm:$0xff] }
0x1a2c   :  { %v4088_v61 = vadd.f32 %v12023_v26, %v4087_v53  ;;  %v16342_v26 = vpack.c.bf16 %v2266_v51, %v2265_v54  ;;  %v2267_v53 = vld [vmem:[%s18200_s20 + $0xa0] sm:$0xff]  ;;  %v16443_v54 = vpack.c.bf16 %v2298_v44, %v2297_v41  ;;  %v2288_v41 = vld [vmem:[%s18200_s20 + $0x148] sm:$0xff] }
0x1a2d   :  { %v4097_v58 = vmax.f32 %v4093_v55, 0.0  ;;  %v2250_v55 = vld [vmem:[%s18200_s20 + $0x18] sm:$0xff]  ;;  %v16562_v44 = vpack.c.bf16 %v2288_v41, %v2287_v40 }
0x1a2e   :  { %v4096_v2 = vmax.f32 %v4088_v61, 0.0  ;;  %v2268_v61 = vld [vmem:[%s18200_s20 + $0xa8] sm:$0xff] }
0x1a30   :  { %13616 = vmatprep.mubr.msk.f32.mxu1 %vm1880_vm10, %v4096_v2  ;;  %v16358_v2 = vpack.c.bf16 %v2250_v55, %v2249_v47  ;;  %v2281_v47 = vld [vmem:[%s18200_s20 + $0x110] sm:$0xff]  ;;  %v2282_v55 = vld [vmem:[%s18200_s20 + $0x118] sm:$0xff] }
0x1a31   :  { %13617 = vmatmul.mubr.msk.f32.vlgmr.msra.gmra.mrb[40].mxu1 %vm1880_vm10, %v4097_v58  ;;  %v16361_v58 = vpack.c.bf16 %v2268_v61, %v2267_v53  ;;  %v16454_v53 = vpack.c.bf16 %v2282_v55, %v2281_v47  ;;  %v2271_v61 = vld [vmem:[%s18200_s20 + $0xc0] sm:$0xff]  ;;  %v2305_v47 = vld [vmem:[%s18200_s20 + $0x1d0] sm:$0xff] }
0x1b04   :  { %v13618_v37 = vpop.f32.mrb[40].mxu1 }
0x1b05   :  { %v4193_v6 = vadd.f32 %v13618_v37, %v12035_v46  ;;  %v4187_v43 = vpop.f32.mrb[41].mxu1  ;;  %v2252_v37 = vld [vmem:[%s18200_s20 + $0x28] sm:$0xff] }
0x1b06   :  { %v4188_v5 = vadd.f32 %v12035_v46, %v4187_v43  ;;  %v2251_v46 = vld [vmem:[%s18200_s20 + $0x20] sm:$0xff] }
0x1b07   :  { %v4197_v24 = vadd.f32 %v4193_v6, %v4001_v50  ;;  %v2248_v50 = vld [vmem:[%s18200_s20 + $0x8] sm:$0xff]  ;;  %v16370_v6 = vpack.c.bf16 %v2252_v37, %v2251_v46  ;;  %v2299_v37 = vld [vmem:[%s18200_s20 + $0x1a0] sm:$0xff] }
0x1b08   :  { %v4196_v3 = vadd.f32 %v4188_v5, %v16217_v15  ;;  %v16340_v52 = vpack.c.bf16 %v2248_v50, %v2247_v45  ;;  %v2253_v45 = vld [vmem:[%s18200_s20 + $0x30] sm:$0xff]  ;;  %v2254_v50 = vld [vmem:[%s18200_s20 + $0x38] sm:$0xff]  ;;  %v2272_v46 = vld [vmem:[%s18200_s20 + $0xc8] sm:$0xff] }
0x1b09   :  { %v4201_v8 = vsel %vm198_vm4, %v4197_v24, 0.0  ;;  %v16445_v51 = vpack.c.bf16 %v2254_v50, %v2253_v45  ;;  %v2277_v45 = vld [vmem:[%s18200_s20 + $0xf0] sm:$0xff]  ;;  %v2278_v50 = vld [vmem:[%s18200_s20 + $0xf8] sm:$0xff] }
0x1b0a   :  { %4202 = vadd.xlane.f32.xlu0 %v4201_v8  ;;  %v4198_v10 = vsel %vm198_vm4, %v4196_v3, 0.0  ;;  %14427 = vmatpush3.bf16.msra.mxu1 %v16340_v52  ;;  %v16576_v55 = vpack.c.bf16 %v2278_v50, %v2277_v45  ;;  %v15253_v45 = vld [vmem:[%s18198_s18 + $0x8] sm:$0xff] }
0x1b0b   :  { %4199 = vadd.xlane.f32.xlu1 %v4198_v10  ;;  %14429 = vmatprep.subr.bf16.mxu1 %v16342_v26 }
0x1b0e   :  { %14431 = vmatpush3.bf16.msra.mxu1 %v16358_v2 }
0x1b0f   :  { %14433 = vmatprep.subr.bf16.mxu1 %v16361_v58 }
0x1b12   :  { %14435 = vmatpush3.bf16.msra.mxu1 %v16370_v6 }
0x1b13   :  { %14437 = vmatprep.subr.bf16.mxu1 %v16432_v42 }
0x1b16   :  { %14439 = vmatpush3.bf16.msra.mxu1 %v16445_v51 }
0x1b97   :  { %v4203_v49 = vpop.xlane.xlu0 %4202 }
0x1b98   :  { %v4205_v12 = vmul.f32 0.03125, %v4203_v49  ;;  %v4200_v18 = vpop.xlane.xlu1 %4199 }
0x1b99   :  { %v4204_v20 = vmul.f32 0.03125, %v4200_v18 }
0x1b9a   :  { %v16274_v19 = vsub.f32 %v4197_v24, %v4205_v12  ;;  %v4227_v12 = vrot.slane %v16210_v1, %v15919_v4 }
0x1b9b   :  { %v16276_v27 = vsub.f32 %v4196_v3, %v4204_v20 }
0x1b9c   :  { %v4209_v21 = vmul.f32 %v16274_v19, %v16274_v19 }
0x1b9d   :  { %v4208_v15 = vmul.f32 %v16276_v27, %v16276_v27 }
0x1b9e   :  { %v4213_v60 = vsel %vm198_vm4, %v4209_v21, 0.0  ;;  %v4233_v21 = vrot.slane %v16210_v1, %v15922_v9 }
0x1b9f   :  { %4214 = vadd.xlane.f32.xlu0 %v4213_v60  ;;  %v4210_v22 = vsel %vm198_vm4, %v4208_v15, 0.0  ;;  %v12040_v15 = vld [vmem:[%s18199_s19 + $0x90] sm:$0xff] }
0x1ba0   :  { %4211 = vadd.xlane.f32.xlu1 %v4210_v22  ;;  %v12044_v60 = vld [vmem:[%s18199_s19 + $0xb0] sm:$0xff] }
0x1ba1   :  { %v14418_v1 = vpack.c.bf16 %v12044_v60, %v12040_v15  ;;  %v2301_v15 = vld [vmem:[%s18200_s20 + $0x1b0] sm:$0xff] }
0x1bb1   :  { %4757 = vperm.xlu1 %15111, %v12058_v23   ;;  %v12049_v23 = vld [vmem:[%s18199_s19 + $0xd8] sm:$0xff] }
0x1bb5   :  { %4760 = vperm.xlu0 %15110, %v12059_v17  }
0x1c2c   :  { %v4215_v43 = vpop.xlane.xlu0 %4214 }
0x1c2d   :  { %v4217_v5 = vmul.f32 0.03125, %v4215_v43  ;;  %v4212_v24 = vpop.xlane.xlu1 %4211  ;;  %v16468_v43 = vpack.c.bf16 %v2272_v46, %v2271_v61  ;;  %v2306_v61 = vld [vmem:[%s18200_s20 + $0x1d8] sm:$0xff]  ;;  %v2261_v46 = vld [vmem:[%s18200_s20 + $0x70] sm:$0xff] }
0x1c2e   :  { %v4216_v3 = vmul.f32 0.03125, %v4212_v24  ;;  %v2255_v24 = vld [vmem:[%s18200_s20 + $0x40] sm:$0xff] }
0x1c2f   :  { %v4219_v8 = vadd.f32 1e-05, %v4217_v5  ;;  %v2300_v5 = vld [vmem:[%s18200_s20 + $0x1a8] sm:$0xff]  ;;  %14441 = vmatprep.subr.bf16.mxu1 %v16468_v43 }
0x1c30   :  { %v4218_v10 = vadd.f32 1e-05, %v4216_v3  ;;  %v2256_v3 = vld [vmem:[%s18200_s20 + $0x48] sm:$0xff] }
0x1c31   :  { %15164 = vrsqrt.f32 %v4219_v8  ;;  %v16479_v8 = vpack.c.bf16 %v2300_v5, %v2299_v37  ;;  %v2262_v37 = vld [vmem:[%s18200_s20 + $0x78] sm:$0xff]  ;;  %v16587_v5 = vpack.c.bf16 %v2306_v61, %v2305_v47 }
0x1c32   :  { %15166 = vrsqrt.f32 %v4218_v10  ;;  %v16481_v10 = vpack.c.bf16 %v2256_v3, %v2255_v24  ;;  %v16589_v24 = vpack.c.bf16 %v2262_v37, %v2261_v46  ;;  %v2289_v3 = vld [vmem:[%s18200_s20 + $0x150] sm:$0xff] }
0x1c33   :  { %18287 = vst [vmem:[#allocation12_spill] sm:$0xff] %v16587_v5 }
0x1c34   :  { %14443 = vmatpush3.bf16.msra.mxu1 %v16481_v10 }
0x1c3b   :  { %v15165_v49 = vpop.eup %15164 }
0x1c3c   :  { %v15167_v18 = vpop.eup %15166  ;;  %v4223_v22 = vmul.f32 %v15165_v49, %v16274_v19  ;;  %v12052_v19 = vld [vmem:[%s18199_s19 + $0xf0] sm:$0xff]  ;;  %v2283_v49 = vld [vmem:[%s18200_s20 + $0x120] sm:$0xff] }
0x1c3d   :  { %v4222_v20 = vmul.f32 %v15167_v18, %v16276_v27  ;;  %v12053_v27 = vld [vmem:[%s18199_s19 + $0xf8] sm:$0xff]  ;;  %v14422_v30 = vpack.c.bf16 %v12052_v19, %v12048_v25  ;;  %v2275_v25 = vld [vmem:[%s18200_s20 + $0xe0] sm:$0xff]  ;;  %v2276_v19 = vld [vmem:[%s18200_s20 + $0xe8] sm:$0xff] }
0x1c3e   :  { %v4229_v36 = vmul.f32 %v4227_v12, %v4223_v22  ;;  %v14420_v11 = vpack.c.bf16 %v12053_v27, %v12049_v23  ;;  %v2302_v22 = vld [vmem:[%s18200_s20 + $0x1b8] sm:$0xff]  ;;  %v2257_v23 = vld [vmem:[%s18200_s20 + $0x50] sm:$0xff]  ;;  %v16540_v29 = vpack.c.bf16 %v2276_v19, %v2275_v25 }
0x1c3f   :  { %v4228_v17 = vmul.f32 %v4227_v12, %v4222_v20  ;;  %v2284_v12 = vld [vmem:[%s18200_s20 + $0x128] sm:$0xff]  ;;  %v2273_v20 = vld [vmem:[%s18200_s20 + $0xd0] sm:$0xff]  ;;  %v2258_v27 = vld [vmem:[%s18200_s20 + $0x58] sm:$0xff] }
0x1c40   :  { %v4235_v13 = vadd.f32 %v4233_v21, %v4229_v36  ;;  %v16490_v18 = vpack.c.bf16 %v2284_v12, %v2283_v49  ;;  %v2286_v36 = vld [vmem:[%s18200_s20 + $0x138] sm:$0xff]  ;;  %v2293_v19 = vld [vmem:[%s18200_s20 + $0x170] sm:$0xff] }
0x1c41   :  { %v4234_v57 = vadd.f32 %v4233_v21, %v4228_v17  ;;  %v2274_v21 = vld [vmem:[%s18200_s20 + $0xd8] sm:$0xff]  ;;  %v16515_v17 = vpack.c.bf16 %v2302_v22, %v2301_v15  ;;  %v2291_v22 = vld [vmem:[%s18200_s20 + $0x160] sm:$0xff] }
0x1c42   :  { %v16504_v60 = vpack.c.bf16 %v2274_v21, %v2273_v20  ;;  %v2290_v49 = vld [vmem:[%s18200_s20 + $0x158] sm:$0xff]  ;;  %v2307_v20 = vld [vmem:[%s18200_s20 + $0x1e0] sm:$0xff]  ;;  %v2308_v21 = vld [vmem:[%s18200_s20 + $0x1e8] sm:$0xff] }
0x1c43   :  { %12054 = vmatmul.mubr.msk.f32.vlgmr.msra.gmra.mrb[50].mxu0 %vm198_vm4, %v4234_v57  ;;  %v16598_v12 = vpack.c.bf16 %v2290_v49, %v2289_v3  ;;  %v16609_v15 = vpack.c.bf16 %v2308_v21, %v2307_v20  ;;  %v15254_v3 = vld [vmem:[%s18198_s18 + $0x20] sm:$0xff] }
0x1c44   :  { %14419 = vmatpush1.bf16.msra.mxu0 %v14418_v1  ;;  %4329 = vmatprep.mubr.f32.mxu0 %v18225_v16  ;;  %v16517_v1 = vpack.c.bf16 %v2258_v27, %v2257_v23  ;;  %v2292_v23 = vld [vmem:[%s18200_s20 + $0x168] sm:$0xff] }
0x1c45   :  { %14421 = vmatprep.subr.bf16.mxu0 %v14420_v11  ;;  %14445 = vmatprep.subr.bf16.mxu1 %v16504_v60  ;;  %18288 = vst [vmem:[#allocation13_spill] sm:$0xff] %v16598_v12  ;;  %18289 = vst [vmem:[#allocation14_spill] sm:$0xff] %v16609_v15  ;;  %v16618_v27 = vpack.c.bf16 %v2292_v23, %v2291_v22  ;;  %v15255_v22 = vld [vmem:[%s18198_s18 + $0x28] sm:$0xff] }
0x1c46   :  { %14447 = vmatpush3.bf16.msra.mxu1 %v16517_v1 }
0x1c47   :  { %12055 = vmatmul.mubr.msk.f32.gmra.mrb[52].mxu0 %vm198_vm4, %v4235_v13  ;;  %14449 = vmatprep.subr.bf16.mxu1 %v16540_v29  ;;  %18290 = vst [vmem:[#allocation15_spill] sm:$0xff] %v16618_v27 }
0x1c48   :  { %14423 = vmatpush1.bf16.msra.mxu0 %v14422_v30  ;;  %4400 = vmatprep.mubr.f32.mxu0 %v18225_v16  ;;  %v2304_v30 = vld [vmem:[%s18200_s20 + $0x1c8] sm:$0xff] }
0x1c49   :  { %14457 = vmatprep.subr.bf16.mxu0 %v16406_v7  ;;  %v16551_v33 = vpack.c.bf16 %v2304_v30, %v2303_v28  ;;  %v2294_v28 = vld [vmem:[%s18200_s20 + $0x178] sm:$0xff] }
0x1c4a   :  { %v16636_v30 = vpack.c.bf16 %v2294_v28, %v2293_v19 }
0x1c4b   :  { %12056 = vmatmul.mubr.msk.f32.vlgmr.msra.gmra.mrb[54].mxu0 %vm198_vm4, %v4234_v57  ;;  %v2285_v57 = vld [vmem:[%s18200_s20 + $0x130] sm:$0xff] }
0x1c4c   :  { %4406 = vmatprep.mubr.f32.mxu0 %v18225_v16  ;;  %14459 = vmatpush3.bf16.msra.mxu0 %v16416_v38  ;;  %v16526_v11 = vpack.c.bf16 %v2286_v36, %v2285_v57  ;;  %v2309_v57 = vld [vmem:[%s18200_s20 + $0x1f0] sm:$0xff]  ;;  %v2310_v36 = vld [vmem:[%s18200_s20 + $0x1f8] sm:$0xff]  ;;  %18292 = vst [vmem:[#allocation17_spill] sm:$0xff] %v16636_v30 }
0x1c4d   :  { %14461 = vmatprep.subr.bf16.mxu0 %v16443_v54  ;;  %v16628_v25 = vpack.c.bf16 %v2310_v36, %v2309_v57 }
0x1c4f   :  { %12057 = vmatmul.mubr.msk.f32.gmra.mrb[56].mxu0 %vm198_vm4, %v4235_v13  ;;  %v2259_v13 = vld [vmem:[%s18200_s20 + $0x60] sm:$0xff]  ;;  %18291 = vst [vmem:[#allocation16_spill] sm:$0xff] %v16628_v25 }
0x1c50   :  { %14463 = vmatpush3.bf16.msra.mxu0 %v16454_v53  ;;  %v16553_v39 = vpack.c.bf16 %v2260_v31, %v2259_v13  ;;  %v15252_v31 = vld [vmem:[%s18198_s18] sm:$0xff] }
0x1c51   :  { %14465 = vmatprep.subr.bf16.mxu0 %v16479_v8 }
0x1c52   :  { %14451 = vmatpush3.bf16.msra.mxu1 %v16553_v39 }
0x1c53   :  { %14453 = vmatprep.subr.bf16.mxu1 %v16576_v55 }
0x1c54   :  { %14467 = vmatpush3.bf16.msra.mxu0 %v16490_v18 }
0x1c55   :  { %14469 = vmatprep.subr.bf16.mxu0 %v16515_v17 }
0x1c56   :  { %14455 = vmatpush3.bf16.msra.mxu1 %v16589_v24 }
0x1c57   :  { %14489 = vmatprep.subr.bf16.mxu1 %v16329_v48 }
0x1c58   :  { %14471 = vmatpush3.bf16.msra.mxu0 %v16526_v11 }
0x1c59   :  { %14473 = vmatprep.subr.bf16.mxu0 %v16551_v33 }
0x1c5c   :  { %14475 = vmatpush3.bf16.msra.mxu0 %v16562_v44 }
0x1c5d   :  { %14477 = vmatprep.subr.bf16.mxu0 %v16587_v5 }
0x1c60   :  { %14479 = vmatpush3.bf16.msra.mxu0 %v16598_v12 }
0x1c61   :  { %14481 = vmatprep.subr.bf16.mxu0 %v16609_v15 }
0x1c64   :  { %14483 = vmatpush3.bf16.msra.mxu0 %v16618_v27 }
0x1c65   :  { %14485 = vmatprep.subr.bf16.mxu0 %v16628_v25 }
0x1c68   :  { %14487 = vmatpush3.bf16.msra.mxu0 %v16636_v30 }
0x1c69   :  { %14521 = vmatprep.subr.bf16.mxu0 %v16406_v7 }
0x1d16   :  { %v4325_v13 = vpop.f32.mrb[50].mxu0 }
0x1d17   :  { %v4413_v40 = vmul.f32 %v15252_v31, %v4325_v13  ;;  %v4327_v41 = vpop.f32.mrb[51].mxu0 }
0x1d18   :  { %v4414_v50 = vmul.f32 %v15253_v45, %v4327_v41 }
0x1d19   :  { %v4421_v47 = vrot.slane %v4413_v40, 4 }
0x1d1a   :  { %v4427_v61 = vrot.slane %v4414_v50, 4  ;;  %v4331_v46 = vpop.f32.mrb[52].mxu0 }
0x1d1b   :  { %v4422_v37 = vadd.f32 %v4421_v47, %v4413_v40  ;;  %v4417_v49 = vmul.f32 %v15254_v3, %v4331_v46  ;;  %v4333_v20 = vpop.f32.mrb[53].mxu0  ;;  %v15256_v40 = vld [vmem:[%s18198_s18 + $0x10] sm:$0xff] }
0x1d1c   :  { %v4428_v21 = vadd.f32 %v4427_v61, %v4414_v50  ;;  %v4418_v23 = vmul.f32 %v15255_v22, %v4333_v20  ;;  %v15257_v61 = vld [vmem:[%s18198_s18 + $0x18] sm:$0xff] }
0x1d1d   :  { %v4423_v57 = vrot.slane %v4422_v37, 2  ;;  %v4445_v36 = vrot.slane %v4417_v49, 4 }
0x1d1e   :  { %v4429_v19 = vrot.slane %v4428_v21, 2  ;;  %v4451_v28 = vrot.slane %v4418_v23, 4  ;;  %v4402_v13 = vpop.f32.mrb[54].mxu0 }
0x1d1f   :  { %v4424_v31 = vadd.f32 %v4423_v57, %v4422_v37  ;;  %v4446_v41 = vadd.f32 %v4445_v36, %v4417_v49  ;;  %v4415_v45 = vmul.f32 %v15256_v40, %v4402_v13  ;;  %v4404_v47 = vpop.f32.mrb[55].mxu0  ;;  %v15258_v36 = vld [vmem:[%s18198_s18 + $0x30] sm:$0xff]  ;;  %v15259_v40 = vld [vmem:[%s18198_s18 + $0x38] sm:$0xff] }
0x1d20   :  { %v4430_v46 = vadd.f32 %v4429_v19, %v4428_v21  ;;  %v4452_v50 = vadd.f32 %v4451_v28, %v4418_v23  ;;  %v4416_v3 = vmul.f32 %v15257_v61, %v4404_v47 }
0x1d21   :  { %v4447_v20 = vrot.slane %v4446_v41, 2  ;;  %v4433_v22 = vrot.slane %v4415_v45, 4  ;;  %v4425_v37 = vrot.slane %v4424_v31, 1 }
0x1d22   :  { %v4453_v63 = vrot.slane %v4452_v50, 2  ;;  %v4439_v35 = vrot.slane %v4416_v3, 4  ;;  %v4408_v16 = vpop.f32.mrb[56].mxu0  ;;  %v4431_v23 = vrot.slane %v4430_v46, 1 }
0x1d23   :  { %v4448_v49 = vadd.f32 %v4447_v20, %v4446_v41  ;;  %v4434_v57 = vadd.f32 %v4433_v22, %v4415_v45  ;;  %v4419_v13 = vmul.f32 %v15258_v36, %v4408_v16  ;;  %v4410_v21 = vpop.f32.mrb[57].mxu0  ;;  %v4426_v20 = vadd.f32 %v4425_v37, %v4424_v31 }
0x1d24   :  { %v4454_v19 = vadd.f32 %v4453_v63, %v4452_v50  ;;  %v4440_v28 = vadd.f32 %v4439_v35, %v4416_v3  ;;  %v4420_v47 = vmul.f32 %v15259_v40, %v4410_v21  ;;  %v4432_v62 = vadd.f32 %v4431_v23, %v4430_v46 }
0x1d25   :  { %v4449_v61 = vrot.slane %v4448_v49, 1  ;;  %v4435_v7 = vrot.slane %v4434_v57, 2  ;;  %v4457_v9 = vrot.slane %v4419_v13, 4  ;;  %v18293_v23 = vmov 0.0  }
0x1d26   :  { %v4455_v4 = vrot.slane %v4454_v19, 1  ;;  %v4441_v41 = vrot.slane %v4440_v28, 2  ;;  %v4463_v45 = vrot.slane %v4420_v47, 4 }
0x1d27   :  { %v4450_v22 = vadd.f32 %v4449_v61, %v4448_v49  ;;  %v4436_v48 = vadd.f32 %v4435_v7, %v4434_v57  ;;  %v4458_v0 = vadd.f32 %v4457_v9, %v4419_v13  ;;  %v12066_v57 = vld [vmem:[%s18270_s21 + $0x90] sm:$0xff]  ;;  %v12067_v13 = vld [vmem:[%s18270_s21 + $0x98] sm:$0xff]  ;;  %v18295_v61 = vld [vmem:[#allocation17_spill] sm:$0xff] }
0x1d28   :  { %v4442_v16 = vadd.f32 %v4441_v41, %v4440_v28  ;;  %v4464_v36 = vadd.f32 %v4463_v45, %v4420_v47  ;;  %v4456_v63 = vadd.f32 %v4455_v4, %v4454_v19  ;;  %v18294_v28 = vld [vmem:[#allocation16_spill] sm:$0xff]  ;;  %v14560_v47 = vpack.c.bf16 %v12067_v13, %v12066_v57  ;;  %v4761_v41 = vpop.permute.xlu0 %4760  ;;  %v18296_v45 = vld [vmem:[#allocation9_spill] sm:$0xff] }
0x1d29   :  { %v4459_v35 = vrot.slane %v4458_v0, 2  ;;  %v4469_v50 = vsel %vm2242_vm12, %v4426_v20, %v4450_v22  ;;  %v4437_v40 = vrot.slane %v4436_v48, 1  ;;  %vm4763_vm15 = vcmp.eq.s32.totalorder %v15482_v14, %v4761_v41 }
0x1d2a   :  { %v4465_v3 = vrot.slane %v4464_v36, 2  ;;  %v4470_v21 = vsel %vm2242_vm12, %v4432_v62, %v4456_v63  ;;  %v4443_v30 = vrot.slane %v4442_v16, 1  ;;  %v12061_v20 = vsel %vm4763_vm15, 1.0, %v18293_v23 }
0x1d2b   :  { %v4460_v56 = vadd.f32 %v4459_v35, %v4458_v0  ;;  %4537 = vmatprep.mubr.f32.mxu1 %v4470_v21  ;;  %v4438_v4 = vadd.f32 %v4437_v40, %v4436_v48  ;;  %v4758_v48 = vpop.permute.xlu1 %4757 }
0x1d2c   :  { %v4466_v25 = vadd.f32 %v4465_v3, %v4464_v36  ;;  %4538 = vmatmul.mubr.f32.vlgmr.msra.gmra.mrb[42].mxu1 %v4469_v50  ;;  %v4444_v46 = vadd.f32 %v4443_v30, %v4442_v16  ;;  %v12065_v30 = vld [vmem:[%s18270_s21 + $0x88] sm:$0xff]  ;;  %vm4762_vm14 = vcmp.eq.s32.totalorder %v15482_v14, %v4758_v48 }
0x1d2d   :  { %v4461_v31 = vrot.slane %v4460_v56, 1  ;;  %14491 = vmatpush3.bf16.msra.mxu1 %v16340_v52  ;;  %4677 = vmatprep.mubr.f32.mxu1 %v16095_v34  ;;  %v12062_v34 = vld [vmem:[%s18270_s21 + $0x70] sm:$0xff]  ;;  %v12060_v19 = vsel %vm4762_vm14, 1.0, %v18293_v23 }
0x1d2e   :  { %v4467_v9 = vrot.slane %v4466_v25, 1  ;;  %14493 = vmatprep.subr.bf16.mxu1 %v16342_v26 }
0x1d2f   :  { %v4462_v7 = vadd.f32 %v4461_v31, %v4460_v56  ;;  %v12063_v56 = vld [vmem:[%s18270_s21 + $0x78] sm:$0xff] }
0x1d30   :  { %v4468_v37 = vadd.f32 %v4467_v9, %v4466_v25  ;;  %v12064_v25 = vld [vmem:[%s18270_s21 + $0x80] sm:$0xff] }
0x1d31   :  { %14495 = vmatpush3.bf16.msra.mxu1 %v16358_v2  ;;  %v4471_v62 = vsel %vm2242_vm12, %v4438_v4, %v4462_v7  ;;  %v14556_v49 = vpack.c.bf16 %v12065_v30, %v12064_v25 }
0x1d32   :  { %v4472_v0 = vsel %vm2242_vm12, %v4444_v46, %v4468_v37  ;;  %14497 = vmatprep.subr.bf16.mxu1 %v16361_v58 }
0x1d33   :  { %4607 = vmatprep.mubr.f32.mxu0 %v4472_v0  ;;  %v15260_v0 = vld [vmem:[%s18271_s0] sm:$0xff] }
0x1d34   :  { %4608 = vmatmul.mubr.f32.vlgmr.msra.gmra.mrb[58].mxu0 %v4471_v62 }
0x1d35   :  { %14499 = vmatpush3.bf16.msra.mxu1 %v16370_v6  ;;  %14523 = vmatpush3.bf16.msra.mxu0 %v16416_v38 }
0x1d36   :  { %4747 = vmatprep.mubr.f32.mxu0 %v16111_v59  ;;  %14501 = vmatprep.subr.bf16.mxu1 %v16432_v42  ;;  %v14552_v59 = vpack.c.bf16 %v12063_v56, %v12062_v34 }
0x1d37   :  { %14525 = vmatprep.subr.bf16.mxu0 %v16443_v54 }
0x1d39   :  { %14503 = vmatpush3.bf16.msra.mxu1 %v16445_v51  ;;  %14527 = vmatpush3.bf16.msra.mxu0 %v16454_v53 }
0x1d3a   :  { %14505 = vmatprep.subr.bf16.mxu1 %v16468_v43  ;;  %14529 = vmatprep.subr.bf16.mxu0 %v16479_v8 }
0x1d3d   :  { %14507 = vmatpush3.bf16.msra.mxu1 %v16481_v10  ;;  %14531 = vmatpush3.bf16.msra.mxu0 %v16490_v18 }
0x1d3e   :  { %14509 = vmatprep.subr.bf16.mxu1 %v16504_v60  ;;  %14533 = vmatprep.subr.bf16.mxu0 %v16515_v17 }
0x1d41   :  { %14511 = vmatpush3.bf16.msra.mxu1 %v16517_v1  ;;  %14535 = vmatpush3.bf16.msra.mxu0 %v16526_v11 }
0x1d42   :  { %14513 = vmatprep.subr.bf16.mxu1 %v16540_v29  ;;  %14537 = vmatprep.subr.bf16.mxu0 %v16551_v33 }
0x1d45   :  { %14515 = vmatpush3.bf16.msra.mxu1 %v16553_v39  ;;  %14539 = vmatpush3.bf16.msra.mxu0 %v16562_v44 }
0x1d46   :  { %14517 = vmatprep.subr.bf16.mxu1 %v16576_v55  ;;  %14541 = vmatprep.subr.bf16.mxu0 %v16587_v5 }
0x1d49   :  { %14519 = vmatpush3.bf16.msra.mxu1 %v16589_v24  ;;  %14543 = vmatpush3.bf16.msra.mxu0 %v16598_v12 }
0x1d4a   :  { %14545 = vmatprep.subr.bf16.mxu0 %v16609_v15  ;;  %14553 = vmatprep.subr.bf16.mxu1 %v14552_v59 }
0x1d4c   :  { %4678 = vmatmul.mubr.f32.vlgmr.msra.gmra.mrb[44].mxu1 %v16091_v32  ;;  %v12068_v32 = vld [vmem:[%s18270_s21 + $0xa0] sm:$0x3] }
0x1d4d   :  { %14547 = vmatpush3.bf16.msra.mxu0 %v16618_v27  ;;  %14555 = vmatpush3.bf16.msra.mxu1 %v14552_v59 }
0x1d4e   :  { %13633 = vmatprep.mubr.msk.f32.mxu1 %vm108_vm1, %v12060_v19  ;;  %14549 = vmatprep.subr.bf16.mxu0 %v18294_v28 }
0x1d4f   :  { %14557 = vmatprep.subr.bf16.mxu1 %v14556_v49 }
0x1d51   :  { %14551 = vmatpush3.bf16.msra.mxu0 %v18295_v61  ;;  %14559 = vmatpush3.bf16.msra.mxu1 %v14556_v49 }
0x1d52   :  { %14561 = vmatprep.subr.bf16.mxu1 %v14560_v47 }
0x1d54   :  { %4748 = vmatmul.mubr.f32.vlgmr.msra.gmra.mrb[60].mxu0 %v18296_v45 }
0x1d55   :  { %14563 = vmatpush3.bf16.msra.mxu1 %v14560_v47 }
0x1d56   :  { %13631 = vmatprep.subr.msk.mxu1 %vm115_vm0, %v12068_v32 }
0x1d59   :  { %13632 = vmatpush3.msk.msra.mxu1 %vm115_vm0, %v12068_v32 }
0x1d5a   :  { %13634 = vmatmul.mubr.msk.f32.vlgmr.msra.gmra.mrb[46].mxu1 %vm108_vm1, %v12061_v20 }
0x1dff   :  { %v12654_v22 = vpop.f32.mrb[42].mxu1 }
0x1e00   :  { %v12655_v16 = vpop.f32.mrb[43].mxu1 }
0x1e01   :  { %v12656_v36 = vadd.f32 %v12655_v16, %v12654_v22  ;;  %v12074_v22 = vld [vmem:[%s18272_s2 + $0x80] sm:$0xff]  ;;  %v12075_v16 = vld [vmem:[%s18272_s2 + $0x88] sm:$0xff] }
0x1e07   :  { %v12689_v63 = vpop.f32.mrb[58].mxu0 }
0x1e08   :  { %v12690_v35 = vpop.f32.mrb[59].mxu0 }
0x1e09   :  { %v12691_v50 = vadd.f32 %v12690_v35, %v12689_v63  ;;  %v14564_v63 = vpack.c.bf16 %v12075_v16, %v12074_v22  ;;  %v12083_v35 = vld [vmem:[%s18272_s2 + $0xa8] sm:$0xff] }
0x1e0a   :  { %v18298_v16 = vld [vmem:[#allocation6_spill] sm:$0xff] }
0x1e0b   :  { %v4610_v3 = vadd.f32 %v12691_v50, %v12656_v36  ;;  %v12082_v36 = vld [vmem:[%s18272_s2 + $0xa0] sm:$0xff]  ;;  %14565 = vmatprep.subr.bf16.mxu0 %v14564_v63 }
0x1e0c   :  { %v14572_v50 = vpack.c.bf16 %v12083_v35, %v12082_v36  ;;  %14567 = vmatpush3.bf16.msra.mxu0 %v14564_v63 }
0x1e0e   :  { %14573 = vmatprep.subr.bf16.mxu1 %v14572_v50 }
0x1e0f   :  { %14575 = vmatpush3.bf16.msra.mxu1 %v14572_v50 }
0x1e1f   :  { %v12724_v21 = vpop.f32.mrb[44].mxu1 }
0x1e20   :  { %v12725_v40 = vpop.f32.mrb[45].mxu1 }
0x1e21   :  { %v12726_v31 = vadd.f32 %v12725_v40, %v12724_v21  ;;  %v12077_v21 = vld [vmem:[%s18272_s2 + $0x98] sm:$0xff]  ;;  %v12084_v40 = vld [vmem:[%s18272_s2 + $0xb0] sm:$0xff] }
0x1e23   :  { %v4680_v9 = vadd.f32 %v12726_v31, %v4610_v3  ;;  %v12076_v3 = vld [vmem:[%s18272_s2 + $0x90] sm:$0xff] }
0x1e24   :  { %v14568_v31 = vpack.c.bf16 %v12077_v21, %v12076_v3  ;;  %v12092_v3 = vld [vmem:[%s18273_s27 + $0x90] sm:$0xff]  ;;  %v12093_v21 = vld [vmem:[%s18273_s27 + $0x98] sm:$0xff] }
0x1e26   :  { %14569 = vmatprep.subr.bf16.mxu0 %v14568_v31 }
0x1e27   :  { %v12759_v4 = vpop.f32.mrb[60].mxu0  ;;  %14571 = vmatpush3.bf16.msra.mxu0 %v14568_v31 }
0x1e28   :  { %v12760_v7 = vpop.f32.mrb[61].mxu0 }
0x1e29   :  { %v12761_v46 = vadd.f32 %v12760_v7, %v12759_v4  ;;  %v12090_v7 = vld [vmem:[%s18273_s27 + $0x80] sm:$0xff] }
0x1e2b   :  { %v16732_v37 = vadd.f32 %v12761_v46, %v4680_v9  ;;  %v12085_v9 = vld [vmem:[%s18272_s2 + $0xb8] sm:$0xff]  ;;  %v12091_v46 = vld [vmem:[%s18273_s27 + $0x88] sm:$0xff] }
0x1e2c   :  { %v14576_v4 = vpack.c.bf16 %v12085_v9, %v12084_v40  ;;  %v12100_v40 = vld [vmem:[%s18273_s27 + $0xb0] sm:$0xff]  ;;  %v12106_v9 = vld [vmem:[%s18274_s9 + $0x80] sm:$0xff] }
0x1e2d   :  { %v13635_v62 = vpop.f32.mrb[46].mxu1 }
0x1e2e   :  { %v4857_v34 = vadd.f32 %v15260_v0, %v13635_v62  ;;  %v4851_v56 = vpop.f32.mrb[47].mxu1  ;;  %14577 = vmatprep.subr.bf16.mxu1 %v14576_v4  ;;  %v12098_v62 = vld [vmem:[%s18273_s27 + $0xa0] sm:$0xff] }
0x1e2f   :  { %v4852_v59 = vadd.f32 %v15260_v0, %v4851_v56  ;;  %14579 = vmatpush3.bf16.msra.mxu1 %v14576_v4  ;;  %v14580_v0 = vpack.c.bf16 %v12091_v46, %v12090_v7  ;;  %v14584_v4 = vpack.c.bf16 %v12093_v21, %v12092_v3  ;;  %v12107_v46 = vld [vmem:[%s18274_s9 + $0x88] sm:$0xff]  ;;  %v12103_v3 = vld [vmem:[%s18279_s6 + $0x5] ss:$0 sm:$0xff] }
0x1e30   :  { %v4869_v48 = vsel %vm198_vm4, %v4857_v34, 0.0 }
0x1e31   :  { %4870 = vadd.xlane.f32.xlu0 %v4869_v48  ;;  %v4866_v25 = vsel %vm198_vm4, %v4852_v59, 0.0  ;;  %14581 = vmatprep.subr.bf16.mxu0 %v14580_v0 }
0x1e32   :  { %4867 = vadd.xlane.f32.xlu1 %v4866_v25 }
0x1ebe   :  { %v4871_v30 = vpop.xlane.xlu0 %4870 }
0x1ebf   :  { %v4873_v49 = vmul.f32 0.03125, %v4871_v30  ;;  %v4868_v57 = vpop.xlane.xlu1 %4867 }
0x1ec0   :  { %v4872_v13 = vmul.f32 0.03125, %v4868_v57 }
0x1ec1   :  { %v4875_v19 = vsub.f32 %v4857_v34, %v4873_v49  ;;  %v12099_v34 = vld [vmem:[%s18273_s27 + $0xa8] sm:$0xff] }
0x1ec2   :  { %v4874_v47 = vsub.f32 %v4852_v59, %v4872_v13  ;;  %v14588_v56 = vpack.c.bf16 %v12099_v34, %v12098_v62  ;;  %v12073_v13 = vld [vmem:[%s18276_s1 + $0x4] sm:$0x3]  ;;  %v12115_v34 = vld [vmem:[%s18274_s9 + $0xa8] sm:$0xff] }
0x1ec3   :  { %v4877_v41 = vmul.f32 %v4875_v19, %v4875_v19  ;;  %v4901_v36 = vrot.slane %v12073_v13, %v18298_v16  ;;  %v12114_v62 = vld [vmem:[%s18274_s9 + $0xa0] sm:$0xff] }
0x1ec4   :  { %v4876_v32 = vmul.f32 %v4874_v47, %v4874_v47  ;;  %14589 = vmatprep.subr.bf16.mxu1 %v14588_v56 }
0x1ec5   :  { %v4881_v45 = vsel %vm198_vm4, %v4877_v41, 0.0  ;;  %v18297_v41 = vld [vmem:[#allocation5_spill] sm:$0xff] }
0x1ec6   :  { %4882 = vadd.xlane.f32.xlu0 %v4881_v45  ;;  %v4878_v20 = vsel %vm198_vm4, %v4876_v32, 0.0  ;;  %v4895_v32 = vrot.slane %v12073_v13, %v18297_v41  ;;  %v12079_v13 = vld [vmem:[%s18278_s30 + $0x4] ss:$0 sm:$0xff] }
0x1ec7   :  { %4879 = vadd.xlane.f32.xlu1 %v4878_v20 }
0x1f53   :  { %v4883_v59 = vpop.xlane.xlu0 %4882 }
0x1f54   :  { %v4885_v48 = vmul.f32 0.03125, %v4883_v59  ;;  %v4880_v25 = vpop.xlane.xlu1 %4879  ;;  %v14596_v59 = vpack.c.bf16 %v12107_v46, %v12106_v9 }
0x1f55   :  { %v4884_v30 = vmul.f32 0.03125, %v4880_v25  ;;  %v12108_v25 = vld [vmem:[%s18274_s9 + $0x90] sm:$0xff] }
0x1f56   :  { %v4887_v49 = vadd.f32 1e-05, %v4885_v48  ;;  %v14604_v48 = vpack.c.bf16 %v12115_v34, %v12114_v62 }
0x1f57   :  { %v4886_v57 = vadd.f32 1e-05, %v4884_v30  ;;  %v12109_v30 = vld [vmem:[%s18274_s9 + $0x98] sm:$0xff] }
0x1f58   :  { %15168 = vrsqrt.f32 %v4887_v49  ;;  %v14600_v49 = vpack.c.bf16 %v12109_v30, %v12108_v25  ;;  %v12111_v25 = vld [vmem:[%s18280_s4 + $0x4] ss:$0 sm:$0xff]  ;;  %v12119_v30 = vld [vmem:[%s18280_s4 + $0x5] ss:$0 sm:$0xff] }
0x1f59   :  { %15170 = vrsqrt.f32 %v4886_v57 }
0x1f62   :  { %v15169_v45 = vpop.eup %15168 }
0x1f63   :  { %v15171_v20 = vpop.eup %15170  ;;  %v4891_v22 = vmul.f32 %v15169_v45, %v4875_v19  ;;  %v12101_v19 = vld [vmem:[%s18273_s27 + $0xb8] sm:$0xff] }
0x1f64   :  { %v4890_v63 = vmul.f32 %v15171_v20, %v4874_v47  ;;  %v14592_v7 = vpack.c.bf16 %v12101_v19, %v12100_v40 }
0x1f65   :  { %v4897_v35 = vmul.f32 %v4895_v32, %v4891_v22 }
0x1f66   :  { %v4896_v50 = vmul.f32 %v4895_v32, %v4890_v63  ;;  %v12087_v32 = vld [vmem:[%s18278_s30 + $0x5] ss:$0 sm:$0xff] }
0x1f67   :  { %v16796_v47 = vadd.f32 %v4901_v36, %v4897_v35 }
0x1f68   :  { %v16794_v31 = vadd.f32 %v4901_v36, %v4896_v50  ;;  %v12095_v50 = vld [vmem:[%s18279_s6 + $0x4] ss:$0 sm:$0xff] }
0x1f6a   :  { %13644 = vmatprep.mubr.msk.f32.mxu0 %vm198_vm4, %v16794_v31  ;;  %13655 = vmatprep.mubr.msk.f32.mxu1 %vm198_vm4, %v16794_v31 }
0x1f6b   :  { %13645 = vmatmul.mubr.msk.f32.vlgmr.msra.gmra.mrb[62].mxu0 %vm198_vm4, %v16796_v47  ;;  %13656 = vmatmul.mubr.msk.f32.vlgmr.msra.gmra.mrb[48].mxu1 %vm198_vm4, %v16796_v47 }
0x1f6c   :  { %14583 = vmatpush3.bf16.msra.mxu0 %v14580_v0  ;;  %14591 = vmatpush3.bf16.msra.mxu1 %v14588_v56  ;;  %v12116_v0 = vld [vmem:[%s18274_s9 + $0xb0] sm:$0xff]  ;;  %v12117_v56 = vld [vmem:[%s18274_s9 + $0xb8] sm:$0xff] }
0x1f6d   :  { %13666 = vmatprep.mubr.msk.f32.mxu0 %vm198_vm4, %v16794_v31  ;;  %13677 = vmatprep.mubr.msk.f32.mxu1 %vm198_vm4, %v16794_v31  ;;  %v14608_v57 = vpack.c.bf16 %v12117_v56, %v12116_v0 }
0x1f6e   :  { %14585 = vmatprep.subr.bf16.mxu0 %v14584_v4  ;;  %14593 = vmatprep.subr.bf16.mxu1 %v14592_v7 }
0x1f70   :  { %14587 = vmatpush3.bf16.msra.mxu0 %v14584_v4  ;;  %14595 = vmatpush3.bf16.msra.mxu1 %v14592_v7 }
0x1f71   :  { %14597 = vmatprep.subr.bf16.mxu0 %v14596_v59  ;;  %14605 = vmatprep.subr.bf16.mxu1 %v14604_v48 }
0x1f73   :  { %13667 = vmatmul.mubr.msk.f32.vlgmr.msra.gmra.mrb[64].mxu0 %vm198_vm4, %v16796_v47  ;;  %13678 = vmatmul.mubr.msk.f32.vlgmr.msra.gmra.mrb[50].mxu1 %vm198_vm4, %v16796_v47 }
0x1f74   :  { %14599 = vmatpush3.bf16.msra.mxu0 %v14596_v59  ;;  %13688 = vmatprep.mubr.msk.f32.mxu0 %vm198_vm4, %v16794_v31 }
0x1f75   :  { %14607 = vmatpush3.bf16.msra.mxu1 %v14604_v48  ;;  %13699 = vmatprep.mubr.msk.f32.mxu1 %vm198_vm4, %v16794_v31  ;;  %v18299_v48 = vmov 0.0|0.0  }
0x1f76   :  { %14601 = vmatprep.subr.bf16.mxu0 %v14600_v49  ;;  %14609 = vmatprep.subr.bf16.mxu1 %v14608_v57 }
0x1f78   :  { %14603 = vmatpush3.bf16.msra.mxu0 %v14600_v49 }
0x1f79   :  { %14611 = vmatpush3.bf16.msra.mxu1 %v14608_v57  ;;  %13702 = vmatprep.subr.mxu0 %v18293_v23 }
0x1f7a   :  { %13712 = vmatprep.subr.mxu1 %v18293_v23 }
0x1f7b   :  { %13689 = vmatmul.mubr.msk.f32.vlgmr.msra.gmra.mrb[66].mxu0 %vm198_vm4, %v16796_v47 }
0x1f7c   :  { %13700 = vmatmul.mubr.msk.f32.vlgmr.msra.gmra.mrb[52].mxu1 %vm198_vm4, %v16796_v47  ;;  %13704 = vmatprep.mubr.msk.f32.mxu0 %vm15313_vm5, %v18293_v23 }
0x1f7d   :  { %13714 = vmatprep.mubr.msk.f32.mxu1 %vm15313_vm5, %v18293_v23 }
0x203e   :  { %v13646_v45 = vpop.f32.mrb[62].mxu0  ;;  %v13657_v20 = vpop.f32.mrb[48].mxu1 }
0x203f   :  { %v16858_v22 = vadd.f32 %v13646_v45, %v12079_v13  ;;  %v16860_v36 = vadd.f32 %v13657_v20, %v12087_v32  ;;  %v4989_v63 = vpop.f32.mrb[63].mxu0  ;;  %v5077_v35 = vpop.f32.mrb[49].mxu1  ;;  %v12072_v20 = vld [vmem:[%s18281_s26 + $0x4] sm:$0x3] }
0x2040   :  { %v4990_v34 = vadd.f32 %v12079_v13, %v4989_v63  ;;  %v5078_v59 = vadd.f32 %v12087_v32, %v5077_v35  ;;  %vm4862_vm2 = vcmp.ne.s32.totalorder %v12072_v20, 0  ;;  %v18300_v63 = vmov -1e+09  }
0x2041   :  { %v16897_v35 = vsel %vm4862_vm2, 0.0, %v18300_v63 }
0x2046   :  { %v13668_v21 = vpop.f32.mrb[64].mxu0  ;;  %v13679_v40 = vpop.f32.mrb[50].mxu1 }
0x2047   :  { %v16868_v19 = vadd.f32 %v13668_v21, %v12095_v50  ;;  %v16870_v9 = vadd.f32 %v13679_v40, %v12103_v3  ;;  %v5165_v4 = vpop.f32.mrb[65].mxu0  ;;  %v5253_v7 = vpop.f32.mrb[51].mxu1 }
0x2048   :  { %v5166_v46 = vadd.f32 %v12095_v50, %v5165_v4  ;;  %v5254_v62 = vadd.f32 %v12103_v3, %v5253_v7  ;;  %v5518_v50 = vrot.slane %v16897_v35, %v18297_v41 }
0x204a   :  { %13703 = vmatpush3.xpose.msk.msra.mxu0 %vm766_vm6, %v5166_v46  ;;  %13713 = vmatpush3.xpose.msk.msra.mxu1 %vm766_vm6, %v5254_v62 }
0x204b   :  { %13707 = vmatprep.subr.mxu0 %v18293_v23  ;;  %14612 = vmatprep.subr.bf16.mxu1 %v18299_v48 }
0x204d   :  { %13705 = vmatmul.mubr.msk.f32.vlgmr.msra.gmra.mrb[68].mxu0 %vm766_vm6, %v4990_v34  ;;  %13715 = vmatmul.mubr.msk.f32.vlgmr.msra.gmra.mrb[54].mxu1 %vm766_vm6, %v5078_v59 }
0x204e   :  { %v13690_v0 = vpop.f32.mrb[66].mxu0  ;;  %13709 = vmatprep.mubr.msk.f32.mxu0 %vm15313_vm5, %v18293_v23  ;;  %13726 = vmatprep.mubr.msk.f32.mxu1 %vm15313_vm5, %v18293_v23 }
0x204f   :  { %v16888_v56 = vadd.f32 %v13690_v0, %v12111_v25  ;;  %v13701_v49 = vpop.f32.mrb[52].mxu1  ;;  %v5341_v57 = vpop.f32.mrb[67].mxu0 }
0x2050   :  { %v16890_v13 = vadd.f32 %v13701_v49, %v12119_v30  ;;  %v5342_v32 = vadd.f32 %v12111_v25, %v5341_v57  ;;  %v5429_v45 = vpop.f32.mrb[53].mxu1 }
0x2052   :  { %13708 = vmatpush3.msra.mxu0 %v5342_v32 }
0x2053   :  { %13717 = vmatprep.subr.mxu0 %v18293_v23 }
0x2120   :  { %v5510_v3 = vpop.f32.mrb[68].mxu0  ;;  %v5679_v21 = vpop.f32.mrb[54].mxu1 }
0x2121   :  { %v5514_v40 = vmul.f32 0.25, %v5510_v3  ;;  %v5683_v4 = vmul.f32 0.25, %v5679_v21  ;;  %v13706_v7 = vpop.f32.mrb[69].mxu0  ;;  %v13716_v46 = vpop.f32.mrb[55].mxu1 }
0x2123   :  { %v5684_v62 = vadd.f32 %v5683_v4, %v5518_v50  ;;  %v5519_v34 = vadd.f32 %v5518_v50, %v5514_v40  ;;  %v12130_v40 = vld [vmem:[%s18191_s11 + $0x50] sm:$0xff]  ;;  %v12131_v4 = vld [vmem:[%s18191_s11 + $0x58] sm:$0xff] }
0x2124   :  { %v14613_v46 = vpack.c.bf16 %v12131_v4, %v12130_v40 }
0x2125   :  { %v5685_v59 = vsel %vm849_vm8, %v5684_v62, -inf  ;;  %v5520_v25 = vsel %vm849_vm8, %v5519_v34, -inf }
0x2126   :  { %5686 = vmax.xlane.f32.xlu0 %v5685_v59  ;;  %5521 = vmax.xlane.f32.xlu1 %v5520_v25  ;;  %v12125_v25 = vld [vmem:[%s18191_s11 + $0x40] sm:$0xff] }
0x2127   :  { %14614 = vmatpush3.bf16.msra.mxu1 %v14613_v46 }
0x2128   :  { %13736 = vmatprep.subr.mxu1 %v18293_v23 }
0x21b3   :  { %v5687_v0 = vpop.xlane.xlu0 %5686  ;;  %v5522_v49 = vpop.xlane.xlu1 %5521 }
0x21b4   :  { %v5688_v57 = vsub.f32 %v5684_v62, %v5687_v0  ;;  %v5523_v32 = vsub.f32 %v5519_v34, %v5522_v49  ;;  %v12126_v0 = vld [vmem:[%s18191_s11 + $0x48] sm:$0xff] }
0x21b6   :  { %v5689_v20 = vmul.f32 1.442695, %v5688_v57  ;;  %v5524_v63 = vmul.f32 1.442695, %v5523_v32  ;;  %v5430_v57 = vadd.f32 %v12119_v30, %v5429_v45  ;;  %v16921_v32 = vpack.c.bf16 %v12126_v0, %v12125_v25 }
0x21b8   :  { %15172 = vpow2.f32 %v5689_v20 }
0x21b9   :  { %15174 = vpow2.f32 %v5524_v63 }
0x21c2   :  { %v15173_v3 = vpop.eup %15172 }
0x21c3   :  { %v15175_v21 = vpop.eup %15174  ;;  %v5691_v7 = vsel %vm849_vm8, %v15173_v3, 0.0 }
0x21c4   :  { %5692 = vadd.xlane.f32.xlu0 %v5691_v7  ;;  %v5526_v50 = vsel %vm849_vm8, %v15175_v21, 0.0 }
0x21c5   :  { %5527 = vadd.xlane.f32.xlu1 %v5526_v50 }
0x2251   :  { %v5693_v63 = vpop.xlane.xlu0 %5692 }
0x2252   :  { %v5528_v62 = vpop.xlane.xlu1 %5527 }
0x2253   :  { %15176 = vrcp.f32 %v5528_v62 }
0x2254   :  { %15178 = vrcp.f32 %v5693_v63 }
0x225d   :  { %v15177_v34 = vpop.eup %15176 }
0x225e   :  { %v5530_v59 = vmul.f32 %v15177_v34, %v15175_v21  ;;  %v15179_v49 = vpop.eup %15178 }
0x225f   :  { %v5695_v20 = vmul.f32 %v15179_v49, %v15173_v3 }
0x2260   :  { %13710 = vmatmul.mubr.msk.f32.vlgmr.msra.gmra.mrb[70].mxu0 %vm849_vm8, %v5530_v59 }
0x2261   :  { %13718 = vmatpush3.msra.mxu0 %v5430_v57  ;;  %13719 = vmatprep.mubr.msk.f32.mxu0 %vm15313_vm5, %v18293_v23 }
0x2262   :  { %14615 = vmatprep.subr.bf16.mxu0 %v18299_v48 }
0x2264   :  { %13720 = vmatmul.mubr.msk.f32.vlgmr.msra.gmra.mrb[72].mxu0 %vm849_vm8, %v5695_v20 }
0x2265   :  { %14617 = vmatpush3.bf16.msra.mxu0 %v16921_v32  ;;  %13733 = vmatprep.mubr.msk.f32.mxu0 %vm15313_vm5, %v18293_v23 }
0x2266   :  { %13741 = vmatprep.subr.mxu0 %v18293_v23 }
0x2333   :  { %v5600_v30 = vpop.f32.mrb[70].mxu0 }
0x2334   :  { %v13711_v45 = vpop.f32.mrb[71].mxu0  ;;  %13734 = vmatmul.mubr.msk.f32.vlgmr.msra.gmra.mrb[74].mxu0 %vm766_vm6, %v5600_v30 }
0x2335   :  { %13742 = vmatpush3.msra.mxu0 %v16888_v56  ;;  %13743 = vmatprep.mubr.msk.f32.mxu0 %vm15313_vm5, %v18293_v23 }
0x2336   :  { %13751 = vmatprep.subr.mxu0 %v18293_v23 }
0x2337   :  { %v5765_v3 = vpop.f32.mrb[72].mxu0 }
0x2338   :  { %v13721_v21 = vpop.f32.mrb[73].mxu0  ;;  %13727 = vmatmul.mubr.msk.f32.vlgmr.msra.gmra.mrb[56].mxu1 %vm766_vm6, %v5765_v3  ;;  %v12143_v3 = vld [vmem:[%s18192_s12 + $0x2] ss:$0 sm:$0xff] }
0x2339   :  { %13737 = vmatpush3.xpose.msk.msra.mxu1 %vm766_vm6, %v16868_v19  ;;  %13738 = vmatprep.mubr.msk.f32.mxu1 %vm15313_vm5, %v18293_v23 }
0x233a   :  { %13746 = vmatprep.subr.mxu1 %v18293_v23 }
0x233c   :  { %13739 = vmatmul.mubr.msk.f32.vlgmr.msra.gmra.mrb[58].mxu1 %vm766_vm6, %v16858_v22 }
0x233d   :  { %13747 = vmatpush3.xpose.msk.msra.mxu1 %vm766_vm6, %v16870_v9  ;;  %13748 = vmatprep.mubr.msk.f32.mxu1 %vm15313_vm5, %v18293_v23  ;;  %v5998_v9 = vrot.slane %v16897_v35, %v18298_v16 }
0x233e   :  { %14618 = vmatprep.subr.bf16.mxu1 %v18299_v48 }
0x2340   :  { %13749 = vmatmul.mubr.msk.f32.vlgmr.msra.gmra.mrb[60].mxu1 %vm766_vm6, %v16860_v36 }
0x2341   :  { %14620 = vmatpush3.bf16.msra.mxu1 %v14613_v46  ;;  %13760 = vmatprep.mubr.msk.f32.mxu1 %vm15313_vm5, %v18293_v23 }
0x2407   :  { %v5914_v19 = vpop.f32.mrb[74].mxu0 }
0x2408   :  { %v13735_v56 = vpop.f32.mrb[75].mxu0 }
0x240b   :  { %v5841_v7 = vpop.f32.mrb[56].mxu1 }
0x240c   :  { %v5915_v50 = vadd.f32 %v5914_v19, %v5841_v7  ;;  %v13728_v22 = vpop.f32.mrb[57].mxu1 }
0x240e   :  { %v6400_v21 = vadd.f32 %v12143_v3, %v5915_v50 }
0x240f   :  { %v5990_v40 = vpop.f32.mrb[58].mxu1 }
0x2410   :  { %v5994_v4 = vmul.f32 0.25, %v5990_v40  ;;  %v13740_v63 = vpop.f32.mrb[59].mxu1  ;;  %v6404_v7 = vadd.f32 %v6400_v21, %v16794_v31 }
0x2412   :  { %v5999_v62 = vadd.f32 %v5998_v9, %v5994_v4  ;;  %v6406_v40 = vsel %vm198_vm4, %v6404_v7, 0.0 }
0x2413   :  { %v6156_v34 = vpop.f32.mrb[60].mxu1 }
0x2414   :  { %v6160_v59 = vmul.f32 0.25, %v6156_v34  ;;  %v13750_v25 = vpop.f32.mrb[61].mxu1  ;;  %v6000_v36 = vsel %vm849_vm8, %v5999_v62, -inf }
0x2415   :  { %6001 = vmax.xlane.f32.xlu1 %v6000_v36 }
0x2416   :  { %v6161_v46 = vadd.f32 %v6160_v59, %v5998_v9 }
0x2418   :  { %v6162_v0 = vsel %vm849_vm8, %v6161_v46, -inf }
0x2419   :  { %6163 = vmax.xlane.f32.xlu0 %v6162_v0 }
0x24a2   :  { %v6002_v49 = vpop.xlane.xlu1 %6001 }
0x24a3   :  { %v6003_v57 = vsub.f32 %v5999_v62, %v6002_v49 }
0x24a5   :  { %v6004_v20 = vmul.f32 1.442695, %v6003_v57 }
0x24a6   :  { %v6164_v30 = vpop.xlane.xlu0 %6163 }
0x24a7   :  { %15180 = vpow2.f32 %v6004_v20  ;;  %v6165_v35 = vsub.f32 %v6161_v46, %v6164_v30 }
0x24a9   :  { %v6166_v45 = vmul.f32 1.442695, %v6165_v35 }
0x24ab   :  { %15182 = vpow2.f32 %v6166_v45 }
0x24b1   :  { %v15181_v19 = vpop.eup %15180 }
0x24b2   :  { %v6006_v56 = vsel %vm849_vm8, %v15181_v19, 0.0 }
0x24b3   :  { %6007 = vadd.xlane.f32.xlu1 %v6006_v56 }
0x24b5   :  { %v15183_v22 = vpop.eup %15182 }
0x24b6   :  { %v6168_v9 = vsel %vm849_vm8, %v15183_v22, 0.0 }
0x24b7   :  { %6169 = vadd.xlane.f32.xlu0 %v6168_v9  ;;  %6407 = vadd.xlane.f32.xlu1 %v6406_v40 }
0x2540   :  { %v6008_v4 = vpop.xlane.xlu1 %6007 }
0x2541   :  { %15184 = vrcp.f32 %v6008_v4 }
0x2544   :  { %v6170_v63 = vpop.xlane.xlu0 %6169  ;;  %v6408_v62 = vpop.xlane.xlu1 %6407 }
0x2545   :  { %15186 = vrcp.f32 %v6170_v63  ;;  %v6412_v34 = vmul.f32 0.03125, %v6408_v62 }
0x2547   :  { %v6414_v50 = vsub.f32 %v6404_v7, %v6412_v34 }
0x2549   :  { %v6416_v59 = vmul.f32 %v6414_v50, %v6414_v50 }
0x254b   :  { %v15185_v25 = vpop.eup %15184  ;;  %v6418_v36 = vsel %vm198_vm4, %v6416_v59, 0.0 }
0x254c   :  { %v6010_v31 = vmul.f32 %v15185_v25, %v15181_v19  ;;  %6419 = vadd.xlane.f32.xlu1 %v6418_v36 }
0x254e   :  { %13744 = vmatmul.mubr.msk.f32.vlgmr.msra.gmra.mrb[76].mxu0 %vm849_vm8, %v6010_v31 }
0x254f   :  { %v15187_v46 = vpop.eup %15186  ;;  %13752 = vmatpush3.msra.mxu0 %v16890_v13  ;;  %13753 = vmatprep.mubr.msk.f32.mxu0 %vm15313_vm5, %v18293_v23  ;;  %v16975_v13 = vld [vmem:[%s18197_s17 + $0x8] sm:$0xf] }
0x2550   :  { %v6172_v0 = vmul.f32 %v15187_v46, %v15183_v22  ;;  %14621 = vmatprep.subr.bf16.mxu0 %v18299_v48  ;;  %v6435_v45 = vrot.slane %v16975_v13, %v18297_v41 }
0x2552   :  { %13754 = vmatmul.mubr.msk.f32.vlgmr.msra.gmra.mrb[78].mxu0 %vm849_vm8, %v6172_v0 }
0x2553   :  { %14623 = vmatpush3.bf16.msra.mxu0 %v16921_v32  ;;  %13767 = vmatprep.mubr.msk.f32.mxu0 %vm15313_vm5, %v18293_v23  ;;  %v6441_v32 = vrot.slane %v16975_v13, %v18298_v16 }
0x25d9   :  { %v6420_v49 = vpop.xlane.xlu1 %6419 }
0x25da   :  { %v6424_v57 = vmul.f32 0.03125, %v6420_v49 }
0x25dc   :  { %v6426_v20 = vadd.f32 1e-05, %v6424_v57  ;;  %v12145_v57 = vld [vmem:[%s18193_s13 + $0x40] sm:$0xff] }
0x25de   :  { %15188 = vrsqrt.f32 %v6426_v20 }
0x25e8   :  { %v15189_v30 = vpop.eup %15188 }
0x25e9   :  { %v6430_v35 = vmul.f32 %v15189_v30, %v6414_v50  ;;  %v12148_v30 = vld [vmem:[%s18193_s13 + $0x58] sm:$0xff] }
0x25eb   :  { %v6436_v19 = vmul.f32 %v6435_v45, %v6430_v35 }
0x25ed   :  { %v16982_v22 = vadd.f32 %v6441_v32, %v6436_v19  ;;  %v12154_v19 = vld [vmem:[%s18195_s15 + $0x88] sm:$0xff] }
0x2621   :  { %v6080_v21 = vpop.f32.mrb[76].mxu0 }
0x2622   :  { %v13745_v56 = vpop.f32.mrb[77].mxu0  ;;  %13768 = vmatmul.mubr.msk.f32.vlgmr.msra.gmra.mrb[80].mxu0 %vm766_vm6, %v6080_v21  ;;  %v12153_v21 = vld [vmem:[%s18195_s15 + $0x80] sm:$0xff] }
0x2623   :  { %v12155_v56 = vld [vmem:[%s18195_s15 + $0x90] sm:$0xff] }
0x2625   :  { %v6242_v7 = vpop.f32.mrb[78].mxu0 }
0x2626   :  { %v13755_v9 = vpop.f32.mrb[79].mxu0  ;;  %13761 = vmatmul.mubr.msk.f32.vlgmr.msra.gmra.mrb[62].mxu1 %vm766_vm6, %v6242_v7  ;;  %v14632_v7 = vpack.c.bf16 %v12154_v19, %v12153_v21  ;;  %v12162_v19 = vld [vmem:[%s18196_s16 + $0x2] ss:$0 sm:$0xff] }
0x2627   :  { %13778 = vmatprep.mubr.msk.f32.mxu1 %vm198_vm4, %v16982_v22  ;;  %v12156_v9 = vld [vmem:[%s18195_s15 + $0x98] sm:$0xff] }
0x2628   :  { %14633 = vmatprep.subr.bf16.mxu0 %v14632_v7 }
0x2629   :  { %14635 = vmatpush3.bf16.msra.mxu0 %v14632_v7 }
0x26f5   :  { %v6388_v40 = vpop.f32.mrb[80].mxu0 }
0x26f6   :  { %v13769_v4 = vpop.f32.mrb[81].mxu0 }
0x26f7   :  { %v12157_v4 = vld [vmem:[%s18195_s15 + $0xa0] sm:$0xff] }
0x26f9   :  { %v6315_v63 = vpop.f32.mrb[62].mxu1 }
0x26fa   :  { %v6389_v62 = vadd.f32 %v6388_v40, %v6315_v63  ;;  %v13762_v34 = vpop.f32.mrb[63].mxu1  ;;  %v14636_v40 = vpack.c.bf16 %v12156_v9, %v12155_v56  ;;  %v12158_v63 = vld [vmem:[%s18195_s15 + $0xa8] sm:$0xff] }
0x26fc   :  { %v6401_v50 = vadd.f32 %v12143_v3, %v6389_v62  ;;  %v12146_v3 = vld [vmem:[%s18193_s13 + $0x48] sm:$0xff]  ;;  %14637 = vmatprep.subr.bf16.mxu0 %v14636_v40  ;;  %v14640_v62 = vpack.c.bf16 %v12158_v63, %v12157_v4 }
0x26fd   :  { %v14624_v20 = vpack.c.bf16 %v12146_v3, %v12145_v57  ;;  %14639 = vmatpush3.bf16.msra.mxu0 %v14636_v40  ;;  %v12160_v57 = vld [vmem:[%s18195_s15 + $0xb8] sm:$0xff] }
0x26fe   :  { %v6405_v59 = vadd.f32 %v6401_v50, %v16796_v47  ;;  %v12147_v47 = vld [vmem:[%s18193_s13 + $0x50] sm:$0xff]  ;;  %14641 = vmatprep.subr.bf16.mxu0 %v14640_v62 }
0x26ff   :  { %14625 = vmatprep.subr.bf16.mxu1 %v14624_v20  ;;  %v14628_v35 = vpack.c.bf16 %v12148_v30, %v12147_v47 }
0x2700   :  { %v6409_v25 = vsel %vm198_vm4, %v6405_v59, 0.0  ;;  %14627 = vmatpush3.bf16.msra.mxu1 %v14624_v20  ;;  %v18301_v20 = vld [vmem:[#allocation10_spill] sm:$0xff] }
0x2701   :  { %6410 = vadd.xlane.f32.xlu0 %v6409_v25  ;;  %14629 = vmatprep.subr.bf16.mxu1 %v14628_v35 }
0x2702   :  { %14643 = vmatpush3.bf16.msra.mxu0 %v14640_v62 }
0x2704   :  { %14631 = vmatpush3.bf16.msra.mxu1 %v14628_v35 }
0x278e   :  { %v6411_v36 = vpop.xlane.xlu0 %6410 }
0x278f   :  { %v6413_v31 = vmul.f32 0.03125, %v6411_v36 }
0x2791   :  { %v6415_v46 = vsub.f32 %v6405_v59, %v6413_v31 }
0x2793   :  { %v6417_v0 = vmul.f32 %v6415_v46, %v6415_v46 }
0x2795   :  { %v6421_v49 = vsel %vm198_vm4, %v6417_v0, 0.0 }
0x2796   :  { %6422 = vadd.xlane.f32.xlu0 %v6421_v49  ;;  %v12159_v49 = vld [vmem:[%s18195_s15 + $0xb0] sm:$0xff] }
0x2797   :  { %v14644_v3 = vpack.c.bf16 %v12160_v57, %v12159_v49 }
0x2799   :  { %14645 = vmatprep.subr.bf16.mxu0 %v14644_v3 }
0x279a   :  { %14647 = vmatpush3.bf16.msra.mxu0 %v14644_v3 }
0x279b   :  { %14665 = vmatprep.subr.bf16.mxu0 %v18301_v20 }
0x2823   :  { %v6423_v34 = vpop.xlane.xlu0 %6422 }
0x2824   :  { %v6425_v50 = vmul.f32 0.03125, %v6423_v34 }
0x2826   :  { %v6427_v59 = vadd.f32 1e-05, %v6425_v50 }
0x2828   :  { %15190 = vrsqrt.f32 %v6427_v59 }
0x2832   :  { %v15191_v25 = vpop.eup %15190 }
0x2833   :  { %v6431_v36 = vmul.f32 %v15191_v25, %v6415_v46 }
0x2835   :  { %v6437_v31 = vmul.f32 %v6435_v45, %v6431_v36  ;;  %v12150_v45 = vld [vmem:[%s18194_s14 + $0x2] ss:$0 sm:$0xff] }
0x2837   :  { %v6443_v0 = vadd.f32 %v6441_v32, %v6437_v31 }
0x2839   :  { %13779 = vmatmul.mubr.msk.f32.vlgmr.msra.gmra.mrb[64].mxu1 %vm198_vm4, %v6443_v0 }
0x283a   :  { %6765 = vmatprep.mubr.f32.mxu1 %v18293_v23 }
0x290c   :  { %v13780_v32 = vpop.f32.mrb[64].mxu1 }
0x290d   :  { %v6535_v46 = vadd.f32 %v13780_v32, %v12150_v45  ;;  %v6529_v47 = vpop.f32.mrb[65].mxu1  ;;  %v12186_v32 = vld [vmem:[%s18269_s7 + $0x38] sm:$0xff] }
0x290e   :  { %v6530_v30 = vadd.f32 %v12150_v45, %v6529_v47  ;;  %v12170_v47 = vld [vmem:[%s18199_s19 + $0x128] sm:$0xff] }
0x290f   :  { %v6539_v21 = vmax.f32 %v6535_v46, 0.0  ;;  %v12166_v46 = vld [vmem:[%s18199_s19 + $0x108] sm:$0xff] }
0x2910   :  { %v6538_v35 = vmax.f32 %v6530_v30, 0.0  ;;  %v14648_v30 = vpack.c.bf16 %v12170_v47, %v12166_v46 }
0x2912   :  { %13797 = vmatprep.mubr.msk.f32.mxu0 %vm1880_vm10, %v6538_v35  ;;  %v12165_v35 = vld [vmem:[%s18199_s19 + $0x100] sm:$0xff]  ;;  %14649 = vmatprep.subr.bf16.mxu1 %v14648_v30 }
0x2913   :  { %13798 = vmatmul.mubr.msk.f32.vlgmr.msra.gmra.mrb[82].mxu0 %vm1880_vm10, %v6539_v21  ;;  %v12169_v21 = vld [vmem:[%s18199_s19 + $0x120] sm:$0xff] }
0x2914   :  { %14667 = vmatpush3.bf16.msra.mxu0 %v16340_v52  ;;  %v18303_v30 = vld [vmem:[#allocation8_spill] sm:$0xff] }
0x2915   :  { %14669 = vmatprep.subr.bf16.mxu0 %v16342_v26 }
0x2918   :  { %14671 = vmatpush3.bf16.msra.mxu0 %v16358_v2 }
0x2919   :  { %14673 = vmatprep.subr.bf16.mxu0 %v16361_v58 }
0x291c   :  { %14675 = vmatpush3.bf16.msra.mxu0 %v16370_v6 }
0x291d   :  { %14677 = vmatprep.subr.bf16.mxu0 %v16432_v42 }
0x2920   :  { %14679 = vmatpush3.bf16.msra.mxu0 %v16445_v51 }
0x2921   :  { %14681 = vmatprep.subr.bf16.mxu0 %v16468_v43 }
0x2924   :  { %14683 = vmatpush3.bf16.msra.mxu0 %v16481_v10 }
0x2925   :  { %14685 = vmatprep.subr.bf16.mxu0 %v16504_v60 }
0x2928   :  { %14687 = vmatpush3.bf16.msra.mxu0 %v16517_v1 }
0x2929   :  { %14689 = vmatprep.subr.bf16.mxu0 %v16540_v29 }
0x292c   :  { %14691 = vmatpush3.bf16.msra.mxu0 %v16553_v39 }
0x292d   :  { %14693 = vmatprep.subr.bf16.mxu0 %v16576_v55 }
0x2930   :  { %14695 = vmatpush3.bf16.msra.mxu0 %v16589_v24 }
0x29e6   :  { %v13799_v56 = vpop.f32.mrb[82].mxu0 }
0x29e7   :  { %v6635_v7 = vadd.f32 %v13799_v56, %v12162_v19  ;;  %v6629_v9 = vpop.f32.mrb[83].mxu0  ;;  %v12174_v56 = vld [vmem:[%s18199_s19 + $0x148] sm:$0xff] }
0x29e8   :  { %v6630_v40 = vadd.f32 %v12162_v19, %v6629_v9  ;;  %v14650_v19 = vpack.c.bf16 %v12169_v21, %v12165_v35  ;;  %v12173_v9 = vld [vmem:[%s18199_s19 + $0x140] sm:$0xff]  ;;  %v6675_v35 = vrot.slane %v16975_v13, %v18303_v30  ;;  %v12167_v21 = vld [vmem:[%s18199_s19 + $0x110] sm:$0xff] }
0x29e9   :  { %v6639_v4 = vadd.f32 %v6635_v7, %v6443_v0  ;;  %v12178_v7 = vld [vmem:[%s18199_s19 + $0x168] sm:$0xff] }
0x29ea   :  { %v6638_v63 = vadd.f32 %v6630_v40, %v16982_v22  ;;  %v12185_v22 = vld [vmem:[%s18269_s7 + $0x30] sm:$0xff]  ;;  %14651 = vmatpush1.bf16.msra.mxu1 %v14650_v19  ;;  %v14652_v40 = vpack.c.bf16 %v12178_v7, %v12174_v56  ;;  %v12176_v7 = vld [vmem:[%s18199_s19 + $0x158] sm:$0xff] }
0x29eb   :  { %v6643_v62 = vsel %vm198_vm4, %v6639_v4, 0.0  ;;  %v12171_v19 = vld [vmem:[%s18199_s19 + $0x130] sm:$0xff] }
0x29ec   :  { %6644 = vadd.xlane.f32.xlu0 %v6643_v62  ;;  %v6640_v34 = vsel %vm198_vm4, %v6638_v63, 0.0  ;;  %14653 = vmatprep.subr.bf16.mxu1 %v14652_v40  ;;  %v12168_v62 = vld [vmem:[%s18199_s19 + $0x118] sm:$0xff]  ;;  %v14658_v40 = vpack.c.bf16 %v12171_v19, %v12167_v21 }
0x29ed   :  { %6641 = vadd.xlane.f32.xlu1 %v6640_v34  ;;  %v12172_v34 = vld [vmem:[%s18199_s19 + $0x138] sm:$0xff] }
0x2a79   :  { %v6645_v50 = vpop.xlane.xlu0 %6644 }
0x2a7a   :  { %v6647_v59 = vmul.f32 0.03125, %v6645_v50  ;;  %v6642_v25 = vpop.xlane.xlu1 %6641  ;;  %v14656_v50 = vpack.c.bf16 %v12172_v34, %v12168_v62  ;;  %v12175_v62 = vld [vmem:[%s18199_s19 + $0x150] sm:$0xff] }
0x2a7b   :  { %v6646_v36 = vmul.f32 0.03125, %v6642_v25 }
0x2a7c   :  { %v6649_v31 = vsub.f32 %v6639_v4, %v6647_v59  ;;  %v12177_v4 = vld [vmem:[%s18199_s19 + $0x160] sm:$0xff] }
0x2a7d   :  { %v6648_v49 = vsub.f32 %v6638_v63, %v6646_v36  ;;  %v14654_v63 = vpack.c.bf16 %v12177_v4, %v12173_v9 }
0x2a7e   :  { %v6651_v57 = vmul.f32 %v6649_v31, %v6649_v31 }
0x2a7f   :  { %v6650_v3 = vmul.f32 %v6648_v49, %v6648_v49  ;;  %14655 = vmatpush1.bf16.msra.mxu1 %v14654_v63 }
0x2a80   :  { %v6655_v45 = vsel %vm198_vm4, %v6651_v57, 0.0  ;;  %14657 = vmatprep.subr.bf16.mxu1 %v14656_v50 }
0x2a81   :  { %6656 = vadd.xlane.f32.xlu0 %v6655_v45  ;;  %v6652_v0 = vsel %vm198_vm4, %v6650_v3, 0.0 }
0x2a82   :  { %6653 = vadd.xlane.f32.xlu1 %v6652_v0 }
0x2a93   :  { %7060 = vperm.xlu1 %15111, %v12185_v22   ;;  %v18302_v22 = vld [vmem:[#allocation7_spill] sm:$0xff] }
0x2a97   :  { %7063 = vperm.xlu0 %15110, %v12186_v32   ;;  %v6669_v32 = vrot.slane %v16975_v13, %v18302_v22 }
0x2b0e   :  { %v6657_v59 = vpop.xlane.xlu0 %6656 }
0x2b0f   :  { %v6659_v25 = vmul.f32 0.03125, %v6657_v59  ;;  %v6654_v36 = vpop.xlane.xlu1 %6653  ;;  %v18304_v59 = vld [vmem:[#allocation11_spill] sm:$0xff] }
0x2b10   :  { %v6658_v57 = vmul.f32 0.03125, %v6654_v36  ;;  %v12190_v36 = vld [vmem:[%s18270_s21 + $0xb0] sm:$0xff] }
0x2b11   :  { %v6661_v3 = vadd.f32 1e-05, %v6659_v25  ;;  %v12189_v25 = vld [vmem:[%s18270_s21 + $0xa8] sm:$0xff] }
0x2b12   :  { %v6660_v45 = vadd.f32 1e-05, %v6658_v57  ;;  %v17144_v57 = vpack.c.bf16 %v12190_v36, %v12189_v25 }
0x2b13   :  { %15192 = vrsqrt.f32 %v6661_v3 }
0x2b14   :  { %15194 = vrsqrt.f32 %v6660_v45  ;;  %14729 = vmatprep.subr.bf16.mxu0 %v17144_v57  ;;  %v15261_v45 = vld [vmem:[%s18198_s18] sm:$0xff] }
0x2b1d   :  { %v15193_v0 = vpop.eup %15192 }
0x2b1e   :  { %v15195_v46 = vpop.eup %15194  ;;  %v6665_v56 = vmul.f32 %v15193_v0, %v6649_v31  ;;  %v12179_v31 = vld [vmem:[%s18199_s19 + $0x170] sm:$0xff] }
0x2b1f   :  { %v6664_v47 = vmul.f32 %v15195_v46, %v6648_v49  ;;  %v12180_v49 = vld [vmem:[%s18199_s19 + $0x178] sm:$0xff]  ;;  %v14662_v34 = vpack.c.bf16 %v12179_v31, %v12175_v62  ;;  %v15262_v46 = vld [vmem:[%s18198_s18 + $0x8] sm:$0xff] }
0x2b20   :  { %v6671_v4 = vmul.f32 %v6669_v32, %v6665_v56  ;;  %v14660_v63 = vpack.c.bf16 %v12180_v49, %v12176_v7  ;;  %v15263_v7 = vld [vmem:[%s18198_s18 + $0x20] sm:$0xff] }
0x2b21   :  { %v6670_v9 = vmul.f32 %v6669_v32, %v6664_v47 }
0x2b22   :  { %v6677_v50 = vadd.f32 %v6675_v35, %v6671_v4 }
0x2b23   :  { %v6676_v13 = vadd.f32 %v6675_v35, %v6670_v9 }
0x2b25   :  { %12181 = vmatmul.mubr.msk.f32.vlgmr.msra.gmra.mrb[66].mxu1 %vm198_vm4, %v6676_v13 }
0x2b26   :  { %14659 = vmatpush1.bf16.msra.mxu1 %v14658_v40  ;;  %6771 = vmatprep.mubr.f32.mxu1 %v18293_v23 }
0x2b27   :  { %14661 = vmatprep.subr.bf16.mxu1 %v14660_v63 }
0x2b29   :  { %12182 = vmatmul.mubr.msk.f32.gmra.mrb[68].mxu1 %vm198_vm4, %v6677_v50 }
0x2b2a   :  { %14663 = vmatpush1.bf16.msra.mxu1 %v14662_v34  ;;  %6842 = vmatprep.mubr.f32.mxu1 %v18293_v23 }
0x2b2b   :  { %14697 = vmatprep.subr.bf16.mxu1 %v18304_v59 }
0x2b2d   :  { %12183 = vmatmul.mubr.msk.f32.vlgmr.msra.gmra.mrb[70].mxu1 %vm198_vm4, %v6676_v13  ;;  %v15264_v13 = vld [vmem:[%s18198_s18 + $0x28] sm:$0xff] }
0x2b2e   :  { %6848 = vmatprep.mubr.f32.mxu1 %v18293_v23  ;;  %14699 = vmatpush3.bf16.msra.mxu1 %v16416_v38 }
0x2b2f   :  { %14701 = vmatprep.subr.bf16.mxu1 %v16443_v54 }
0x2b31   :  { %12184 = vmatmul.mubr.msk.f32.gmra.mrb[72].mxu1 %vm198_vm4, %v6677_v50 }
0x2b32   :  { %14703 = vmatpush3.bf16.msra.mxu1 %v16454_v53 }
0x2b33   :  { %14705 = vmatprep.subr.bf16.mxu1 %v16479_v8 }
0x2b36   :  { %14707 = vmatpush3.bf16.msra.mxu1 %v16490_v18 }
0x2b37   :  { %14709 = vmatprep.subr.bf16.mxu1 %v16515_v17 }
0x2b3a   :  { %14711 = vmatpush3.bf16.msra.mxu1 %v16526_v11 }
0x2b3b   :  { %14713 = vmatprep.subr.bf16.mxu1 %v16551_v33 }
0x2b3e   :  { %14715 = vmatpush3.bf16.msra.mxu1 %v16562_v44 }
0x2b3f   :  { %14717 = vmatprep.subr.bf16.mxu1 %v16587_v5 }
0x2b42   :  { %14719 = vmatpush3.bf16.msra.mxu1 %v16598_v12 }
0x2b43   :  { %14721 = vmatprep.subr.bf16.mxu1 %v16609_v15 }
0x2b46   :  { %14723 = vmatpush3.bf16.msra.mxu1 %v16618_v27  ;;  %v7061_v27 = vpop.permute.xlu1 %7060 }
0x2b47   :  { %14725 = vmatprep.subr.bf16.mxu1 %v18294_v28  ;;  %vm7065_vm3 = vcmp.eq.s32.totalorder %v15482_v14, %v7061_v27 }
0x2b48   :  { %v12187_v27 = vsel %vm7065_vm3, 1.0, %v18293_v23 }
0x2b4a   :  { %14727 = vmatpush3.bf16.msra.mxu1 %v18295_v61 }
0x2bf8   :  { %v6767_v3 = vpop.f32.mrb[66].mxu1 }
0x2bf9   :  { %v6855_v0 = vmul.f32 %v15261_v45, %v6767_v3  ;;  %v6769_v32 = vpop.f32.mrb[67].mxu1  ;;  %v15265_v3 = vld [vmem:[%s18198_s18 + $0x10] sm:$0xff] }
0x2bfa   :  { %v6856_v47 = vmul.f32 %v15262_v46, %v6769_v32 }
0x2bfb   :  { %v6863_v35 = vrot.slane %v6855_v0, 4 }
0x2bfc   :  { %v6869_v21 = vrot.slane %v6856_v47, 4  ;;  %v6773_v19 = vpop.f32.mrb[68].mxu1 }
0x2bfd   :  { %v6864_v56 = vadd.f32 %v6863_v35, %v6855_v0  ;;  %v6859_v49 = vmul.f32 %v15263_v7, %v6773_v19  ;;  %v6775_v9 = vpop.f32.mrb[69].mxu1 }
0x2bfe   :  { %v6870_v40 = vadd.f32 %v6869_v21, %v6856_v47  ;;  %v6860_v4 = vmul.f32 %v15264_v13, %v6775_v9  ;;  %v15266_v47 = vld [vmem:[%s18198_s18 + $0x18] sm:$0xff] }
0x2bff   :  { %v6865_v63 = vrot.slane %v6864_v56, 2  ;;  %v6887_v62 = vrot.slane %v6859_v49, 4 }
0x2c00   :  { %v6871_v31 = vrot.slane %v6870_v40, 2  ;;  %v6893_v34 = vrot.slane %v6860_v4, 4  ;;  %v6844_v50 = vpop.f32.mrb[70].mxu1 }
0x2c01   :  { %v6866_v25 = vadd.f32 %v6865_v63, %v6864_v56  ;;  %v6888_v36 = vadd.f32 %v6887_v62, %v6859_v49  ;;  %v6857_v45 = vmul.f32 %v15265_v3, %v6844_v50  ;;  %v6846_v0 = vpop.f32.mrb[71].mxu1  ;;  %v15267_v62 = vld [vmem:[%s18198_s18 + $0x30] sm:$0xff]  ;;  %v15268_v3 = vld [vmem:[%s18198_s18 + $0x38] sm:$0xff] }
0x2c02   :  { %v6872_v32 = vadd.f32 %v6871_v31, %v6870_v40  ;;  %v6894_v46 = vadd.f32 %v6893_v34, %v6860_v4  ;;  %v6858_v35 = vmul.f32 %v15266_v47, %v6846_v0 }
0x2c03   :  { %v6889_v21 = vrot.slane %v6888_v36, 2  ;;  %v6875_v19 = vrot.slane %v6857_v45, 4  ;;  %v6867_v56 = vrot.slane %v6866_v25, 1 }
0x2c04   :  { %v6895_v7 = vrot.slane %v6894_v46, 2  ;;  %v6881_v9 = vrot.slane %v6858_v35, 4  ;;  %v6850_v13 = vpop.f32.mrb[72].mxu1  ;;  %v6873_v4 = vrot.slane %v6872_v32, 1 }
0x2c05   :  { %v6890_v49 = vadd.f32 %v6889_v21, %v6888_v36  ;;  %v6876_v63 = vadd.f32 %v6875_v19, %v6857_v45  ;;  %v6861_v50 = vmul.f32 %v15267_v62, %v6850_v13  ;;  %v6852_v40 = vpop.f32.mrb[73].mxu1  ;;  %v6868_v19 = vadd.f32 %v6867_v56, %v6866_v25 }
0x2c06   :  { %v6896_v31 = vadd.f32 %v6895_v7, %v6894_v46  ;;  %v6882_v34 = vadd.f32 %v6881_v9, %v6858_v35  ;;  %v6862_v0 = vmul.f32 %v15268_v3, %v6852_v40  ;;  %v12191_v46 = vld [vmem:[%s18270_s21 + $0xb8] sm:$0xff]  ;;  %v12192_v35 = vld [vmem:[%s18270_s21 + $0xc0] sm:$0xff]  ;;  %v6874_v62 = vadd.f32 %v6873_v4, %v6872_v32  ;;  %v12194_v32 = vld [vmem:[%s18270_s21 + $0xd0] sm:$0xff] }
0x2c07   :  { %v6891_v47 = vrot.slane %v6890_v49, 1  ;;  %v6877_v61 = vrot.slane %v6876_v63, 2  ;;  %v6899_v28 = vrot.slane %v6861_v50, 4 }
0x2c08   :  { %v6897_v36 = vrot.slane %v6896_v31, 1  ;;  %v6883_v45 = vrot.slane %v6882_v34, 2  ;;  %v6905_v21 = vrot.slane %v6862_v0, 4 }
0x2c09   :  { %v6892_v15 = vadd.f32 %v6891_v47, %v6890_v49  ;;  %v6878_v12 = vadd.f32 %v6877_v61, %v6876_v63  ;;  %v6900_v13 = vadd.f32 %v6899_v28, %v6861_v50  ;;  %v14732_v61 = vpack.c.bf16 %v12192_v35, %v12191_v46  ;;  %v12193_v50 = vld [vmem:[%s18270_s21 + $0xc8] sm:$0xff]  ;;  %v7064_v46 = vpop.permute.xlu0 %7063 }
0x2c0a   :  { %v6884_v7 = vadd.f32 %v6883_v45, %v6882_v34  ;;  %v6906_v9 = vadd.f32 %v6905_v21, %v6862_v0  ;;  %v6898_v40 = vadd.f32 %v6897_v36, %v6896_v31  ;;  %v14736_v0 = vpack.c.bf16 %v12194_v32, %v12193_v50 }
0x2c0b   :  { %v6901_v3 = vrot.slane %v6900_v13, 2  ;;  %v6911_v25 = vsel %vm2242_vm12, %v6868_v19, %v6892_v15  ;;  %v6879_v49 = vrot.slane %v6878_v12, 1  ;;  %vm7066_vm7 = vcmp.eq.s32.totalorder %v15482_v14, %v7064_v46  ;;  %v12209_v46 = vld [vmem:[%s18272_s2 + $0xe0] sm:$0xff] }
0x2c0c   :  { %v6907_v56 = vrot.slane %v6906_v9, 2  ;;  %v6912_v28 = vsel %vm2242_vm12, %v6874_v62, %v6898_v40  ;;  %v6885_v4 = vrot.slane %v6884_v7, 1 }
0x2c0d   :  { %v6902_v63 = vadd.f32 %v6901_v3, %v6900_v13  ;;  %6979 = vmatprep.mubr.f32.mxu0 %v6912_v28  ;;  %v6880_v47 = vadd.f32 %v6879_v49, %v6878_v12  ;;  %v12188_v12 = vsel %vm7066_vm7, 1.0, %v18293_v23 }
0x2c0e   :  { %v6908_v31 = vadd.f32 %v6907_v56, %v6906_v9  ;;  %6980 = vmatmul.mubr.f32.vlgmr.msra.gmra.mrb[84].mxu0 %v6911_v25  ;;  %v6886_v45 = vadd.f32 %v6885_v4, %v6884_v7 }
0x2c0f   :  { %v6903_v15 = vrot.slane %v6902_v63, 1  ;;  %14731 = vmatpush3.bf16.msra.mxu0 %v17144_v57  ;;  %13814 = vmatprep.mubr.msk.f32.mxu0 %vm108_vm1, %v12187_v27  ;;  %v12195_v57 = vld [vmem:[%s18270_s21 + $0xd8] sm:$0x3] }
0x2c10   :  { %v6909_v34 = vrot.slane %v6908_v31, 1  ;;  %14733 = vmatprep.subr.bf16.mxu0 %v14732_v61 }
0x2c11   :  { %v6904_v36 = vadd.f32 %v6903_v15, %v6902_v63 }
0x2c12   :  { %v6910_v21 = vadd.f32 %v6909_v34, %v6908_v31 }
0x2c13   :  { %14735 = vmatpush3.bf16.msra.mxu0 %v14732_v61  ;;  %v6913_v19 = vsel %vm2242_vm12, %v6880_v47, %v6904_v36  ;;  %v15269_v61 = vld [vmem:[%s18271_s0] sm:$0xff] }
0x2c14   :  { %v6914_v13 = vsel %vm2242_vm12, %v6886_v45, %v6910_v21  ;;  %14737 = vmatprep.subr.bf16.mxu0 %v14736_v0 }
0x2c15   :  { %7049 = vmatprep.mubr.f32.mxu1 %v6914_v13  ;;  %v12202_v13 = vld [vmem:[%s18272_s2 + $0xc8] sm:$0xff] }
0x2c16   :  { %7050 = vmatmul.mubr.f32.vlgmr.msra.gmra.mrb[74].mxu1 %v6913_v19  ;;  %v12201_v19 = vld [vmem:[%s18272_s2 + $0xc0] sm:$0xff] }
0x2c17   :  { %14739 = vmatpush3.bf16.msra.mxu0 %v14736_v0 }
0x2c18   :  { %13812 = vmatprep.subr.msk.mxu0 %vm115_vm0, %v12195_v57 }
0x2c1b   :  { %13813 = vmatpush3.msk.msra.mxu0 %vm115_vm0, %v12195_v57  ;;  %v14740_v57 = vpack.c.bf16 %v12202_v13, %v12201_v19 }
0x2c1c   :  { %13815 = vmatmul.mubr.msk.f32.vlgmr.msra.gmra.mrb[86].mxu0 %vm108_vm1, %v12188_v12  ;;  %v12210_v12 = vld [vmem:[%s18272_s2 + $0xe8] sm:$0xff] }
0x2c1d   :  { %14741 = vmatprep.subr.bf16.mxu1 %v14740_v57 }
0x2c1e   :  { %14743 = vmatpush3.bf16.msra.mxu1 %v14740_v57 }
0x2ce1   :  { %v12883_v35 = vpop.f32.mrb[84].mxu0 }
0x2ce2   :  { %v12884_v7 = vpop.f32.mrb[85].mxu0 }
0x2ce3   :  { %v12885_v9 = vadd.f32 %v12884_v7, %v12883_v35  ;;  %v14748_v35 = vpack.c.bf16 %v12210_v12, %v12209_v46  ;;  %v12203_v7 = vld [vmem:[%s18272_s2 + $0xd0] sm:$0xff] }
0x2ce5   :  { %14749 = vmatprep.subr.bf16.mxu0 %v14748_v35 }
0x2ce6   :  { %14751 = vmatpush3.bf16.msra.mxu0 %v14748_v35 }
0x2ce9   :  { %v12918_v62 = vpop.f32.mrb[74].mxu1 }
0x2cea   :  { %v12919_v40 = vpop.f32.mrb[75].mxu1 }
0x2ceb   :  { %v12920_v3 = vadd.f32 %v12919_v40, %v12918_v62  ;;  %v12211_v62 = vld [vmem:[%s18272_s2 + $0xf0] sm:$0xff] }
0x2ced   :  { %v7052_v25 = vadd.f32 %v12920_v3, %v12885_v9  ;;  %v12204_v9 = vld [vmem:[%s18272_s2 + $0xd8] sm:$0xff] }
0x2cee   :  { %v14744_v40 = vpack.c.bf16 %v12204_v9, %v12203_v7  ;;  %v12212_v3 = vld [vmem:[%s18272_s2 + $0xf8] sm:$0xff]  ;;  %v12219_v7 = vld [vmem:[%s18273_s27 + $0xd0] sm:$0xff] }
0x2cef   :  { %v17200_v56 = vadd.f32 %v7052_v25, %v16732_v37  ;;  %v13816_v28 = vpop.f32.mrb[86].mxu0  ;;  %v14752_v25 = vpack.c.bf16 %v12212_v3, %v12211_v62  ;;  %v12220_v9 = vld [vmem:[%s18273_s27 + $0xd8] sm:$0xff]  ;;  %v12227_v62 = vld [vmem:[%s18273_s27 + $0xf0] sm:$0xff]  ;;  %v12233_v3 = vld [vmem:[%s18274_s9 + $0xc0] sm:$0xff] }
0x2cf0   :  { %v7160_v49 = vadd.f32 %v15269_v61, %v13816_v28  ;;  %v7154_v63 = vpop.f32.mrb[87].mxu0  ;;  %14745 = vmatprep.subr.bf16.mxu1 %v14744_v40  ;;  %v12217_v28 = vld [vmem:[%s18273_s27 + $0xc0] sm:$0xff] }
0x2cf1   :  { %v7155_v50 = vadd.f32 %v15269_v61, %v7154_v63  ;;  %14753 = vmatprep.subr.bf16.mxu0 %v14752_v25  ;;  %14747 = vmatpush3.bf16.msra.mxu1 %v14744_v40  ;;  %v12218_v61 = vld [vmem:[%s18273_s27 + $0xc8] sm:$0xff] }
0x2cf2   :  { %v7172_v32 = vsel %vm198_vm4, %v7160_v49, 0.0  ;;  %14755 = vmatpush3.bf16.msra.mxu0 %v14752_v25  ;;  %v14756_v63 = vpack.c.bf16 %v12218_v61, %v12217_v28  ;;  %v14760_v25 = vpack.c.bf16 %v12220_v9, %v12219_v7  ;;  %v12234_v61 = vld [vmem:[%s18274_s9 + $0xc8] sm:$0xff]  ;;  %v12230_v7 = vld [vmem:[%s18279_s6 + $0x7] ss:$0 sm:$0xff] }
0x2cf3   :  { %7173 = vadd.xlane.f32.xlu0 %v7172_v32  ;;  %v7169_v27 = vsel %vm198_vm4, %v7155_v50, 0.0 }
0x2cf4   :  { %7170 = vadd.xlane.f32.xlu1 %v7169_v27  ;;  %14757 = vmatprep.subr.bf16.mxu1 %v14756_v63 }
0x2d80   :  { %v7174_v4 = vpop.xlane.xlu0 %7173 }
0x2d81   :  { %v7176_v31 = vmul.f32 0.03125, %v7174_v4  ;;  %v7171_v15 = vpop.xlane.xlu1 %7170 }
0x2d82   :  { %v7175_v34 = vmul.f32 0.03125, %v7171_v15 }
0x2d83   :  { %v7178_v37 = vsub.f32 %v7160_v49, %v7176_v31  ;;  %v12225_v49 = vld [vmem:[%s18273_s27 + $0xe0] sm:$0xff] }
0x2d84   :  { %v7177_v0 = vsub.f32 %v7155_v50, %v7175_v34  ;;  %v12226_v50 = vld [vmem:[%s18273_s27 + $0xe8] sm:$0xff] }
0x2d85   :  { %v7180_v47 = vmul.f32 %v7178_v37, %v7178_v37  ;;  %v14764_v32 = vpack.c.bf16 %v12226_v50, %v12225_v49  ;;  %v12241_v49 = vld [vmem:[%s18274_s9 + $0xe0] sm:$0xff]  ;;  %v12242_v50 = vld [vmem:[%s18274_s9 + $0xe8] sm:$0xff] }
0x2d86   :  { %v7179_v36 = vmul.f32 %v7177_v0, %v7177_v0 }
0x2d87   :  { %v7184_v45 = vsel %vm198_vm4, %v7180_v47, 0.0  ;;  %14765 = vmatprep.subr.bf16.mxu0 %v14764_v32 }
0x2d88   :  { %7185 = vadd.xlane.f32.xlu0 %v7184_v45  ;;  %v7181_v21 = vsel %vm198_vm4, %v7179_v36, 0.0  ;;  %v12200_v36 = vld [vmem:[%s18276_s1 + $0x6] sm:$0x3] }
0x2d89   :  { %7182 = vadd.xlane.f32.xlu1 %v7181_v21  ;;  %v7198_v45 = vrot.slane %v12200_v36, %v18297_v41  ;;  %v7204_v46 = vrot.slane %v12200_v36, %v18298_v16  ;;  %v12206_v36 = vld [vmem:[%s18278_s30 + $0x6] ss:$0 sm:$0xff] }
0x2e15   :  { %v7186_v27 = vpop.xlane.xlu0 %7185 }
0x2e16   :  { %v7188_v4 = vmul.f32 0.03125, %v7186_v27  ;;  %v7183_v31 = vpop.xlane.xlu1 %7182  ;;  %v14772_v27 = vpack.c.bf16 %v12234_v61, %v12233_v3 }
0x2e17   :  { %v7187_v15 = vmul.f32 0.03125, %v7183_v31  ;;  %v12235_v31 = vld [vmem:[%s18274_s9 + $0xd0] sm:$0xff] }
0x2e18   :  { %v7190_v34 = vadd.f32 1e-05, %v7188_v4  ;;  %v14780_v4 = vpack.c.bf16 %v12242_v50, %v12241_v49 }
0x2e19   :  { %v7189_v47 = vadd.f32 1e-05, %v7187_v15  ;;  %v12236_v15 = vld [vmem:[%s18274_s9 + $0xd8] sm:$0xff] }
0x2e1a   :  { %15196 = vrsqrt.f32 %v7190_v34  ;;  %v14776_v34 = vpack.c.bf16 %v12236_v15, %v12235_v31  ;;  %v12246_v31 = vld [vmem:[%s18280_s4 + $0x7] ss:$0 sm:$0xff] }
0x2e1b   :  { %15198 = vrsqrt.f32 %v7189_v47 }
0x2e24   :  { %v15197_v21 = vpop.eup %15196 }
0x2e25   :  { %v15199_v19 = vpop.eup %15198  ;;  %v7194_v13 = vmul.f32 %v15197_v21, %v7178_v37  ;;  %v12228_v37 = vld [vmem:[%s18273_s27 + $0xf8] sm:$0xff] }
0x2e26   :  { %v7193_v57 = vmul.f32 %v15199_v19, %v7177_v0  ;;  %v14768_v28 = vpack.c.bf16 %v12228_v37, %v12227_v62 }
0x2e27   :  { %v7200_v12 = vmul.f32 %v7198_v45, %v7194_v13 }
0x2e28   :  { %v7199_v35 = vmul.f32 %v7198_v45, %v7193_v57  ;;  %v12214_v45 = vld [vmem:[%s18278_s30 + $0x7] ss:$0 sm:$0xff] }
0x2e29   :  { %v17264_v0 = vadd.f32 %v7204_v46, %v7200_v12 }
0x2e2a   :  { %v17262_v40 = vadd.f32 %v7204_v46, %v7199_v35  ;;  %v12222_v35 = vld [vmem:[%s18279_s6 + $0x6] ss:$0 sm:$0xff] }
0x2e2c   :  { %13825 = vmatprep.mubr.msk.f32.mxu1 %vm198_vm4, %v17262_v40  ;;  %13836 = vmatprep.mubr.msk.f32.mxu0 %vm198_vm4, %v17262_v40 }
0x2e2d   :  { %13826 = vmatmul.mubr.msk.f32.vlgmr.msra.gmra.mrb[76].mxu1 %vm198_vm4, %v17264_v0  ;;  %13837 = vmatmul.mubr.msk.f32.vlgmr.msra.gmra.mrb[88].mxu0 %vm198_vm4, %v17264_v0 }
0x2e2e   :  { %14759 = vmatpush3.bf16.msra.mxu1 %v14756_v63  ;;  %14767 = vmatpush3.bf16.msra.mxu0 %v14764_v32  ;;  %v12243_v63 = vld [vmem:[%s18274_s9 + $0xf0] sm:$0xff]  ;;  %v12244_v32 = vld [vmem:[%s18274_s9 + $0xf8] sm:$0xff] }
0x2e2f   :  { %13847 = vmatprep.mubr.msk.f32.mxu1 %vm198_vm4, %v17262_v40  ;;  %13858 = vmatprep.mubr.msk.f32.mxu0 %vm198_vm4, %v17262_v40  ;;  %v14784_v47 = vpack.c.bf16 %v12244_v32, %v12243_v63 }
0x2e30   :  { %14761 = vmatprep.subr.bf16.mxu1 %v14760_v25  ;;  %14769 = vmatprep.subr.bf16.mxu0 %v14768_v28 }
0x2e32   :  { %14763 = vmatpush3.bf16.msra.mxu1 %v14760_v25  ;;  %14771 = vmatpush3.bf16.msra.mxu0 %v14768_v28 }
0x2e33   :  { %14773 = vmatprep.subr.bf16.mxu1 %v14772_v27  ;;  %14781 = vmatprep.subr.bf16.mxu0 %v14780_v4 }
0x2e35   :  { %13848 = vmatmul.mubr.msk.f32.vlgmr.msra.gmra.mrb[78].mxu1 %vm198_vm4, %v17264_v0  ;;  %13859 = vmatmul.mubr.msk.f32.vlgmr.msra.gmra.mrb[90].mxu0 %vm198_vm4, %v17264_v0 }
0x2e36   :  { %14775 = vmatpush3.bf16.msra.mxu1 %v14772_v27  ;;  %13869 = vmatprep.mubr.msk.f32.mxu1 %vm198_vm4, %v17262_v40 }
0x2e37   :  { %14783 = vmatpush3.bf16.msra.mxu0 %v14780_v4  ;;  %13880 = vmatprep.mubr.msk.f32.mxu0 %vm198_vm4, %v17262_v40  ;;  %v12238_v4 = vld [vmem:[%s18280_s4 + $0x6] ss:$0 sm:$0xff] }
0x2e38   :  { %14777 = vmatprep.subr.bf16.mxu1 %v14776_v34  ;;  %14785 = vmatprep.subr.bf16.mxu0 %v14784_v47 }
0x2e3a   :  { %14779 = vmatpush3.bf16.msra.mxu1 %v14776_v34 }
0x2e3b   :  { %14787 = vmatpush3.bf16.msra.mxu0 %v14784_v47  ;;  %13883 = vmatprep.subr.mxu1 %v18293_v23 }
0x2e3c   :  { %13893 = vmatprep.subr.mxu0 %v18293_v23 }
0x2e3d   :  { %13870 = vmatmul.mubr.msk.f32.vlgmr.msra.gmra.mrb[80].mxu1 %vm198_vm4, %v17264_v0 }
0x2e3e   :  { %13881 = vmatmul.mubr.msk.f32.vlgmr.msra.gmra.mrb[92].mxu0 %vm198_vm4, %v17264_v0  ;;  %13885 = vmatprep.mubr.msk.f32.mxu1 %vm15313_vm5, %v18293_v23 }
0x2e3f   :  { %13895 = vmatprep.mubr.msk.f32.mxu0 %vm15313_vm5, %v18293_v23 }
0x2f00   :  { %v13827_v21 = vpop.f32.mrb[76].mxu1  ;;  %v13838_v19 = vpop.f32.mrb[88].mxu0 }
0x2f01   :  { %v17326_v13 = vadd.f32 %v13827_v21, %v12206_v36  ;;  %v17328_v46 = vadd.f32 %v13838_v19, %v12214_v45  ;;  %v7292_v57 = vpop.f32.mrb[77].mxu1  ;;  %v7380_v12 = vpop.f32.mrb[89].mxu0  ;;  %v12199_v21 = vld [vmem:[%s18281_s26 + $0x6] sm:$0x3]  ;;  %v18305_v19 = vmov -1e+09  }
0x2f02   :  { %v7293_v50 = vadd.f32 %v12206_v36, %v7292_v57  ;;  %v7381_v27 = vadd.f32 %v12214_v45, %v7380_v12  ;;  %vm7165_vm9 = vcmp.ne.s32.totalorder %v12199_v21, 0 }
0x2f03   :  { %v17365_v57 = vsel %vm7165_vm9, 0.0, %v18305_v19 }
0x2f04   :  { %v7821_v12 = vrot.slane %v17365_v57, %v18297_v41 }
0x2f08   :  { %v13849_v9 = vpop.f32.mrb[78].mxu1  ;;  %v13860_v62 = vpop.f32.mrb[90].mxu0 }
0x2f09   :  { %v17336_v37 = vadd.f32 %v13849_v9, %v12222_v35  ;;  %v17338_v3 = vadd.f32 %v13860_v62, %v12230_v7  ;;  %v7468_v25 = vpop.f32.mrb[79].mxu1  ;;  %v7556_v28 = vpop.f32.mrb[91].mxu0 }
0x2f0a   :  { %v7469_v61 = vadd.f32 %v12222_v35, %v7468_v25  ;;  %v7557_v49 = vadd.f32 %v12230_v7, %v7556_v28 }
0x2f0c   :  { %13884 = vmatpush3.xpose.msk.msra.mxu1 %vm766_vm6, %v7469_v61  ;;  %13894 = vmatpush3.xpose.msk.msra.mxu0 %vm766_vm6, %v7557_v49 }
0x2f0d   :  { %13888 = vmatprep.subr.mxu1 %v18293_v23  ;;  %14788 = vmatprep.subr.bf16.mxu0 %v18299_v48 }
0x2f0f   :  { %13886 = vmatmul.mubr.msk.f32.vlgmr.msra.gmra.mrb[82].mxu1 %vm766_vm6, %v7293_v50  ;;  %13896 = vmatmul.mubr.msk.f32.vlgmr.msra.gmra.mrb[94].mxu0 %vm766_vm6, %v7381_v27 }
0x2f10   :  { %v13871_v15 = vpop.f32.mrb[80].mxu1  ;;  %13890 = vmatprep.mubr.msk.f32.mxu1 %vm15313_vm5, %v18293_v23  ;;  %13907 = vmatprep.mubr.msk.f32.mxu0 %vm15313_vm5, %v18293_v23 }
0x2f11   :  { %v17356_v63 = vadd.f32 %v13871_v15, %v12238_v4  ;;  %v13882_v32 = vpop.f32.mrb[92].mxu0  ;;  %v7644_v34 = vpop.f32.mrb[81].mxu1 }
0x2f12   :  { %v17358_v47 = vadd.f32 %v13882_v32, %v12246_v31  ;;  %v7645_v36 = vadd.f32 %v12238_v4, %v7644_v34  ;;  %v7732_v45 = vpop.f32.mrb[93].mxu0 }
0x2f14   :  { %13889 = vmatpush3.msra.mxu1 %v7645_v36 }
0x2f15   :  { %13898 = vmatprep.subr.mxu1 %v18293_v23 }
0x2fe2   :  { %v7813_v35 = vpop.f32.mrb[82].mxu1  ;;  %v7982_v7 = vpop.f32.mrb[94].mxu0 }
0x2fe3   :  { %v7817_v9 = vmul.f32 0.25, %v7813_v35  ;;  %v7986_v62 = vmul.f32 0.25, %v7982_v7  ;;  %v13887_v25 = vpop.f32.mrb[83].mxu1  ;;  %v13897_v28 = vpop.f32.mrb[95].mxu0 }
0x2fe5   :  { %v7987_v61 = vadd.f32 %v7986_v62, %v7821_v12  ;;  %v7822_v49 = vadd.f32 %v7821_v12, %v7817_v9  ;;  %v12257_v9 = vld [vmem:[%s18191_s11 + $0x70] sm:$0xff]  ;;  %v12258_v62 = vld [vmem:[%s18191_s11 + $0x78] sm:$0xff] }
0x2fe6   :  { %v14789_v28 = vpack.c.bf16 %v12258_v62, %v12257_v9 }
0x2fe7   :  { %v7988_v50 = vsel %vm849_vm8, %v7987_v61, -inf  ;;  %v7823_v27 = vsel %vm849_vm8, %v7822_v49, -inf }
0x2fe8   :  { %7989 = vmax.xlane.f32.xlu0 %v7988_v50  ;;  %7824 = vmax.xlane.f32.xlu1 %v7823_v27 }
0x2fe9   :  { %14790 = vmatpush3.bf16.msra.mxu0 %v14789_v28 }
0x2fea   :  { %13917 = vmatprep.subr.mxu0 %v18293_v23 }
0x3075   :  { %v7990_v4 = vpop.xlane.xlu0 %7989  ;;  %v7825_v15 = vpop.xlane.xlu1 %7824 }
0x3076   :  { %v7991_v32 = vsub.f32 %v7987_v61, %v7990_v4  ;;  %v7826_v34 = vsub.f32 %v7822_v49, %v7825_v15  ;;  %v12252_v4 = vld [vmem:[%s18191_s11 + $0x60] sm:$0xff]  ;;  %v12253_v15 = vld [vmem:[%s18191_s11 + $0x68] sm:$0xff] }
0x3078   :  { %v7992_v36 = vmul.f32 1.442695, %v7991_v32  ;;  %v7827_v21 = vmul.f32 1.442695, %v7826_v34  ;;  %v7733_v34 = vadd.f32 %v12246_v31, %v7732_v45 }
0x307a   :  { %15200 = vpow2.f32 %v7992_v36  ;;  %v17389_v36 = vpack.c.bf16 %v12253_v15, %v12252_v4 }
0x307b   :  { %15202 = vpow2.f32 %v7827_v21 }
0x3084   :  { %v15201_v35 = vpop.eup %15200 }
0x3085   :  { %v15203_v7 = vpop.eup %15202  ;;  %v7994_v25 = vsel %vm849_vm8, %v15201_v35, 0.0 }
0x3086   :  { %7995 = vadd.xlane.f32.xlu0 %v7994_v25  ;;  %v7829_v12 = vsel %vm849_vm8, %v15203_v7, 0.0 }
0x3087   :  { %7830 = vadd.xlane.f32.xlu1 %v7829_v12 }
0x3113   :  { %v7996_v61 = vpop.xlane.xlu0 %7995 }
0x3114   :  { %v7831_v49 = vpop.xlane.xlu1 %7830 }
0x3115   :  { %15204 = vrcp.f32 %v7831_v49 }
0x3116   :  { %15206 = vrcp.f32 %v7996_v61 }
0x311f   :  { %v15205_v50 = vpop.eup %15204 }
0x3120   :  { %v7833_v27 = vmul.f32 %v15205_v50, %v15203_v7  ;;  %v15207_v32 = vpop.eup %15206 }
0x3121   :  { %v7998_v21 = vmul.f32 %v15207_v32, %v15201_v35 }
0x3122   :  { %13891 = vmatmul.mubr.msk.f32.vlgmr.msra.gmra.mrb[84].mxu1 %vm849_vm8, %v7833_v27 }
0x3123   :  { %13899 = vmatpush3.msra.mxu1 %v7733_v34  ;;  %13900 = vmatprep.mubr.msk.f32.mxu1 %vm15313_vm5, %v18293_v23 }
0x3124   :  { %14791 = vmatprep.subr.bf16.mxu1 %v18299_v48 }
0x3126   :  { %13901 = vmatmul.mubr.msk.f32.vlgmr.msra.gmra.mrb[86].mxu1 %vm849_vm8, %v7998_v21 }
0x3127   :  { %14793 = vmatpush3.bf16.msra.mxu1 %v17389_v36  ;;  %13914 = vmatprep.mubr.msk.f32.mxu1 %vm15313_vm5, %v18293_v23 }
0x3128   :  { %13922 = vmatprep.subr.mxu1 %v18293_v23 }
0x31f5   :  { %v7903_v31 = vpop.f32.mrb[84].mxu1 }
0x31f6   :  { %v13892_v45 = vpop.f32.mrb[85].mxu1  ;;  %13915 = vmatmul.mubr.msk.f32.vlgmr.msra.gmra.mrb[88].mxu1 %vm766_vm6, %v7903_v31 }
0x31f7   :  { %13923 = vmatpush3.msra.mxu1 %v17356_v63  ;;  %13924 = vmatprep.mubr.msk.f32.mxu1 %vm15313_vm5, %v18293_v23 }
0x31f8   :  { %13932 = vmatprep.subr.mxu1 %v18293_v23 }
0x31f9   :  { %v8068_v35 = vpop.f32.mrb[86].mxu1 }
0x31fa   :  { %v13902_v7 = vpop.f32.mrb[87].mxu1  ;;  %13908 = vmatmul.mubr.msk.f32.vlgmr.msra.gmra.mrb[96].mxu0 %vm766_vm6, %v8068_v35  ;;  %v12270_v35 = vld [vmem:[%s18192_s12 + $0x3] ss:$0 sm:$0xff] }
0x31fb   :  { %13918 = vmatpush3.xpose.msk.msra.mxu0 %vm766_vm6, %v17336_v37  ;;  %13919 = vmatprep.mubr.msk.f32.mxu0 %vm15313_vm5, %v18293_v23 }
0x31fc   :  { %13927 = vmatprep.subr.mxu0 %v18293_v23 }
0x31fe   :  { %13920 = vmatmul.mubr.msk.f32.vlgmr.msra.gmra.mrb[98].mxu0 %vm766_vm6, %v17326_v13 }
0x31ff   :  { %13928 = vmatpush3.xpose.msk.msra.mxu0 %vm766_vm6, %v17338_v3  ;;  %13929 = vmatprep.mubr.msk.f32.mxu0 %vm15313_vm5, %v18293_v23  ;;  %v8301_v3 = vrot.slane %v17365_v57, %v18298_v16 }
0x3200   :  { %14794 = vmatprep.subr.bf16.mxu0 %v18299_v48 }
0x3202   :  { %13930 = vmatmul.mubr.msk.f32.vlgmr.msra.gmra.mrb[100].mxu0 %vm766_vm6, %v17328_v46 }
0x3203   :  { %14796 = vmatpush3.bf16.msra.mxu0 %v14789_v28  ;;  %13941 = vmatprep.mubr.msk.f32.mxu0 %vm15313_vm5, %v18293_v23 }
0x32c9   :  { %v8217_v37 = vpop.f32.mrb[88].mxu1 }
0x32ca   :  { %v13916_v63 = vpop.f32.mrb[89].mxu1 }
0x32cd   :  { %v8144_v25 = vpop.f32.mrb[96].mxu0 }
0x32ce   :  { %v8218_v12 = vadd.f32 %v8217_v37, %v8144_v25  ;;  %v13909_v13 = vpop.f32.mrb[97].mxu0 }
0x32d0   :  { %v8703_v7 = vadd.f32 %v12270_v35, %v8218_v12 }
0x32d1   :  { %v8293_v9 = vpop.f32.mrb[98].mxu0 }
0x32d2   :  { %v8297_v62 = vmul.f32 0.25, %v8293_v9  ;;  %v13921_v61 = vpop.f32.mrb[99].mxu0  ;;  %v8707_v25 = vadd.f32 %v8703_v7, %v17262_v40 }
0x32d4   :  { %v8302_v49 = vadd.f32 %v8301_v3, %v8297_v62  ;;  %v8709_v9 = vsel %vm198_vm4, %v8707_v25, 0.0 }
0x32d5   :  { %v8459_v50 = vpop.f32.mrb[100].mxu0 }
0x32d6   :  { %v8463_v27 = vmul.f32 0.25, %v8459_v50  ;;  %v13931_v4 = vpop.f32.mrb[101].mxu0  ;;  %v8303_v46 = vsel %vm849_vm8, %v8302_v49, -inf }
0x32d7   :  { %8304 = vmax.xlane.f32.xlu1 %v8303_v46 }
0x32d8   :  { %v8464_v28 = vadd.f32 %v8463_v27, %v8301_v3 }
0x32da   :  { %v8465_v15 = vsel %vm849_vm8, %v8464_v28, -inf }
0x32db   :  { %8466 = vmax.xlane.f32.xlu0 %v8465_v15 }
0x3364   :  { %v8305_v32 = vpop.xlane.xlu1 %8304 }
0x3365   :  { %v8306_v34 = vsub.f32 %v8302_v49, %v8305_v32 }
0x3367   :  { %v8307_v21 = vmul.f32 1.442695, %v8306_v34 }
0x3368   :  { %v8467_v31 = vpop.xlane.xlu0 %8466 }
0x3369   :  { %15208 = vpow2.f32 %v8307_v21  ;;  %v8468_v57 = vsub.f32 %v8464_v28, %v8467_v31 }
0x336b   :  { %v8469_v45 = vmul.f32 1.442695, %v8468_v57 }
0x336d   :  { %15210 = vpow2.f32 %v8469_v45 }
0x3373   :  { %v15209_v37 = vpop.eup %15208 }
0x3374   :  { %v8309_v63 = vsel %vm849_vm8, %v15209_v37, 0.0 }
0x3375   :  { %8310 = vadd.xlane.f32.xlu1 %v8309_v63 }
0x3377   :  { %v15211_v13 = vpop.eup %15210 }
0x3378   :  { %v8471_v3 = vsel %vm849_vm8, %v15211_v13, 0.0 }
0x3379   :  { %8472 = vadd.xlane.f32.xlu0 %v8471_v3  ;;  %8710 = vadd.xlane.f32.xlu1 %v8709_v9 }
0x3402   :  { %v8311_v62 = vpop.xlane.xlu1 %8310 }
0x3403   :  { %15212 = vrcp.f32 %v8311_v62 }
0x3406   :  { %v8473_v61 = vpop.xlane.xlu0 %8472  ;;  %v8711_v49 = vpop.xlane.xlu1 %8710 }
0x3407   :  { %15214 = vrcp.f32 %v8473_v61  ;;  %v8715_v50 = vmul.f32 0.03125, %v8711_v49 }
0x3409   :  { %v8717_v12 = vsub.f32 %v8707_v25, %v8715_v50 }
0x340b   :  { %v8719_v27 = vmul.f32 %v8717_v12, %v8717_v12 }
0x340d   :  { %v15213_v4 = vpop.eup %15212  ;;  %v8721_v46 = vsel %vm198_vm4, %v8719_v27, 0.0 }
0x340e   :  { %v8313_v40 = vmul.f32 %v15213_v4, %v15209_v37  ;;  %8722 = vadd.xlane.f32.xlu1 %v8721_v46 }
0x3410   :  { %13925 = vmatmul.mubr.msk.f32.vlgmr.msra.gmra.mrb[90].mxu1 %vm849_vm8, %v8313_v40 }
0x3411   :  { %v15215_v28 = vpop.eup %15214  ;;  %13933 = vmatpush3.msra.mxu1 %v17358_v47  ;;  %13934 = vmatprep.mubr.msk.f32.mxu1 %vm15313_vm5, %v18293_v23  ;;  %v17443_v47 = vld [vmem:[%s18197_s17 + $0xc] sm:$0xf] }
0x3412   :  { %v8475_v15 = vmul.f32 %v15215_v28, %v15211_v13  ;;  %14797 = vmatprep.subr.bf16.mxu1 %v18299_v48  ;;  %v8738_v45 = vrot.slane %v17443_v47, %v18297_v41 }
0x3414   :  { %13935 = vmatmul.mubr.msk.f32.vlgmr.msra.gmra.mrb[92].mxu1 %vm849_vm8, %v8475_v15 }
0x3415   :  { %14799 = vmatpush3.bf16.msra.mxu1 %v17389_v36  ;;  %13948 = vmatprep.mubr.msk.f32.mxu1 %vm15313_vm5, %v18293_v23  ;;  %v8744_v36 = vrot.slane %v17443_v47, %v18298_v16 }
0x349b   :  { %v8723_v32 = vpop.xlane.xlu1 %8722 }
0x349c   :  { %v8727_v34 = vmul.f32 0.03125, %v8723_v32 }
0x349e   :  { %v8729_v21 = vadd.f32 1e-05, %v8727_v34  ;;  %v12272_v34 = vld [vmem:[%s18193_s13 + $0x60] sm:$0xff] }
0x34a0   :  { %15216 = vrsqrt.f32 %v8729_v21 }
0x34aa   :  { %v15217_v31 = vpop.eup %15216 }
0x34ab   :  { %v8733_v57 = vmul.f32 %v15217_v31, %v8717_v12  ;;  %v12275_v31 = vld [vmem:[%s18193_s13 + $0x78] sm:$0xff] }
0x34ad   :  { %v8739_v37 = vmul.f32 %v8738_v45, %v8733_v57 }
0x34af   :  { %v17450_v13 = vadd.f32 %v8744_v36, %v8739_v37  ;;  %v12281_v37 = vld [vmem:[%s18195_s15 + $0xc8] sm:$0xff] }
0x34e3   :  { %v8383_v7 = vpop.f32.mrb[90].mxu1 }
0x34e4   :  { %v13926_v63 = vpop.f32.mrb[91].mxu1  ;;  %13949 = vmatmul.mubr.msk.f32.vlgmr.msra.gmra.mrb[94].mxu1 %vm766_vm6, %v8383_v7  ;;  %v12280_v7 = vld [vmem:[%s18195_s15 + $0xc0] sm:$0xff] }
0x34e5   :  { %v12282_v63 = vld [vmem:[%s18195_s15 + $0xd0] sm:$0xff] }
0x34e7   :  { %v8545_v25 = vpop.f32.mrb[92].mxu1 }
0x34e8   :  { %v13936_v3 = vpop.f32.mrb[93].mxu1  ;;  %13942 = vmatmul.mubr.msk.f32.vlgmr.msra.gmra.mrb[102].mxu0 %vm766_vm6, %v8545_v25  ;;  %v14808_v25 = vpack.c.bf16 %v12281_v37, %v12280_v7  ;;  %v12289_v7 = vld [vmem:[%s18196_s16 + $0x3] ss:$0 sm:$0xff] }
0x34e9   :  { %13959 = vmatprep.mubr.msk.f32.mxu0 %vm198_vm4, %v17450_v13  ;;  %v12283_v3 = vld [vmem:[%s18195_s15 + $0xd8] sm:$0xff] }
0x34ea   :  { %14809 = vmatprep.subr.bf16.mxu1 %v14808_v25 }
0x34eb   :  { %14811 = vmatpush3.bf16.msra.mxu1 %v14808_v25 }
0x35b7   :  { %v8691_v9 = vpop.f32.mrb[94].mxu1 }
0x35b8   :  { %v13950_v62 = vpop.f32.mrb[95].mxu1 }
0x35b9   :  { %v12284_v62 = vld [vmem:[%s18195_s15 + $0xe0] sm:$0xff] }
0x35bb   :  { %v8618_v61 = vpop.f32.mrb[102].mxu0 }
0x35bc   :  { %v8692_v49 = vadd.f32 %v8691_v9, %v8618_v61  ;;  %v13943_v50 = vpop.f32.mrb[103].mxu0  ;;  %v14812_v9 = vpack.c.bf16 %v12283_v3, %v12282_v63  ;;  %v12285_v61 = vld [vmem:[%s18195_s15 + $0xe8] sm:$0xff] }
0x35be   :  { %v8704_v12 = vadd.f32 %v12270_v35, %v8692_v49  ;;  %v12273_v35 = vld [vmem:[%s18193_s13 + $0x68] sm:$0xff]  ;;  %14813 = vmatprep.subr.bf16.mxu1 %v14812_v9  ;;  %v14816_v49 = vpack.c.bf16 %v12285_v61, %v12284_v62 }
0x35bf   :  { %v14800_v21 = vpack.c.bf16 %v12273_v35, %v12272_v34  ;;  %14815 = vmatpush3.bf16.msra.mxu1 %v14812_v9  ;;  %v12287_v34 = vld [vmem:[%s18195_s15 + $0xf8] sm:$0xff] }
0x35c0   :  { %v8708_v27 = vadd.f32 %v8704_v12, %v17264_v0  ;;  %v12274_v0 = vld [vmem:[%s18193_s13 + $0x70] sm:$0xff]  ;;  %14817 = vmatprep.subr.bf16.mxu1 %v14816_v49 }
0x35c1   :  { %14801 = vmatprep.subr.bf16.mxu0 %v14800_v21  ;;  %v14804_v57 = vpack.c.bf16 %v12275_v31, %v12274_v0 }
0x35c2   :  { %v8712_v4 = vsel %vm198_vm4, %v8708_v27, 0.0  ;;  %14803 = vmatpush3.bf16.msra.mxu0 %v14800_v21 }
0x35c3   :  { %8713 = vadd.xlane.f32.xlu0 %v8712_v4  ;;  %14805 = vmatprep.subr.bf16.mxu0 %v14804_v57 }
0x35c4   :  { %14819 = vmatpush3.bf16.msra.mxu1 %v14816_v49 }
0x35c6   :  { %14807 = vmatpush3.bf16.msra.mxu0 %v14804_v57 }
0x3650   :  { %v8714_v46 = vpop.xlane.xlu0 %8713 }
0x3651   :  { %v8716_v40 = vmul.f32 0.03125, %v8714_v46 }
0x3653   :  { %v8718_v28 = vsub.f32 %v8708_v27, %v8716_v40 }
0x3655   :  { %v8720_v15 = vmul.f32 %v8718_v28, %v8718_v28 }
0x3657   :  { %v8724_v32 = vsel %vm198_vm4, %v8720_v15, 0.0 }
0x3658   :  { %8725 = vadd.xlane.f32.xlu0 %v8724_v32  ;;  %v12286_v32 = vld [vmem:[%s18195_s15 + $0xf0] sm:$0xff] }
0x3659   :  { %v14820_v35 = vpack.c.bf16 %v12287_v34, %v12286_v32 }
0x365b   :  { %14821 = vmatprep.subr.bf16.mxu1 %v14820_v35 }
0x365c   :  { %14823 = vmatpush3.bf16.msra.mxu1 %v14820_v35 }
0x365d   :  { %14841 = vmatprep.subr.bf16.mxu1 %v18301_v20 }
0x36e5   :  { %v8726_v50 = vpop.xlane.xlu0 %8725 }
0x36e6   :  { %v8728_v12 = vmul.f32 0.03125, %v8726_v50 }
0x36e8   :  { %v8730_v27 = vadd.f32 1e-05, %v8728_v12 }
0x36ea   :  { %15218 = vrsqrt.f32 %v8730_v27 }
0x36f4   :  { %v15219_v4 = vpop.eup %15218 }
0x36f5   :  { %v8734_v46 = vmul.f32 %v15219_v4, %v8718_v28 }
0x36f7   :  { %v8740_v40 = vmul.f32 %v8738_v45, %v8734_v46  ;;  %v12277_v45 = vld [vmem:[%s18194_s14 + $0x3] ss:$0 sm:$0xff] }
0x36f9   :  { %v8746_v15 = vadd.f32 %v8744_v36, %v8740_v40 }
0x36fb   :  { %13960 = vmatmul.mubr.msk.f32.vlgmr.msra.gmra.mrb[104].mxu0 %vm198_vm4, %v8746_v15 }
0x36fc   :  { %9068 = vmatprep.mubr.f32.mxu0 %v18293_v23 }
0x37ce   :  { %v13961_v36 = vpop.f32.mrb[104].mxu0 }
0x37cf   :  { %v8838_v28 = vadd.f32 %v13961_v36, %v12277_v45  ;;  %v8832_v21 = vpop.f32.mrb[105].mxu0  ;;  %v12293_v36 = vld [vmem:[%s18199_s19 + $0x188] sm:$0xff] }
0x37d0   :  { %v8833_v0 = vadd.f32 %v12277_v45, %v8832_v21  ;;  %v12313_v45 = vld [vmem:[%s18269_s7 + $0x48] sm:$0xff] }
0x37d1   :  { %v8842_v57 = vmax.f32 %v8838_v28, 0.0  ;;  %v12297_v28 = vld [vmem:[%s18199_s19 + $0x1a8] sm:$0xff] }
0x37d2   :  { %v8841_v31 = vmax.f32 %v8833_v0, 0.0  ;;  %v14824_v21 = vpack.c.bf16 %v12297_v28, %v12293_v36  ;;  %v12292_v0 = vld [vmem:[%s18199_s19 + $0x180] sm:$0xff]  ;;  %v8978_v36 = vrot.slane %v17443_v47, %v18303_v30  ;;  %v12294_v28 = vld [vmem:[%s18199_s19 + $0x190] sm:$0xff] }
0x37d4   :  { %13978 = vmatprep.mubr.msk.f32.mxu1 %vm1880_vm10, %v8841_v31  ;;  %v12296_v31 = vld [vmem:[%s18199_s19 + $0x1a0] sm:$0xff]  ;;  %14825 = vmatprep.subr.bf16.mxu0 %v14824_v21  ;;  %v12298_v21 = vld [vmem:[%s18199_s19 + $0x1b0] sm:$0xff] }
0x37d5   :  { %13979 = vmatmul.mubr.msk.f32.vlgmr.msra.gmra.mrb[96].mxu1 %vm1880_vm10, %v8842_v57  ;;  %v14826_v57 = vpack.c.bf16 %v12296_v31, %v12292_v0  ;;  %v12303_v31 = vld [vmem:[%s18199_s19 + $0x1d8] sm:$0xff] }
0x37d6   :  { %14843 = vmatpush3.bf16.msra.mxu1 %v16340_v52 }
0x37d7   :  { %14845 = vmatprep.subr.bf16.mxu1 %v16342_v26  ;;  %14827 = vmatpush1.bf16.msra.mxu0 %v14826_v57 }
0x37da   :  { %14847 = vmatpush3.bf16.msra.mxu1 %v16358_v2 }
0x37db   :  { %14849 = vmatprep.subr.bf16.mxu1 %v16361_v58 }
0x37de   :  { %14851 = vmatpush3.bf16.msra.mxu1 %v16370_v6 }
0x37df   :  { %14853 = vmatprep.subr.bf16.mxu1 %v16432_v42 }
0x37e2   :  { %14855 = vmatpush3.bf16.msra.mxu1 %v16445_v51 }
0x37e3   :  { %14857 = vmatprep.subr.bf16.mxu1 %v16468_v43 }
0x37e6   :  { %14859 = vmatpush3.bf16.msra.mxu1 %v16481_v10 }
0x37e7   :  { %14861 = vmatprep.subr.bf16.mxu1 %v16504_v60 }
0x37ea   :  { %14863 = vmatpush3.bf16.msra.mxu1 %v16517_v1 }
0x37eb   :  { %14865 = vmatprep.subr.bf16.mxu1 %v16540_v29 }
0x37ee   :  { %14867 = vmatpush3.bf16.msra.mxu1 %v16553_v39 }
0x37ef   :  { %14869 = vmatprep.subr.bf16.mxu1 %v16576_v55 }
0x37f2   :  { %14871 = vmatpush3.bf16.msra.mxu1 %v16589_v24 }
0x38a8   :  { %v13980_v37 = vpop.f32.mrb[96].mxu1 }
0x38a9   :  { %v8938_v63 = vadd.f32 %v13980_v37, %v12289_v7  ;;  %v8932_v25 = vpop.f32.mrb[97].mxu1  ;;  %v12305_v37 = vld [vmem:[%s18199_s19 + $0x1e8] sm:$0xff] }
0x38aa   :  { %v8933_v3 = vadd.f32 %v12289_v7, %v8932_v25  ;;  %v12301_v7 = vld [vmem:[%s18199_s19 + $0x1c8] sm:$0xff] }
0x38ab   :  { %v8942_v9 = vadd.f32 %v8938_v63, %v8746_v15  ;;  %v12300_v63 = vld [vmem:[%s18199_s19 + $0x1c0] sm:$0xff]  ;;  %v14828_v25 = vpack.c.bf16 %v12305_v37, %v12301_v7  ;;  %v14834_v7 = vpack.c.bf16 %v12298_v21, %v12294_v28 }
0x38ac   :  { %v8941_v62 = vadd.f32 %v8933_v3, %v17450_v13  ;;  %v12312_v13 = vld [vmem:[%s18269_s7 + $0x40] sm:$0xff] }
0x38ad   :  { %v8946_v61 = vsel %vm198_vm4, %v8942_v9, 0.0  ;;  %v12304_v3 = vld [vmem:[%s18199_s19 + $0x1e0] sm:$0xff]  ;;  %14829 = vmatprep.subr.bf16.mxu0 %v14828_v25  ;;  %v12302_v25 = vld [vmem:[%s18199_s19 + $0x1d0] sm:$0xff] }
0x38ae   :  { %8947 = vadd.xlane.f32.xlu0 %v8946_v61  ;;  %v8943_v49 = vsel %vm198_vm4, %v8941_v62, 0.0  ;;  %v12299_v61 = vld [vmem:[%s18199_s19 + $0x1b8] sm:$0xff] }
0x38af   :  { %8944 = vadd.xlane.f32.xlu1 %v8943_v49 }
0x393b   :  { %v8948_v50 = vpop.xlane.xlu0 %8947 }
0x393c   :  { %v8950_v12 = vmul.f32 0.03125, %v8948_v50  ;;  %v8945_v27 = vpop.xlane.xlu1 %8944 }
0x393d   :  { %v8949_v4 = vmul.f32 0.03125, %v8945_v27 }
0x393e   :  { %v8952_v46 = vsub.f32 %v8942_v9, %v8950_v12  ;;  %v14830_v9 = vpack.c.bf16 %v12304_v3, %v12300_v63 }
0x393f   :  { %v8951_v40 = vsub.f32 %v8941_v62, %v8949_v4  ;;  %v12295_v62 = vld [vmem:[%s18199_s19 + $0x198] sm:$0xff] }
0x3940   :  { %v8954_v32 = vmul.f32 %v8952_v46, %v8952_v46  ;;  %14831 = vmatpush1.bf16.msra.mxu0 %v14830_v9  ;;  %v14832_v49 = vpack.c.bf16 %v12299_v61, %v12295_v62  ;;  %v18306_v62 = vld [vmem:[#allocation13_spill] sm:$0xff]  ;;  %v18307_v61 = vld [vmem:[#allocation14_spill] sm:$0xff] }
0x3941   :  { %v8953_v34 = vmul.f32 %v8951_v40, %v8951_v40 }
0x3942   :  { %v8958_v35 = vsel %vm198_vm4, %v8954_v32, 0.0  ;;  %14833 = vmatprep.subr.bf16.mxu0 %v14832_v49  ;;  %v18308_v49 = vld [vmem:[#allocation15_spill] sm:$0xff] }
0x3943   :  { %8959 = vadd.xlane.f32.xlu0 %v8958_v35  ;;  %v8955_v15 = vsel %vm198_vm4, %v8953_v34, 0.0 }
0x3944   :  { %8956 = vadd.xlane.f32.xlu1 %v8955_v15  ;;  %v8972_v15 = vrot.slane %v17443_v47, %v18302_v22 }
0x3955   :  { %9363 = vperm.xlu1 %15111, %v12312_v13  }
0x3959   :  { %9366 = vperm.xlu0 %15110, %v12313_v45  }
0x39d0   :  { %v8960_v50 = vpop.xlane.xlu0 %8959 }
0x39d1   :  { %v8962_v12 = vmul.f32 0.03125, %v8960_v50  ;;  %v8957_v27 = vpop.xlane.xlu1 %8956  ;;  %v18309_v50 = vld [vmem:[#allocation16_spill] sm:$0xff] }
0x39d2   :  { %v8961_v4 = vmul.f32 0.03125, %v8957_v27  ;;  %v12316_v27 = vld [vmem:[%s18270_s21 + $0xe0] sm:$0xff] }
0x39d3   :  { %v8964_v32 = vadd.f32 1e-05, %v8962_v12  ;;  %v18310_v12 = vld [vmem:[#allocation17_spill] sm:$0xff] }
0x39d4   :  { %v8963_v34 = vadd.f32 1e-05, %v8961_v4  ;;  %v12317_v4 = vld [vmem:[%s18270_s21 + $0xe8] sm:$0xff] }
0x39d5   :  { %15220 = vrsqrt.f32 %v8964_v32  ;;  %v17612_v32 = vpack.c.bf16 %v12317_v4, %v12316_v27 }
0x39d6   :  { %15222 = vrsqrt.f32 %v8963_v34 }
0x39d7   :  { %14905 = vmatprep.subr.bf16.mxu1 %v17612_v32 }
0x39df   :  { %v15221_v35 = vpop.eup %15220 }
0x39e0   :  { %v15223_v13 = vpop.eup %15222  ;;  %v8968_v0 = vmul.f32 %v15221_v35, %v8952_v46  ;;  %v12306_v46 = vld [vmem:[%s18199_s19 + $0x1f0] sm:$0xff]  ;;  %v15270_v35 = vld [vmem:[%s18198_s18] sm:$0xff] }
0x39e1   :  { %v8967_v45 = vmul.f32 %v15223_v13, %v8951_v40  ;;  %v12307_v40 = vld [vmem:[%s18199_s19 + $0x1f8] sm:$0xff]  ;;  %v14838_v3 = vpack.c.bf16 %v12306_v46, %v12302_v25 }
0x39e2   :  { %v8974_v37 = vmul.f32 %v8972_v15, %v8968_v0  ;;  %v14836_v63 = vpack.c.bf16 %v12307_v40, %v12303_v31  ;;  %v15272_v40 = vld [vmem:[%s18198_s18 + $0x20] sm:$0xff] }
0x39e3   :  { %v8973_v57 = vmul.f32 %v8972_v15, %v8967_v45  ;;  %v15271_v45 = vld [vmem:[%s18198_s18 + $0x8] sm:$0xff] }
0x39e4   :  { %v8980_v9 = vadd.f32 %v8978_v36, %v8974_v37  ;;  %v15273_v37 = vld [vmem:[%s18198_s18 + $0x28] sm:$0xff] }
0x39e5   :  { %v8979_v47 = vadd.f32 %v8978_v36, %v8973_v57 }
0x39e7   :  { %12308 = vmatmul.mubr.msk.f32.vlgmr.msra.gmra.mrb[106].mxu0 %vm198_vm4, %v8979_v47 }
0x39e8   :  { %14835 = vmatpush1.bf16.msra.mxu0 %v14834_v7  ;;  %9074 = vmatprep.mubr.f32.mxu0 %v18293_v23 }
0x39e9   :  { %14837 = vmatprep.subr.bf16.mxu0 %v14836_v63 }
0x39eb   :  { %12309 = vmatmul.mubr.msk.f32.gmra.mrb[108].mxu0 %vm198_vm4, %v8980_v9 }
0x39ec   :  { %14839 = vmatpush1.bf16.msra.mxu0 %v14838_v3  ;;  %9145 = vmatprep.mubr.f32.mxu0 %v18293_v23 }
0x39ed   :  { %14873 = vmatprep.subr.bf16.mxu0 %v18304_v59 }
0x39ef   :  { %12310 = vmatmul.mubr.msk.f32.vlgmr.msra.gmra.mrb[110].mxu0 %vm198_vm4, %v8979_v47 }
0x39f0   :  { %9151 = vmatprep.mubr.f32.mxu0 %v18293_v23  ;;  %14875 = vmatpush3.bf16.msra.mxu0 %v16416_v38 }
0x39f1   :  { %14877 = vmatprep.subr.bf16.mxu0 %v16443_v54 }
0x39f3   :  { %12311 = vmatmul.mubr.msk.f32.gmra.mrb[112].mxu0 %vm198_vm4, %v8980_v9 }
0x39f4   :  { %14879 = vmatpush3.bf16.msra.mxu0 %v16454_v53 }
0x39f5   :  { %14881 = vmatprep.subr.bf16.mxu0 %v16479_v8 }
0x39f8   :  { %14883 = vmatpush3.bf16.msra.mxu0 %v16490_v18 }
0x39f9   :  { %14885 = vmatprep.subr.bf16.mxu0 %v16515_v17 }
0x39fc   :  { %14887 = vmatpush3.bf16.msra.mxu0 %v16526_v11 }
0x39fd   :  { %14889 = vmatprep.subr.bf16.mxu0 %v16551_v33 }
0x3a00   :  { %14891 = vmatpush3.bf16.msra.mxu0 %v16562_v44 }
0x3a01   :  { %14893 = vmatprep.subr.bf16.mxu0 %v16587_v5 }
0x3a04   :  { %14895 = vmatpush3.bf16.msra.mxu0 %v18306_v62 }
0x3a05   :  { %14897 = vmatprep.subr.bf16.mxu0 %v18307_v61  ;;  %v9364_v61 = vpop.permute.xlu1 %9363 }
0x3a06   :  { %vm9368_vm11 = vcmp.eq.s32.totalorder %v15482_v14, %v9364_v61 }
0x3a07   :  { %v12314_v61 = vsel %vm9368_vm11, 1.0, %v18293_v23 }
0x3a08   :  { %14899 = vmatpush3.bf16.msra.mxu0 %v18308_v49 }
0x3a09   :  { %14901 = vmatprep.subr.bf16.mxu0 %v18309_v50 }
0x3a0c   :  { %14903 = vmatpush3.bf16.msra.mxu0 %v18310_v12 }
0x3aba   :  { %v9070_v34 = vpop.f32.mrb[106].mxu0 }
0x3abb   :  { %v9158_v15 = vmul.f32 %v15270_v35, %v9070_v34  ;;  %v9072_v13 = vpop.f32.mrb[107].mxu0  ;;  %v15274_v35 = vld [vmem:[%s18198_s18 + $0x10] sm:$0xff] }
0x3abc   :  { %v9159_v36 = vmul.f32 %v15271_v45, %v9072_v13 }
0x3abd   :  { %v9166_v28 = vrot.slane %v9158_v15, 4 }
0x3abe   :  { %v9172_v21 = vrot.slane %v9159_v36, 4  ;;  %v9076_v0 = vpop.f32.mrb[108].mxu0 }
0x3abf   :  { %v9167_v31 = vadd.f32 %v9166_v28, %v9158_v15  ;;  %v9162_v57 = vmul.f32 %v15272_v40, %v9076_v0  ;;  %v9078_v7 = vpop.f32.mrb[109].mxu0  ;;  %v15275_v28 = vld [vmem:[%s18198_s18 + $0x18] sm:$0xff] }
0x3ac0   :  { %v9173_v47 = vadd.f32 %v9172_v21, %v9159_v36  ;;  %v9163_v63 = vmul.f32 %v15273_v37, %v9078_v7 }
0x3ac1   :  { %v9168_v25 = vrot.slane %v9167_v31, 2  ;;  %v9190_v46 = vrot.slane %v9162_v57, 4 }
0x3ac2   :  { %v9174_v3 = vrot.slane %v9173_v47, 2  ;;  %v9196_v9 = vrot.slane %v9163_v63, 4  ;;  %v9147_v27 = vpop.f32.mrb[110].mxu0 }
0x3ac3   :  { %v9169_v4 = vadd.f32 %v9168_v25, %v9167_v31  ;;  %v9191_v34 = vadd.f32 %v9190_v46, %v9162_v57  ;;  %v9160_v15 = vmul.f32 %v15274_v35, %v9147_v27  ;;  %v9149_v13 = vpop.f32.mrb[111].mxu0  ;;  %v15276_v46 = vld [vmem:[%s18198_s18 + $0x30] sm:$0xff]  ;;  %v15277_v35 = vld [vmem:[%s18198_s18 + $0x38] sm:$0xff] }
0x3ac4   :  { %v9175_v45 = vadd.f32 %v9174_v3, %v9173_v47  ;;  %v9197_v36 = vadd.f32 %v9196_v9, %v9163_v63  ;;  %v9161_v21 = vmul.f32 %v15275_v28, %v9149_v13 }
0x3ac5   :  { %v9192_v0 = vrot.slane %v9191_v34, 2  ;;  %v9178_v40 = vrot.slane %v9160_v15, 4  ;;  %v9170_v31 = vrot.slane %v9169_v4, 1 }
0x3ac6   :  { %v9198_v7 = vrot.slane %v9197_v36, 2  ;;  %v9184_v37 = vrot.slane %v9161_v21, 4  ;;  %v9153_v12 = vpop.f32.mrb[112].mxu0  ;;  %v9176_v63 = vrot.slane %v9175_v45, 1 }
0x3ac7   :  { %v9193_v57 = vadd.f32 %v9192_v0, %v9191_v34  ;;  %v9179_v25 = vadd.f32 %v9178_v40, %v9160_v15  ;;  %v9164_v27 = vmul.f32 %v15276_v46, %v9153_v12  ;;  %v9155_v47 = vpop.f32.mrb[113].mxu0  ;;  %v9171_v40 = vadd.f32 %v9170_v31, %v9169_v4 }
0x3ac8   :  { %v9199_v3 = vadd.f32 %v9198_v7, %v9197_v36  ;;  %v9185_v9 = vadd.f32 %v9184_v37, %v9161_v21  ;;  %v9165_v13 = vmul.f32 %v15277_v35, %v9155_v47  ;;  %v12318_v36 = vld [vmem:[%s18270_s21 + $0xf0] sm:$0xff]  ;;  %v12319_v21 = vld [vmem:[%s18270_s21 + $0xf8] sm:$0xff]  ;;  %v9177_v46 = vadd.f32 %v9176_v63, %v9175_v45  ;;  %v12321_v45 = vld [vmem:[%s18270_s21 + $0x108] sm:$0xff] }
0x3ac9   :  { %v9194_v28 = vrot.slane %v9193_v57, 1  ;;  %v9180_v50 = vrot.slane %v9179_v25, 2  ;;  %v9202_v49 = vrot.slane %v9164_v27, 4 }
0x3aca   :  { %v9200_v34 = vrot.slane %v9199_v3, 1  ;;  %v9186_v15 = vrot.slane %v9185_v9, 2  ;;  %v9208_v0 = vrot.slane %v9165_v13, 4 }
0x3acb   :  { %v9195_v62 = vadd.f32 %v9194_v28, %v9193_v57  ;;  %v9181_v5 = vadd.f32 %v9180_v50, %v9179_v25  ;;  %v9203_v12 = vadd.f32 %v9202_v49, %v9164_v27  ;;  %v14908_v50 = vpack.c.bf16 %v12319_v21, %v12318_v36  ;;  %v12320_v27 = vld [vmem:[%s18270_s21 + $0x100] sm:$0xff]  ;;  %v9367_v36 = vpop.permute.xlu0 %9366 }
0x3acc   :  { %v9187_v7 = vadd.f32 %v9186_v15, %v9185_v9  ;;  %v9209_v37 = vadd.f32 %v9208_v0, %v9165_v13  ;;  %v9201_v47 = vadd.f32 %v9200_v34, %v9199_v3  ;;  %v14912_v13 = vpack.c.bf16 %v12321_v45, %v12320_v27 }
0x3acd   :  { %v9204_v35 = vrot.slane %v9203_v12, 2  ;;  %v9214_v4 = vsel %vm2242_vm12, %v9171_v40, %v9195_v62  ;;  %v9182_v57 = vrot.slane %v9181_v5, 1  ;;  %vm9369_vm13 = vcmp.eq.s32.totalorder %v15482_v14, %v9367_v36  ;;  %v15278_v14 = vld [vmem:[%s18271_s0] sm:$0xff]  ;;  %s18317_s0 = sld [smem:[#allocation30_spill]] }
0x3ace   :  { %v9210_v31 = vrot.slane %v9209_v37, 2  ;;  %v9215_v49 = vsel %vm2242_vm12, %v9177_v46, %v9201_v47  ;;  %v9188_v63 = vrot.slane %v9187_v7, 1 }
0x3acf   :  { %v9205_v25 = vadd.f32 %v9204_v35, %v9203_v12  ;;  %9282 = vmatprep.mubr.f32.mxu1 %v9215_v49  ;;  %v9183_v28 = vadd.f32 %v9182_v57, %v9181_v5  ;;  %v12315_v5 = vsel %vm9369_vm13, 1.0, %v18293_v23 }
0x3ad0   :  { %v9211_v3 = vadd.f32 %v9210_v31, %v9209_v37  ;;  %9283 = vmatmul.mubr.f32.vlgmr.msra.gmra.mrb[98].mxu1 %v9214_v4  ;;  %v9189_v15 = vadd.f32 %v9188_v63, %v9187_v7 }
0x3ad1   :  { %v9206_v62 = vrot.slane %v9205_v25, 1  ;;  %14907 = vmatpush3.bf16.msra.mxu1 %v17612_v32  ;;  %13995 = vmatprep.mubr.msk.f32.mxu1 %vm108_vm1, %v12314_v61  ;;  %v12322_v32 = vld [vmem:[%s18270_s21 + $0x110] sm:$0x3] }
0x3ad2   :  { %v9212_v9 = vrot.slane %v9211_v3, 1  ;;  %14909 = vmatprep.subr.bf16.mxu1 %v14908_v50 }
0x3ad3   :  { %v9207_v34 = vadd.f32 %v9206_v62, %v9205_v25 }
0x3ad4   :  { %v9213_v0 = vadd.f32 %v9212_v9, %v9211_v3 }
0x3ad5   :  { %14911 = vmatpush3.bf16.msra.mxu1 %v14908_v50  ;;  %v9216_v40 = vsel %vm2242_vm12, %v9183_v28, %v9207_v34 }
0x3ad6   :  { %v9217_v12 = vsel %vm2242_vm12, %v9189_v15, %v9213_v0  ;;  %14913 = vmatprep.subr.bf16.mxu1 %v14912_v13  ;;  %v12328_v0 = vld [vmem:[%s18272_s2 + $0x100] sm:$0xff] }
0x3ad7   :  { %9352 = vmatprep.mubr.f32.mxu0 %v9217_v12  ;;  %v12336_v12 = vld [vmem:[%s18272_s2 + $0x120] sm:$0xff] }
0x3ad8   :  { %9353 = vmatmul.mubr.f32.vlgmr.msra.gmra.mrb[114].mxu0 %v9216_v40  ;;  %v12329_v40 = vld [vmem:[%s18272_s2 + $0x108] sm:$0xff] }
0x3ad9   :  { %14915 = vmatpush3.bf16.msra.mxu1 %v14912_v13  ;;  %v14916_v36 = vpack.c.bf16 %v12329_v40, %v12328_v0 }
0x3ada   :  { %13993 = vmatprep.subr.msk.mxu1 %vm115_vm0, %v12322_v32 }
0x3adb   :  { %14917 = vmatprep.subr.bf16.mxu0 %v14916_v36 }
0x3adc   :  { %14919 = vmatpush3.bf16.msra.mxu0 %v14916_v36 }
0x3add   :  { %13994 = vmatpush3.msk.msra.mxu1 %vm115_vm0, %v12322_v32  ;;  %v12337_v32 = vld [vmem:[%s18272_s2 + $0x128] sm:$0xff] }
0x3ade   :  { %13996 = vmatmul.mubr.msk.f32.vlgmr.msra.gmra.mrb[100].mxu1 %vm108_vm1, %v12315_v5  ;;  %v14924_v5 = vpack.c.bf16 %v12337_v32, %v12336_v12  ;;  %vm11848_vm1 = vcmask 9216  }
0x3ae0   :  { %14925 = vmatprep.subr.bf16.mxu1 %v14924_v5 }
0x3ae1   :  { %14927 = vmatpush3.bf16.msra.mxu1 %v14924_v5  ;;  %v12346_v5 = vld [vmem:[%s18273_s27 + $0x110] sm:$0xff] }
0x3ba3   :  { %v13042_v21 = vpop.f32.mrb[98].mxu1 }
0x3ba4   :  { %v13043_v7 = vpop.f32.mrb[99].mxu1 }
0x3ba5   :  { %v13044_v37 = vadd.f32 %v13043_v7, %v13042_v21  ;;  %v12330_v21 = vld [vmem:[%s18272_s2 + $0x110] sm:$0xff]  ;;  %v12331_v7 = vld [vmem:[%s18272_s2 + $0x118] sm:$0xff] }
0x3bab   :  { %v13077_v46 = vpop.f32.mrb[114].mxu0 }
0x3bac   :  { %v13078_v47 = vpop.f32.mrb[115].mxu0 }
0x3bad   :  { %v13079_v35 = vadd.f32 %v13078_v47, %v13077_v46  ;;  %v14920_v46 = vpack.c.bf16 %v12331_v7, %v12330_v21  ;;  %v12339_v47 = vld [vmem:[%s18272_s2 + $0x138] sm:$0xff]  ;;  %v12354_v7 = vld [vmem:[%s18273_s27 + $0x130] sm:$0xff] }
0x3bae   :  { %v12347_v21 = vld [vmem:[%s18273_s27 + $0x118] sm:$0xff] }
0x3baf   :  { %v9355_v4 = vadd.f32 %v13079_v35, %v13044_v37  ;;  %v12338_v37 = vld [vmem:[%s18272_s2 + $0x130] sm:$0xff]  ;;  %14921 = vmatprep.subr.bf16.mxu0 %v14920_v46 }
0x3bb0   :  { %v14928_v35 = vpack.c.bf16 %v12339_v47, %v12338_v37  ;;  %14923 = vmatpush3.bf16.msra.mxu0 %v14920_v46  ;;  %v12360_v46 = vld [vmem:[%s18274_s9 + $0x100] sm:$0xff]  ;;  %v14936_v47 = vpack.c.bf16 %v12347_v21, %v12346_v5 }
0x3bb1   :  { %v17668_v31 = vadd.f32 %v9355_v4, %v17200_v56  ;;  %v13997_v49 = vpop.f32.mrb[100].mxu1  ;;  %v12344_v4 = vld [vmem:[%s18273_s27 + $0x100] sm:$0xff] }
0x3bb2   :  { %v9463_v50 = vadd.f32 %v15278_v14, %v13997_v49  ;;  %v9457_v57 = vpop.f32.mrb[101].mxu1  ;;  %14929 = vmatprep.subr.bf16.mxu1 %v14928_v35  ;;  %v12345_v49 = vld [vmem:[%s18273_s27 + $0x108] sm:$0xff] }
0x3bb3   :  { %v9458_v25 = vadd.f32 %v15278_v14, %v9457_v57  ;;  %v12352_v14 = vld [vmem:[%s18273_s27 + $0x120] sm:$0xff]  ;;  %14931 = vmatpush3.bf16.msra.mxu1 %v14928_v35  ;;  %v12353_v57 = vld [vmem:[%s18273_s27 + $0x128] sm:$0xff] }
0x3bb4   :  { %v9475_v27 = vsel %vm198_vm4, %v9463_v50, 0.0 }
0x3bb5   :  { %9476 = vadd.xlane.f32.xlu0 %v9475_v27  ;;  %v9472_v45 = vsel %vm198_vm4, %v9458_v25, 0.0 }
0x3bb6   :  { %9473 = vadd.xlane.f32.xlu1 %v9472_v45 }
0x3c42   :  { %v9477_v61 = vpop.xlane.xlu0 %9476 }
0x3c43   :  { %v9479_v63 = vmul.f32 0.03125, %v9477_v61  ;;  %v9474_v3 = vpop.xlane.xlu1 %9473 }
0x3c44   :  { %v9478_v62 = vmul.f32 0.03125, %v9474_v3 }
0x3c45   :  { %v9481_v56 = vsub.f32 %v9463_v50, %v9479_v63  ;;  %v14932_v50 = vpack.c.bf16 %v12345_v49, %v12344_v4  ;;  %v12361_v4 = vld [vmem:[%s18274_s9 + $0x108] sm:$0xff]  ;;  %v12368_v49 = vld [vmem:[%s18274_s9 + $0x120] sm:$0xff] }
0x3c46   :  { %v9480_v9 = vsub.f32 %v9458_v25, %v9478_v62  ;;  %v14940_v25 = vpack.c.bf16 %v12353_v57, %v12352_v14  ;;  %v12369_v14 = vld [vmem:[%s18274_s9 + $0x128] sm:$0xff]  ;;  %v14948_v57 = vpack.c.bf16 %v12361_v4, %v12360_v46 }
0x3c47   :  { %v9483_v13 = vmul.f32 %v9481_v56, %v9481_v56  ;;  %14933 = vmatprep.subr.bf16.mxu0 %v14932_v50 }
0x3c48   :  { %v9482_v28 = vmul.f32 %v9480_v9, %v9480_v9  ;;  %14941 = vmatprep.subr.bf16.mxu1 %v14940_v25 }
0x3c49   :  { %v9487_v34 = vsel %vm198_vm4, %v9483_v13, 0.0  ;;  %v12327_v13 = vld [vmem:[%s18276_s1 + $0x8] sm:$0x3] }
0x3c4a   :  { %9488 = vadd.xlane.f32.xlu0 %v9487_v34  ;;  %v9484_v15 = vsel %vm198_vm4, %v9482_v28, 0.0  ;;  %v9501_v28 = vrot.slane %v12327_v13, %v18297_v41  ;;  %v9507_v40 = vrot.slane %v12327_v13, %v18298_v16  ;;  %v12341_v13 = vld [vmem:[%s18278_s30 + $0x9] ss:$0 sm:$0xff] }
0x3c4b   :  { %9485 = vadd.xlane.f32.xlu1 %v9484_v15 }
0x3cd7   :  { %v9489_v27 = vpop.xlane.xlu0 %9488 }
0x3cd8   :  { %v9491_v45 = vmul.f32 0.03125, %v9489_v27  ;;  %v9486_v61 = vpop.xlane.xlu1 %9485  ;;  %v14956_v27 = vpack.c.bf16 %v12369_v14, %v12368_v49 }
0x3cd9   :  { %v9490_v63 = vmul.f32 0.03125, %v9486_v61  ;;  %v12363_v61 = vld [vmem:[%s18274_s9 + $0x118] sm:$0xff] }
0x3cda   :  { %v9493_v3 = vadd.f32 1e-05, %v9491_v45  ;;  %v12362_v45 = vld [vmem:[%s18274_s9 + $0x110] sm:$0xff] }
0x3cdb   :  { %v9492_v62 = vadd.f32 1e-05, %v9490_v63  ;;  %v14952_v63 = vpack.c.bf16 %v12363_v61, %v12362_v45 }
0x3cdc   :  { %15224 = vrsqrt.f32 %v9493_v3 }
0x3cdd   :  { %15226 = vrsqrt.f32 %v9492_v62  ;;  %v12333_v62 = vld [vmem:[%s18278_s30 + $0x8] ss:$0 sm:$0xff] }
0x3ce6   :  { %v15225_v34 = vpop.eup %15224 }
0x3ce7   :  { %v15227_v15 = vpop.eup %15226  ;;  %v9497_v0 = vmul.f32 %v15225_v34, %v9481_v56  ;;  %v12355_v56 = vld [vmem:[%s18273_s27 + $0x138] sm:$0xff]  ;;  %s18318_s27 = sld [smem:[#allocation32_spill]] }
0x3ce8   :  { %v9496_v12 = vmul.f32 %v15227_v15, %v9480_v9  ;;  %v14944_v35 = vpack.c.bf16 %v12355_v56, %v12354_v7 }
0x3ce9   :  { %v9503_v36 = vmul.f32 %v9501_v28, %v9497_v0 }
0x3cea   :  { %v9502_v32 = vmul.f32 %v9501_v28, %v9496_v12 }
0x3ceb   :  { %v17732_v9 = vadd.f32 %v9507_v40, %v9503_v36  ;;  %v12349_v36 = vld [vmem:[%s18279_s6 + $0x8] ss:$0 sm:$0xff] }
0x3cec   :  { %v17730_v37 = vadd.f32 %v9507_v40, %v9502_v32  ;;  %v12357_v32 = vld [vmem:[%s18279_s6 + $0x9] ss:$0 sm:$0xff] }
0x3cee   :  { %14006 = vmatprep.mubr.msk.f32.mxu0 %vm198_vm4, %v17730_v37  ;;  %14017 = vmatprep.mubr.msk.f32.mxu1 %vm198_vm4, %v17730_v37 }
0x3cef   :  { %14007 = vmatmul.mubr.msk.f32.vlgmr.msra.gmra.mrb[116].mxu0 %vm198_vm4, %v17732_v9  ;;  %14018 = vmatmul.mubr.msk.f32.vlgmr.msra.gmra.mrb[102].mxu1 %vm198_vm4, %v17732_v9 }
0x3cf0   :  { %14935 = vmatpush3.bf16.msra.mxu0 %v14932_v50  ;;  %14943 = vmatpush3.bf16.msra.mxu1 %v14940_v25  ;;  %v12370_v50 = vld [vmem:[%s18274_s9 + $0x130] sm:$0xff]  ;;  %v12371_v25 = vld [vmem:[%s18274_s9 + $0x138] sm:$0xff] }
0x3cf1   :  { %14028 = vmatprep.mubr.msk.f32.mxu0 %vm198_vm4, %v17730_v37  ;;  %14039 = vmatprep.mubr.msk.f32.mxu1 %vm198_vm4, %v17730_v37  ;;  %v14960_v3 = vpack.c.bf16 %v12371_v25, %v12370_v50 }
0x3cf2   :  { %14937 = vmatprep.subr.bf16.mxu0 %v14936_v47  ;;  %14945 = vmatprep.subr.bf16.mxu1 %v14944_v35 }
0x3cf4   :  { %14939 = vmatpush3.bf16.msra.mxu0 %v14936_v47  ;;  %14947 = vmatpush3.bf16.msra.mxu1 %v14944_v35 }
0x3cf5   :  { %14949 = vmatprep.subr.bf16.mxu0 %v14948_v57  ;;  %14957 = vmatprep.subr.bf16.mxu1 %v14956_v27 }
0x3cf7   :  { %14029 = vmatmul.mubr.msk.f32.vlgmr.msra.gmra.mrb[118].mxu0 %vm198_vm4, %v17732_v9  ;;  %14040 = vmatmul.mubr.msk.f32.vlgmr.msra.gmra.mrb[104].mxu1 %vm198_vm4, %v17732_v9 }
0x3cf8   :  { %14951 = vmatpush3.bf16.msra.mxu0 %v14948_v57  ;;  %14050 = vmatprep.mubr.msk.f32.mxu0 %vm198_vm4, %v17730_v37  ;;  %v12365_v57 = vld [vmem:[%s18280_s4 + $0x8] ss:$0 sm:$0xff] }
0x3cf9   :  { %14959 = vmatpush3.bf16.msra.mxu1 %v14956_v27  ;;  %14061 = vmatprep.mubr.msk.f32.mxu1 %vm198_vm4, %v17730_v37  ;;  %v12373_v27 = vld [vmem:[%s18280_s4 + $0x9] ss:$0 sm:$0xff] }
0x3cfa   :  { %14953 = vmatprep.subr.bf16.mxu0 %v14952_v63  ;;  %14961 = vmatprep.subr.bf16.mxu1 %v14960_v3 }
0x3cfc   :  { %14955 = vmatpush3.bf16.msra.mxu0 %v14952_v63 }
0x3cfd   :  { %14963 = vmatpush3.bf16.msra.mxu1 %v14960_v3  ;;  %14064 = vmatprep.subr.mxu0 %v18293_v23 }
0x3cfe   :  { %14074 = vmatprep.subr.mxu1 %v18293_v23 }
0x3cff   :  { %14051 = vmatmul.mubr.msk.f32.vlgmr.msra.gmra.mrb[120].mxu0 %vm198_vm4, %v17732_v9 }
0x3d00   :  { %14062 = vmatmul.mubr.msk.f32.vlgmr.msra.gmra.mrb[106].mxu1 %vm198_vm4, %v17732_v9  ;;  %14066 = vmatprep.mubr.msk.f32.mxu0 %vm15313_vm5, %v18293_v23 }
0x3d01   :  { %14076 = vmatprep.mubr.msk.f32.mxu1 %vm15313_vm5, %v18293_v23 }
0x3dc2   :  { %v14008_v28 = vpop.f32.mrb[116].mxu0  ;;  %v14019_v34 = vpop.f32.mrb[102].mxu1 }
0x3dc3   :  { %v17794_v15 = vadd.f32 %v14008_v28, %v12333_v62  ;;  %v17796_v0 = vadd.f32 %v14019_v34, %v12341_v13  ;;  %v9595_v40 = vpop.f32.mrb[117].mxu0  ;;  %v9683_v12 = vpop.f32.mrb[103].mxu1 }
0x3dc4   :  { %v9596_v49 = vadd.f32 %v12333_v62, %v9595_v40  ;;  %v9684_v14 = vadd.f32 %v12341_v13, %v9683_v12  ;;  %v12326_v13 = vld [vmem:[%s18281_s26 + $0x8] sm:$0x3] }
0x3dc5   :  { %vm9468_vm0 = vcmp.ne.s32.totalorder %v12326_v13, 0 }
0x3dc6   :  { %v17833_v28 = vsel %vm9468_vm0, 0.0, %v18305_v19 }
0x3dc7   :  { %v10124_v34 = vrot.slane %v17833_v28, %v18297_v41 }
0x3dca   :  { %v14030_v5 = vpop.f32.mrb[118].mxu0  ;;  %v14041_v21 = vpop.f32.mrb[104].mxu1 }
0x3dcb   :  { %v17804_v7 = vadd.f32 %v14030_v5, %v12349_v36  ;;  %v17806_v56 = vadd.f32 %v14041_v21, %v12357_v32  ;;  %v9771_v46 = vpop.f32.mrb[119].mxu0  ;;  %v9859_v47 = vpop.f32.mrb[105].mxu1 }
0x3dcc   :  { %v9772_v35 = vadd.f32 %v12349_v36, %v9771_v46  ;;  %v9860_v4 = vadd.f32 %v12357_v32, %v9859_v47 }
0x3dce   :  { %14065 = vmatpush3.xpose.msk.msra.mxu0 %vm766_vm6, %v9772_v35  ;;  %14075 = vmatpush3.xpose.msk.msra.mxu1 %vm766_vm6, %v9860_v4 }
0x3dcf   :  { %14069 = vmatprep.subr.mxu0 %v18293_v23  ;;  %14964 = vmatprep.subr.bf16.mxu1 %v18299_v48 }
0x3dd1   :  { %14067 = vmatmul.mubr.msk.f32.vlgmr.msra.gmra.mrb[122].mxu0 %vm766_vm6, %v9596_v49  ;;  %14077 = vmatmul.mubr.msk.f32.vlgmr.msra.gmra.mrb[108].mxu1 %vm766_vm6, %v9684_v14 }
0x3dd2   :  { %v14052_v45 = vpop.f32.mrb[120].mxu0  ;;  %14071 = vmatprep.mubr.msk.f32.mxu0 %vm15313_vm5, %v18293_v23  ;;  %14088 = vmatprep.mubr.msk.f32.mxu1 %vm15313_vm5, %v18293_v23 }
0x3dd3   :  { %v17824_v61 = vadd.f32 %v14052_v45, %v12365_v57  ;;  %v14063_v50 = vpop.f32.mrb[106].mxu1  ;;  %v9947_v25 = vpop.f32.mrb[121].mxu0 }
0x3dd4   :  { %v17826_v63 = vadd.f32 %v14063_v50, %v12373_v27  ;;  %v9948_v3 = vadd.f32 %v12365_v57, %v9947_v25  ;;  %v10035_v62 = vpop.f32.mrb[107].mxu1 }
0x3dd6   :  { %14070 = vmatpush3.msra.mxu0 %v9948_v3 }
0x3dd7   :  { %14079 = vmatprep.subr.mxu0 %v18293_v23 }
0x3ea4   :  { %v10116_v40 = vpop.f32.mrb[122].mxu0  ;;  %v10285_v12 = vpop.f32.mrb[108].mxu1 }
0x3ea5   :  { %v10120_v36 = vmul.f32 0.25, %v10116_v40  ;;  %v10289_v32 = vmul.f32 0.25, %v10285_v12  ;;  %v14068_v5 = vpop.f32.mrb[123].mxu0  ;;  %v14078_v21 = vpop.f32.mrb[109].mxu1  ;;  %v12384_v40 = vld [vmem:[%s18191_s11 + $0x90] sm:$0xff]  ;;  %v12385_v12 = vld [vmem:[%s18191_s11 + $0x98] sm:$0xff] }
0x3ea7   :  { %v10125_v46 = vadd.f32 %v10124_v34, %v10120_v36  ;;  %v10290_v47 = vadd.f32 %v10289_v32, %v10124_v34  ;;  %v14965_v36 = vpack.c.bf16 %v12385_v12, %v12384_v40 }
0x3ea9   :  { %v10291_v35 = vsel %vm849_vm8, %v10290_v47, -inf  ;;  %v10126_v4 = vsel %vm849_vm8, %v10125_v46, -inf  ;;  %14966 = vmatpush3.bf16.msra.mxu1 %v14965_v36 }
0x3eaa   :  { %10292 = vmax.xlane.f32.xlu0 %v10291_v35  ;;  %10127 = vmax.xlane.f32.xlu1 %v10126_v4  ;;  %v12380_v35 = vld [vmem:[%s18191_s11 + $0x88] sm:$0xff] }
0x3eab   :  { %14098 = vmatprep.subr.mxu1 %v18293_v23 }
0x3f37   :  { %v10293_v49 = vpop.xlane.xlu0 %10292  ;;  %v10128_v19 = vpop.xlane.xlu1 %10127 }
0x3f38   :  { %v10294_v14 = vsub.f32 %v10290_v47, %v10293_v49  ;;  %v10129_v57 = vsub.f32 %v10125_v46, %v10128_v19  ;;  %v12379_v47 = vld [vmem:[%s18191_s11 + $0x80] sm:$0xff]  ;;  %v10036_v49 = vadd.f32 %v12373_v27, %v10035_v62 }
0x3f39   :  { %v17857_v19 = vpack.c.bf16 %v12380_v35, %v12379_v47 }
0x3f3a   :  { %v10295_v45 = vmul.f32 1.442695, %v10294_v14  ;;  %v10130_v50 = vmul.f32 1.442695, %v10129_v57 }
0x3f3c   :  { %15228 = vpow2.f32 %v10295_v45 }
0x3f3d   :  { %15230 = vpow2.f32 %v10130_v50 }
0x3f46   :  { %v15229_v25 = vpop.eup %15228 }
0x3f47   :  { %v15231_v3 = vpop.eup %15230  ;;  %v10297_v13 = vsel %vm849_vm8, %v15229_v25, 0.0 }
0x3f48   :  { %10298 = vadd.xlane.f32.xlu0 %v10297_v13  ;;  %v10132_v34 = vsel %vm849_vm8, %v15231_v3, 0.0 }
0x3f49   :  { %10133 = vadd.xlane.f32.xlu1 %v10132_v34 }
0x3fd5   :  { %v10299_v32 = vpop.xlane.xlu0 %10298 }
0x3fd6   :  { %v10134_v5 = vpop.xlane.xlu1 %10133 }
0x3fd7   :  { %15232 = vrcp.f32 %v10134_v5 }
0x3fd8   :  { %15234 = vrcp.f32 %v10299_v32 }
0x3fe1   :  { %v15233_v21 = vpop.eup %15232 }
0x3fe2   :  { %v10136_v46 = vmul.f32 %v15233_v21, %v15231_v3  ;;  %v15235_v4 = vpop.eup %15234 }
0x3fe3   :  { %v10301_v14 = vmul.f32 %v15235_v4, %v15229_v25 }
0x3fe4   :  { %14072 = vmatmul.mubr.msk.f32.vlgmr.msra.gmra.mrb[124].mxu0 %vm849_vm8, %v10136_v46 }
0x3fe5   :  { %14080 = vmatpush3.msra.mxu0 %v10036_v49  ;;  %14081 = vmatprep.mubr.msk.f32.mxu0 %vm15313_vm5, %v18293_v23 }
0x3fe6   :  { %14967 = vmatprep.subr.bf16.mxu0 %v18299_v48 }
0x3fe8   :  { %14082 = vmatmul.mubr.msk.f32.vlgmr.msra.gmra.mrb[126].mxu0 %vm849_vm8, %v10301_v14  ;;  %v12397_v14 = vld [vmem:[%s18192_s12 + $0x4] ss:$0 sm:$0xff]  ;;  %s18320_s12 = sld [smem:[#allocation31_spill]] }
0x3fe9   :  { %14969 = vmatpush3.bf16.msra.mxu0 %v17857_v19  ;;  %14095 = vmatprep.mubr.msk.f32.mxu0 %vm15313_vm5, %v18293_v23 }
0x3fea   :  { %14103 = vmatprep.subr.mxu0 %v18293_v23 }
0x40b7   :  { %v10206_v27 = vpop.f32.mrb[124].mxu0 }
0x40b8   :  { %v14073_v62 = vpop.f32.mrb[125].mxu0  ;;  %14096 = vmatmul.mubr.msk.f32.vlgmr.msra.gmra.mrb[128].mxu0 %vm766_vm6, %v10206_v27 }
0x40b9   :  { %14104 = vmatpush3.msra.mxu0 %v17824_v61  ;;  %14105 = vmatprep.mubr.msk.f32.mxu0 %vm15313_vm5, %v18293_v23 }
0x40ba   :  { %14113 = vmatprep.subr.mxu0 %v18293_v23 }
0x40bb   :  { %v10371_v57 = vpop.f32.mrb[126].mxu0 }
0x40bc   :  { %v14083_v45 = vpop.f32.mrb[127].mxu0  ;;  %14089 = vmatmul.mubr.msk.f32.vlgmr.msra.gmra.mrb[110].mxu1 %vm766_vm6, %v10371_v57 }
0x40bd   :  { %14099 = vmatpush3.xpose.msk.msra.mxu1 %vm766_vm6, %v17804_v7  ;;  %14100 = vmatprep.mubr.msk.f32.mxu1 %vm15313_vm5, %v18293_v23 }
0x40be   :  { %14108 = vmatprep.subr.mxu1 %v18293_v23 }
0x40c0   :  { %14101 = vmatmul.mubr.msk.f32.vlgmr.msra.gmra.mrb[112].mxu1 %vm766_vm6, %v17794_v15 }
0x40c1   :  { %14109 = vmatpush3.xpose.msk.msra.mxu1 %vm766_vm6, %v17806_v56  ;;  %14110 = vmatprep.mubr.msk.f32.mxu1 %vm15313_vm5, %v18293_v23  ;;  %v10604_v56 = vrot.slane %v17833_v28, %v18298_v16 }
0x40c2   :  { %14970 = vmatprep.subr.bf16.mxu1 %v18299_v48 }
0x40c4   :  { %14111 = vmatmul.mubr.msk.f32.vlgmr.msra.gmra.mrb[114].mxu1 %vm766_vm6, %v17796_v0 }
0x40c5   :  { %14972 = vmatpush3.bf16.msra.mxu1 %v14965_v36  ;;  %14122 = vmatprep.mubr.msk.f32.mxu1 %vm15313_vm5, %v18293_v23 }
0x418b   :  { %v10520_v7 = vpop.f32.mrb[128].mxu0 }
0x418c   :  { %v14097_v61 = vpop.f32.mrb[129].mxu0 }
0x418f   :  { %v10447_v50 = vpop.f32.mrb[110].mxu1 }
0x4190   :  { %v10521_v25 = vadd.f32 %v10520_v7, %v10447_v50  ;;  %v14090_v15 = vpop.f32.mrb[111].mxu1 }
0x4192   :  { %v11006_v27 = vadd.f32 %v12397_v14, %v10521_v25 }
0x4193   :  { %v10596_v3 = vpop.f32.mrb[112].mxu1 }
0x4194   :  { %v10600_v13 = vmul.f32 0.25, %v10596_v3  ;;  %v14102_v34 = vpop.f32.mrb[113].mxu1  ;;  %v11010_v45 = vadd.f32 %v11006_v27, %v17730_v37 }
0x4196   :  { %v10605_v40 = vadd.f32 %v10604_v56, %v10600_v13  ;;  %v11012_v50 = vsel %vm198_vm4, %v11010_v45, 0.0 }
0x4197   :  { %v10762_v12 = vpop.f32.mrb[114].mxu1 }
0x4198   :  { %v10766_v32 = vmul.f32 0.25, %v10762_v12  ;;  %v14112_v5 = vpop.f32.mrb[115].mxu1  ;;  %v10606_v0 = vsel %vm849_vm8, %v10605_v40, -inf }
0x4199   :  { %10607 = vmax.xlane.f32.xlu1 %v10606_v0 }
0x419a   :  { %v10767_v36 = vadd.f32 %v10766_v32, %v10604_v56 }
0x419c   :  { %v10768_v21 = vsel %vm849_vm8, %v10767_v36, -inf }
0x419d   :  { %10769 = vmax.xlane.f32.xlu0 %v10768_v21 }
0x4226   :  { %v10608_v46 = vpop.xlane.xlu1 %10607 }
0x4227   :  { %v10609_v47 = vsub.f32 %v10605_v40, %v10608_v46 }
0x4229   :  { %v10610_v35 = vmul.f32 1.442695, %v10609_v47 }
0x422a   :  { %v10770_v4 = vpop.xlane.xlu0 %10769 }
0x422b   :  { %15236 = vpow2.f32 %v10610_v35  ;;  %v10771_v28 = vsub.f32 %v10767_v36, %v10770_v4 }
0x422d   :  { %v10772_v49 = vmul.f32 1.442695, %v10771_v28 }
0x422f   :  { %15238 = vpow2.f32 %v10772_v49 }
0x4235   :  { %v15237_v62 = vpop.eup %15236 }
0x4236   :  { %v10612_v57 = vsel %vm849_vm8, %v15237_v62, 0.0 }
0x4237   :  { %10613 = vadd.xlane.f32.xlu1 %v10612_v57 }
0x4239   :  { %v15239_v7 = vpop.eup %15238 }
0x423a   :  { %v10774_v61 = vsel %vm849_vm8, %v15239_v7, 0.0 }
0x423b   :  { %10775 = vadd.xlane.f32.xlu0 %v10774_v61  ;;  %11013 = vadd.xlane.f32.xlu1 %v11012_v50 }
0x42c4   :  { %v10614_v15 = vpop.xlane.xlu1 %10613 }
0x42c5   :  { %15240 = vrcp.f32 %v10614_v15 }
0x42c8   :  { %v10776_v56 = vpop.xlane.xlu0 %10775  ;;  %v11014_v3 = vpop.xlane.xlu1 %11013 }
0x42c9   :  { %15242 = vrcp.f32 %v10776_v56  ;;  %v11018_v13 = vmul.f32 0.03125, %v11014_v3 }
0x42cb   :  { %v11020_v25 = vsub.f32 %v11010_v45, %v11018_v13 }
0x42cd   :  { %v11022_v34 = vmul.f32 %v11020_v25, %v11020_v25 }
0x42cf   :  { %v15241_v40 = vpop.eup %15240  ;;  %v11024_v12 = vsel %vm198_vm4, %v11022_v34, 0.0 }
0x42d0   :  { %v10616_v37 = vmul.f32 %v15241_v40, %v15237_v62  ;;  %11025 = vadd.xlane.f32.xlu1 %v11024_v12  ;;  %v12399_v12 = vld [vmem:[%s18193_s13 + $0x80] sm:$0xff] }
0x42d2   :  { %14106 = vmatmul.mubr.msk.f32.vlgmr.msra.gmra.mrb[130].mxu0 %vm849_vm8, %v10616_v37 }
0x42d3   :  { %v15243_v32 = vpop.eup %15242  ;;  %14114 = vmatpush3.msra.mxu0 %v17826_v63  ;;  %14115 = vmatprep.mubr.msk.f32.mxu0 %vm15313_vm5, %v18293_v23  ;;  %v17911_v63 = vld [vmem:[%s18197_s17 + $0x10] sm:$0xf] }
0x42d4   :  { %v10778_v5 = vmul.f32 %v15243_v32, %v15239_v7  ;;  %14973 = vmatprep.subr.bf16.mxu0 %v18299_v48  ;;  %v11041_v35 = vrot.slane %v17911_v63, %v18297_v41  ;;  %v12402_v32 = vld [vmem:[%s18193_s13 + $0x98] sm:$0xff] }
0x42d6   :  { %14116 = vmatmul.mubr.msk.f32.vlgmr.msra.gmra.mrb[132].mxu0 %vm849_vm8, %v10778_v5 }
0x42d7   :  { %14975 = vmatpush3.bf16.msra.mxu0 %v17857_v19  ;;  %14129 = vmatprep.mubr.msk.f32.mxu0 %vm15313_vm5, %v18293_v23  ;;  %v11047_v19 = vrot.slane %v17911_v63, %v18298_v16 }
0x435d   :  { %v11026_v0 = vpop.xlane.xlu1 %11025 }
0x435e   :  { %v11030_v36 = vmul.f32 0.03125, %v11026_v0  ;;  %v12407_v0 = vld [vmem:[%s18195_s15 + $0x100] sm:$0xff] }
0x4360   :  { %v11032_v21 = vadd.f32 1e-05, %v11030_v36  ;;  %v12408_v36 = vld [vmem:[%s18195_s15 + $0x108] sm:$0xff] }
0x4362   :  { %15244 = vrsqrt.f32 %v11032_v21  ;;  %v12409_v21 = vld [vmem:[%s18195_s15 + $0x110] sm:$0xff] }
0x436c   :  { %v15245_v46 = vpop.eup %15244 }
0x436d   :  { %v11036_v47 = vmul.f32 %v15245_v46, %v11020_v25  ;;  %v14984_v46 = vpack.c.bf16 %v12408_v36, %v12407_v0  ;;  %v12419_v0 = vld [vmem:[%s18199_s19 + $0x200] sm:$0xff] }
0x436e   :  { %v12423_v36 = vld [vmem:[%s18199_s19 + $0x220] sm:$0xff] }
0x436f   :  { %v11042_v28 = vmul.f32 %v11041_v35, %v11036_v47  ;;  %v12410_v47 = vld [vmem:[%s18195_s15 + $0x118] sm:$0xff]  ;;  %14985 = vmatprep.subr.bf16.mxu0 %v14984_v46 }
0x4371   :  { %v17918_v62 = vadd.f32 %v11047_v19, %v11042_v28  ;;  %v12411_v28 = vld [vmem:[%s18195_s15 + $0x120] sm:$0xff] }
0x43a5   :  { %v10686_v4 = vpop.f32.mrb[130].mxu0 }
0x43a6   :  { %v14107_v49 = vpop.f32.mrb[131].mxu0  ;;  %14130 = vmatmul.mubr.msk.f32.vlgmr.msra.gmra.mrb[134].mxu0 %vm766_vm6, %v10686_v4  ;;  %v14988_v4 = vpack.c.bf16 %v12410_v47, %v12409_v21  ;;  %v15002_v21 = vpack.c.bf16 %v12423_v36, %v12419_v0  ;;  %v12432_v47 = vld [vmem:[%s18199_s19 + $0x268] sm:$0xff] }
0x43a7   :  { %v12412_v49 = vld [vmem:[%s18195_s15 + $0x128] sm:$0xff]  ;;  %14987 = vmatpush3.bf16.msra.mxu0 %v14984_v46 }
0x43a8   :  { %14989 = vmatprep.subr.bf16.mxu0 %v14988_v4  ;;  %v12428_v46 = vld [vmem:[%s18199_s19 + $0x248] sm:$0xff] }
0x43a9   :  { %v10848_v27 = vpop.f32.mrb[132].mxu0 }
0x43aa   :  { %v14117_v57 = vpop.f32.mrb[133].mxu0  ;;  %14123 = vmatmul.mubr.msk.f32.vlgmr.msra.gmra.mrb[116].mxu1 %vm766_vm6, %v10848_v27  ;;  %v14992_v27 = vpack.c.bf16 %v12412_v49, %v12411_v28  ;;  %v12427_v28 = vld [vmem:[%s18199_s19 + $0x240] sm:$0xff] }
0x43ab   :  { %14140 = vmatprep.mubr.msk.f32.mxu1 %vm198_vm4, %v17918_v62  ;;  %14991 = vmatpush3.bf16.msra.mxu0 %v14988_v4  ;;  %v15004_v4 = vpack.c.bf16 %v12432_v47, %v12428_v46  ;;  %v12431_v49 = vld [vmem:[%s18199_s19 + $0x260] sm:$0xff] }
0x43ac   :  { %14993 = vmatprep.subr.bf16.mxu0 %v14992_v27 }
0x43af   :  { %14995 = vmatpush3.bf16.msra.mxu0 %v14992_v27  ;;  %v15006_v27 = vpack.c.bf16 %v12431_v49, %v12427_v28 }
0x4479   :  { %v10994_v45 = vpop.f32.mrb[134].mxu0 }
0x447a   :  { %v14131_v7 = vpop.f32.mrb[135].mxu0 }
0x447d   :  { %v10921_v41 = vpop.f32.mrb[116].mxu1 }
0x447e   :  { %v10995_v61 = vadd.f32 %v10994_v45, %v10921_v41  ;;  %v14124_v50 = vpop.f32.mrb[117].mxu1 }
0x4480   :  { %v11007_v15 = vadd.f32 %v12397_v14, %v10995_v61  ;;  %v12400_v14 = vld [vmem:[%s18193_s13 + $0x88] sm:$0xff] }
0x4481   :  { %v14976_v37 = vpack.c.bf16 %v12400_v14, %v12399_v12 }
0x4482   :  { %v11011_v16 = vadd.f32 %v11007_v15, %v17732_v9  ;;  %v12401_v9 = vld [vmem:[%s18193_s13 + $0x90] sm:$0xff] }
0x4483   :  { %14977 = vmatprep.subr.bf16.mxu1 %v14976_v37  ;;  %v14980_v5 = vpack.c.bf16 %v12402_v32, %v12401_v9  ;;  %v12424_v32 = vld [vmem:[%s18199_s19 + $0x228] sm:$0xff] }
0x4484   :  { %v11015_v56 = vsel %vm198_vm4, %v11011_v16, 0.0  ;;  %14979 = vmatpush3.bf16.msra.mxu1 %v14976_v37 }
0x4485   :  { %11016 = vadd.xlane.f32.xlu0 %v11015_v56  ;;  %14981 = vmatprep.subr.bf16.mxu1 %v14980_v5  ;;  %v12414_v56 = vld [vmem:[%s18195_s15 + $0x138] sm:$0xff] }
0x4488   :  { %14983 = vmatpush3.bf16.msra.mxu1 %v14980_v5 }
0x4512   :  { %v11017_v3 = vpop.xlane.xlu0 %11016 }
0x4513   :  { %v11019_v13 = vmul.f32 0.03125, %v11017_v3 }
0x4515   :  { %v11021_v25 = vsub.f32 %v11011_v16, %v11019_v13  ;;  %v12413_v16 = vld [vmem:[%s18195_s15 + $0x130] sm:$0xff]  ;;  %s18321_s15 = sld [smem:[#allocation33_spill]] }
0x4516   :  { %v14996_v3 = vpack.c.bf16 %v12414_v56, %v12413_v16 }
0x4517   :  { %v11023_v34 = vmul.f32 %v11021_v25, %v11021_v25 }
0x4518   :  { %14997 = vmatprep.subr.bf16.mxu0 %v14996_v3 }
0x4519   :  { %v11027_v40 = vsel %vm198_vm4, %v11023_v34, 0.0  ;;  %14999 = vmatpush3.bf16.msra.mxu0 %v14996_v3 }
0x451a   :  { %11028 = vadd.xlane.f32.xlu0 %v11027_v40  ;;  %15017 = vmatprep.subr.bf16.mxu0 %v18301_v20 }
0x45a7   :  { %v11029_v57 = vpop.xlane.xlu0 %11028 }
0x45a8   :  { %v11031_v45 = vmul.f32 0.03125, %v11029_v57  ;;  %v12422_v57 = vld [vmem:[%s18199_s19 + $0x218] sm:$0xff] }
0x45aa   :  { %v11033_v7 = vadd.f32 1e-05, %v11031_v45  ;;  %v12426_v45 = vld [vmem:[%s18199_s19 + $0x238] sm:$0xff] }
0x45ac   :  { %15246 = vrsqrt.f32 %v11033_v7  ;;  %v15008_v7 = vpack.c.bf16 %v12426_v45, %v12422_v57  ;;  %v15284_v45 = vld [vmem:[%s18198_s18 + $0x18] sm:$0xff] }
0x45b6   :  { %v15247_v41 = vpop.eup %15246 }
0x45b7   :  { %v11037_v61 = vmul.f32 %v15247_v41, %v11021_v25 }
0x45b9   :  { %v11043_v50 = vmul.f32 %v11041_v35, %v11037_v61  ;;  %v12404_v35 = vld [vmem:[%s18194_s14 + $0x4] ss:$0 sm:$0xff] }
0x45bb   :  { %v11049_v15 = vadd.f32 %v11047_v19, %v11043_v50 }
0x45bd   :  { %14141 = vmatmul.mubr.msk.f32.vlgmr.msra.gmra.mrb[118].mxu1 %vm198_vm4, %v11049_v15 }
0x45be   :  { %11371 = vmatprep.mubr.f32.mxu1 %v18293_v23 }
0x4690   :  { %v14142_v19 = vpop.f32.mrb[118].mxu1 }
0x4691   :  { %v11141_v13 = vadd.f32 %v14142_v19, %v12404_v35  ;;  %v11135_v25 = vpop.f32.mrb[119].mxu1 }
0x4692   :  { %v11136_v34 = vadd.f32 %v12404_v35, %v11135_v25  ;;  %v11275_v35 = vrot.slane %v17911_v63, %v18302_v22  ;;  %v11281_v25 = vrot.slane %v17911_v63, %v18303_v30  ;;  %v12434_v22 = vld [vmem:[%s18199_s19 + $0x278] sm:$0xff] }
0x4693   :  { %v11145_v12 = vmax.f32 %v11141_v13, 0.0 }
0x4694   :  { %v11144_v40 = vmax.f32 %v11136_v34, 0.0  ;;  %v12421_v34 = vld [vmem:[%s18199_s19 + $0x210] sm:$0xff] }
0x4696   :  { %14159 = vmatprep.mubr.msk.f32.mxu0 %vm1880_vm10, %v11144_v40  ;;  %v12425_v40 = vld [vmem:[%s18199_s19 + $0x230] sm:$0xff] }
0x4697   :  { %14160 = vmatmul.mubr.msk.f32.vlgmr.msra.gmra.mrb[136].mxu0 %vm1880_vm10, %v11145_v12 }
0x4698   :  { %15019 = vmatpush3.bf16.msra.mxu0 %v16340_v52  ;;  %v12416_v52 = vld [vmem:[%s18196_s16 + $0x4] ss:$0 sm:$0xff]  ;;  %s15316_s16 = smov [#allocation2]  }
0x4699   :  { %15021 = vmatprep.subr.bf16.mxu0 %v16342_v26  ;;  %s11856_s17 = sshll.u32 %s15316_s16, 4  ;;  %s11857_s17 = int_to_ptr.vmem [resolvable:$true] %s11856_s17 }
0x469a   :  { %s15287_s3 = scalar_lea.vmem %s11857_s17, 32  ;;  %p15292_p1 = scmp.lt.s32.totalorder %s11857_s17, %s11857_s17 }
0x469b   :  { %p15288_p0 = scmp.ne.s32.totalorder %s11857_s17, %s15287_s3  ;;  %p15293_p2 = scmp.lt.s32.totalorder %s15287_s3, %s15287_s3 }
0x469c   :  { %15023 = vmatpush3.bf16.msra.mxu0 %v16358_v2 }
0x469d   :  { %15025 = vmatprep.subr.bf16.mxu0 %v16361_v58  ;;  %p15294_p3 = por %p15293_p2, %p15292_p1 }
0x469f   :  { %p15295_p4 = pnand %p15294_p3, %p15288_p0 }
0x46a0   :  { %15027 = vmatpush3.bf16.msra.mxu0 %v16370_v6 }
0x46a1   :  { %15029 = vmatprep.subr.bf16.mxu0 %v16432_v42 }
0x46a4   :  { %15031 = vmatpush3.bf16.msra.mxu0 %v16445_v51 }
0x46a5   :  { %15033 = vmatprep.subr.bf16.mxu0 %v16468_v43 }
0x46a8   :  { %15035 = vmatpush3.bf16.msra.mxu0 %v16481_v10 }
0x46a9   :  { %15037 = vmatprep.subr.bf16.mxu0 %v16504_v60 }
0x46ac   :  { %15039 = vmatpush3.bf16.msra.mxu0 %v16517_v1 }
0x46ad   :  { %15041 = vmatprep.subr.bf16.mxu0 %v16540_v29 }
0x46b0   :  { %15043 = vmatpush3.bf16.msra.mxu0 %v16553_v39 }
0x46b1   :  { %15045 = vmatprep.subr.bf16.mxu0 %v16576_v55 }
0x46b4   :  { %15047 = vmatpush3.bf16.msra.mxu0 %v16589_v24 }
0x46b5   :  { %15080 = vmatprep.subr.bf16.mxu0 %v18299_v48 }
0x476a   :  { %v14161_v26 = vpop.f32.mrb[136].mxu0 }
0x476b   :  { %v11241_v2 = vadd.f32 %v14161_v26, %v12416_v52  ;;  %v11235_v58 = vpop.f32.mrb[137].mxu0 }
0x476c   :  { %v11236_v6 = vadd.f32 %v12416_v52, %v11235_v58  ;;  %v12430_v52 = vld [vmem:[%s18199_s19 + $0x258] sm:$0xff] }
0x476d   :  { %v11245_v42 = vadd.f32 %v11241_v2, %v11049_v15  ;;  %v15010_v2 = vpack.c.bf16 %v12425_v40, %v12421_v34  ;;  %v15012_v58 = vpack.c.bf16 %v12434_v22, %v12430_v52  ;;  %v15286_v52 = vld [vmem:[%s18198_s18 + $0x38] sm:$0xff] }
0x476e   :  { %v11244_v51 = vadd.f32 %v11236_v6, %v17918_v62  ;;  %v12420_v62 = vld [vmem:[%s18199_s19 + $0x208] sm:$0xff]  ;;  %v12429_v6 = vld [vmem:[%s18199_s19 + $0x250] sm:$0xff] }
0x476f   :  { %v11249_v43 = vsel %vm198_vm4, %v11245_v42, 0.0  ;;  %v15000_v5 = vpack.c.bf16 %v12424_v32, %v12420_v62 }
0x4770   :  { %11250 = vadd.xlane.f32.xlu0 %v11249_v43  ;;  %v11246_v10 = vsel %vm198_vm4, %v11244_v51, 0.0 }
0x4771   :  { %11247 = vadd.xlane.f32.xlu1 %v11246_v10  ;;  %15001 = vmatprep.subr.bf16.mxu1 %v15000_v5  ;;  %v18314_v10 = vld [vmem:[#allocation15_spill] sm:$0xff] }
0x4772   :  { %15003 = vmatpush1.bf16.msra.mxu1 %v15002_v21 }
0x4773   :  { %15005 = vmatprep.subr.bf16.mxu1 %v15004_v4  ;;  %v15283_v4 = vld [vmem:[%s18198_s18 + $0x10] sm:$0xff] }
0x4776   :  { %15007 = vmatpush1.bf16.msra.mxu1 %v15006_v27 }
0x4777   :  { %15009 = vmatprep.subr.bf16.mxu1 %v15008_v7 }
0x47fd   :  { %v11251_v60 = vpop.xlane.xlu0 %11250 }
0x47fe   :  { %v11253_v1 = vmul.f32 0.03125, %v11251_v60  ;;  %v11248_v29 = vpop.xlane.xlu1 %11247 }
0x47ff   :  { %v11252_v39 = vmul.f32 0.03125, %v11248_v29 }
0x4800   :  { %v11255_v55 = vsub.f32 %v11245_v42, %v11253_v1  ;;  %v12433_v42 = vld [vmem:[%s18199_s19 + $0x270] sm:$0xff] }
0x4801   :  { %v11254_v24 = vsub.f32 %v11244_v51, %v11252_v39  ;;  %v15014_v51 = vpack.c.bf16 %v12433_v42, %v12429_v6 }
0x4802   :  { %v11257_v20 = vmul.f32 %v11255_v55, %v11255_v55 }
0x4803   :  { %v11256_v14 = vmul.f32 %v11254_v24, %v11254_v24 }
0x4804   :  { %v11261_v37 = vsel %vm198_vm4, %v11257_v20, 0.0 }
0x4805   :  { %11262 = vadd.xlane.f32.xlu0 %v11261_v37  ;;  %v11258_v9 = vsel %vm198_vm4, %v11256_v14, 0.0 }
0x4806   :  { %11259 = vadd.xlane.f32.xlu1 %v11258_v9  ;;  %v15282_v9 = vld [vmem:[%s18198_s18 + $0x28] sm:$0xff] }
0x4892   :  { %v11263_v41 = vpop.xlane.xlu0 %11262 }
0x4893   :  { %v11265_v61 = vmul.f32 0.03125, %v11263_v41  ;;  %v11260_v50 = vpop.xlane.xlu1 %11259 }
0x4894   :  { %v11264_v15 = vmul.f32 0.03125, %v11260_v50 }
0x4895   :  { %v11267_v16 = vadd.f32 1e-05, %v11265_v61 }
0x4896   :  { %v11266_v56 = vadd.f32 1e-05, %v11264_v15 }
0x4897   :  { %15248 = vrsqrt.f32 %v11267_v16 }
0x4898   :  { %15250 = vrsqrt.f32 %v11266_v56 }
0x48a1   :  { %v15249_v3 = vpop.eup %15248 }
0x48a2   :  { %v15251_v19 = vpop.eup %15250  ;;  %v11271_v12 = vmul.f32 %v15249_v3, %v11255_v55 }
0x48a3   :  { %v11270_v13 = vmul.f32 %v15251_v19, %v11254_v24  ;;  %v15281_v24 = vld [vmem:[%s18198_s18 + $0x20] sm:$0xff]  ;;  %v15285_v19 = vld [vmem:[%s18198_s18 + $0x30] sm:$0xff] }
0x48a4   :  { %v11277_v63 = vmul.f32 %v11275_v35, %v11271_v12 }
0x48a5   :  { %v11276_v26 = vmul.f32 %v11275_v35, %v11270_v13 }
0x48a6   :  { %v11283_v43 = vadd.f32 %v11281_v25, %v11277_v63 }
0x48a7   :  { %v11282_v30 = vadd.f32 %v11281_v25, %v11276_v26 }
0x48a9   :  { %12435 = vmatmul.mubr.msk.f32.vlgmr.msra.gmra.mrb[120].mxu1 %vm198_vm4, %v11282_v30 }
0x48aa   :  { %15011 = vmatpush1.bf16.msra.mxu1 %v15010_v2  ;;  %11377 = vmatprep.mubr.f32.mxu1 %v18293_v23 }
0x48ab   :  { %15013 = vmatprep.subr.bf16.mxu1 %v15012_v58 }
0x48ad   :  { %12436 = vmatmul.mubr.msk.f32.gmra.mrb[122].mxu1 %vm198_vm4, %v11283_v43 }
0x48ae   :  { %15015 = vmatpush1.bf16.msra.mxu1 %v15014_v51  ;;  %11448 = vmatprep.mubr.f32.mxu1 %v18293_v23 }
0x48af   :  { %15049 = vmatprep.subr.bf16.mxu1 %v18304_v59  ;;  %v18311_v59 = vld [vmem:[#allocation12_spill] sm:$0xff] }
0x48b1   :  { %12437 = vmatmul.mubr.msk.f32.vlgmr.msra.gmra.mrb[124].mxu1 %vm198_vm4, %v11282_v30 }
0x48b2   :  { %11454 = vmatprep.mubr.f32.mxu1 %v18293_v23  ;;  %15051 = vmatpush3.bf16.msra.mxu1 %v16416_v38  ;;  %v18312_v38 = vld [vmem:[#allocation13_spill] sm:$0xff] }
0x48b3   :  { %15053 = vmatprep.subr.bf16.mxu1 %v16443_v54  ;;  %v18313_v54 = vld [vmem:[#allocation14_spill] sm:$0xff] }
0x48b5   :  { %12438 = vmatmul.mubr.msk.f32.gmra.mrb[126].mxu1 %vm198_vm4, %v11283_v43 }
0x48b6   :  { %15055 = vmatpush3.bf16.msra.mxu1 %v16454_v53  ;;  %v18315_v53 = vld [vmem:[#allocation16_spill] sm:$0xff] }
0x48b7   :  { %15057 = vmatprep.subr.bf16.mxu1 %v16479_v8  ;;  %v18316_v8 = vld [vmem:[#allocation17_spill] sm:$0xff] }
0x48ba   :  { %15059 = vmatpush3.bf16.msra.mxu1 %v16490_v18 }
0x48bb   :  { %15061 = vmatprep.subr.bf16.mxu1 %v16515_v17  ;;  %v15279_v17 = vld [vmem:[%s18198_s18] sm:$0xff] }
0x48be   :  { %15063 = vmatpush3.bf16.msra.mxu1 %v16526_v11 }
0x48bf   :  { %15065 = vmatprep.subr.bf16.mxu1 %v16551_v33 }
0x48c2   :  { %15067 = vmatpush3.bf16.msra.mxu1 %v16562_v44  ;;  %v15280_v44 = vld [vmem:[%s18198_s18 + $0x8] sm:$0xff] }
0x48c3   :  { %15069 = vmatprep.subr.bf16.mxu1 %v18311_v59 }
0x48c6   :  { %15071 = vmatpush3.bf16.msra.mxu1 %v18312_v38 }
0x48c7   :  { %15073 = vmatprep.subr.bf16.mxu1 %v18313_v54 }
0x48ca   :  { %15075 = vmatpush3.bf16.msra.mxu1 %v18314_v10 }
0x48cb   :  { %15077 = vmatprep.subr.bf16.mxu1 %v18315_v53 }
0x48ce   :  { %15079 = vmatpush3.bf16.msra.mxu1 %v18316_v8 }
0x48cf   :  { %15092 = vmatprep.subr.bf16.mxu1 %v18299_v48 }
0x497c   :  { %v11373_v18 = vpop.f32.mrb[120].mxu1 }
0x497d   :  { %v11461_v11 = vmul.f32 %v15279_v17, %v11373_v18  ;;  %v11375_v33 = vpop.f32.mrb[121].mxu1 }
0x497e   :  { %v11462_v60 = vmul.f32 %v15280_v44, %v11375_v33 }
0x497f   :  { %v11469_v1 = vrot.slane %v11461_v11, 4 }
0x4980   :  { %v11475_v29 = vrot.slane %v11462_v60, 4  ;;  %v11379_v39 = vpop.f32.mrb[122].mxu1 }
0x4981   :  { %v11470_v55 = vadd.f32 %v11469_v1, %v11461_v11  ;;  %v11465_v20 = vmul.f32 %v15281_v24, %v11379_v39  ;;  %v11381_v14 = vpop.f32.mrb[123].mxu1 }
0x4982   :  { %v11476_v37 = vadd.f32 %v11475_v29, %v11462_v60  ;;  %v11466_v62 = vmul.f32 %v15282_v9, %v11381_v14 }
0x4983   :  { %v11471_v32 = vrot.slane %v11470_v55, 2  ;;  %v11493_v5 = vrot.slane %v11465_v20, 4 }
0x4984   :  { %v11477_v0 = vrot.slane %v11476_v37, 2  ;;  %v11499_v36 = vrot.slane %v11466_v62, 4  ;;  %v11450_v21 = vpop.f32.mrb[124].mxu1 }
0x4985   :  { %v11472_v46 = vadd.f32 %v11471_v32, %v11470_v55  ;;  %v11494_v47 = vadd.f32 %v11493_v5, %v11465_v20  ;;  %v11463_v28 = vmul.f32 %v15283_v4, %v11450_v21  ;;  %v11452_v49 = vpop.f32.mrb[125].mxu1  ;;  %v11672_v32 = vld [vmem:[%s18317_s0 + $0x8] sm:$0xff]  ;;  %v11675_v21 = vld [vmem:[%s18317_s0 + $0x20] sm:$0xff]  ;;  %v11677_v4 = vld [vmem:[%s18317_s0 + $0x30] sm:$0xff] }
0x4986   :  { %v11478_v27 = vadd.f32 %v11477_v0, %v11476_v37  ;;  %v11500_v57 = vadd.f32 %v11499_v36, %v11466_v62  ;;  %v11464_v7 = vmul.f32 %v15284_v45, %v11452_v49  ;;  %v11671_v62 = vld [vmem:[%s18317_s0] sm:$0xff]  ;;  %v11673_v0 = vld [vmem:[%s18317_s0 + $0x10] sm:$0xff] }
0x4987   :  { %v11495_v41 = vrot.slane %v11494_v47, 2  ;;  %v11481_v61 = vrot.slane %v11463_v28, 4  ;;  %v11473_v56 = vrot.slane %v11472_v46, 1  ;;  %v15081_v5 = vpack.c.bf16 %v11672_v32, %v11671_v62  ;;  %v11762_v45 = vld [vmem:[%s18318_s27 + $0x10] sm:$0xff] }
0x4988   :  { %v11501_v50 = vrot.slane %v11500_v57, 2  ;;  %v11487_v15 = vrot.slane %v11464_v7, 4  ;;  %v11456_v16 = vpop.f32.mrb[126].mxu1  ;;  %v11479_v34 = vrot.slane %v11478_v27, 1 }
0x4989   :  { %v11496_v3 = vadd.f32 %v11495_v41, %v11494_v47  ;;  %v11482_v35 = vadd.f32 %v11481_v61, %v11463_v28  ;;  %v11467_v13 = vmul.f32 %v15285_v19, %v11456_v16  ;;  %v11458_v25 = vpop.f32.mrb[127].mxu1  ;;  %v11474_v42 = vadd.f32 %v11473_v56, %v11472_v46  ;;  %v11676_v46 = vld [vmem:[%s18317_s0 + $0x28] sm:$0xff]  ;;  %v11678_v28 = vld [vmem:[%s18317_s0 + $0x38] sm:$0xff] }
0x498a   :  { %v11502_v40 = vadd.f32 %v11501_v50, %v11500_v57  ;;  %v11488_v12 = vadd.f32 %v11487_v15, %v11464_v7  ;;  %v11468_v22 = vmul.f32 %v15286_v52, %v11458_v25  ;;  %v11480_v10 = vadd.f32 %v11479_v34, %v11478_v27  ;;  %v11760_v27 = vld [vmem:[%s18318_s27] sm:$0xff]  ;;  %v11761_v57 = vld [vmem:[%s18318_s27 + $0x8] sm:$0xff]  ;;  %v11763_v41 = vld [vmem:[%s18318_s27 + $0x18] sm:$0xff] }
0x498b   :  { %v11497_v26 = vrot.slane %v11496_v3, 1  ;;  %v11483_v2 = vrot.slane %v11482_v35, 2  ;;  %v11505_v30 = vrot.slane %v11467_v13, 4  ;;  %v15087_v47 = vpack.c.bf16 %v11676_v46, %v11675_v21  ;;  %v11764_v50 = vld [vmem:[%s18318_s27 + $0x20] sm:$0xff]  ;;  %v11765_v15 = vld [vmem:[%s18318_s27 + $0x28] sm:$0xff] }
0x498c   :  { %v11503_v63 = vrot.slane %v11502_v40, 1  ;;  %v11489_v58 = vrot.slane %v11488_v12, 2  ;;  %v11511_v6 = vrot.slane %v11468_v22, 4  ;;  %v15090_v49 = vpack.c.bf16 %v11678_v28, %v11677_v4 }
0x498d   :  { %v11498_v51 = vadd.f32 %v11497_v26, %v11496_v3  ;;  %v11484_v43 = vadd.f32 %v11483_v2, %v11482_v35  ;;  %v11506_v59 = vadd.f32 %v11505_v30, %v11467_v13  ;;  %v15093_v7 = vpack.c.bf16 %v11761_v57, %v11760_v27  ;;  %v11767_v26 = vld [vmem:[%s18318_s27 + $0x38] sm:$0xff]  ;;  %v12440_v30 = vld [vmem:[%s18320_s12] ss:$0 sm:$0xff] }
0x498e   :  { %v11490_v38 = vadd.f32 %v11489_v58, %v11488_v12  ;;  %v11512_v54 = vadd.f32 %v11511_v6, %v11468_v22  ;;  %v11504_v53 = vadd.f32 %v11503_v63, %v11502_v40  ;;  %v15096_v61 = vpack.c.bf16 %v11763_v41, %v11762_v45  ;;  %v12439_v40 = vld [vmem:[%s18319_s22] ss:$0 sm:$0xff] }
0x498f   :  { %v11507_v8 = vrot.slane %v11506_v59, 2  ;;  %v11517_v18 = vsel %vm2242_vm12, %v11474_v42, %v11498_v51  ;;  %v11485_v33 = vrot.slane %v11484_v43, 1  ;;  %v15099_v16 = vpack.c.bf16 %v11765_v15, %v11764_v50  ;;  %v12442_v42 = vld [vmem:[%s18321_s15] ss:$0 sm:$0xff] }
0x4990   :  { %v11513_v17 = vrot.slane %v11512_v54, 2  ;;  %v11518_v11 = vsel %vm2242_vm12, %v11480_v10, %v11504_v53  ;;  %v11491_v60 = vrot.slane %v11490_v38, 1 }
0x4991   :  { %v11508_v44 = vadd.f32 %v11507_v8, %v11506_v59  ;;  %11585 = vmatprep.mubr.f32.mxu0 %v11518_v11  ;;  %v11486_v55 = vadd.f32 %v11485_v33, %v11484_v43 }
0x4992   :  { %v11514_v1 = vadd.f32 %v11513_v17, %v11512_v54  ;;  %11586 = vmatmul.mubr.f32.vlgmr.msra.gmra.mrb[138].mxu0 %v11517_v18  ;;  %v11492_v20 = vadd.f32 %v11491_v60, %v11490_v38 }
0x4993   :  { %v11509_v29 = vrot.slane %v11508_v44, 1  ;;  %14178 = vmatprep.mubr.msk.f32.mxu0 %vm15313_vm5, %v18293_v23  ;;  %15082 = vmatpush3.bf16.msra.mxu0 %v15081_v5 }
0x4994   :  { %v11515_v39 = vrot.slane %v11514_v1, 1  ;;  %15083 = vmatprep.subr.bf16.mxu0 %v18299_v48 }
0x4995   :  { %v11510_v24 = vadd.f32 %v11509_v29, %v11508_v44 }
0x4996   :  { %v11516_v14 = vadd.f32 %v11515_v39, %v11514_v1 }
0x4997   :  { %v11519_v37 = vsel %vm2242_vm12, %v11486_v55, %v11510_v24 }
0x4998   :  { %v11520_v9 = vsel %vm2242_vm12, %v11492_v20, %v11516_v14 }
0x4999   :  { %11655 = vmatprep.mubr.f32.mxu1 %v11520_v9 }
0x499a   :  { %11656 = vmatmul.mubr.f32.vlgmr.msra.gmra.mrb[128].mxu1 %v11519_v37 }
0x499b   :  { %14197 = vmatprep.mubr.msk.f32.mxu1 %vm15313_vm5, %v18293_v23  ;;  %v11674_v23 = vld [vmem:[%s18317_s0 + $0x18] sm:$0xff]  ;;  %15094 = vmatpush3.bf16.msra.mxu1 %v15093_v7 }
0x499c   :  { %v15084_v36 = vpack.c.bf16 %v11674_v23, %v11673_v0  ;;  %15095 = vmatprep.subr.bf16.mxu1 %v18299_v48 }
0x499e   :  { %15085 = vmatpush3.bf16.msra.mxu0 %v15084_v36 }
0x499f   :  { %15086 = vmatprep.subr.bf16.mxu0 %v18299_v48  ;;  %15097 = vmatpush3.bf16.msra.mxu1 %v15096_v61 }
0x49a0   :  { %15098 = vmatprep.subr.bf16.mxu1 %v18299_v48 }
0x49a2   :  { %15088 = vmatpush3.bf16.msra.mxu0 %v15087_v47 }
0x49a3   :  { %15089 = vmatprep.subr.bf16.mxu0 %v18299_v48  ;;  %15100 = vmatpush3.bf16.msra.mxu1 %v15099_v16 }
0x49a4   :  { %15101 = vmatprep.subr.bf16.mxu1 %v18299_v48  ;;  %v11766_v48 = vld [vmem:[%s18318_s27 + $0x30] sm:$0xff] }
0x49a5   :  { %v15102_v2 = vpack.c.bf16 %v11767_v26, %v11766_v48 }
0x49a6   :  { %15091 = vmatpush3.bf16.msra.mxu0 %v15090_v49 }
0x49a7   :  { %15103 = vmatpush3.bf16.msra.mxu1 %v15102_v2 }
0x4a65   :  { %v13201_v56 = vpop.f32.mrb[138].mxu0 }
0x4a66   :  { %v13202_v3 = vpop.f32.mrb[139].mxu0 }
0x4a67   :  { %v13203_v35 = vadd.f32 %v13202_v3, %v13201_v56 }
0x4a6d   :  { %v13236_v19 = vpop.f32.mrb[128].mxu1 }
0x4a6e   :  { %v13237_v13 = vpop.f32.mrb[129].mxu1 }
0x4a6f   :  { %v13238_v25 = vadd.f32 %v13237_v13, %v13236_v19 }
0x4a71   :  { %v11658_v34 = vadd.f32 %v13238_v25, %v13203_v35 }
0x4a73   :  { %v11661_v12 = vadd.f32 %v11658_v34, %v17668_v31 }
0x4a75   :  { %v11669_v52 = vadd.f32 %v12439_v40, %v11661_v12 }
0x4a77   :  { %v11670_v22 = vmax.f32 %v11669_v52, 0.0 }
0x4a79   :  { %14179 = vmatmul.mubr.msk.f32.vlgmr.msra.gmra.mrb[140].mxu0 %vm1880_vm10, %v11670_v22 }
0x4b4c   :  { %v11755_v63 = vpop.f32.mrb[140].mxu0 }
0x4b4d   :  { %v11756_v31 = vadd.f32 %v12440_v30, %v11755_v63  ;;  %v14180_v58 = vpop.f32.mrb[141].mxu0 }
0x4b4f   :  { %v11759_v6 = vmax.f32 %v11756_v31, 0.0 }
0x4b51   :  { %14198 = vmatmul.mubr.msk.f32.vlgmr.msra.gmra.mrb[130].mxu1 %vm1880_vm10, %v11759_v6 }
0x4c24   :  { %v11844_v51 = vpop.f32.mrb[130].mxu1 }
0x4c25   :  { %v11845_v43 = vadd.f32 %v12442_v42, %v11844_v51  ;;  %v14199_v59 = vpop.f32.mrb[131].mxu1 }
0x4c27   :  { %11849 = vst.msk [vmem:[#allocation2] sm:$0x3] %vm11848_vm1, %v11845_v43 }
0x4c28   :  { %15298 = shalt.err (!%p15295_p4)
}
0x4c29   :  { %s18322_s7 = sld [smem:[#allocation34_spill]] }
0x4c2f   :  { %s15299_s8 = scalar_lea.hbm %s18322_s7, 32 }
0x4c30   :  { %p15300_p5 = scmp.ne.s32.totalorder %s18322_s7, %s15299_s8  ;;  %p15303_p6 = scmp.lt.u32.totalorder %s15299_s8, %s18322_s7 }
0x4c32   :  { %p15305_p7 = pnand %p15303_p6, %p15300_p5 }
0x4c34   :  { %15308 = shalt.err (!%p15305_p7)
}
0x4c35   :  { %11859 = dma.vmem_to_hbm [thread:$0]  %s11857_s17, 32, %s18322_s7, [#allocation3]  }
0x4c36   :  { %15309 = dma.done.wait [#allocation3], 32  }
0x4c37   :  { %15310 = vsyncadd [#allocation3], 4294967264 }
0x4c38   :  { %11863 = vsyncpa [#allocation3], 1 }

</bundles_post_ra>
